<compile_context>
chip_gen: v6e
topology: v6e:2x2x1
jax: 0.10.0
libtpu: 0.0.40
codegen_flags: <defaults>
</compile_context>

<pallas_src>
import math
import jax
import jax.numpy as jnp
from jax.experimental import pallas as pl
from jax.experimental.pallas import tpu as pltpu

LEAK = 0.2
BN_EPS = 0.8   # nn.BatchNorm2d(out, 0.8): second positional arg is eps

_LAYER_CFG = [
    # (cin, cout, stride, pad, bn)
    (3,   16,  2, 1, False),
    (16,  32,  1, 0, True),
    (32,  64,  2, 1, True),
    (64,  128, 1, 0, True),
    (128, 256, 2, 1, True),
    (256, 512, 1, 0, True),
]


def _round_up(v, m):
    return (v + m - 1) // m * m


def _build_plan():
    """Static (Python) per-layer packing/tiling plan."""
    plan = []
    c_store = _LAYER_CFG[0][0]   # channels as stored in the incoming activation
    ones_idx = None              # index of the constant-1 channel (None if absent)
    n_layers = len(_LAYER_CFG)
    for li, (cin, cout, stride, pad, bn) in enumerate(_LAYER_CFG):
        is_last = li == n_layers - 1
        n_out = max(_round_up(cout, 128), 128)   # lane-dense output (>=128)
        k_data = 9 * c_store                     # im2col K before padding
        if ones_idx is not None:
            # Input carries a constant-1 channel: fold bias into the centre-tap
            # weight row (the centre tap never reads spatial zero-padding).
            kp = k_data
            bias_row = 4 * c_store + ones_idx
            set_ones_col = False
        elif k_data % 128 != 0:
            # K padding exists anyway -> free bias column (layer 1).
            kp = max(_round_up(k_data + 1, 128), 128)
            bias_row = k_data
            set_ones_col = True
        else:
            kp = k_data
            bias_row = None          # bias added in the kernel epilogue
            set_ones_col = False
        emit_ones = (not is_last) and (cout < n_out)
        plan.append(dict(cin=cin, cout=cout, stride=stride, pad=pad, bn=bn,
                         c_store_in=c_store, kp=kp, n_out=n_out,
                         bias_row=bias_row, set_ones_col=set_ones_col,
                         emit_ones=emit_ones,
                         out_dtype=jnp.float32 if is_last else jnp.bfloat16))
        c_store = n_out
        ones_idx = cout if emit_ones else None
    return plan


_PLAN = _build_plan()


# ---- Fused block kernels ---------------------------------------------------

def _block_kernel_folded(x_ref, w_ref, aux_ref, o_ref):
    # Conv bias already folded into the weight matrix via a ones column/channel.
    acc = jnp.dot(x_ref[...], w_ref[...], preferred_element_type=jnp.float32)
    acc = jnp.where(acc > 0, acc, LEAK * acc)         # LeakyReLU(0.2)
    aux = aux_ref[...]                                # (3, Np): [bias, scale, shift]
    # Dropout2d(0.25) is identity in eval mode; BN(eval) folded to scale/shift.
    o_ref[...] = (acc * aux[1:2, :] + aux[2:3, :]).astype(o_ref.dtype)


def _block_kernel_bias(x_ref, w_ref, aux_ref, o_ref):
    acc = jnp.dot(x_ref[...], w_ref[...], preferred_element_type=jnp.float32)
    aux = aux_ref[...]
    acc = acc + aux[0:1, :]                           # conv bias
    acc = jnp.where(acc > 0, acc, LEAK * acc)         # LeakyReLU(0.2)
    o_ref[...] = (acc * aux[1:2, :] + aux[2:3, :]).astype(o_ref.dtype)


# ---- One ConvDrop_ACGAN block ----------------------------------------------

def _conv_block(a, wm, aux, p):
    """a: (N,H,W,C) bf16 channel-padded activation -> (N,OH,OW,Np) activation."""
    N, H, W, C = a.shape
    stride, pad = p["stride"], p["pad"]
    OH = (H + 2 * pad - 3) // stride + 1
    OW = (W + 2 * pad - 3) // stride + 1
    kp, n_out = p["kp"], p["n_out"]

    ap = jnp.pad(a, ((0, 0), (pad, pad), (pad, pad), (0, 0))) if pad else a

    # im2col (XLA glue); patch order (i, j, channel) matches the packed weight.
    patches = [ap[:, i:i + stride * OH:stride, j:j + stride * OW:stride, :]
               for i in range(3) for j in range(3)]
    patches = jnp.concatenate(patches, axis=-1)
    M = N * OH * OW
    k_data = 9 * C
    xm = patches.reshape(M, k_data)

    tm = min(256, _round_up(M, 16))       # bf16 sublane packing -> 16-row tiles
    Mp = _round_up(M, tm)
    if Mp != M or kp != k_data or p["set_ones_col"]:
        xm_p = jnp.zeros((Mp, kp), jnp.bfloat16).at[:M, :k_data].set(xm)
        if p["set_ones_col"]:
            xm_p = xm_p.at[:, k_data].set(1.0)        # folded-bias ones column
    else:
        xm_p = xm

    kernel = _block_kernel_folded if p["bias_row"] is not None else _block_kernel_bias

    out = pl.pallas_call(
        kernel,
        out_shape=jax.ShapeDtypeStruct((Mp, n_out), p["out_dtype"]),
        grid=(Mp // tm,),
        in_specs=[
            pl.BlockSpec((tm, kp), lambda i: (i, 0)),
            pl.BlockSpec((kp, n_out), lambda i: (0, 0)),
            pl.BlockSpec((3, n_out), lambda i: (0, 0)),
        ],
        out_specs=pl.BlockSpec((tm, n_out), lambda i: (i, 0)),
        compiler_params=pltpu.CompilerParams(
            dimension_semantics=("parallel",),
            vmem_limit_bytes=32 * 1024 * 1024),
    )(xm_p, wm, aux)

    return out[:M].reshape(N, OH, OW, n_out)


# ---- Parameters -------------------------------------------------------------

def init_params(key):
    params = []
    for (cin, cout, _, _, _) in _LAYER_CFG:
        key, kw, kb = jax.random.split(key, 3)
        fan_in = cin * 9
        bound = 1.0 / math.sqrt(fan_in)          # PyTorch default conv init range
        w = jax.random.uniform(kw, (3, 3, cin, cout), jnp.float32,
                               minval=-bound, maxval=bound)
        b = jax.random.uniform(kb, (cout,), jnp.float32,
                               minval=-bound, maxval=bound)
        gamma = jnp.ones((cout,), jnp.float32)   # PyTorch BN default init
        beta = jnp.zeros((cout,), jnp.float32)
        params.append((w, b, gamma, beta))
    return params


def pack_params(params):
    """One-time packing: padded bf16 weight matrices + merged (3,Np) aux."""
    packed = []
    for (w, b, gamma, beta), p in zip(params, _PLAN):
        cs, cin, cout = p["c_store_in"], p["cin"], p["cout"]
        kp, n_out = p["kp"], p["n_out"]
        wm = jnp.zeros((kp, n_out), jnp.float32)
        for t in range(9):
            i, j = divmod(t, 3)
            wm = wm.at[t * cs:t * cs + cin, :cout].set(w[i, j])
        if p["bias_row"] is not None:
            wm = wm.at[p["bias_row"], :cout].set(b)
        wm = wm.astype(jnp.bfloat16)

        if p["bn"]:
            scale = gamma / jnp.sqrt(1.0 + BN_EPS)   # running mean=0, var=1 (eval)
            shift = beta
        else:
            scale = jnp.ones((cout,), jnp.float32)
            shift = jnp.zeros((cout,), jnp.float32)
        aux = jnp.zeros((3, n_out), jnp.float32)
        if p["bias_row"] is None:
            aux = aux.at[0, :cout].set(b)
        aux = aux.at[1, :cout].set(scale)
        aux = aux.at[2, :cout].set(shift)
        if p["emit_ones"]:
            aux = aux.at[2, cout].set(1.0)           # constant-1 channel for next layer
        packed.append((wm, aux))
    return packed


# ---- Net forward -------------------------------------------------------------

def net_forward(x_nchw, packed_params):
    a = jnp.transpose(x_nchw, (0, 2, 3, 1)).astype(jnp.bfloat16)   # NCHW -> NHWC
    for (wm, aux), p in zip(packed_params, _PLAN):
        a = _conv_block(a, wm, aux, p)
    # back to NCHW (PyTorch forward has no return; we return conv6's output)
    return jnp.transpose(a, (0, 3, 1, 2))


def net_reference(x_nchw, params):
    """Pure-JAX f32 reference (eval-mode semantics), used only for validation."""
    out = jnp.transpose(x_nchw, (0, 2, 3, 1)).astype(jnp.float32)
    for (w, b, gamma, beta), (cin, cout, stride, pad, bn) in zip(params, _LAYER_CFG):
        out = jax.lax.conv_general_dilated(
            out, w, window_strides=(stride, stride),
            padding=((pad, pad), (pad, pad)),
            dimension_numbers=("NHWC", "HWIO", "NHWC"))
        out = out + b
        out = jnp.where(out > 0, out, LEAK * out)
        if bn:
            out = out * (gamma / jnp.sqrt(1.0 + BN_EPS)) + beta
    return jnp.transpose(out, (0, 3, 1, 2))


if __name__ == "__main__":
    key = jax.random.PRNGKey(0)
    k_in, k_par = jax.random.split(key)
    # 32x32 is the smallest spatial size the 6-block stack supports.
    x = jax.random.normal(k_in, (2, 3, 32, 32), jnp.float32)   # NCHW
    params = init_params(k_par)
    packed = pack_params(params)

    out = jax.jit(net_forward)(x, packed)
    out = jax.block_until_ready(out)
    assert out.shape == (2, 512, 1, 1), out.shape
    assert bool(jnp.all(jnp.isfinite(out)))

    # Loose validation against an f32 XLA reference (bf16 matmuls => tolerance).
    ref = jax.block_until_ready(jax.jit(net_reference)(x, params))
    err = float(jnp.max(jnp.abs(out - ref)) / (jnp.max(jnp.abs(ref)) + 1e-12))
    assert err < 0.2, f"mismatch vs f32 reference: rel-to-max err = {err}"

    print("KERNEL_OK")
</pallas_src>

<mosaic_0001>
module attributes {stable_mosaic.version = 11 : i64} {
  func.func @_block_kernel_folded(%arg0: i32, %arg1: memref<256x128xbf16, #tpu.memory_space<vmem>>, %arg2: memref<128x128xbf16, #tpu.memory_space<vmem>>, %arg3: memref<3x128xf32, #tpu.memory_space<vmem>>, %arg4: memref<256x128xbf16, #tpu.memory_space<vmem>>) attributes {dimension_semantics = [#tpu.dimension_semantics<parallel>], iteration_bounds = array<i64: 2>, scalar_prefetch = 0 : i64, scratch_operands = 0 : i64, tpu.core_type = #tpu.core_type<tc>, window_params = [{transform_indices = @transform_0, window_bounds = array<i64: 256, 128>}, {pipeline_mode = #tpu.pipeline_mode<synchronous>, transform_indices = @transform_1, window_bounds = array<i64: 128, 128>}, {pipeline_mode = #tpu.pipeline_mode<synchronous>, transform_indices = @transform_2, window_bounds = array<i64: 3, 128>}, {transform_indices = @transform_3, window_bounds = array<i64: 256, 128>}]} {
    %c0 = arith.constant 0 : index
    %c0_0 = arith.constant 0 : index
    %0 = vector.load %arg1[%c0, %c0_0] : memref<256x128xbf16, #tpu.memory_space<vmem>>, vector<256x128xbf16>
    %c0_1 = arith.constant 0 : index
    %c0_2 = arith.constant 0 : index
    %1 = vector.load %arg2[%c0_1, %c0_2] : memref<128x128xbf16, #tpu.memory_space<vmem>>, vector<128x128xbf16>
    %cst = arith.constant dense<0.000000e+00> : vector<256x128xf32>
    %2 = tpu.matmul %0, %1, %cst {dimension_numbers = #tpu.dot_dimension_numbers<[1], [0], [0], [1], [0, 0, 1, 1], [], []>} : vector<256x128xbf16>, vector<128x128xbf16>, vector<256x128xf32> -> vector<256x128xf32>
    %cst_3 = arith.constant 0.000000e+00 : f32
    %3 = vector.broadcast %cst_3 : f32 to vector<256x128xf32>
    %4 = arith.cmpf ogt, %2, %3 : vector<256x128xf32>
    %cst_4 = arith.constant 2.000000e-01 : f32
    %5 = vector.broadcast %cst_4 : f32 to vector<256x128xf32>
    %6 = arith.mulf %5, %2 : vector<256x128xf32>
    %7 = arith.select %4, %2, %6 : vector<256x128xi1>, vector<256x128xf32>
    %c0_5 = arith.constant 0 : index
    %c0_6 = arith.constant 0 : index
    %8 = vector.load %arg3[%c0_5, %c0_6] : memref<3x128xf32, #tpu.memory_space<vmem>>, vector<3x128xf32>
    %9 = vector.extract_strided_slice %8 {offsets = [1, 0], sizes = [1, 128], strides = [1, 1]} : vector<3x128xf32> to vector<1x128xf32>
    %10 = vector.broadcast %9 : vector<1x128xf32> to vector<256x128xf32>
    %11 = arith.mulf %7, %10 : vector<256x128xf32>
    %12 = vector.extract_strided_slice %8 {offsets = [2, 0], sizes = [1, 128], strides = [1, 1]} : vector<3x128xf32> to vector<1x128xf32>
    %13 = vector.broadcast %12 : vector<1x128xf32> to vector<256x128xf32>
    %14 = arith.addf %11, %13 : vector<256x128xf32>
    %15 = arith.truncf %14 : vector<256x128xf32> to vector<256x128xbf16>
    %c0_7 = arith.constant 0 : index
    %c0_8 = arith.constant 0 : index
    %16 = vector.load %arg4[%c0_7, %c0_8] : memref<256x128xbf16, #tpu.memory_space<vmem>>, vector<256x128xbf16>
    tpu.vector_store %arg4[%c0_7, %c0_8], %15 {strides = array<i32>} : memref<256x128xbf16, #tpu.memory_space<vmem>>, vector<256x128xbf16>,
    return
  }
  func.func @transform_0(%arg0: i32) -> (i32, i32) {
    %c0_i32 = arith.constant 0 : i32
    %c0_i32_0 = arith.constant 0 : i32
    return %arg0, %c0_i32 : i32, i32
  }
  func.func @transform_1(%arg0: i32) -> (i32, i32) {
    %c0_i32 = arith.constant 0 : i32
    %c0_i32_0 = arith.constant 0 : i32
    %c0_i32_1 = arith.constant 0 : i32
    return %c0_i32, %c0_i32_0 : i32, i32
  }
  func.func @transform_2(%arg0: i32) -> (i32, i32) {
    %c0_i32 = arith.constant 0 : i32
    %c0_i32_0 = arith.constant 0 : i32
    %c0_i32_1 = arith.constant 0 : i32
    return %c0_i32, %c0_i32_0 : i32, i32
  }
  func.func @transform_3(%arg0: i32) -> (i32, i32) {
    %c0_i32 = arith.constant 0 : i32
    %c0_i32_0 = arith.constant 0 : i32
    return %arg0, %c0_i32 : i32, i32
  }
}

module attributes {stable_mosaic.version = 11 : i64} {
  func.func @_block_kernel_folded(%arg0: i32, %arg1: memref<256x1152xbf16, #tpu.memory_space<vmem>>, %arg2: memref<1152x128xbf16, #tpu.memory_space<vmem>>, %arg3: memref<3x128xf32, #tpu.memory_space<vmem>>, %arg4: memref<256x128xbf16, #tpu.memory_space<vmem>>) attributes {dimension_semantics = [#tpu.dimension_semantics<parallel>], iteration_bounds = array<i64: 2>, scalar_prefetch = 0 : i64, scratch_operands = 0 : i64, tpu.core_type = #tpu.core_type<tc>, window_params = [{transform_indices = @transform_0, window_bounds = array<i64: 256, 1152>}, {pipeline_mode = #tpu.pipeline_mode<synchronous>, transform_indices = @transform_1, window_bounds = array<i64: 1152, 128>}, {pipeline_mode = #tpu.pipeline_mode<synchronous>, transform_indices = @transform_2, window_bounds = array<i64: 3, 128>}, {transform_indices = @transform_3, window_bounds = array<i64: 256, 128>}]} {
    %c0 = arith.constant 0 : index
    %c0_0 = arith.constant 0 : index
    %0 = vector.load %arg1[%c0, %c0_0] : memref<256x1152xbf16, #tpu.memory_space<vmem>>, vector<256x1152xbf16>
    %c0_1 = arith.constant 0 : index
    %c0_2 = arith.constant 0 : index
    %1 = vector.load %arg2[%c0_1, %c0_2] : memref<1152x128xbf16, #tpu.memory_space<vmem>>, vector<1152x128xbf16>
    %cst = arith.constant dense<0.000000e+00> : vector<256x128xf32>
    %2 = tpu.matmul %0, %1, %cst {dimension_numbers = #tpu.dot_dimension_numbers<[1], [0], [0], [1], [0, 0, 1, 1], [], []>} : vector<256x1152xbf16>, vector<1152x128xbf16>, vector<256x128xf32> -> vector<256x128xf32>
    %cst_3 = arith.constant 0.000000e+00 : f32
    %3 = vector.broadcast %cst_3 : f32 to vector<256x128xf32>
    %4 = arith.cmpf ogt, %2, %3 : vector<256x128xf32>
    %cst_4 = arith.constant 2.000000e-01 : f32
    %5 = vector.broadcast %cst_4 : f32 to vector<256x128xf32>
    %6 = arith.mulf %5, %2 : vector<256x128xf32>
    %7 = arith.select %4, %2, %6 : vector<256x128xi1>, vector<256x128xf32>
    %c0_5 = arith.constant 0 : index
    %c0_6 = arith.constant 0 : index
    %8 = vector.load %arg3[%c0_5, %c0_6] : memref<3x128xf32, #tpu.memory_space<vmem>>, vector<3x128xf32>
    %9 = vector.extract_strided_slice %8 {offsets = [1, 0], sizes = [1, 128], strides = [1, 1]} : vector<3x128xf32> to vector<1x128xf32>
    %10 = vector.broadcast %9 : vector<1x128xf32> to vector<256x128xf32>
    %11 = arith.mulf %7, %10 : vector<256x128xf32>
    %12 = vector.extract_strided_slice %8 {offsets = [2, 0], sizes = [1, 128], strides = [1, 1]} : vector<3x128xf32> to vector<1x128xf32>
    %13 = vector.broadcast %12 : vector<1x128xf32> to vector<256x128xf32>
    %14 = arith.addf %11, %13 : vector<256x128xf32>
    %15 = arith.truncf %14 : vector<256x128xf32> to vector<256x128xbf16>
    %c0_7 = arith.constant 0 : index
    %c0_8 = arith.constant 0 : index
    %16 = vector.load %arg4[%c0_7, %c0_8] : memref<256x128xbf16, #tpu.memory_space<vmem>>, vector<256x128xbf16>
    tpu.vector_store %arg4[%c0_7, %c0_8], %15 {strides = array<i32>} : memref<256x128xbf16, #tpu.memory_space<vmem>>, vector<256x128xbf16>,
    return
  }
  func.func @transform_0(%arg0: i32) -> (i32, i32) {
    %c0_i32 = arith.constant 0 : i32
    %c0_i32_0 = arith.constant 0 : i32
    return %arg0, %c0_i32 : i32, i32
  }
  func.func @transform_1(%arg0: i32) -> (i32, i32) {
    %c0_i32 = arith.constant 0 : i32
    %c0_i32_0 = arith.constant 0 : i32
    %c0_i32_1 = arith.constant 0 : i32
    return %c0_i32, %c0_i32_0 : i32, i32
  }
  func.func @transform_2(%arg0: i32) -> (i32, i32) {
    %c0_i32 = arith.constant 0 : i32
    %c0_i32_0 = arith.constant 0 : i32
    %c0_i32_1 = arith.constant 0 : i32
    return %c0_i32, %c0_i32_0 : i32, i32
  }
  func.func @transform_3(%arg0: i32) -> (i32, i32) {
    %c0_i32 = arith.constant 0 : i32
    %c0_i32_0 = arith.constant 0 : i32
    return %arg0, %c0_i32 : i32, i32
  }
}

module attributes {stable_mosaic.version = 11 : i64} {
  func.func @_block_kernel_folded(%arg0: i32, %arg1: memref<112x1152xbf16, #tpu.memory_space<vmem>>, %arg2: memref<1152x128xbf16, #tpu.memory_space<vmem>>, %arg3: memref<3x128xf32, #tpu.memory_space<vmem>>, %arg4: memref<112x128xbf16, #tpu.memory_space<vmem>>) attributes {dimension_semantics = [#tpu.dimension_semantics<parallel>], iteration_bounds = array<i64: 1>, scalar_prefetch = 0 : i64, scratch_operands = 0 : i64, tpu.core_type = #tpu.core_type<tc>, window_params = [{transform_indices = @transform_0, window_bounds = array<i64: 112, 1152>}, {pipeline_mode = #tpu.pipeline_mode<synchronous>, transform_indices = @transform_1, window_bounds = array<i64: 1152, 128>}, {pipeline_mode = #tpu.pipeline_mode<synchronous>, transform_indices = @transform_2, window_bounds = array<i64: 3, 128>}, {transform_indices = @transform_3, window_bounds = array<i64: 112, 128>}]} {
    %c0 = arith.constant 0 : index
    %c0_0 = arith.constant 0 : index
    %0 = vector.load %arg1[%c0, %c0_0] : memref<112x1152xbf16, #tpu.memory_space<vmem>>, vector<112x1152xbf16>
    %c0_1 = arith.constant 0 : index
    %c0_2 = arith.constant 0 : index
    %1 = vector.load %arg2[%c0_1, %c0_2] : memref<1152x128xbf16, #tpu.memory_space<vmem>>, vector<1152x128xbf16>
    %cst = arith.constant dense<0.000000e+00> : vector<112x128xf32>
    %2 = tpu.matmul %0, %1, %cst {dimension_numbers = #tpu.dot_dimension_numbers<[1], [0], [0], [1], [0, 0, 1, 1], [], []>} : vector<112x1152xbf16>, vector<1152x128xbf16>, vector<112x128xf32> -> vector<112x128xf32>
    %cst_3 = arith.constant 0.000000e+00 : f32
    %3 = vector.broadcast %cst_3 : f32 to vector<112x128xf32>
    %4 = arith.cmpf ogt, %2, %3 : vector<112x128xf32>
    %cst_4 = arith.constant 2.000000e-01 : f32
    %5 = vector.broadcast %cst_4 : f32 to vector<112x128xf32>
    %6 = arith.mulf %5, %2 : vector<112x128xf32>
    %7 = arith.select %4, %2, %6 : vector<112x128xi1>, vector<112x128xf32>
    %c0_5 = arith.constant 0 : index
    %c0_6 = arith.constant 0 : index
    %8 = vector.load %arg3[%c0_5, %c0_6] : memref<3x128xf32, #tpu.memory_space<vmem>>, vector<3x128xf32>
    %9 = vector.extract_strided_slice %8 {offsets = [1, 0], sizes = [1, 128], strides = [1, 1]} : vector<3x128xf32> to vector<1x128xf32>
    %10 = vector.broadcast %9 : vector<1x128xf32> to vector<112x128xf32>
    %11 = arith.mulf %7, %10 : vector<112x128xf32>
    %12 = vector.extract_strided_slice %8 {offsets = [2, 0], sizes = [1, 128], strides = [1, 1]} : vector<3x128xf32> to vector<1x128xf32>
    %13 = vector.broadcast %12 : vector<1x128xf32> to vector<112x128xf32>
    %14 = arith.addf %11, %13 : vector<112x128xf32>
    %15 = arith.truncf %14 : vector<112x128xf32> to vector<112x128xbf16>
    %c0_7 = arith.constant 0 : index
    %c0_8 = arith.constant 0 : index
    %16 = vector.load %arg4[%c0_7, %c0_8] : memref<112x128xbf16, #tpu.memory_space<vmem>>, vector<112x128xbf16>
    tpu.vector_store %arg4[%c0_7, %c0_8], %15 {strides = array<i32>} : memref<112x128xbf16, #tpu.memory_space<vmem>>, vector<112x128xbf16>,
    return
  }
  func.func @transform_0(%arg0: i32) -> (i32, i32) {
    %c0_i32 = arith.constant 0 : i32
    %c0_i32_0 = arith.constant 0 : i32
    return %arg0, %c0_i32 : i32, i32
  }
  func.func @transform_1(%arg0: i32) -> (i32, i32) {
    %c0_i32 = arith.constant 0 : i32
    %c0_i32_0 = arith.constant 0 : i32
    %c0_i32_1 = arith.constant 0 : i32
    return %c0_i32, %c0_i32_0 : i32, i32
  }
  func.func @transform_2(%arg0: i32) -> (i32, i32) {
    %c0_i32 = arith.constant 0 : i32
    %c0_i32_0 = arith.constant 0 : i32
    %c0_i32_1 = arith.constant 0 : i32
    return %c0_i32, %c0_i32_0 : i32, i32
  }
  func.func @transform_3(%arg0: i32) -> (i32, i32) {
    %c0_i32 = arith.constant 0 : i32
    %c0_i32_0 = arith.constant 0 : i32
    return %arg0, %c0_i32 : i32, i32
  }
}

module attributes {stable_mosaic.version = 11 : i64} {
  func.func @_block_kernel_folded(%arg0: i32, %arg1: memref<64x1152xbf16, #tpu.memory_space<vmem>>, %arg2: memref<1152x128xbf16, #tpu.memory_space<vmem>>, %arg3: memref<3x128xf32, #tpu.memory_space<vmem>>, %arg4: memref<64x128xbf16, #tpu.memory_space<vmem>>) attributes {dimension_semantics = [#tpu.dimension_semantics<parallel>], iteration_bounds = array<i64: 1>, scalar_prefetch = 0 : i64, scratch_operands = 0 : i64, tpu.core_type = #tpu.core_type<tc>, window_params = [{transform_indices = @transform_0, window_bounds = array<i64: 64, 1152>}, {pipeline_mode = #tpu.pipeline_mode<synchronous>, transform_indices = @transform_1, window_bounds = array<i64: 1152, 128>}, {pipeline_mode = #tpu.pipeline_mode<synchronous>, transform_indices = @transform_2, window_bounds = array<i64: 3, 128>}, {transform_indices = @transform_3, window_bounds = array<i64: 64, 128>}]} {
    %c0 = arith.constant 0 : index
    %c0_0 = arith.constant 0 : index
    %0 = vector.load %arg1[%c0, %c0_0] : memref<64x1152xbf16, #tpu.memory_space<vmem>>, vector<64x1152xbf16>
    %c0_1 = arith.constant 0 : index
    %c0_2 = arith.constant 0 : index
    %1 = vector.load %arg2[%c0_1, %c0_2] : memref<1152x128xbf16, #tpu.memory_space<vmem>>, vector<1152x128xbf16>
    %cst = arith.constant dense<0.000000e+00> : vector<64x128xf32>
    %2 = tpu.matmul %0, %1, %cst {dimension_numbers = #tpu.dot_dimension_numbers<[1], [0], [0], [1], [0, 0, 1, 1], [], []>} : vector<64x1152xbf16>, vector<1152x128xbf16>, vector<64x128xf32> -> vector<64x128xf32>
    %cst_3 = arith.constant 0.000000e+00 : f32
    %3 = vector.broadcast %cst_3 : f32 to vector<64x128xf32>
    %4 = arith.cmpf ogt, %2, %3 : vector<64x128xf32>
    %cst_4 = arith.constant 2.000000e-01 : f32
    %5 = vector.broadcast %cst_4 : f32 to vector<64x128xf32>
    %6 = arith.mulf %5, %2 : vector<64x128xf32>
    %7 = arith.select %4, %2, %6 : vector<64x128xi1>, vector<64x128xf32>
    %c0_5 = arith.constant 0 : index
    %c0_6 = arith.constant 0 : index
    %8 = vector.load %arg3[%c0_5, %c0_6] : memref<3x128xf32, #tpu.memory_space<vmem>>, vector<3x128xf32>
    %9 = vector.extract_strided_slice %8 {offsets = [1, 0], sizes = [1, 128], strides = [1, 1]} : vector<3x128xf32> to vector<1x128xf32>
    %10 = vector.broadcast %9 : vector<1x128xf32> to vector<64x128xf32>
    %11 = arith.mulf %7, %10 : vector<64x128xf32>
    %12 = vector.extract_strided_slice %8 {offsets = [2, 0], sizes = [1, 128], strides = [1, 1]} : vector<3x128xf32> to vector<1x128xf32>
    %13 = vector.broadcast %12 : vector<1x128xf32> to vector<64x128xf32>
    %14 = arith.addf %11, %13 : vector<64x128xf32>
    %15 = arith.truncf %14 : vector<64x128xf32> to vector<64x128xbf16>
    %c0_7 = arith.constant 0 : index
    %c0_8 = arith.constant 0 : index
    %16 = vector.load %arg4[%c0_7, %c0_8] : memref<64x128xbf16, #tpu.memory_space<vmem>>, vector<64x128xbf16>
    tpu.vector_store %arg4[%c0_7, %c0_8], %15 {strides = array<i32>} : memref<64x128xbf16, #tpu.memory_space<vmem>>, vector<64x128xbf16>,
    return
  }
  func.func @transform_0(%arg0: i32) -> (i32, i32) {
    %c0_i32 = arith.constant 0 : i32
    %c0_i32_0 = arith.constant 0 : i32
    return %arg0, %c0_i32 : i32, i32
  }
  func.func @transform_1(%arg0: i32) -> (i32, i32) {
    %c0_i32 = arith.constant 0 : i32
    %c0_i32_0 = arith.constant 0 : i32
    %c0_i32_1 = arith.constant 0 : i32
    return %c0_i32, %c0_i32_0 : i32, i32
  }
  func.func @transform_2(%arg0: i32) -> (i32, i32) {
    %c0_i32 = arith.constant 0 : i32
    %c0_i32_0 = arith.constant 0 : i32
    %c0_i32_1 = arith.constant 0 : i32
    return %c0_i32, %c0_i32_0 : i32, i32
  }
  func.func @transform_3(%arg0: i32) -> (i32, i32) {
    %c0_i32 = arith.constant 0 : i32
    %c0_i32_0 = arith.constant 0 : i32
    return %arg0, %c0_i32 : i32, i32
  }
}

module attributes {stable_mosaic.version = 11 : i64} {
  func.func @_block_kernel_bias(%arg0: i32, %arg1: memref<32x1152xbf16, #tpu.memory_space<vmem>>, %arg2: memref<1152x256xbf16, #tpu.memory_space<vmem>>, %arg3: memref<3x256xf32, #tpu.memory_space<vmem>>, %arg4: memref<32x256xbf16, #tpu.memory_space<vmem>>) attributes {dimension_semantics = [#tpu.dimension_semantics<parallel>], iteration_bounds = array<i64: 1>, scalar_prefetch = 0 : i64, scratch_operands = 0 : i64, tpu.core_type = #tpu.core_type<tc>, window_params = [{transform_indices = @transform_0, window_bounds = array<i64: 32, 1152>}, {pipeline_mode = #tpu.pipeline_mode<synchronous>, transform_indices = @transform_1, window_bounds = array<i64: 1152, 256>}, {pipeline_mode = #tpu.pipeline_mode<synchronous>, transform_indices = @transform_2, window_bounds = array<i64: 3, 256>}, {transform_indices = @transform_3, window_bounds = array<i64: 32, 256>}]} {
    %c0 = arith.constant 0 : index
    %c0_0 = arith.constant 0 : index
    %0 = vector.load %arg1[%c0, %c0_0] : memref<32x1152xbf16, #tpu.memory_space<vmem>>, vector<32x1152xbf16>
    %c0_1 = arith.constant 0 : index
    %c0_2 = arith.constant 0 : index
    %1 = vector.load %arg2[%c0_1, %c0_2] : memref<1152x256xbf16, #tpu.memory_space<vmem>>, vector<1152x256xbf16>
    %cst = arith.constant dense<0.000000e+00> : vector<32x256xf32>
    %2 = tpu.matmul %0, %1, %cst {dimension_numbers = #tpu.dot_dimension_numbers<[1], [0], [0], [1], [0, 0, 1, 1], [], []>} : vector<32x1152xbf16>, vector<1152x256xbf16>, vector<32x256xf32> -> vector<32x256xf32>
    %c0_3 = arith.constant 0 : index
    %c0_4 = arith.constant 0 : index
    %3 = vector.load %arg3[%c0_3, %c0_4] : memref<3x256xf32, #tpu.memory_space<vmem>>, vector<3x256xf32>
    %4 = vector.extract_strided_slice %3 {offsets = [0, 0], sizes = [1, 256], strides = [1, 1]} : vector<3x256xf32> to vector<1x256xf32>
    %5 = vector.broadcast %4 : vector<1x256xf32> to vector<32x256xf32>
    %6 = arith.addf %2, %5 : vector<32x256xf32>
    %cst_5 = arith.constant 0.000000e+00 : f32
    %7 = vector.broadcast %cst_5 : f32 to vector<32x256xf32>
    %8 = arith.cmpf ogt, %6, %7 : vector<32x256xf32>
    %cst_6 = arith.constant 2.000000e-01 : f32
    %9 = vector.broadcast %cst_6 : f32 to vector<32x256xf32>
    %10 = arith.mulf %9, %6 : vector<32x256xf32>
    %11 = arith.select %8, %6, %10 : vector<32x256xi1>, vector<32x256xf32>
    %12 = vector.extract_strided_slice %3 {offsets = [1, 0], sizes = [1, 256], strides = [1, 1]} : vector<3x256xf32> to vector<1x256xf32>
    %13 = vector.broadcast %12 : vector<1x256xf32> to vector<32x256xf32>
    %14 = arith.mulf %11, %13 : vector<32x256xf32>
    %15 = vector.extract_strided_slice %3 {offsets = [2, 0], sizes = [1, 256], strides = [1, 1]} : vector<3x256xf32> to vector<1x256xf32>
    %16 = vector.broadcast %15 : vector<1x256xf32> to vector<32x256xf32>
    %17 = arith.addf %14, %16 : vector<32x256xf32>
    %18 = arith.truncf %17 : vector<32x256xf32> to vector<32x256xbf16>
    %c0_7 = arith.constant 0 : index
    %c0_8 = arith.constant 0 : index
    %19 = vector.load %arg4[%c0_7, %c0_8] : memref<32x256xbf16, #tpu.memory_space<vmem>>, vector<32x256xbf16>
    tpu.vector_store %arg4[%c0_7, %c0_8], %18 {strides = array<i32>} : memref<32x256xbf16, #tpu.memory_space<vmem>>, vector<32x256xbf16>,
    return
  }
  func.func @transform_0(%arg0: i32) -> (i32, i32) {
    %c0_i32 = arith.constant 0 : i32
    %c0_i32_0 = arith.constant 0 : i32
    return %arg0, %c0_i32 : i32, i32
  }
  func.func @transform_1(%arg0: i32) -> (i32, i32) {
    %c0_i32 = arith.constant 0 : i32
    %c0_i32_0 = arith.constant 0 : i32
    %c0_i32_1 = arith.constant 0 : i32
    return %c0_i32, %c0_i32_0 : i32, i32
  }
  func.func @transform_2(%arg0: i32) -> (i32, i32) {
    %c0_i32 = arith.constant 0 : i32
    %c0_i32_0 = arith.constant 0 : i32
    %c0_i32_1 = arith.constant 0 : i32
    return %c0_i32, %c0_i32_0 : i32, i32
  }
  func.func @transform_3(%arg0: i32) -> (i32, i32) {
    %c0_i32 = arith.constant 0 : i32
    %c0_i32_0 = arith.constant 0 : i32
    return %arg0, %c0_i32 : i32, i32
  }
}

module attributes {stable_mosaic.version = 11 : i64} {
  func.func @_block_kernel_bias(%arg0: i32, %arg1: memref<16x2304xbf16, #tpu.memory_space<vmem>>, %arg2: memref<2304x512xbf16, #tpu.memory_space<vmem>>, %arg3: memref<3x512xf32, #tpu.memory_space<vmem>>, %arg4: memref<16x512xf32, #tpu.memory_space<vmem>>) attributes {dimension_semantics = [#tpu.dimension_semantics<parallel>], iteration_bounds = array<i64: 1>, scalar_prefetch = 0 : i64, scratch_operands = 0 : i64, tpu.core_type = #tpu.core_type<tc>, window_params = [{transform_indices = @transform_0, window_bounds = array<i64: 16, 2304>}, {pipeline_mode = #tpu.pipeline_mode<synchronous>, transform_indices = @transform_1, window_bounds = array<i64: 2304, 512>}, {pipeline_mode = #tpu.pipeline_mode<synchronous>, transform_indices = @transform_2, window_bounds = array<i64: 3, 512>}, {transform_indices = @transform_3, window_bounds = array<i64: 16, 512>}]} {
    %c0 = arith.constant 0 : index
    %c0_0 = arith.constant 0 : index
    %0 = vector.load %arg1[%c0, %c0_0] : memref<16x2304xbf16, #tpu.memory_space<vmem>>, vector<16x2304xbf16>
    %c0_1 = arith.constant 0 : index
    %c0_2 = arith.constant 0 : index
    %1 = vector.load %arg2[%c0_1, %c0_2] : memref<2304x512xbf16, #tpu.memory_space<vmem>>, vector<2304x512xbf16>
    %cst = arith.constant dense<0.000000e+00> : vector<16x512xf32>
    %2 = tpu.matmul %0, %1, %cst {dimension_numbers = #tpu.dot_dimension_numbers<[1], [0], [0], [1], [0, 0, 1, 1], [], []>} : vector<16x2304xbf16>, vector<2304x512xbf16>, vector<16x512xf32> -> vector<16x512xf32>
    %c0_3 = arith.constant 0 : index
    %c0_4 = arith.constant 0 : index
    %3 = vector.load %arg3[%c0_3, %c0_4] : memref<3x512xf32, #tpu.memory_space<vmem>>, vector<3x512xf32>
    %4 = vector.extract_strided_slice %3 {offsets = [0, 0], sizes = [1, 512], strides = [1, 1]} : vector<3x512xf32> to vector<1x512xf32>
    %5 = vector.broadcast %4 : vector<1x512xf32> to vector<16x512xf32>
    %6 = arith.addf %2, %5 : vector<16x512xf32>
    %cst_5 = arith.constant 0.000000e+00 : f32
    %7 = vector.broadcast %cst_5 : f32 to vector<16x512xf32>
    %8 = arith.cmpf ogt, %6, %7 : vector<16x512xf32>
    %cst_6 = arith.constant 2.000000e-01 : f32
    %9 = vector.broadcast %cst_6 : f32 to vector<16x512xf32>
    %10 = arith.mulf %9, %6 : vector<16x512xf32>
    %11 = arith.select %8, %6, %10 : vector<16x512xi1>, vector<16x512xf32>
    %12 = vector.extract_strided_slice %3 {offsets = [1, 0], sizes = [1, 512], strides = [1, 1]} : vector<3x512xf32> to vector<1x512xf32>
    %13 = vector.broadcast %12 : vector<1x512xf32> to vector<16x512xf32>
    %14 = arith.mulf %11, %13 : vector<16x512xf32>
    %15 = vector.extract_strided_slice %3 {offsets = [2, 0], sizes = [1, 512], strides = [1, 1]} : vector<3x512xf32> to vector<1x512xf32>
    %16 = vector.broadcast %15 : vector<1x512xf32> to vector<16x512xf32>
    %17 = arith.addf %14, %16 : vector<16x512xf32>
    %c0_7 = arith.constant 0 : index
    %c0_8 = arith.constant 0 : index
    %18 = vector.load %arg4[%c0_7, %c0_8] : memref<16x512xf32, #tpu.memory_space<vmem>>, vector<16x512xf32>
    tpu.vector_store %arg4[%c0_7, %c0_8], %17 {strides = array<i32>} : memref<16x512xf32, #tpu.memory_space<vmem>>, vector<16x512xf32>,
    return
  }
  func.func @transform_0(%arg0: i32) -> (i32, i32) {
    %c0_i32 = arith.constant 0 : i32
    %c0_i32_0 = arith.constant 0 : i32
    return %arg0, %c0_i32 : i32, i32
  }
  func.func @transform_1(%arg0: i32) -> (i32, i32) {
    %c0_i32 = arith.constant 0 : i32
    %c0_i32_0 = arith.constant 0 : i32
    %c0_i32_1 = arith.constant 0 : i32
    return %c0_i32, %c0_i32_0 : i32, i32
  }
  func.func @transform_2(%arg0: i32) -> (i32, i32) {
    %c0_i32 = arith.constant 0 : i32
    %c0_i32_0 = arith.constant 0 : i32
    %c0_i32_1 = arith.constant 0 : i32
    return %c0_i32, %c0_i32_0 : i32, i32
  }
  func.func @transform_3(%arg0: i32) -> (i32, i32) {
    %c0_i32 = arith.constant 0 : i32
    %c0_i32_0 = arith.constant 0 : i32
    return %arg0, %c0_i32 : i32, i32
  }
}

</mosaic_0001>

<bundles_post_ra>
// kernel: net_forward.6
= control target key start
LH: loop header
LB: loop body
LE: loop exit
PB: predicated region body
PF: predicated region fallthrough
CT: control target
= control target key end

     0   :  { %s1255_s12 = smov 0   ;;  %s1412_s0 = inlined_call_operand.vmem [shape: bf16[512,128], index: 0, kind: input, shape index: {}]   ;;  %s1413_s1 = inlined_call_operand.vmem [shape: bf16[128,128], index: 1, kind: input, shape index: {}]   ;;  %s1414_s2 = inlined_call_operand.vmem [shape: f32[3,128], index: 2, kind: input, shape index: {}]   ;;  %s1415_s3 = inlined_call_operand.vmem [shape: bf16[512,128], index: 3, kind: output, shape index: {}]  }
   0x1 LB: > { %s913_s13 = sadd.s32 4294967295, %s1233_s12   ;;  %p917_p0 = scmp.ge.s32.totalorder %s1233_s12, 1  ;;  %s1233_s12 = sphi %s1255_s12, %s13_s12  }
   0x2   : > { %p138_p1 = scmp.lt.s32.totalorder %s1233_s12, 3 }
   0x4   : > { %p139_p2 = pnand %p917_p0, %p138_p1 }
   0x5   : > { %s918_s16 = sshll.u32 (!%p139_p2), %s913_s13, 5 }
   0x6   : > { %142 = sbr.rel (%p139_p2) target bundleno = 287 (0x11f), region = 32  ;;  %p163_p3 = scmp.lt.s32.totalorder (!%p139_p2), %s918_s16, 63 }
   0xb   : > { %v1203_v0 = vld [vmem:[%s1413_s1 + $0x38] sm:$0xff]   ;;  %v1204_v1 = vld [vmem:[%s1413_s1 + $0x30] sm:$0xff]   ;;  %s1417_s16 = smov (!%p163_p3, %s918_s16), 63  ;;  %v1205_v2 = vld [vmem:[%s1413_s1 + $0x28] sm:$0xff]   ;;  %v625_v24 = vlaneseq }
   0xc   : > { %1131 = vmatprep.subr.bf16.mxu0 %v1203_v0  ;;  %1179 = vmatprep.subr.bf16.mxu1 %v1203_v0  ;;  %s919_s21 = sshll.u32 %s1417_s16, 2  ;;  %v1206_v3 = vld [vmem:[%s1413_s1 + $0x20] sm:$0xff]   ;;  %v1207_v6 = vld [vmem:[%s1413_s1 + $0x18] sm:$0xff]   ;;  %v1208_v7 = vld [vmem:[%s1413_s1 + $0x10] sm:$0xff]  }
   0xd   : > { %1132 = vmatpush3.bf16.msra.mxu0 %v1203_v0  ;;  %1187 = vmatpush3.bf16.msra.mxu1 %v1203_v0  ;;  %s1280_s24 = scalar_lea.vmem %s1412_s0, %s919_s21  ;;  %v1209_v8 = vld [vmem:[%s1413_s1 + $0x8] sm:$0xff]   ;;  %v1210_v9 = vld [vmem:[%s1413_s1] sm:$0xff]   ;;  %v626_v25 = vshrl.u32 %v625_v24, 7  ;;  %s1337_s13 = scalar_lea.vmem %s1415_s3, %s919_s21 }
   0xe   : > { %1133 = vmatprep.subr.bf16.mxu0 %v1204_v1  ;;  %1180 = vmatprep.subr.bf16.mxu1 %v1204_v1  ;;  %v1211_v4 = vld [vmem:[%s1280_s24] sm:$0xff]   ;;  %v1213_v10 = vld [vmem:[%s1280_s24 + $0x8] sm:$0xff]   ;;  %v1215_v12 = vld [vmem:[%s1280_s24 + $0x10] sm:$0xff]  }
   0xf   : > { %v1212_v5 = vld [vmem:[%s1280_s24 + $0x40] sm:$0xff]   ;;  %1147 = vmatprep.mubr.bf16.mxu0 %v1211_v4  ;;  %v1214_v11 = vld [vmem:[%s1280_s24 + $0x48] sm:$0xff]   ;;  %v1216_v13 = vld [vmem:[%s1280_s24 + $0x50] sm:$0xff]   ;;  %v627_v26 = vsub.s32 1, %v626_v25  ;;  %v663_v28 = vsub.s32 2, %v626_v25 }
  0x10   : > { %1163 = vmatprep.mubr.bf16.mxu1 %v1212_v5  ;;  %v1217_v14 = vld [vmem:[%s1280_s24 + $0x18] sm:$0xff]   ;;  %v1219_v16 = vld [vmem:[%s1280_s24 + $0x20] sm:$0xff]   ;;  %v1221_v18 = vld [vmem:[%s1280_s24 + $0x28] sm:$0xff]  }
  0x11   : > { %1134 = vmatpush3.bf16.msra.mxu0 %v1204_v1  ;;  %1188 = vmatpush3.bf16.msra.mxu1 %v1204_v1  ;;  %v1218_v15 = vld [vmem:[%s1280_s24 + $0x58] sm:$0xff]   ;;  %v1220_v17 = vld [vmem:[%s1280_s24 + $0x60] sm:$0xff]   ;;  %v1222_v19 = vld [vmem:[%s1280_s24 + $0x68] sm:$0xff]  }
  0x12   : > { %1135 = vmatprep.subr.bf16.mxu0 %v1205_v2  ;;  %1181 = vmatprep.subr.bf16.mxu1 %v1205_v2  ;;  %v1223_v20 = vld [vmem:[%s1280_s24 + $0x30] sm:$0xff]   ;;  %v1225_v22 = vld [vmem:[%s1280_s24 + $0x38] sm:$0xff]   ;;  %v624_v27 = vld [vmem:[%s1414_s2] sm:$0x7] }
  0x13   : > { %v1224_v21 = vld [vmem:[%s1280_s24 + $0x70] sm:$0xff]   ;;  %v1226_v23 = vld [vmem:[%s1280_s24 + $0x78] sm:$0xff]   ;;  %v1316_v30 = vrot.slane %v624_v27, %v627_v26  ;;  %v1318_v34 = vrot.slane %v624_v27, %v663_v28 }
  0x15   : > { %1136 = vmatpush3.bf16.msra.mxu0 %v1205_v2  ;;  %1189 = vmatpush3.bf16.msra.mxu1 %v1205_v2 }
  0x16   : > { %1137 = vmatprep.subr.bf16.mxu0 %v1206_v3  ;;  %1182 = vmatprep.subr.bf16.mxu1 %v1206_v3 }
  0x19   : > { %1138 = vmatpush3.bf16.msra.mxu0 %v1206_v3  ;;  %1190 = vmatpush3.bf16.msra.mxu1 %v1206_v3 }
  0x1a   : > { %1139 = vmatprep.subr.bf16.mxu0 %v1207_v6  ;;  %1183 = vmatprep.subr.bf16.mxu1 %v1207_v6 }
  0x1d   : > { %1140 = vmatpush3.bf16.msra.mxu0 %v1207_v6  ;;  %1191 = vmatpush3.bf16.msra.mxu1 %v1207_v6 }
  0x1e   : > { %1141 = vmatprep.subr.bf16.mxu0 %v1208_v7  ;;  %1184 = vmatprep.subr.bf16.mxu1 %v1208_v7 }
  0x21   : > { %1142 = vmatpush3.bf16.msra.mxu0 %v1208_v7  ;;  %1192 = vmatpush3.bf16.msra.mxu1 %v1208_v7 }
  0x22   : > { %1143 = vmatprep.subr.bf16.mxu0 %v1209_v8  ;;  %1185 = vmatprep.subr.bf16.mxu1 %v1209_v8 }
  0x25   : > { %1144 = vmatpush3.bf16.msra.mxu0 %v1209_v8  ;;  %1193 = vmatpush3.bf16.msra.mxu1 %v1209_v8 }
  0x26   : > { %1145 = vmatprep.subr.bf16.mxu0 %v1210_v9  ;;  %1186 = vmatprep.subr.bf16.mxu1 %v1210_v9 }
  0x29   : > { %1146 = vmatpush3.bf16.msra.mxu0 %v1210_v9  ;;  %1194 = vmatpush3.bf16.msra.mxu1 %v1210_v9 }
  0x2c   : > { %1148 = vmatmul.mubr.bf16.vlgmr.msra.gmra.mxu0 %v1213_v10  ;;  %1164 = vmatmul.mubr.bf16.vlgmr.msra.gmra.mxu1 %v1214_v11 }
  0x2d   : > { %1151 = vmatprep.mubr.bf16.mxu0 %v1215_v12  ;;  %1167 = vmatprep.mubr.bf16.mxu1 %v1216_v13 }
  0x34   : > { %1152 = vmatmul.mubr.bf16.gmra.mxu0 %v1217_v14  ;;  %1168 = vmatmul.mubr.bf16.gmra.mxu1 %v1218_v15 }
  0x35   : > { %1155 = vmatprep.mubr.bf16.mxu0 %v1219_v16  ;;  %1171 = vmatprep.mubr.bf16.mxu1 %v1220_v17 }
  0x3c   : > { %1156 = vmatmul.mubr.bf16.gmra.mxu0 %v1221_v18  ;;  %1172 = vmatmul.mubr.bf16.gmra.mxu1 %v1222_v19 }
  0x3d   : > { %1159 = vmatprep.mubr.bf16.mxu0 %v1223_v20  ;;  %1175 = vmatprep.mubr.bf16.mxu1 %v1224_v21 }
  0x44   : > { %1160 = vmatmul.mubr.bf16.gmra.mxu0 %v1225_v22  ;;  %1176 = vmatmul.mubr.bf16.gmra.mxu1 %v1226_v23 }
  0xec   : > { %v1149_v29 = vpop.f32.mrf.mxu0  ;;  %v1165_v31 = vpop.f32.mrf.mxu1 }
  0xed   : > { %vm530_vm0 = vcmp.gt.f32.partialorder %v1149_v29, 0.0  ;;  %v562_v32 = vmul.f32 0.2, %v1149_v29  ;;  %vm546_vm1 = vcmp.gt.f32.partialorder %v1165_v31, 0.0  ;;  %v578_v33 = vmul.f32 0.2, %v1165_v31 }
  0xee   : > { %v401_v35 = vpop.f32.mrf.mxu0  ;;  %v465_v36 = vpop.f32.mrf.mxu1 }
  0xef   : > { %v594_v37 = vsel %vm530_vm0, %v1149_v29, %v562_v32  ;;  %v610_v38 = vsel %vm546_vm1, %v1165_v31, %v578_v33  ;;  %vm528_vm2 = vcmp.gt.f32.partialorder %v401_v35, 0.0  ;;  %v560_v39 = vmul.f32 0.2, %v401_v35 }
  0xf0   : > { %v631_v40 = vmul.f32 %v1316_v30, %v594_v37  ;;  %v647_v41 = vmul.f32 %v1316_v30, %v610_v38  ;;  %vm544_vm3 = vcmp.gt.f32.partialorder %v465_v36, 0.0  ;;  %v576_v42 = vmul.f32 0.2, %v465_v36  ;;  %v1150_v43 = vpop.f32.mrf.mxu0  ;;  %v1166_v44 = vpop.f32.mrf.mxu1 }
  0xf1   : > { %v592_v45 = vsel %vm528_vm2, %v401_v35, %v560_v39  ;;  %vm531_vm4 = vcmp.gt.f32.partialorder %v1150_v43, 0.0  ;;  %v563_v46 = vmul.f32 0.2, %v1150_v43  ;;  %vm547_vm5 = vcmp.gt.f32.partialorder %v1166_v44, 0.0 }
  0xf2   : > { %v667_v47 = vadd.f32 %v1318_v34, %v631_v40  ;;  %v683_v48 = vadd.f32 %v1318_v34, %v647_v41  ;;  %v629_v49 = vmul.f32 %v1316_v30, %v592_v45  ;;  %v608_v50 = vsel %vm544_vm3, %v465_v36, %v576_v42  ;;  %v404_v51 = vpop.f32.mrf.mxu0  ;;  %v468_v52 = vpop.f32.mrf.mxu1 }
  0xf3   : > { %v645_v53 = vmul.f32 %v1316_v30, %v608_v50  ;;  %v595_v54 = vsel %vm531_vm4, %v1150_v43, %v563_v46  ;;  %v579_v55 = vmul.f32 0.2, %v1166_v44  ;;  %vm529_vm6 = vcmp.gt.f32.partialorder %v404_v51, 0.0 }
  0xf4   : > { %v665_v56 = vadd.f32 %v1318_v34, %v629_v49  ;;  %v632_v57 = vmul.f32 %v1316_v30, %v595_v54  ;;  %v561_v58 = vmul.f32 0.2, %v404_v51  ;;  %vm545_vm7 = vcmp.gt.f32.partialorder %v468_v52, 0.0  ;;  %v1153_v59 = vpop.f32.mrf.mxu0  ;;  %v1169_v60 = vpop.f32.mrf.mxu1 }
  0xf5   : > { %v681_v61 = vadd.f32 %v1318_v34, %v645_v53  ;;  %v611_v62 = vsel %vm547_vm5, %v1166_v44, %v579_v55  ;;  %v577_v63 = vmul.f32 0.2, %v468_v52  ;;  %vm534_vm8 = vcmp.gt.f32.partialorder %v1153_v59, 0.0 }
  0xf6   : > { %v668_v0 = vadd.f32 %v1318_v34, %v632_v57  ;;  %v648_v1 = vmul.f32 %v1316_v30, %v611_v62  ;;  %v593_v2 = vsel %vm529_vm6, %v404_v51, %v561_v58  ;;  %v566_v3 = vmul.f32 0.2, %v1153_v59  ;;  %v417_v4 = vpop.f32.mrf.mxu0  ;;  %v481_v5 = vpop.f32.mrf.mxu1 }
  0xf7   : > { %v630_v6 = vmul.f32 %v1316_v30, %v593_v2  ;;  %v609_v7 = vsel %vm545_vm7, %v468_v52, %v577_v63  ;;  %vm550_vm9 = vcmp.gt.f32.partialorder %v1169_v60, 0.0  ;;  %v582_v8 = vmul.f32 0.2, %v1169_v60 }
  0xf8   : > { %v1020_v9 = vpack.c.bf16 %v668_v0, %v667_v47  ;;  %v684_v10 = vadd.f32 %v1318_v34, %v648_v1  ;;  %v646_v11 = vmul.f32 %v1316_v30, %v609_v7  ;;  %v598_v12 = vsel %vm534_vm8, %v1153_v59, %v566_v3  ;;  %v1154_v13 = vpop.f32.mrf.mxu0  ;;  %v1170_v14 = vpop.f32.mrf.mxu1 }
  0xf9   : > { %v666_v15 = vadd.f32 %v1318_v34, %v630_v6  ;;  %v635_v16 = vmul.f32 %v1316_v30, %v598_v12  ;;  %v614_v17 = vsel %vm550_vm9, %v1169_v60, %v582_v8  ;;  %vm532_vm10 = vcmp.gt.f32.partialorder %v417_v4, 0.0 }
  0xfa   : > { %1092 = vst [vmem:[%s1337_s13 + $0x8] sm:$0xff] %v1020_v9   ;;  %v1060_v18 = vpack.c.bf16 %v684_v10, %v683_v48  ;;  %v682_v19 = vadd.f32 %v1318_v34, %v646_v11  ;;  %v651_v20 = vmul.f32 %v1316_v30, %v614_v17  ;;  %v564_v21 = vmul.f32 0.2, %v417_v4  ;;  %v420_v22 = vpop.f32.mrf.mxu0  ;;  %v484_v23 = vpop.f32.mrf.mxu1 }
  0xfb   : > { %v1015_v24 = vpack.c.bf16 %v666_v15, %v665_v56  ;;  %v671_v25 = vadd.f32 %v1318_v34, %v635_v16  ;;  %vm548_vm11 = vcmp.gt.f32.partialorder %v481_v5, 0.0  ;;  %v580_v26 = vmul.f32 0.2, %v481_v5 }
  0xfc   : > { %1100 = vst [vmem:[%s1337_s13 + $0x48] sm:$0xff] %v1060_v18   ;;  %v1055_v27 = vpack.c.bf16 %v682_v19, %v681_v61  ;;  %v687_v28 = vadd.f32 %v1318_v34, %v651_v20  ;;  %v596_v29 = vsel %vm532_vm10, %v417_v4, %v564_v21  ;;  %vm535_vm12 = vcmp.gt.f32.partialorder %v1154_v13, 0.0  ;;  %v1157_v31 = vpop.f32.mrf.mxu0  ;;  %v1173_v32 = vpop.f32.mrf.mxu1 }
  0xfd   : > { %1016 = vst [vmem:[%s1337_s13] sm:$0xff] %v1015_v24   ;;  %v633_v33 = vmul.f32 %v1316_v30, %v596_v29  ;;  %v612_v35 = vsel %vm548_vm11, %v481_v5, %v580_v26  ;;  %v567_v36 = vmul.f32 0.2, %v1154_v13  ;;  %vm551_vm13 = vcmp.gt.f32.partialorder %v1170_v14, 0.0 }
  0xfe   : > { %1099 = vst [vmem:[%s1337_s13 + $0x40] sm:$0xff] %v1055_v27   ;;  %v649_v37 = vmul.f32 %v1316_v30, %v612_v35  ;;  %v583_v38 = vmul.f32 0.2, %v1170_v14  ;;  %vm533_vm14 = vcmp.gt.f32.partialorder %v420_v22, 0.0  ;;  %v565_v39 = vmul.f32 0.2, %v420_v22  ;;  %v433_v40 = vpop.f32.mrf.mxu0  ;;  %v497_v41 = vpop.f32.mrf.mxu1 }
  0xff   : > { %v669_v42 = vadd.f32 %v1318_v34, %v633_v33  ;;  %v599_v43 = vsel %vm535_vm12, %v1154_v13, %v567_v36  ;;  %vm549_vm15 = vcmp.gt.f32.partialorder %v484_v23, 0.0  ;;  %v581_v44 = vmul.f32 0.2, %v484_v23 }
 0x100   : > { %v685_v45 = vadd.f32 %v1318_v34, %v649_v37  ;;  %v636_v46 = vmul.f32 %v1316_v30, %v599_v43  ;;  %v615_v47 = vsel %vm551_vm13, %v1170_v14, %v583_v38  ;;  %v597_v48 = vsel %vm533_vm14, %v420_v22, %v565_v39  ;;  %v1158_v49 = vpop.f32.mrf.mxu0  ;;  %v1174_v50 = vpop.f32.mrf.mxu1 }
 0x101   : > { %v652_v51 = vmul.f32 %v1316_v30, %v615_v47  ;;  %v634_v52 = vmul.f32 %v1316_v30, %v597_v48  ;;  %v613_v53 = vsel %vm549_vm15, %v484_v23, %v581_v44  ;;  %vm538_vm0 = vcmp.gt.f32.partialorder %v1157_v31, 0.0 }
 0x102   : > { %v672_v54 = vadd.f32 %v1318_v34, %v636_v46  ;;  %v650_v55 = vmul.f32 %v1316_v30, %v613_v53  ;;  %v570_v56 = vmul.f32 0.2, %v1157_v31  ;;  %vm554_vm1 = vcmp.gt.f32.partialorder %v1173_v32, 0.0  ;;  %v436_v57 = vpop.f32.mrf.mxu0  ;;  %v500_v58 = vpop.f32.mrf.mxu1 }
 0x103   : > { %v688_v59 = vadd.f32 %v1318_v34, %v652_v51  ;;  %v670_v60 = vadd.f32 %v1318_v34, %v634_v52  ;;  %v586_v61 = vmul.f32 0.2, %v1173_v32  ;;  %vm536_vm2 = vcmp.gt.f32.partialorder %v433_v40, 0.0 }
 0x104   : > { %v1030_v62 = vpack.c.bf16 %v672_v54, %v671_v25  ;;  %v686_v63 = vadd.f32 %v1318_v34, %v650_v55  ;;  %v602_v0 = vsel %vm538_vm0, %v1157_v31, %v570_v56  ;;  %v568_v1 = vmul.f32 0.2, %v433_v40  ;;  %v1161_v6 = vpop.f32.mrf.mxu0  ;;  %v1177_v9 = vpop.f32.mrf.mxu1 }
 0x105   : > { %v1070_v2 = vpack.c.bf16 %v688_v59, %v687_v28  ;;  %v1025_v3 = vpack.c.bf16 %v670_v60, %v669_v42  ;;  %v639_v4 = vmul.f32 %v1316_v30, %v602_v0  ;;  %v618_v5 = vsel %vm554_vm1, %v1173_v32, %v586_v61 }
 0x106   : > { %1094 = vst [vmem:[%s1337_s13 + $0x18] sm:$0xff] %v1030_v62   ;;  %v1065_v7 = vpack.c.bf16 %v686_v63, %v685_v45  ;;  %v600_v8 = vsel %vm536_vm2, %v433_v40, %v568_v1  ;;  %vm552_vm3 = vcmp.gt.f32.partialorder %v497_v41, 0.0  ;;  %v655_v10 = vmul.f32 %v1316_v30, %v618_v5  ;;  %v449_v18 = vpop.f32.mrf.mxu0  ;;  %v513_v22 = vpop.f32.mrf.mxu1 }
 0x107   : > { %1102 = vst [vmem:[%s1337_s13 + $0x58] sm:$0xff] %v1070_v2   ;;  %1093 = vst [vmem:[%s1337_s13 + $0x10] sm:$0xff] %v1025_v3   ;;  %v584_v11 = vmul.f32 0.2, %v497_v41  ;;  %vm539_vm4 = vcmp.gt.f32.partialorder %v1158_v49, 0.0  ;;  %v675_v12 = vadd.f32 %v1318_v34, %v639_v4  ;;  %vm555_vm5 = vcmp.gt.f32.partialorder %v1174_v50, 0.0 }
 0x108   : > { %1101 = vst [vmem:[%s1337_s13 + $0x50] sm:$0xff] %v1065_v7   ;;  %v571_v13 = vmul.f32 0.2, %v1158_v49  ;;  %v587_v14 = vmul.f32 0.2, %v1174_v50  ;;  %v637_v15 = vmul.f32 %v1316_v30, %v600_v8  ;;  %vm537_vm6 = vcmp.gt.f32.partialorder %v436_v57, 0.0  ;;  %v1162_v36 = vpop.f32.mrf.mxu0 }
 0x109   : > { %v616_v16 = vsel %vm552_vm3, %v497_v41, %v584_v11  ;;  %v569_v17 = vmul.f32 0.2, %v436_v57  ;;  %vm553_vm7 = vcmp.gt.f32.partialorder %v500_v58, 0.0  ;;  %v585_v26 = vmul.f32 0.2, %v500_v58  ;;  %v1178_v41 = vpop.f32.mrf.mxu1 }
 0x10a   : > { %v653_v19 = vmul.f32 %v1316_v30, %v616_v16  ;;  %v603_v20 = vsel %vm539_vm4, %v1158_v49, %v571_v13  ;;  %v619_v21 = vsel %vm555_vm5, %v1174_v50, %v587_v14  ;;  %v691_v27 = vadd.f32 %v1318_v34, %v655_v10  ;;  %v452_v50 = vpop.f32.mrf.mxu0 }
 0x10b   : > { %v640_v23 = vmul.f32 %v1316_v30, %v603_v20  ;;  %v656_v24 = vmul.f32 %v1316_v30, %v619_v21  ;;  %v601_v25 = vsel %vm537_vm6, %v436_v57, %v569_v17  ;;  %vm542_vm8 = vcmp.gt.f32.partialorder %v1161_v6, 0.0  ;;  %v516_v54 = vpop.f32.mrf.mxu1 }
 0x10c   : > { %v638_v28 = vmul.f32 %v1316_v30, %v601_v25  ;;  %v574_v29 = vmul.f32 0.2, %v1161_v6  ;;  %v673_v31 = vadd.f32 %v1318_v34, %v637_v15  ;;  %v617_v35 = vsel %vm553_vm7, %v500_v58, %v585_v26 }
 0x10d   : > { %v676_v32 = vadd.f32 %v1318_v34, %v640_v23  ;;  %v692_v33 = vadd.f32 %v1318_v34, %v656_v24  ;;  %v654_v38 = vmul.f32 %v1316_v30, %v617_v35  ;;  %v590_v40 = vmul.f32 0.2, %v1177_v9 }
 0x10e   : > { %v674_v37 = vadd.f32 %v1318_v34, %v638_v28  ;;  %v606_v39 = vsel %vm542_vm8, %v1161_v6, %v574_v29  ;;  %v689_v42 = vadd.f32 %v1318_v34, %v653_v19  ;;  %vm558_vm9 = vcmp.gt.f32.partialorder %v1177_v9, 0.0 }
 0x10f   : > { %v1040_v43 = vpack.c.bf16 %v676_v32, %v675_v12  ;;  %v1080_v44 = vpack.c.bf16 %v692_v33, %v691_v27  ;;  %v690_v46 = vadd.f32 %v1318_v34, %v654_v38  ;;  %vm540_vm10 = vcmp.gt.f32.partialorder %v449_v18, 0.0 }
 0x110   : > { %v1035_v45 = vpack.c.bf16 %v674_v37, %v673_v31  ;;  %v572_v47 = vmul.f32 0.2, %v449_v18  ;;  %v643_v48 = vmul.f32 %v1316_v30, %v606_v39  ;;  %vm556_vm11 = vcmp.gt.f32.partialorder %v513_v22, 0.0 }
 0x111   : > { %1096 = vst [vmem:[%s1337_s13 + $0x28] sm:$0xff] %v1040_v43   ;;  %1104 = vst [vmem:[%s1337_s13 + $0x68] sm:$0xff] %v1080_v44   ;;  %v588_v49 = vmul.f32 0.2, %v513_v22  ;;  %v1075_v51 = vpack.c.bf16 %v690_v46, %v689_v42  ;;  %v622_v52 = vsel %vm558_vm9, %v1177_v9, %v590_v40  ;;  %vm543_vm12 = vcmp.gt.f32.partialorder %v1162_v36, 0.0 }
 0x112   : > { %1095 = vst [vmem:[%s1337_s13 + $0x20] sm:$0xff] %v1035_v45   ;;  %v575_v53 = vmul.f32 0.2, %v1162_v36  ;;  %v604_v55 = vsel %vm540_vm10, %v449_v18, %v572_v47  ;;  %vm559_vm13 = vcmp.gt.f32.partialorder %v1178_v41, 0.0  ;;  %v591_v58 = vmul.f32 0.2, %v1178_v41 }
 0x113   : > { %1103 = vst [vmem:[%s1337_s13 + $0x60] sm:$0xff] %v1075_v51   ;;  %v620_v56 = vsel %vm556_vm11, %v513_v22, %v588_v49  ;;  %vm541_vm14 = vcmp.gt.f32.partialorder %v452_v50, 0.0  ;;  %v659_v59 = vmul.f32 %v1316_v30, %v622_v52  ;;  %v573_v61 = vmul.f32 0.2, %v452_v50 }
 0x114   : > { %v607_v57 = vsel %vm543_vm12, %v1162_v36, %v575_v53  ;;  %vm557_vm15 = vcmp.gt.f32.partialorder %v516_v54, 0.0  ;;  %v679_v62 = vadd.f32 %v1318_v34, %v643_v48  ;;  %v641_v63 = vmul.f32 %v1316_v30, %v604_v55 }
 0x115   : > { %v644_v60 = vmul.f32 %v1316_v30, %v607_v57  ;;  %v623_v0 = vsel %vm559_vm13, %v1178_v41, %v591_v58  ;;  %v589_v1 = vmul.f32 0.2, %v516_v54  ;;  %v657_v2 = vmul.f32 %v1316_v30, %v620_v56 }
 0x116   : > { %v660_v4 = vmul.f32 %v1316_v30, %v623_v0  ;;  %v605_v5 = vsel %vm541_vm14, %v452_v50, %v573_v61  ;;  %v695_v8 = vadd.f32 %v1318_v34, %v659_v59  ;;  %v677_v12 = vadd.f32 %v1318_v34, %v641_v63 }
 0x117   : > { %v680_v3 = vadd.f32 %v1318_v34, %v644_v60  ;;  %v642_v6 = vmul.f32 %v1316_v30, %v605_v5  ;;  %v621_v7 = vsel %vm557_vm15, %v516_v54, %v589_v1  ;;  %v693_v14 = vadd.f32 %v1318_v34, %v657_v2 }
 0x118   : > { %v696_v10 = vadd.f32 %v1318_v34, %v660_v4  ;;  %v658_v11 = vmul.f32 %v1316_v30, %v621_v7 }
 0x119   : > { %v1050_v9 = vpack.c.bf16 %v680_v3, %v679_v62  ;;  %v678_v13 = vadd.f32 %v1318_v34, %v642_v6 }
 0x11a   : > { %v1090_v15 = vpack.c.bf16 %v696_v10, %v695_v8  ;;  %v694_v16 = vadd.f32 %v1318_v34, %v658_v11 }
 0x11b   : > { %1098 = vst [vmem:[%s1337_s13 + $0x38] sm:$0xff] %v1050_v9   ;;  %v1045_v17 = vpack.c.bf16 %v678_v13, %v677_v12 }
 0x11c   : > { %1106 = vst [vmem:[%s1337_s13 + $0x78] sm:$0xff] %v1090_v15   ;;  %v1085_v18 = vpack.c.bf16 %v694_v16, %v693_v14 }
 0x11d   : > { %1097 = vst [vmem:[%s1337_s13 + $0x30] sm:$0xff] %v1045_v17  }
 0x11e   : > { %1105 = vst [vmem:[%s1337_s13 + $0x70] sm:$0xff] %v1085_v18  }
 0x11f PF: > { %s13_s12 = sadd.s32 1, %s1233_s12  }
 0x120   : > { %p10_p4 = scmp.ge.s32.totalorder %s13_s12, 4  }
 0x122   :  { %12 = sbr.rel (!%p10_p4) target bundleno = 1 (0x1), region = 62 }

// kernel: net_forward.7
= control target key start
LH: loop header
LB: loop body
LE: loop exit
PB: predicated region body
PF: predicated region fallthrough
CT: control target
= control target key end

     0   :  { %s4079_s12 = smov 0   ;;  %s4971_s0 = inlined_call_operand.vmem [shape: bf16[512,1152], index: 0, kind: input, shape index: {}]   ;;  %s4972_s1 = inlined_call_operand.vmem [shape: bf16[1152,128], index: 1, kind: input, shape index: {}]   ;;  %s4973_s2 = inlined_call_operand.vmem [shape: f32[3,128], index: 2, kind: input, shape index: {}]   ;;  %s4974_s3 = inlined_call_operand.vmem [shape: bf16[512,128], index: 3, kind: output, shape index: {}]  }
   0x1 LB: > { %s2840_s13 = sadd.s32 4294967295, %s4057_s12   ;;  %p2844_p0 = scmp.ge.s32.totalorder %s4057_s12, 1  ;;  %s4057_s12 = sphi %s4079_s12, %s13_s12  }
   0x2   : > { %p139_p1 = scmp.lt.s32.totalorder %s4057_s12, 3 }
   0x4   : > { %p140_p2 = pnand %p2844_p0, %p139_p1 }
   0x6   : > { %143 = sbr.rel (%p140_p2) target bundleno = 539 (0x21b), region = 32 }
   0xb   : > { %v3771_v0 = vld [vmem:[%s4972_s1 + $0x78] sm:$0xff]   ;;  %s2845_s16 = sshll.u32 %s2840_s13, 5  ;;  %v3773_v2 = vld [vmem:[%s4972_s1 + $0x70] sm:$0xff]   ;;  %v3775_v4 = vld [vmem:[%s4972_s1 + $0x68] sm:$0xff]  }
   0xc   : > { %v3772_v1 = vld [vmem:[%s4972_s1 + $0x38] sm:$0xff]   ;;  %3226 = vmatprep.subr.bf16.mxu0 %v3771_v0  ;;  %3746 = vmatprep.subr.bf16.mxu1 %v3771_v0  ;;  %p165_p3 = scmp.lt.s32.totalorder %s2845_s16, 63  ;;  %v3774_v3 = vld [vmem:[%s4972_s1 + $0x30] sm:$0xff]   ;;  %v3776_v5 = vld [vmem:[%s4972_s1 + $0x28] sm:$0xff]  }
   0xd   : > { %3227 = vmatpush3.bf16.msra.mxu0 %v3772_v1  ;;  %3754 = vmatpush3.bf16.msra.mxu1 %v3772_v1  ;;  %v3777_v6 = vld [vmem:[%s4972_s1 + $0x60] sm:$0xff]   ;;  %v3779_v8 = vld [vmem:[%s4972_s1 + $0x58] sm:$0xff]   ;;  %v3781_v10 = vld [vmem:[%s4972_s1 + $0x50] sm:$0xff]  }
   0xe   : > { %3228 = vmatprep.subr.bf16.mxu0 %v3773_v2  ;;  %3747 = vmatprep.subr.bf16.mxu1 %v3773_v2  ;;  %s4998_s16 = smov (!%p165_p3, %s2845_s16), 63  ;;  %v3778_v7 = vld [vmem:[%s4972_s1 + $0x20] sm:$0xff]   ;;  %v3780_v9 = vld [vmem:[%s4972_s1 + $0x18] sm:$0xff]   ;;  %v3782_v13 = vld [vmem:[%s4972_s1 + $0x10] sm:$0xff]  }
   0xf   : > { %s3762_s29 = smul.u32 36, %s4998_s16  ;;  %v3783_v14 = vld [vmem:[%s4972_s1 + $0x48] sm:$0xff]   ;;  %v3785_v16 = vld [vmem:[%s4972_s1 + $0x40] sm:$0xff]   ;;  %v3793_v18 = vld [vmem:[%s4972_s1 + $0xf8] sm:$0xff]   ;;  %s2848_s19 = sshll.u32 %s4998_s16, 2 }
  0x10   : > { %v3784_v15 = vld [vmem:[%s4972_s1 + $0x8] sm:$0xff]   ;;  %v3786_v17 = vld [vmem:[%s4972_s1] sm:$0xff]   ;;  %v3796_v21 = vld [vmem:[%s4972_s1 + $0x178] sm:$0xff]   ;;  %s4836_s21 = scalar_lea.vmem %s4974_s3, %s2848_s19 }
  0x11   : > { %3229 = vmatpush3.bf16.msra.mxu0 %v3774_v3  ;;  %3755 = vmatpush3.bf16.msra.mxu1 %v3774_v3  ;;  %s4120_s9 = scalar_lea.vmem %s4971_s0, %s3762_s29  ;;  %v3794_v22 = vld [vmem:[%s4972_s1 + $0xb8] sm:$0xff]   ;;  %v3795_v23 = vld [vmem:[%s4972_s1 + $0xf0] sm:$0xff]   ;;  %v3805_v31 = vld [vmem:[%s4972_s1 + $0xe8] sm:$0xff]  }
  0x12   : > { %3230 = vmatprep.subr.bf16.mxu0 %v3775_v4  ;;  %3748 = vmatprep.subr.bf16.mxu1 %v3775_v4  ;;  %v3789_v11 = vld [vmem:[%s4120_s9 + $0x4] ss:$36 sps:$4 sm:$0xff]   ;;  %v3798_v24 = vld [vmem:[%s4972_s1 + $0x138] sm:$0xff]   ;;  %v3799_v25 = vld [vmem:[%s4120_s9 + $0x4c] ss:$36 sps:$4 sm:$0xff]  }
  0x13   : > { %v3792_v12 = vld [vmem:[%s4120_s9 + $0x364] ss:$36 sps:$4 sm:$0xff]   ;;  %1682 = vmatprep.mubr.bf16.mxu0 %v3789_v11  ;;  %v3801_v26 = vld [vmem:[%s4120_s9 + $0x3ac] ss:$36 sps:$4 sm:$0xff]   ;;  %v3809_v35 = vld [vmem:[%s4120_s9 + $0x94] ss:$36 sps:$4 sm:$0xff]  }
  0x14   : > { %1778 = vmatprep.mubr.bf16.mxu1 %v3792_v12  ;;  %v3787_v19 = vld [vmem:[%s4120_s9] ss:$36 sps:$4 sm:$0xff]   ;;  %v3797_v27 = vld [vmem:[%s4972_s1 + $0xb0] sm:$0xff]   ;;  %v3803_v29 = vld [vmem:[%s4120_s9 + $0x48] ss:$36 sps:$4 sm:$0xff]  }
  0x15   : > { %3231 = vmatpush3.bf16.msra.mxu0 %v3776_v5  ;;  %3756 = vmatpush3.bf16.msra.mxu1 %v3776_v5  ;;  %v3790_v20 = vld [vmem:[%s4120_s9 + $0x360] ss:$36 sps:$4 sm:$0xff]   ;;  %v3816_v28 = vld [vmem:[%s4972_s1 + $0x170] sm:$0xff]   ;;  %v3804_v30 = vld [vmem:[%s4120_s9 + $0x3a8] ss:$36 sps:$4 sm:$0xff]  }
  0x16   : > { %3232 = vmatprep.subr.bf16.mxu0 %v3777_v6  ;;  %3749 = vmatprep.subr.bf16.mxu1 %v3777_v6  ;;  %v3806_v32 = vld [vmem:[%s4972_s1 + $0xa8] sm:$0xff]   ;;  %v3818_v33 = vld [vmem:[%s4972_s1 + $0x130] sm:$0xff]   ;;  %v3807_v34 = vld [vmem:[%s4972_s1 + $0xe0] sm:$0xff]  }
  0x17   : > { %v3811_v36 = vld [vmem:[%s4120_s9 + $0x3f4] ss:$36 sps:$4 sm:$0xff]   ;;  %v3808_v37 = vld [vmem:[%s4972_s1 + $0xa0] sm:$0xff]   ;;  %v3830_v43 = vld [vmem:[%s4972_s1 + $0x168] sm:$0xff]  }
  0x18   : > { %v3813_v38 = vld [vmem:[%s4120_s9 + $0x90] ss:$36 sps:$4 sm:$0xff]   ;;  %v3815_v40 = vld [vmem:[%s4972_s1 + $0xd8] sm:$0xff]   ;;  %v3832_v46 = vld [vmem:[%s4972_s1 + $0x128] sm:$0xff]  }
  0x19   : > { %3233 = vmatpush3.bf16.msra.mxu0 %v3778_v7  ;;  %3757 = vmatpush3.bf16.msra.mxu1 %v3778_v7  ;;  %v3814_v39 = vld [vmem:[%s4120_s9 + $0x3f0] ss:$36 sps:$4 sm:$0xff]   ;;  %v3817_v41 = vld [vmem:[%s4972_s1 + $0x98] sm:$0xff]   ;;  %v3827_v48 = vld [vmem:[%s4972_s1 + $0xc8] sm:$0xff]  }
  0x1a   : > { %3234 = vmatprep.subr.bf16.mxu0 %v3779_v8  ;;  %3750 = vmatprep.subr.bf16.mxu1 %v3779_v8  ;;  %v3819_v42 = vld [vmem:[%s4972_s1 + $0xd0] sm:$0xff]   ;;  %v3821_v44 = vld [vmem:[%s4120_s9 + $0xdc] ss:$36 sps:$4 sm:$0xff]   ;;  %v3828_v51 = vld [vmem:[%s4972_s1 + $0x88] sm:$0xff]  }
  0x1b   : > { %v3823_v45 = vld [vmem:[%s4120_s9 + $0x43c] ss:$36 sps:$4 sm:$0xff]   ;;  %v3820_v47 = vld [vmem:[%s4972_s1 + $0x90] sm:$0xff]   ;;  %v3833_v53 = vld [vmem:[%s4120_s9 + $0x124] ss:$36 sps:$4 sm:$0xff]  }
  0x1c   : > { %v3825_v49 = vld [vmem:[%s4120_s9 + $0xd8] ss:$36 sps:$4 sm:$0xff]   ;;  %v3829_v52 = vld [vmem:[%s4972_s1 + $0xc0] sm:$0xff]   ;;  %v3837_v54 = vld [vmem:[%s4120_s9 + $0xc] ss:$36 sps:$4 sm:$0xff]  }
  0x1d   : > { %3235 = vmatpush3.bf16.msra.mxu0 %v3780_v9  ;;  %3758 = vmatpush3.bf16.msra.mxu1 %v3780_v9  ;;  %v3826_v50 = vld [vmem:[%s4120_s9 + $0x438] ss:$36 sps:$4 sm:$0xff]   ;;  %v3847_v55 = vld [vmem:[%s4972_s1 + $0x160] sm:$0xff]   ;;  %v3835_v58 = vld [vmem:[%s4120_s9 + $0x8] ss:$36 sps:$4 sm:$0xff]  }
  0x1e   : > { %3236 = vmatprep.subr.bf16.mxu0 %v3781_v10  ;;  %3751 = vmatprep.subr.bf16.mxu1 %v3781_v10  ;;  %v3848_v56 = vld [vmem:[%s4972_s1 + $0x120] sm:$0xff]   ;;  %v3839_v60 = vld [vmem:[%s4972_s1 + $0x1f8] sm:$0xff]   ;;  %v3841_v62 = vld [vmem:[%s4120_s9 + $0x16c] ss:$36 sps:$4 sm:$0xff]  }
  0x1f   : > { %v3831_v57 = vld [vmem:[%s4972_s1 + $0x80] sm:$0xff]   ;;  %v3840_v61 = vld [vmem:[%s4972_s1 + $0x1b8] sm:$0xff]   ;;  %v3855_v1 = vld [vmem:[%s4972_s1 + $0x1f0] sm:$0xff]  }
  0x20   : > { %v3838_v59 = vld [vmem:[%s4120_s9 + $0x120] ss:$36 sps:$4 sm:$0xff]   ;;  %v3843_v63 = vld [vmem:[%s4120_s9 + $0x54] ss:$36 sps:$4 sm:$0xff]   ;;  %v3845_v4 = vld [vmem:[%s4120_s9 + $0x168] ss:$36 sps:$4 sm:$0xff]  }
  0x21   : > { %3237 = vmatpush3.bf16.msra.mxu0 %v3782_v13  ;;  %3759 = vmatpush3.bf16.msra.mxu1 %v3782_v13  ;;  %v3857_v0 = vld [vmem:[%s4972_s1 + $0x158] sm:$0xff]   ;;  %v3856_v3 = vld [vmem:[%s4972_s1 + $0x1b0] sm:$0xff]   ;;  %v3872_v9 = vld [vmem:[%s4972_s1 + $0x1e8] sm:$0xff]  }
  0x22   : > { %3238 = vmatprep.subr.bf16.mxu0 %v3783_v14  ;;  %3752 = vmatprep.subr.bf16.mxu1 %v3783_v14  ;;  %v3858_v2 = vld [vmem:[%s4972_s1 + $0x118] sm:$0xff]   ;;  %v3846_v5 = vld [vmem:[%s4120_s9 + $0x50] ss:$36 sps:$4 sm:$0xff]   ;;  %v3874_v11 = vld [vmem:[%s4972_s1 + $0x1a8] sm:$0xff]  }
  0x23   : > { %v3849_v6 = vld [vmem:[%s4120_s9 + $0x1b4] ss:$36 sps:$4 sm:$0xff]   ;;  %v3851_v7 = vld [vmem:[%s4120_s9 + $0x9c] ss:$36 sps:$4 sm:$0xff]  }
  0x24   : > { %v3871_v8 = vld [vmem:[%s4972_s1 + $0x150] sm:$0xff]   ;;  %v3854_v13 = vld [vmem:[%s4120_s9 + $0x98] ss:$36 sps:$4 sm:$0xff]  }
  0x25   : > { %3239 = vmatpush3.bf16.msra.mxu0 %v3784_v15  ;;  %3760 = vmatpush3.bf16.msra.mxu1 %v3784_v15  ;;  %v3873_v10 = vld [vmem:[%s4972_s1 + $0x110] sm:$0xff]   ;;  %v3859_v14 = vld [vmem:[%s4120_s9 + $0x1fc] ss:$36 sps:$4 sm:$0xff]   ;;  %v3881_v15 = vld [vmem:[%s4972_s1 + $0x148] sm:$0xff]  }
  0x26   : > { %3240 = vmatprep.subr.bf16.mxu0 %v3785_v16  ;;  %3753 = vmatprep.subr.bf16.mxu1 %v3785_v16  ;;  %v3853_v12 = vld [vmem:[%s4120_s9 + $0x1b0] ss:$36 sps:$4 sm:$0xff]   ;;  %v3882_v16 = vld [vmem:[%s4972_s1 + $0x108] sm:$0xff]  }
  0x29   : > { %3241 = vmatpush3.bf16.msra.mxu0 %v3786_v17  ;;  %3761 = vmatpush3.bf16.msra.mxu1 %v3786_v17  ;;  %v3861_v17 = vld [vmem:[%s4120_s9 + $0xe4] ss:$36 sps:$4 sm:$0xff]  }
  0x2a   : > { %3338 = vmatprep.subr.bf16.mxu1 %v3793_v18  ;;  %3450 = vmatprep.subr.bf16.mxu0 %v3796_v21  ;;  %v3889_v18 = vld [vmem:[%s4972_s1 + $0x1e0] sm:$0xff]  }
  0x2b   : > { %v3864_v21 = vld [vmem:[%s4120_s9 + $0xe0] ss:$36 sps:$4 sm:$0xff]  }
  0x2c   : > { %1683 = vmatmul.mubr.bf16.vlgmr.msra.gmra.mxu0 %v3787_v19  ;;  %1779 = vmatmul.mubr.bf16.vlgmr.msra.gmra.mxu1 %v3790_v20  ;;  %v3890_v19 = vld [vmem:[%s4972_s1 + $0x1a0] sm:$0xff]   ;;  %v3863_v20 = vld [vmem:[%s4120_s9 + $0x1f8] ss:$36 sps:$4 sm:$0xff]  }
  0x2d   : > { %3339 = vmatpush3.bf16.msra.mxu1 %v3794_v22  ;;  %3451 = vmatpush3.bf16.msra.mxu0 %v3798_v24  ;;  %v3865_v22 = vld [vmem:[%s4120_s9 + $0x244] ss:$36 sps:$4 sm:$0xff]  }
  0x2e   : > { %3340 = vmatprep.subr.bf16.mxu1 %v3795_v23  ;;  %1690 = vmatprep.mubr.bf16.mxu0 %v3799_v25  ;;  %v3867_v23 = vld [vmem:[%s4120_s9 + $0x12c] ss:$36 sps:$4 sm:$0xff]   ;;  %v3897_v24 = vld [vmem:[%s4972_s1 + $0x140] sm:$0xff]  }
  0x2f   : > { %1786 = vmatprep.mubr.bf16.mxu1 %v3801_v26  ;;  %3452 = vmatprep.subr.bf16.mxu0 %v3816_v28  ;;  %v3898_v25 = vld [vmem:[%s4972_s1 + $0x100] sm:$0xff]   ;;  %v3905_v26 = vld [vmem:[%s4972_s1 + $0x1d8] sm:$0xff]  }
  0x30   : > { %v3906_v28 = vld [vmem:[%s4972_s1 + $0x198] sm:$0xff]  }
  0x31   : > { %3341 = vmatpush3.bf16.msra.mxu1 %v3797_v27  ;;  %3453 = vmatpush3.bf16.msra.mxu0 %v3818_v33  ;;  %v3869_v27 = vld [vmem:[%s4120_s9 + $0x240] ss:$36 sps:$4 sm:$0xff]   ;;  %v3920_v33 = vld [vmem:[%s4972_s1 + $0x1d0] sm:$0xff]  }
  0x32   : > { %3342 = vmatprep.subr.bf16.mxu1 %v3805_v31  ;;  %3454 = vmatprep.subr.bf16.mxu0 %v3830_v43  ;;  %v3875_v31 = vld [vmem:[%s4120_s9 + $0x28c] ss:$36 sps:$4 sm:$0xff]   ;;  %v3891_v43 = vld [vmem:[%s4120_s9 + $0x31c] ss:$36 sps:$4 sm:$0xff]  }
  0x34   : > { %1691 = vmatmul.mubr.bf16.gmra.mxu0 %v3803_v29  ;;  %1787 = vmatmul.mubr.bf16.gmra.mxu1 %v3804_v30  ;;  %v3907_v29 = vld [vmem:[%s4972_s1 + $0x238] sm:$0xff]   ;;  %v3870_v30 = vld [vmem:[%s4120_s9 + $0x128] ss:$36 sps:$4 sm:$0xff]  }
  0x35   : > { %3343 = vmatpush3.bf16.msra.mxu1 %v3806_v32  ;;  %1698 = vmatprep.mubr.bf16.mxu0 %v3809_v35  ;;  %v3877_v32 = vld [vmem:[%s4120_s9 + $0x174] ss:$36 sps:$4 sm:$0xff]  }
  0x36   : > { %3344 = vmatprep.subr.bf16.mxu1 %v3807_v34  ;;  %1794 = vmatprep.mubr.bf16.mxu1 %v3811_v36  ;;  %v3879_v34 = vld [vmem:[%s4120_s9 + $0x288] ss:$36 sps:$4 sm:$0xff]   ;;  %v3921_v35 = vld [vmem:[%s4972_s1 + $0x190] sm:$0xff]  }
  0x37   : > { %3455 = vmatpush3.bf16.msra.mxu0 %v3832_v46  ;;  %v3880_v36 = vld [vmem:[%s4120_s9 + $0x170] ss:$36 sps:$4 sm:$0xff]   ;;  %v3896_v46 = vld [vmem:[%s4120_s9 + $0x200] ss:$36 sps:$4 sm:$0xff]  }
  0x38   : > { %3456 = vmatprep.subr.bf16.mxu0 %v3847_v55  ;;  %v3922_v55 = vld [vmem:[%s4972_s1 + $0x230] sm:$0xff]  }
  0x39   : > { %3345 = vmatpush3.bf16.msra.mxu1 %v3808_v37  ;;  %v3883_v37 = vld [vmem:[%s4120_s9 + $0x2d4] ss:$36 sps:$4 sm:$0xff]  }
  0x3a   : > { %3346 = vmatprep.subr.bf16.mxu1 %v3815_v40  ;;  %v3888_v40 = vld [vmem:[%s4120_s9 + $0x1b8] ss:$36 sps:$4 sm:$0xff]  }
  0x3b   : > { %3457 = vmatpush3.bf16.msra.mxu0 %v3848_v56  ;;  %v3937_v56 = vld [vmem:[%s4972_s1 + $0x228] sm:$0xff]  }
  0x3c   : > { %1699 = vmatmul.mubr.bf16.gmra.mxu0 %v3813_v38  ;;  %1795 = vmatmul.mubr.bf16.gmra.mxu1 %v3814_v39  ;;  %v3885_v38 = vld [vmem:[%s4120_s9 + $0x1bc] ss:$36 sps:$4 sm:$0xff]   ;;  %v3887_v39 = vld [vmem:[%s4120_s9 + $0x2d0] ss:$36 sps:$4 sm:$0xff]  }
  0x3d   : > { %3347 = vmatpush3.bf16.msra.mxu1 %v3817_v41  ;;  %1706 = vmatprep.mubr.bf16.mxu0 %v3821_v44  ;;  %v3935_v41 = vld [vmem:[%s4972_s1 + $0x1c8] sm:$0xff]  }
  0x3e   : > { %3348 = vmatprep.subr.bf16.mxu1 %v3819_v42  ;;  %1802 = vmatprep.mubr.bf16.mxu1 %v3823_v45  ;;  %v3936_v42 = vld [vmem:[%s4972_s1 + $0x188] sm:$0xff]   ;;  %v3895_v45 = vld [vmem:[%s4120_s9 + $0x318] ss:$36 sps:$4 sm:$0xff]  }
  0x3f   : > { %3458 = vmatprep.subr.bf16.mxu0 %v3857_v0  ;;  %v3893_v44 = vld [vmem:[%s4120_s9 + $0x204] ss:$36 sps:$4 sm:$0xff]  }
  0x40   : > { %3459 = vmatpush3.bf16.msra.mxu0 %v3858_v2  ;;  %v3919_v0 = vld [vmem:[%s4120_s9 + $0xa0] ss:$36 sps:$4 sm:$0xff]   ;;  %v3925_v2 = vld [vmem:[%s4120_s9 + $0xec] ss:$36 sps:$4 sm:$0xff]  }
  0x41   : > { %3349 = vmatpush3.bf16.msra.mxu1 %v3820_v47  ;;  %3460 = vmatprep.subr.bf16.mxu0 %v3871_v8  ;;  %v3950_v47 = vld [vmem:[%s4972_s1 + $0x1c0] sm:$0xff]   ;;  %v3931_v8 = vld [vmem:[%s4120_s9 + $0x134] ss:$36 sps:$4 sm:$0xff]  }
  0x42   : > { %3350 = vmatprep.subr.bf16.mxu1 %v3827_v48  ;;  %v3951_v48 = vld [vmem:[%s4972_s1 + $0x180] sm:$0xff]  }
  0x44   : > { %1707 = vmatmul.mubr.bf16.gmra.mxu0 %v3825_v49  ;;  %1803 = vmatmul.mubr.bf16.gmra.mxu1 %v3826_v50  ;;  %v3899_v49 = vld [vmem:[%s4120_s9 + $0x24c] ss:$36 sps:$4 sm:$0xff]   ;;  %v3903_v50 = vld [vmem:[%s4120_s9 + $0x14] ss:$36 sps:$4 sm:$0xff]  }
  0x45   : > { %3351 = vmatpush3.bf16.msra.mxu1 %v3828_v51  ;;  %1714 = vmatprep.mubr.bf16.mxu0 %v3833_v53  ;;  %v3901_v51 = vld [vmem:[%s4120_s9 + $0x10] ss:$36 sps:$4 sm:$0xff]  }
  0x46   : > { %3352 = vmatprep.subr.bf16.mxu1 %v3829_v52  ;;  %1843 = vmatprep.mubr.bf16.mxu1 %v3837_v54  ;;  %v3904_v52 = vld [vmem:[%s4120_s9 + $0x248] ss:$36 sps:$4 sm:$0xff]   ;;  %v3908_v53 = vld [vmem:[%s4120_s9 + $0x294] ss:$36 sps:$4 sm:$0xff]   ;;  %v3910_v54 = vld [vmem:[%s4120_s9 + $0x5c] ss:$36 sps:$4 sm:$0xff]  }
  0x47   : > { %3461 = vmatpush3.bf16.msra.mxu0 %v3873_v10  ;;  %v3933_v10 = vld [vmem:[%s4120_s9 + $0x368] ss:$36 sps:$4 sm:$0xff]  }
  0x48   : > { %3462 = vmatprep.subr.bf16.mxu0 %v3881_v15  ;;  %v3943_v15 = vld [vmem:[%s4120_s9 + $0x178] ss:$36 sps:$4 sm:$0xff]  }
  0x49   : > { %3353 = vmatpush3.bf16.msra.mxu1 %v3831_v57  ;;  %v3912_v57 = vld [vmem:[%s4120_s9 + $0x290] ss:$36 sps:$4 sm:$0xff]  }
  0x4a   : > { %3562 = vmatprep.subr.bf16.mxu1 %v3839_v60  ;;  %v3916_v60 = vld [vmem:[%s4120_s9 + $0xa4] ss:$36 sps:$4 sm:$0xff]  }
  0x4b   : > { %3463 = vmatpush3.bf16.msra.mxu0 %v3882_v16  ;;  %v3944_v16 = vld [vmem:[%s4120_s9 + $0x3fc] ss:$36 sps:$4 sm:$0xff]  }
  0x4c   : > { %1715 = vmatmul.mubr.bf16.gmra.mxu0 %v3838_v59  ;;  %1844 = vmatmul.mubr.bf16.vlgmr.msra.gmra.mxu1 %v3835_v58  ;;  %v3913_v58 = vld [vmem:[%s4120_s9 + $0x58] ss:$36 sps:$4 sm:$0xff]  }
  0x4d   : > { %3563 = vmatpush3.bf16.msra.mxu1 %v3840_v61  ;;  %1722 = vmatprep.mubr.bf16.mxu0 %v3841_v62  ;;  %v3914_v59 = vld [vmem:[%s4120_s9 + $0x2dc] ss:$36 sps:$4 sm:$0xff]  }
  0x4e   : > { %1851 = vmatprep.mubr.bf16.mxu1 %v3843_v63  ;;  %3564 = vmatprep.subr.bf16.mxu1 %v3855_v1  ;;  %v3952_v61 = vld [vmem:[%s4972_s1 + $0x220] sm:$0xff]   ;;  %v3965_v62 = vld [vmem:[%s4972_s1 + $0x218] sm:$0xff]  }
  0x4f   : > { %3464 = vmatprep.subr.bf16.mxu0 %v3897_v24  ;;  %v3918_v63 = vld [vmem:[%s4120_s9 + $0x2d8] ss:$36 sps:$4 sm:$0xff]   ;;  %v3923_v1 = vld [vmem:[%s4120_s9 + $0x324] ss:$36 sps:$4 sm:$0xff]  }
  0x50   : > { %3465 = vmatpush3.bf16.msra.mxu0 %v3898_v25  ;;  %v3959_v24 = vld [vmem:[%s4120_s9 + $0x254] ss:$36 sps:$4 sm:$0xff]   ;;  %v3963_v25 = vld [vmem:[%s4120_s9 + $0x1c] ss:$36 sps:$4 sm:$0xff]  }
  0x51   : > { %3565 = vmatpush3.bf16.msra.mxu1 %v3856_v3  ;;  %3698 = vmatprep.subr.bf16.mxu0 %v3907_v29  ;;  %v3978_v3 = vld [vmem:[%s4972_s1 + $0x210] sm:$0xff]  }
  0x52   : > { %3566 = vmatprep.subr.bf16.mxu1 %v3872_v9  ;;  %v4004_v9 = vld [vmem:[%s4972_s1 + $0x200] sm:$0xff]  }
  0x54   : > { %1723 = vmatmul.mubr.bf16.gmra.mxu0 %v3845_v4  ;;  %1852 = vmatmul.mubr.bf16.gmra.mxu1 %v3846_v5  ;;  %v3927_v4 = vld [vmem:[%s4120_s9 + $0x320] ss:$36 sps:$4 sm:$0xff]   ;;  %v3928_v5 = vld [vmem:[%s4120_s9 + $0xe8] ss:$36 sps:$4 sm:$0xff]  }
  0x55   : > { %1730 = vmatprep.mubr.bf16.mxu0 %v3849_v6  ;;  %1859 = vmatprep.mubr.bf16.mxu1 %v3851_v7  ;;  %v3991_v6 = vld [vmem:[%s4972_s1 + $0x208] sm:$0xff]  }
  0x56   : > { %3567 = vmatpush3.bf16.msra.mxu1 %v3874_v11  ;;  %v3929_v7 = vld [vmem:[%s4120_s9 + $0x36c] ss:$36 sps:$4 sm:$0xff]  }
  0x57   : > { %3568 = vmatprep.subr.bf16.mxu1 %v3889_v18  ;;  %v3934_v11 = vld [vmem:[%s4120_s9 + $0x130] ss:$36 sps:$4 sm:$0xff]   ;;  %v3948_v18 = vld [vmem:[%s4120_s9 + $0x3f8] ss:$36 sps:$4 sm:$0xff]  }
  0x5a   : > { %3569 = vmatpush3.bf16.msra.mxu1 %v3890_v19  ;;  %v3949_v19 = vld [vmem:[%s4120_s9 + $0x1c0] ss:$36 sps:$4 sm:$0xff]  }
  0x5b   : > { %3570 = vmatprep.subr.bf16.mxu1 %v3905_v26  ;;  %v3961_v26 = vld [vmem:[%s4120_s9 + $0x18] ss:$36 sps:$4 sm:$0xff]  }
  0x5c   : > { %1731 = vmatmul.mubr.bf16.gmra.mxu0 %v3853_v12  ;;  %1860 = vmatmul.mubr.bf16.gmra.mxu1 %v3854_v13  ;;  %v3938_v12 = vld [vmem:[%s4120_s9 + $0x3b4] ss:$36 sps:$4 sm:$0xff]   ;;  %v3940_v13 = vld [vmem:[%s4120_s9 + $0x17c] ss:$36 sps:$4 sm:$0xff]  }
  0x5d   : > { %1738 = vmatprep.mubr.bf16.mxu0 %v3859_v14  ;;  %1867 = vmatprep.mubr.bf16.mxu1 %v3861_v17  ;;  %v3942_v14 = vld [vmem:[%s4120_s9 + $0x3b0] ss:$36 sps:$4 sm:$0xff]   ;;  %v3946_v17 = vld [vmem:[%s4120_s9 + $0x1c4] ss:$36 sps:$4 sm:$0xff]  }
  0x5e   : > { %3571 = vmatpush3.bf16.msra.mxu1 %v3906_v28  ;;  %v3966_v28 = vld [vmem:[%s4120_s9 + $0x29c] ss:$36 sps:$4 sm:$0xff]  }
  0x5f   : > { %3572 = vmatprep.subr.bf16.mxu1 %v3920_v33  ;;  %v3974_v33 = vld [vmem:[%s4120_s9 + $0xac] ss:$36 sps:$4 sm:$0xff]  }
  0x62   : > { %3573 = vmatpush3.bf16.msra.mxu1 %v3921_v35  ;;  %v3977_v35 = vld [vmem:[%s4120_s9 + $0xa8] ss:$36 sps:$4 sm:$0xff]  }
  0x63   : > { %3574 = vmatprep.subr.bf16.mxu1 %v3935_v41  ;;  %v3987_v41 = vld [vmem:[%s4120_s9 + $0x13c] ss:$36 sps:$4 sm:$0xff]  }
  0x64   : > { %1739 = vmatmul.mubr.bf16.gmra.mxu0 %v3863_v20  ;;  %1868 = vmatmul.mubr.bf16.gmra.mxu1 %v3864_v21  ;;  %v3953_v20 = vld [vmem:[%s4120_s9 + $0x444] ss:$36 sps:$4 sm:$0xff]   ;;  %v3955_v21 = vld [vmem:[%s4120_s9 + $0x20c] ss:$36 sps:$4 sm:$0xff]  }
  0x65   : > { %1746 = vmatprep.mubr.bf16.mxu0 %v3865_v22  ;;  %1875 = vmatprep.mubr.bf16.mxu1 %v3867_v23  ;;  %v3957_v22 = vld [vmem:[%s4120_s9 + $0x440] ss:$36 sps:$4 sm:$0xff]   ;;  %v3958_v23 = vld [vmem:[%s4120_s9 + $0x208] ss:$36 sps:$4 sm:$0xff]  }
  0x66   : > { %3575 = vmatpush3.bf16.msra.mxu1 %v3936_v42  ;;  %v3989_v42 = vld [vmem:[%s4120_s9 + $0x370] ss:$36 sps:$4 sm:$0xff]  }
  0x67   : > { %3576 = vmatprep.subr.bf16.mxu1 %v3950_v47 }
  0x6a   : > { %3577 = vmatpush3.bf16.msra.mxu1 %v3951_v48 }
  0x6c   : > { %1747 = vmatmul.mubr.bf16.gmra.mxu0 %v3869_v27  ;;  %1876 = vmatmul.mubr.bf16.gmra.mxu1 %v3870_v30  ;;  %v3964_v27 = vld [vmem:[%s4120_s9 + $0x250] ss:$36 sps:$4 sm:$0xff]   ;;  %v3970_v30 = vld [vmem:[%s4120_s9 + $0x298] ss:$36 sps:$4 sm:$0xff]  }
  0x6d   : > { %1754 = vmatprep.mubr.bf16.mxu0 %v3875_v31  ;;  %1883 = vmatprep.mubr.bf16.mxu1 %v3877_v32  ;;  %v3971_v31 = vld [vmem:[%s4120_s9 + $0x60] ss:$36 sps:$4 sm:$0xff]  }
  0x6e   : > { %v3972_v32 = vld [vmem:[%s4120_s9 + $0x2e4] ss:$36 sps:$4 sm:$0xff]  }
  0x74   : > { %1755 = vmatmul.mubr.bf16.gmra.mxu0 %v3879_v34  ;;  %1884 = vmatmul.mubr.bf16.gmra.mxu1 %v3880_v36  ;;  %v3976_v34 = vld [vmem:[%s4120_s9 + $0x2e0] ss:$36 sps:$4 sm:$0xff]   ;;  %v3979_v36 = vld [vmem:[%s4120_s9 + $0x32c] ss:$36 sps:$4 sm:$0xff]  }
  0x75   : > { %1762 = vmatprep.mubr.bf16.mxu0 %v3883_v37  ;;  %1891 = vmatprep.mubr.bf16.mxu1 %v3885_v38  ;;  %v3981_v37 = vld [vmem:[%s4120_s9 + $0xf4] ss:$36 sps:$4 sm:$0xff]   ;;  %v3983_v38 = vld [vmem:[%s4120_s9 + $0x328] ss:$36 sps:$4 sm:$0xff]  }
  0x7c   : > { %1763 = vmatmul.mubr.bf16.gmra.mxu0 %v3887_v39  ;;  %1892 = vmatmul.mubr.bf16.gmra.mxu1 %v3888_v40  ;;  %v3984_v39 = vld [vmem:[%s4120_s9 + $0xf0] ss:$36 sps:$4 sm:$0xff]  }
  0x7d   : > { %1770 = vmatprep.mubr.bf16.mxu0 %v3891_v43  ;;  %1899 = vmatprep.mubr.bf16.mxu1 %v3893_v44  ;;  %v3985_v40 = vld [vmem:[%s4120_s9 + $0x374] ss:$36 sps:$4 sm:$0xff]   ;;  %v3992_v44 = vld [vmem:[%s4120_s9 + $0x3bc] ss:$36 sps:$4 sm:$0xff]  }
  0x7e   : > { %v3990_v43 = vld [vmem:[%s4120_s9 + $0x138] ss:$36 sps:$4 sm:$0xff]  }
  0x84   : > { %1771 = vmatmul.mubr.bf16.gmra.mxu0 %v3895_v45  ;;  %1900 = vmatmul.mubr.bf16.gmra.mxu1 %v3896_v46  ;;  %v3994_v45 = vld [vmem:[%s4120_s9 + $0x184] ss:$36 sps:$4 sm:$0xff]  }
  0x85   : > { %1907 = vmatprep.mubr.bf16.mxu1 %v3899_v49  ;;  %2004 = vmatprep.mubr.bf16.mxu0 %v3903_v50 }
  0x8c   : > { %1908 = vmatmul.mubr.bf16.gmra.mxu1 %v3904_v52  ;;  %2005 = vmatmul.mubr.bf16.vlgmr.msra.gmra.mxu0 %v3901_v51 }
  0x8d   : > { %3699 = vmatpush3.bf16.msra.mxu0 %v3907_v29  ;;  %1915 = vmatprep.mubr.bf16.mxu1 %v3908_v53  ;;  %v3968_v29 = vld [vmem:[%s4120_s9 + $0x64] ss:$36 sps:$4 sm:$0xff]  }
  0x8e   : > { %2012 = vmatprep.mubr.bf16.mxu0 %v3910_v54  ;;  %3700 = vmatprep.subr.bf16.mxu0 %v3922_v55  ;;  %v3996_v54 = vld [vmem:[%s4120_s9 + $0x3b8] ss:$36 sps:$4 sm:$0xff]  }
  0x91   : > { %3701 = vmatpush3.bf16.msra.mxu0 %v3922_v55  ;;  %v3997_v55 = vld [vmem:[%s4120_s9 + $0x180] ss:$36 sps:$4 sm:$0xff]  }
  0x92   : > { %3702 = vmatprep.subr.bf16.mxu0 %v3937_v56 }
  0x94   : > { %1916 = vmatmul.mubr.bf16.gmra.mxu1 %v3912_v57  ;;  %2013 = vmatmul.mubr.bf16.gmra.mxu0 %v3913_v58  ;;  %v4000_v57 = vld [vmem:[%s4120_s9 + $0x1cc] ss:$36 sps:$4 sm:$0xff]  }
  0x95   : > { %1923 = vmatprep.mubr.bf16.mxu1 %v3914_v59  ;;  %2020 = vmatprep.mubr.bf16.mxu0 %v3916_v60 }
  0x96   : > { %3703 = vmatpush3.bf16.msra.mxu0 %v3937_v56  ;;  %v3998_v56 = vld [vmem:[%s4120_s9 + $0x404] ss:$36 sps:$4 sm:$0xff]  }
  0x97   : > { %3704 = vmatprep.subr.bf16.mxu0 %v3952_v61 }
  0x9a   : > { %3705 = vmatpush3.bf16.msra.mxu0 %v3952_v61 }
  0x9b   : > { %3706 = vmatprep.subr.bf16.mxu0 %v3965_v62 }
  0x9c   : > { %1924 = vmatmul.mubr.bf16.gmra.mxu1 %v3918_v63  ;;  %2021 = vmatmul.mubr.bf16.gmra.mxu0 %v3919_v0 }
  0x9d   : > { %1931 = vmatprep.mubr.bf16.mxu1 %v3923_v1  ;;  %2028 = vmatprep.mubr.bf16.mxu0 %v3925_v2 }
  0x9e   : > { %3707 = vmatpush3.bf16.msra.mxu0 %v3965_v62 }
  0x9f   : > { %3708 = vmatprep.subr.bf16.mxu0 %v3978_v3 }
  0xa2   : > { %3709 = vmatpush3.bf16.msra.mxu0 %v3978_v3 }
  0xa3   : > { %3710 = vmatprep.subr.bf16.mxu0 %v3991_v6 }
  0xa4   : > { %1932 = vmatmul.mubr.bf16.gmra.mxu1 %v3927_v4  ;;  %2029 = vmatmul.mubr.bf16.gmra.mxu0 %v3928_v5 }
  0xa5   : > { %1939 = vmatprep.mubr.bf16.mxu1 %v3929_v7  ;;  %2036 = vmatprep.mubr.bf16.mxu0 %v3931_v8  ;;  %v4003_v7 = vld [vmem:[%s4120_s9 + $0x1c8] ss:$36 sps:$4 sm:$0xff]  }
  0xa6   : > { %3711 = vmatpush3.bf16.msra.mxu0 %v3991_v6  ;;  %v4002_v6 = vld [vmem:[%s4120_s9 + $0x400] ss:$36 sps:$4 sm:$0xff]   ;;  %v4005_v8 = vld [vmem:[%s4120_s9 + $0x44c] ss:$36 sps:$4 sm:$0xff]  }
  0xa7   : > { %3712 = vmatprep.subr.bf16.mxu0 %v4004_v9 }
  0xaa   : > { %3713 = vmatpush3.bf16.msra.mxu0 %v4004_v9  ;;  %v4007_v9 = vld [vmem:[%s4120_s9 + $0x214] ss:$36 sps:$4 sm:$0xff]  }
  0xac   : > { %1940 = vmatmul.mubr.bf16.gmra.mxu1 %v3933_v10  ;;  %2037 = vmatmul.mubr.bf16.gmra.mxu0 %v3934_v11 }
  0xad   : > { %1947 = vmatprep.mubr.bf16.mxu1 %v3938_v12  ;;  %2044 = vmatprep.mubr.bf16.mxu0 %v3940_v13 }
  0xb4   : > { %1948 = vmatmul.mubr.bf16.gmra.mxu1 %v3942_v14  ;;  %2045 = vmatmul.mubr.bf16.gmra.mxu0 %v3943_v15 }
  0xb5   : > { %1955 = vmatprep.mubr.bf16.mxu1 %v3944_v16  ;;  %2052 = vmatprep.mubr.bf16.mxu0 %v3946_v17 }
  0xbc   : > { %1956 = vmatmul.mubr.bf16.gmra.mxu1 %v3948_v18  ;;  %2053 = vmatmul.mubr.bf16.gmra.mxu0 %v3949_v19 }
  0xbd   : > { %1963 = vmatprep.mubr.bf16.mxu1 %v3953_v20  ;;  %2060 = vmatprep.mubr.bf16.mxu0 %v3955_v21 }
  0xc4   : > { %1964 = vmatmul.mubr.bf16.gmra.mxu1 %v3957_v22  ;;  %2061 = vmatmul.mubr.bf16.gmra.mxu0 %v3958_v23  ;;  %v4009_v22 = vld [vmem:[%s4120_s9 + $0x448] ss:$36 sps:$4 sm:$0xff]   ;;  %v4010_v23 = vld [vmem:[%s4120_s9 + $0x210] ss:$36 sps:$4 sm:$0xff]  }
  0xc5   : > { %2068 = vmatprep.mubr.bf16.mxu0 %v3959_v24  ;;  %2165 = vmatprep.mubr.bf16.mxu1 %v3963_v25  ;;  %v4013_v24 = vld [vmem:[%s4120_s9 + $0x25c] ss:$36 sps:$4 sm:$0xff]  }
  0xc6   : > { %v4014_v25 = vld [vmem:[%s4120_s9 + $0x20] ss:$36 sps:$4 sm:$0xff]  }
  0xcc   : > { %2069 = vmatmul.mubr.bf16.gmra.mxu0 %v3964_v27  ;;  %2166 = vmatmul.mubr.bf16.vlgmr.msra.gmra.mxu1 %v3961_v26 }
  0xcd   : > { %2076 = vmatprep.mubr.bf16.mxu0 %v3966_v28  ;;  %2173 = vmatprep.mubr.bf16.mxu1 %v3968_v29 }
  0xd4   : > { %2077 = vmatmul.mubr.bf16.gmra.mxu0 %v3970_v30  ;;  %2174 = vmatmul.mubr.bf16.gmra.mxu1 %v3971_v31 }
  0xd5   : > { %2084 = vmatprep.mubr.bf16.mxu0 %v3972_v32  ;;  %2181 = vmatprep.mubr.bf16.mxu1 %v3974_v33 }
  0xdc   : > { %2085 = vmatmul.mubr.bf16.gmra.mxu0 %v3976_v34  ;;  %2182 = vmatmul.mubr.bf16.gmra.mxu1 %v3977_v35 }
  0xdd   : > { %2092 = vmatprep.mubr.bf16.mxu0 %v3979_v36  ;;  %2189 = vmatprep.mubr.bf16.mxu1 %v3981_v37 }
  0xe4   : > { %2093 = vmatmul.mubr.bf16.gmra.mxu0 %v3983_v38  ;;  %2190 = vmatmul.mubr.bf16.gmra.mxu1 %v3984_v39  ;;  %v4011_v38 = vld [vmem:[%s4120_s9 + $0x258] ss:$36 sps:$4 sm:$0xff]   ;;  %v4015_v39 = vld [vmem:[%s4120_s9 + $0x68] ss:$36 sps:$4 sm:$0xff]  }
  0xe5   : > { %2100 = vmatprep.mubr.bf16.mxu0 %v3985_v40  ;;  %2197 = vmatprep.mubr.bf16.mxu1 %v3987_v41  ;;  %v4018_v40 = vld [vmem:[%s4120_s9 + $0x2a4] ss:$36 sps:$4 sm:$0xff]   ;;  %v4019_v41 = vld [vmem:[%s4120_s9 + $0xb0] ss:$36 sps:$4 sm:$0xff]  }
  0xec   : > { %v3242_v46 = vpop.f32.mrf.mxu0  ;;  %v3314_v47 = vpop.f32.mrf.mxu1  ;;  %2101 = vmatmul.mubr.bf16.gmra.mxu0 %v3989_v42  ;;  %2198 = vmatmul.mubr.bf16.gmra.mxu1 %v3990_v43 }
  0xed   : > { %2108 = vmatprep.mubr.bf16.mxu0 %v3992_v44  ;;  %2205 = vmatprep.mubr.bf16.mxu1 %v3994_v45 }
  0xee   : > { %v3243_v48 = vpop.f32.mrf.mxu0  ;;  %v3315_v49 = vpop.f32.mrf.mxu1 }
  0xef   : > { %v4413_v50 = vadd.f32 %v3243_v48, %v3242_v46  ;;  %v4415_v51 = vadd.f32 %v3315_v49, %v3314_v47 }
  0xf0   : > { %v3245_v52 = vpop.f32.mrf.mxu0  ;;  %v3317_v53 = vpop.f32.mrf.mxu1 }
  0xf2   : > { %v3246_v58 = vpop.f32.mrf.mxu0  ;;  %v3318_v59 = vpop.f32.mrf.mxu1 }
  0xf3   : > { %v4421_v60 = vadd.f32 %v3246_v58, %v3245_v52  ;;  %v4423_v61 = vadd.f32 %v3318_v59, %v3317_v53  ;;  %v4023_v59 = vld [vmem:[%s4120_s9 + $0x2ec] ss:$36 sps:$4 sm:$0xff]  }
  0xf4   : > { %v3248_v62 = vpop.f32.mrf.mxu0  ;;  %v3320_v63 = vpop.f32.mrf.mxu1  ;;  %2109 = vmatmul.mubr.bf16.gmra.mxu0 %v3996_v54  ;;  %2206 = vmatmul.mubr.bf16.gmra.mxu1 %v3997_v55 }
  0xf5   : > { %2116 = vmatprep.mubr.bf16.mxu0 %v3998_v56  ;;  %2213 = vmatprep.mubr.bf16.mxu1 %v4000_v57  ;;  %v4016_v56 = vld [vmem:[%s4120_s9 + $0x2a0] ss:$36 sps:$4 sm:$0xff]   ;;  %v4020_v57 = vld [vmem:[%s4120_s9 + $0xf8] ss:$36 sps:$4 sm:$0xff]  }
  0xf6   : > { %v3249_v0 = vpop.f32.mrf.mxu0  ;;  %v3321_v1 = vpop.f32.mrf.mxu1 }
  0xf7   : > { %v4425_v2 = vadd.f32 %v3249_v0, %v3248_v62  ;;  %v4427_v3 = vadd.f32 %v3321_v1, %v3320_v63  ;;  %v4024_v62 = vld [vmem:[%s4120_s9 + $0x140] ss:$36 sps:$4 sm:$0xff]  }
  0xf8   : > { %v3251_v4 = vpop.f32.mrf.mxu0  ;;  %v3323_v5 = vpop.f32.mrf.mxu1 }
  0xfa   : > { %v3252_v10 = vpop.f32.mrf.mxu0  ;;  %v3324_v11 = vpop.f32.mrf.mxu1 }
  0xfb   : > { %v4433_v12 = vadd.f32 %v3252_v10, %v3251_v4  ;;  %v4435_v13 = vadd.f32 %v3324_v11, %v3323_v5 }
  0xfc   : > { %v3254_v14 = vpop.f32.mrf.mxu0  ;;  %v3326_v15 = vpop.f32.mrf.mxu1  ;;  %2117 = vmatmul.mubr.bf16.gmra.mxu0 %v4002_v6  ;;  %2214 = vmatmul.mubr.bf16.gmra.mxu1 %v4003_v7 }
  0xfd   : > { %2124 = vmatprep.mubr.bf16.mxu0 %v4005_v8  ;;  %2221 = vmatprep.mubr.bf16.mxu1 %v4007_v9 }
  0xfe   : > { %v3255_v16 = vpop.f32.mrf.mxu0  ;;  %v3327_v17 = vpop.f32.mrf.mxu1 }
  0xff   : > { %v4437_v18 = vadd.f32 %v3255_v16, %v3254_v14  ;;  %v4439_v19 = vadd.f32 %v3327_v17, %v3326_v15  ;;  %v4021_v15 = vld [vmem:[%s4120_s9 + $0x2e8] ss:$36 sps:$4 sm:$0xff]  }
 0x100   : > { %v3257_v20 = vpop.f32.mrf.mxu0  ;;  %v3329_v21 = vpop.f32.mrf.mxu1  ;;  %v4025_v16 = vld [vmem:[%s4120_s9 + $0x188] ss:$36 sps:$4 sm:$0xff]  }
 0x102   : > { %v3258_v26 = vpop.f32.mrf.mxu0  ;;  %v3330_v27 = vpop.f32.mrf.mxu1 }
 0x103   : > { %v4445_v28 = vadd.f32 %v3258_v26, %v3257_v20  ;;  %v4447_v29 = vadd.f32 %v3330_v27, %v3329_v21  ;;  %v4028_v20 = vld [vmem:[%s4120_s9 + $0x334] ss:$36 sps:$4 sm:$0xff]  }
 0x104   : > { %v3260_v30 = vpop.f32.mrf.mxu0  ;;  %v3332_v31 = vpop.f32.mrf.mxu1  ;;  %2125 = vmatmul.mubr.bf16.gmra.mxu0 %v4009_v22  ;;  %2222 = vmatmul.mubr.bf16.gmra.mxu1 %v4010_v23  ;;  %v4029_v21 = vld [vmem:[%s4120_s9 + $0x1d0] ss:$36 sps:$4 sm:$0xff]  }
 0x105   : > { %2229 = vmatprep.mubr.bf16.mxu1 %v4013_v24  ;;  %3714 = vmatprep.mubr.bf16.mxu0 %v4014_v25 }
 0x106   : > { %v3261_v32 = vpop.f32.mrf.mxu0  ;;  %v3333_v33 = vpop.f32.mrf.mxu1 }
 0x107   : > { %v4449_v34 = vadd.f32 %v3261_v32, %v3260_v30  ;;  %v4451_v35 = vadd.f32 %v3333_v33, %v3332_v31 }
 0x108   : > { %v3263_v36 = vpop.f32.mrf.mxu0  ;;  %v3335_v37 = vpop.f32.mrf.mxu1 }
 0x10a   : > { %v3264_v42 = vpop.f32.mrf.mxu0  ;;  %v3336_v43 = vpop.f32.mrf.mxu1 }
 0x10b   : > { %v4457_v44 = vadd.f32 %v3264_v42, %v3263_v36  ;;  %v4459_v45 = vadd.f32 %v3336_v43, %v3335_v37  ;;  %v4026_v37 = vld [vmem:[%s4120_s9 + $0x330] ss:$36 sps:$4 sm:$0xff]  }
 0x10c   : > { %v3266_v46 = vpop.f32.mrf.mxu0  ;;  %v3354_v47 = vpop.f32.mrf.mxu1  ;;  %2230 = vmatmul.mubr.bf16.gmra.mxu1 %v4011_v38  ;;  %3715 = vmatmul.mubr.bf16.vlgmr.msra.gmra.mxu0 %v4015_v39  ;;  %v4030_v38 = vld [vmem:[%s4120_s9 + $0x218] ss:$36 sps:$4 sm:$0xff]  }
 0x10d   : > { %2237 = vmatprep.mubr.bf16.mxu1 %v4018_v40  ;;  %3718 = vmatprep.mubr.bf16.mxu0 %v4019_v41  ;;  %v4033_v40 = vld [vmem:[%s4120_s9 + $0x37c] ss:$36 sps:$4 sm:$0xff]  }
 0x10e   : > { %v3267_v48 = vpop.f32.mrf.mxu0  ;;  %v3355_v49 = vpop.f32.mrf.mxu1  ;;  %v4034_v41 = vld [vmem:[%s4120_s9 + $0x260] ss:$36 sps:$4 sm:$0xff]  }
 0x10f   : > { %v4461_v52 = vadd.f32 %v3267_v48, %v3266_v46  ;;  %v3356_v53 = vadd.f32 %v3355_v49, %v3354_v47 }
 0x110   : > { %v3269_v54 = vpop.f32.mrf.mxu0  ;;  %v3357_v55 = vpop.f32.mrf.mxu1 }
 0x111   : > { %v4466_v58 = vadd.f32 %v3356_v53, %v4413_v50 }
 0x112   : > { %v3270_v63 = vpop.f32.mrf.mxu0  ;;  %v3358_v0 = vpop.f32.mrf.mxu1 }
 0x113   : > { %v4470_v1 = vadd.f32 %v3270_v63, %v3269_v54  ;;  %v3359_v4 = vadd.f32 %v3358_v0, %v3357_v55  ;;  %v4038_v0 = vld [vmem:[%s4120_s9 + $0x3c4] ss:$36 sps:$4 sm:$0xff]  }
 0x114   : > { %v3272_v5 = vpop.f32.mrf.mxu0  ;;  %v3360_v6 = vpop.f32.mrf.mxu1  ;;  %2238 = vmatmul.mubr.bf16.gmra.mxu1 %v4016_v56  ;;  %3719 = vmatmul.mubr.bf16.gmra.mxu0 %v4020_v57 }
 0x115   : > { %v4473_v7 = vadd.f32 %v3359_v4, %v4421_v60  ;;  %2245 = vmatprep.mubr.bf16.mxu1 %v4023_v59  ;;  %3722 = vmatprep.mubr.bf16.mxu0 %v4024_v62  ;;  %v4031_v59 = vld [vmem:[%s4120_s9 + $0x378] ss:$36 sps:$4 sm:$0xff]   ;;  %v4035_v62 = vld [vmem:[%s4120_s9 + $0x2a8] ss:$36 sps:$4 sm:$0xff]   ;;  %v4039_v4 = vld [vmem:[%s4120_s9 + $0x2f0] ss:$36 sps:$4 sm:$0xff]  }
 0x116   : > { %v3273_v50 = vpop.f32.mrf.mxu0  ;;  %v3361_v8 = vpop.f32.mrf.mxu1 }
 0x117   : > { %v4475_v9 = vadd.f32 %v3273_v50, %v3272_v5  ;;  %v3362_v10 = vadd.f32 %v3361_v8, %v3360_v6 }
 0x118   : > { %v3275_v11 = vpop.f32.mrf.mxu0  ;;  %v3363_v14 = vpop.f32.mrf.mxu1 }
 0x119   : > { %v4480_v17 = vadd.f32 %v3362_v10, %v4425_v2 }
 0x11a   : > { %v3276_v22 = vpop.f32.mrf.mxu0  ;;  %v3364_v23 = vpop.f32.mrf.mxu1 }
 0x11b   : > { %v4484_v60 = vadd.f32 %v3276_v22, %v3275_v11  ;;  %v3365_v24 = vadd.f32 %v3364_v23, %v3363_v14  ;;  %v4036_v22 = vld [vmem:[%s4120_s9 + $0x3c0] ss:$36 sps:$4 sm:$0xff]   ;;  %v4040_v23 = vld [vmem:[%s4120_s9 + $0x338] ss:$36 sps:$4 sm:$0xff]  }
 0x11c   : > { %v3278_v25 = vpop.f32.mrf.mxu0  ;;  %v3366_v26 = vpop.f32.mrf.mxu1  ;;  %2246 = vmatmul.mubr.bf16.gmra.mxu1 %v4021_v15  ;;  %3723 = vmatmul.mubr.bf16.gmra.mxu0 %v4025_v16 }
 0x11d   : > { %v4487_v27 = vadd.f32 %v3365_v24, %v4433_v12  ;;  %2253 = vmatprep.mubr.bf16.mxu1 %v4028_v20  ;;  %3726 = vmatprep.mubr.bf16.mxu0 %v4029_v21 }
 0x11e   : > { %v3279_v2 = vpop.f32.mrf.mxu0  ;;  %v3367_v30 = vpop.f32.mrf.mxu1 }
 0x11f   : > { %v4489_v31 = vadd.f32 %v3279_v2, %v3278_v25  ;;  %v3368_v32 = vadd.f32 %v3367_v30, %v3366_v26  ;;  %v4043_v25 = vld [vmem:[%s4120_s9 + $0x40c] ss:$36 sps:$4 sm:$0xff]   ;;  %v4044_v26 = vld [vmem:[%s4120_s9 + $0x380] ss:$36 sps:$4 sm:$0xff]  }
 0x120   : > { %v3281_v33 = vpop.f32.mrf.mxu0  ;;  %v3369_v36 = vpop.f32.mrf.mxu1 }
 0x121   : > { %v4494_v39 = vadd.f32 %v3368_v32, %v4437_v18 }
 0x122   : > { %v3282_v42 = vpop.f32.mrf.mxu0  ;;  %v3370_v43 = vpop.f32.mrf.mxu1 }
 0x123   : > { %v4498_v12 = vadd.f32 %v3282_v42, %v3281_v33  ;;  %v3371_v46 = vadd.f32 %v3370_v43, %v3369_v36 }
 0x124   : > { %v3284_v47 = vpop.f32.mrf.mxu0  ;;  %v3372_v48 = vpop.f32.mrf.mxu1  ;;  %2254 = vmatmul.mubr.bf16.gmra.mxu1 %v4026_v37  ;;  %3727 = vmatmul.mubr.bf16.gmra.mxu0 %v4030_v38 }
 0x125   : > { %v4501_v49 = vadd.f32 %v3371_v46, %v4445_v28  ;;  %2261 = vmatprep.mubr.bf16.mxu1 %v4033_v40  ;;  %3730 = vmatprep.mubr.bf16.mxu0 %v4034_v41  ;;  %v4041_v46 = vld [vmem:[%s4120_s9 + $0x408] ss:$36 sps:$4 sm:$0xff]  }
 0x126   : > { %v3285_v18 = vpop.f32.mrf.mxu0  ;;  %v3373_v53 = vpop.f32.mrf.mxu1 }
 0x127   : > { %v4503_v54 = vadd.f32 %v3285_v18, %v3284_v47  ;;  %v3374_v55 = vadd.f32 %v3373_v53, %v3372_v48  ;;  %v4045_v47 = vld [vmem:[%s4120_s9 + $0x3c8] ss:$36 sps:$4 sm:$0xff]   ;;  %v4048_v18 = vld [vmem:[%s4120_s9 + $0x454] ss:$36 sps:$4 sm:$0xff]  }
 0x128   : > { %v3287_v56 = vpop.f32.mrf.mxu0  ;;  %v3375_v57 = vpop.f32.mrf.mxu1  ;;  %v4049_v53 = vld [vmem:[%s4120_s9 + $0x410] ss:$36 sps:$4 sm:$0xff]  }
 0x129   : > { %v4508_v63 = vadd.f32 %v3374_v55, %v4449_v34 }
 0x12a   : > { %v3288_v5 = vpop.f32.mrf.mxu0  ;;  %v3376_v6 = vpop.f32.mrf.mxu1 }
 0x12b   : > { %v4512_v28 = vadd.f32 %v3288_v5, %v3287_v56  ;;  %v3377_v50 = vadd.f32 %v3376_v6, %v3375_v57 }
 0x12c   : > { %v3290_v8 = vpop.f32.mrf.mxu0  ;;  %v3378_v10 = vpop.f32.mrf.mxu1  ;;  %2262 = vmatmul.mubr.bf16.gmra.mxu1 %v4031_v59  ;;  %3731 = vmatmul.mubr.bf16.gmra.mxu0 %v4035_v62 }
 0x12d   : > { %v4515_v11 = vadd.f32 %v3377_v50, %v4457_v44  ;;  %2269 = vmatprep.mubr.bf16.mxu1 %v4038_v0  ;;  %3734 = vmatprep.mubr.bf16.mxu0 %v4039_v4 }
 0x12e   : > { %v3291_v34 = vpop.f32.mrf.mxu0  ;;  %v3379_v14 = vpop.f32.mrf.mxu1 }
 0x12f   : > { %v4517_v15 = vadd.f32 %v3291_v34, %v3290_v8  ;;  %v3380_v16 = vadd.f32 %v3379_v14, %v3378_v10  ;;  %v4046_v10 = vld [vmem:[%s4120_s9 + $0x450] ss:$36 sps:$4 sm:$0xff]   ;;  %v4050_v34 = vld [vmem:[%s4120_s9 + $0x458] ss:$36 sps:$4 sm:$0xff]  }
 0x130   : > { %v3293_v20 = vpop.f32.mrf.mxu0  ;;  %v3381_v21 = vpop.f32.mrf.mxu1 }
 0x131   : > { %v4522_v24 = vadd.f32 %v3380_v16, %v4461_v52 }
 0x132   : > { %v3294_v2 = vpop.f32.mrf.mxu0  ;;  %v3382_v30 = vpop.f32.mrf.mxu1 }
 0x133   : > { %v4526_v44 = vadd.f32 %v3294_v2, %v3293_v20  ;;  %v3383_v32 = vadd.f32 %v3382_v30, %v3381_v21 }
 0x134   : > { %v3296_v33 = vpop.f32.mrf.mxu0  ;;  %v3384_v36 = vpop.f32.mrf.mxu1  ;;  %2270 = vmatmul.mubr.bf16.gmra.mxu1 %v4036_v22  ;;  %3735 = vmatmul.mubr.bf16.gmra.mxu0 %v4040_v23 }
 0x135   : > { %v4529_v37 = vadd.f32 %v3383_v32, %v4470_v1  ;;  %2277 = vmatprep.mubr.bf16.mxu1 %v4043_v25  ;;  %3738 = vmatprep.mubr.bf16.mxu0 %v4044_v26 }
 0x136   : > { %v3297_v52 = vpop.f32.mrf.mxu0  ;;  %v3385_v38 = vpop.f32.mrf.mxu1 }
 0x137   : > { %v4531_v40 = vadd.f32 %v3297_v52, %v3296_v33  ;;  %v3386_v41 = vadd.f32 %v3385_v38, %v3384_v36 }
 0x138   : > { %v3299_v42 = vpop.f32.mrf.mxu0  ;;  %v3387_v43 = vpop.f32.mrf.mxu1 }
 0x139   : > { %v4536_v48 = vadd.f32 %v3386_v41, %v4475_v9 }
 0x13a   : > { %v3300_v55 = vpop.f32.mrf.mxu0  ;;  %v3388_v56 = vpop.f32.mrf.mxu1 }
 0x13b   : > { %v4540_v1 = vadd.f32 %v3300_v55, %v3299_v42  ;;  %v3389_v57 = vadd.f32 %v3388_v56, %v3387_v43 }
 0x13c   : > { %v3302_v59 = vpop.f32.mrf.mxu0  ;;  %v3390_v62 = vpop.f32.mrf.mxu1  ;;  %2278 = vmatmul.mubr.bf16.gmra.mxu1 %v4041_v46  ;;  %3739 = vmatmul.mubr.bf16.gmra.mxu0 %v4045_v47 }
 0x13d   : > { %v4543_v0 = vadd.f32 %v3389_v57, %v4484_v60  ;;  %2285 = vmatprep.mubr.bf16.mxu1 %v4048_v18  ;;  %3742 = vmatprep.mubr.bf16.mxu0 %v4049_v53 }
 0x13e   : > { %v3303_v9 = vpop.f32.mrf.mxu0  ;;  %v3391_v4 = vpop.f32.mrf.mxu1 }
 0x13f   : > { %v4545_v5 = vadd.f32 %v3303_v9, %v3302_v59  ;;  %v3392_v6 = vadd.f32 %v3391_v4, %v3390_v62 }
 0x140   : > { %v3305_v50 = vpop.f32.mrf.mxu0  ;;  %v3393_v8 = vpop.f32.mrf.mxu1 }
 0x141   : > { %v4550_v14 = vadd.f32 %v3392_v6, %v4489_v31 }
 0x142   : > { %v3306_v16 = vpop.f32.mrf.mxu0  ;;  %v3394_v20 = vpop.f32.mrf.mxu1 }
 0x143   : > { %v4552_v21 = vadd.f32 %v3306_v16, %v3305_v50  ;;  %v3395_v60 = vadd.f32 %v3394_v20, %v3393_v8 }
 0x144   : > { %v3308_v22 = vpop.f32.mrf.mxu0  ;;  %v3396_v23 = vpop.f32.mrf.mxu1  ;;  %2286 = vmatmul.mubr.bf16.gmra.mxu1 %v4046_v10  ;;  %3743 = vmatmul.mubr.bf16.gmra.mxu0 %v4050_v34 }
 0x145   : > { %v4555_v25 = vadd.f32 %v3395_v60, %v4498_v12 }
 0x146   : > { %v3309_v26 = vpop.f32.mrf.mxu0  ;;  %v3397_v2 = vpop.f32.mrf.mxu1 }
 0x147   : > { %v4557_v30 = vadd.f32 %v3309_v26, %v3308_v22  ;;  %v3398_v32 = vadd.f32 %v3397_v2, %v3396_v23 }
 0x148   : > { %v3311_v33 = vpop.f32.mrf.mxu0  ;;  %v3399_v31 = vpop.f32.mrf.mxu1 }
 0x149   : > { %v4560_v36 = vadd.f32 %v3398_v32, %v4503_v54 }
 0x14a   : > { %v3312_v52 = vpop.f32.mrf.mxu0  ;;  %v3400_v38 = vpop.f32.mrf.mxu1 }
 0x14b   : > { %v4562_v41 = vadd.f32 %v3312_v52, %v3311_v33  ;;  %v3401_v42 = vadd.f32 %v3400_v38, %v3399_v31 }
 0x14c   : > { %v3402_v43 = vpop.f32.mrf.mxu1  ;;  %v3466_v46 = vpop.f32.mrf.mxu0 }
 0x14d   : > { %v4565_v12 = vadd.f32 %v3401_v42, %v4512_v28 }
 0x14e   : > { %v3403_v47 = vpop.f32.mrf.mxu1  ;;  %v3467_v18 = vpop.f32.mrf.mxu0 }
 0x14f   : > { %v3404_v53 = vadd.f32 %v3403_v47, %v3402_v43  ;;  %v3468_v55 = vadd.f32 %v3467_v18, %v3466_v46 }
 0x150   : > { %v3405_v56 = vpop.f32.mrf.mxu1  ;;  %v3469_v57 = vpop.f32.mrf.mxu0 }
 0x151   : > { %v4568_v59 = vadd.f32 %v3404_v53, %v4517_v15  ;;  %v4571_v54 = vadd.f32 %v3468_v55, %v4466_v58 }
 0x152   : > { %v3406_v62 = vpop.f32.mrf.mxu1  ;;  %v3470_v9 = vpop.f32.mrf.mxu0 }
 0x153   : > { %v3407_v4 = vadd.f32 %v3406_v62, %v3405_v56  ;;  %v3471_v6 = vadd.f32 %v3470_v9, %v3469_v57 }
 0x154   : > { %v3408_v50 = vpop.f32.mrf.mxu1  ;;  %v3472_v8 = vpop.f32.mrf.mxu0 }
 0x155   : > { %v4574_v28 = vadd.f32 %v3407_v4, %v4526_v44  ;;  %v4577_v10 = vadd.f32 %v3471_v6, %v4473_v7 }
 0x156   : > { %v3409_v34 = vpop.f32.mrf.mxu1  ;;  %v3473_v16 = vpop.f32.mrf.mxu0 }
 0x157   : > { %v3410_v20 = vadd.f32 %v3409_v34, %v3408_v50  ;;  %v3474_v15 = vadd.f32 %v3473_v16, %v3472_v8 }
 0x158   : > { %v3411_v60 = vpop.f32.mrf.mxu1  ;;  %v3475_v22 = vpop.f32.mrf.mxu0 }
 0x159   : > { %v4580_v58 = vadd.f32 %v3410_v20, %v4531_v40  ;;  %v4583_v23 = vadd.f32 %v3474_v15, %v4480_v17 }
 0x15a   : > { %v3412_v26 = vpop.f32.mrf.mxu1  ;;  %v3476_v2 = vpop.f32.mrf.mxu0 }
 0x15b   : > { %v3413_v32 = vadd.f32 %v3412_v26, %v3411_v60  ;;  %v3477_v44 = vadd.f32 %v3476_v2, %v3475_v22 }
 0x15c   : > { %v3414_v33 = vpop.f32.mrf.mxu1  ;;  %v3478_v31 = vpop.f32.mrf.mxu0 }
 0x15d   : > { %v4586_v7 = vadd.f32 %v3413_v32, %v4540_v1  ;;  %v4589_v52 = vadd.f32 %v3477_v44, %v4487_v27 }
 0x15e   : > { %v3415_v38 = vpop.f32.mrf.mxu1  ;;  %v3479_v42 = vpop.f32.mrf.mxu0 }
 0x15f   : > { %v3416_v43 = vadd.f32 %v3415_v38, %v3414_v33  ;;  %v3480_v40 = vadd.f32 %v3479_v42, %v3478_v31 }
 0x160   : > { %v3417_v46 = vpop.f32.mrf.mxu1  ;;  %v3481_v47 = vpop.f32.mrf.mxu0 }
 0x161   : > { %v4592_v17 = vadd.f32 %v3416_v43, %v4545_v5  ;;  %v4595_v18 = vadd.f32 %v3480_v40, %v4494_v39 }
 0x162   : > { %v3418_v53 = vpop.f32.mrf.mxu1  ;;  %v3482_v55 = vpop.f32.mrf.mxu0 }
 0x163   : > { %v3419_v56 = vadd.f32 %v3418_v53, %v3417_v46  ;;  %v3483_v1 = vadd.f32 %v3482_v55, %v3481_v47 }
 0x164   : > { %v3420_v57 = vpop.f32.mrf.mxu1  ;;  %v3484_v62 = vpop.f32.mrf.mxu0 }
 0x165   : > { %v4598_v27 = vadd.f32 %v3419_v56, %v4552_v21  ;;  %v4601_v9 = vadd.f32 %v3483_v1, %v4501_v49 }
 0x166   : > { %v3421_v4 = vpop.f32.mrf.mxu1  ;;  %v3485_v6 = vpop.f32.mrf.mxu0 }
 0x167   : > { %v3422_v50 = vadd.f32 %v3421_v4, %v3420_v57  ;;  %v3486_v5 = vadd.f32 %v3485_v6, %v3484_v62 }
 0x168   : > { %v3423_v8 = vpop.f32.mrf.mxu1  ;;  %v3487_v34 = vpop.f32.mrf.mxu0 }
 0x169   : > { %v4604_v39 = vadd.f32 %v3422_v50, %v4557_v30  ;;  %v4607_v16 = vadd.f32 %v3486_v5, %v4508_v63 }
 0x16a   : > { %v3424_v20 = vpop.f32.mrf.mxu1  ;;  %v3488_v15 = vpop.f32.mrf.mxu0 }
 0x16b   : > { %v3425_v60 = vadd.f32 %v3424_v20, %v3423_v8  ;;  %v3489_v21 = vadd.f32 %v3488_v15, %v3487_v34 }
 0x16c   : > { %v3426_v22 = vpop.f32.mrf.mxu1  ;;  %v3490_v26 = vpop.f32.mrf.mxu0 }
 0x16d   : > { %v4610_v49 = vadd.f32 %v3425_v60, %v4562_v41  ;;  %v4613_v2 = vadd.f32 %v3489_v21, %v4515_v11 }
 0x16e   : > { %v3427_v32 = vpop.f32.mrf.mxu1  ;;  %v3491_v44 = vpop.f32.mrf.mxu0 }
 0x16f   : > { %v3428_v33 = vadd.f32 %v3427_v32, %v3426_v22  ;;  %v3492_v30 = vadd.f32 %v3491_v44, %v3490_v26 }
 0x170   : > { %v3429_v31 = vpop.f32.mrf.mxu1  ;;  %v3493_v38 = vpop.f32.mrf.mxu0 }
 0x171   : > { %v4616_v63 = vadd.f32 %v3428_v33, %v4415_v51  ;;  %v4619_v42 = vadd.f32 %v3492_v30, %v4522_v24 }
 0x172   : > { %v3430_v43 = vpop.f32.mrf.mxu1  ;;  %v3494_v40 = vpop.f32.mrf.mxu0 }
 0x173   : > { %v3431_v46 = vadd.f32 %v3430_v43, %v3429_v31  ;;  %v3495_v41 = vadd.f32 %v3494_v40, %v3493_v38 }
 0x174   : > { %v3432_v47 = vpop.f32.mrf.mxu1  ;;  %v3496_v53 = vpop.f32.mrf.mxu0 }
 0x175   : > { %v4622_v11 = vadd.f32 %v3431_v46, %v4423_v61  ;;  %v4625_v55 = vadd.f32 %v3495_v41, %v4529_v37 }
 0x176   : > { %v3433_v56 = vpop.f32.mrf.mxu1  ;;  %v3497_v1 = vpop.f32.mrf.mxu0 }
 0x177   : > { %v3434_v57 = vadd.f32 %v3433_v56, %v3432_v47  ;;  %v3498_v51 = vadd.f32 %v3497_v1, %v3496_v53 }
 0x178   : > { %v3435_v62 = vpop.f32.mrf.mxu1  ;;  %v3499_v4 = vpop.f32.mrf.mxu0 }
 0x179   : > { %v4628_v24 = vadd.f32 %v3434_v57, %v4427_v3  ;;  %v4631_v6 = vadd.f32 %v3498_v51, %v4536_v48 }
 0x17a   : > { %v3436_v50 = vpop.f32.mrf.mxu1  ;;  %v3500_v5 = vpop.f32.mrf.mxu0 }
 0x17b   : > { %v3437_v8 = vadd.f32 %v3436_v50, %v3435_v62  ;;  %v3501_v61 = vadd.f32 %v3500_v5, %v3499_v4 }
 0x17c   : > { %v3438_v34 = vpop.f32.mrf.mxu1  ;;  %v3502_v20 = vpop.f32.mrf.mxu0 }
 0x17d   : > { %v4634_v37 = vadd.f32 %v3437_v8, %v4435_v13  ;;  %v4637_v15 = vadd.f32 %v3501_v61, %v4543_v0 }
 0x17e   : > { %v3439_v60 = vpop.f32.mrf.mxu1  ;;  %v3503_v21 = vpop.f32.mrf.mxu0 }
 0x17f   : > { %v3440_v22 = vadd.f32 %v3439_v60, %v3438_v34  ;;  %v3504_v3 = vadd.f32 %v3503_v21, %v3502_v20 }
 0x180   : > { %v3441_v26 = vpop.f32.mrf.mxu1  ;;  %v3505_v32 = vpop.f32.mrf.mxu0 }
 0x181   : > { %v4640_v48 = vadd.f32 %v3440_v22, %v4439_v19  ;;  %v4643_v44 = vadd.f32 %v3504_v3, %v4550_v14 }
 0x182   : > { %v3442_v33 = vpop.f32.mrf.mxu1  ;;  %v3506_v30 = vpop.f32.mrf.mxu0 }
 0x183   : > { %v3443_v31 = vadd.f32 %v3442_v33, %v3441_v26  ;;  %v3507_v13 = vadd.f32 %v3506_v30, %v3505_v32 }
 0x184   : > { %v3444_v38 = vpop.f32.mrf.mxu1  ;;  %v3508_v43 = vpop.f32.mrf.mxu0 }
 0x185   : > { %v4646_v0 = vadd.f32 %v3443_v31, %v4447_v29  ;;  %v4649_v40 = vadd.f32 %v3507_v13, %v4555_v25 }
 0x186   : > { %v3445_v46 = vpop.f32.mrf.mxu1  ;;  %v3509_v41 = vpop.f32.mrf.mxu0 }
 0x187   : > { %v3446_v47 = vadd.f32 %v3445_v46, %v3444_v38  ;;  %v3510_v19 = vadd.f32 %v3509_v41, %v3508_v43 }
 0x188   : > { %v3447_v53 = vpop.f32.mrf.mxu1  ;;  %v3511_v56 = vpop.f32.mrf.mxu0 }
 0x189   : > { %v4652_v14 = vadd.f32 %v3446_v47, %v4451_v35  ;;  %v4655_v1 = vadd.f32 %v3510_v19, %v4560_v36 }
 0x18a   : > { %v3448_v57 = vpop.f32.mrf.mxu1  ;;  %v3512_v51 = vpop.f32.mrf.mxu0 }
 0x18b   : > { %v3449_v62 = vadd.f32 %v3448_v57, %v3447_v53  ;;  %v3513_v29 = vadd.f32 %v3512_v51, %v3511_v56 }
 0x18c   : > { %v3514_v4 = vpop.f32.mrf.mxu0  ;;  %v3578_v50 = vpop.f32.mrf.mxu1 }
 0x18d   : > { %v4658_v25 = vadd.f32 %v3449_v62, %v4459_v45  ;;  %v4661_v5 = vadd.f32 %v3513_v29, %v4565_v12 }
 0x18e   : > { %v3515_v8 = vpop.f32.mrf.mxu0  ;;  %v3579_v61 = vpop.f32.mrf.mxu1 }
 0x18f   : > { %v3516_v34 = vadd.f32 %v3515_v8, %v3514_v4  ;;  %v3580_v35 = vadd.f32 %v3579_v61, %v3578_v50 }
 0x190   : > { %v3517_v20 = vpop.f32.mrf.mxu0  ;;  %v4663_v60 = vpop.f32.mrf.mxu1 }
 0x191   : > { %v4666_v36 = vadd.f32 %v3516_v34, %v4568_v59  ;;  %v4669_v21 = vadd.f32 %v3580_v35, %v4571_v54 }
 0x192   : > { %v3518_v22 = vpop.f32.mrf.mxu0  ;;  %v4671_v3 = vpop.f32.mrf.mxu1 }
 0x193   : > { %v3519_v45 = vadd.f32 %v3518_v22, %v3517_v20 }
 0x194   : > { %v3520_v26 = vpop.f32.mrf.mxu0  ;;  %v4673_v12 = vpop.f32.mrf.mxu1 }
 0x195   : > { %v4676_v32 = vadd.f32 %v3519_v45, %v4574_v28 }
 0x196   : > { %v3521_v33 = vpop.f32.mrf.mxu0  ;;  %v4678_v30 = vpop.f32.mrf.mxu1 }
 0x197   : > { %v3522_v31 = vadd.f32 %v3521_v33, %v3520_v26 }
 0x198   : > { %v3523_v13 = vpop.f32.mrf.mxu0  ;;  %v4680_v59 = vpop.f32.mrf.mxu1 }
 0x199   : > { %v4683_v54 = vadd.f32 %v3522_v31, %v4580_v58 }
 0x19a   : > { %v3524_v38 = vpop.f32.mrf.mxu0  ;;  %v4685_v43 = vpop.f32.mrf.mxu1 }
 0x19b   : > { %v3525_v46 = vadd.f32 %v3524_v38, %v3523_v13 }
 0x19c   : > { %v3526_v41 = vpop.f32.mrf.mxu0  ;;  %v4687_v47 = vpop.f32.mrf.mxu1 }
 0x19d   : > { %v4690_v28 = vadd.f32 %v3525_v46, %v4586_v7 }
 0x19e   : > { %v3527_v19 = vpop.f32.mrf.mxu0  ;;  %v4692_v53 = vpop.f32.mrf.mxu1 }
 0x19f   : > { %4975 = vst [vmem:[#allocation2_spill] sm:$0xff] %v4690_v28  ;;  %v3528_v56 = vadd.f32 %v3527_v19, %v3526_v41 }
 0x1a0   : > { %v3529_v57 = vpop.f32.mrf.mxu0  ;;  %v4694_v51 = vpop.f32.mrf.mxu1 }
 0x1a1   : > { %v4697_v58 = vadd.f32 %v3528_v56, %v4592_v17 }
 0x1a2   : > { %v3530_v62 = vpop.f32.mrf.mxu0  ;;  %v4699_v29 = vpop.f32.mrf.mxu1 }
 0x1a3   : > { %4976 = vst [vmem:[#allocation3_spill] sm:$0xff] %v4697_v58  ;;  %v3531_v4 = vadd.f32 %v3530_v62, %v3529_v57 }
 0x1a4   : > { %v3532_v50 = vpop.f32.mrf.mxu0  ;;  %v4701_v8 = vpop.f32.mrf.mxu1 }
 0x1a5   : > { %v4704_v7 = vadd.f32 %v3531_v4, %v4598_v27 }
 0x1a6   : > { %v3533_v61 = vpop.f32.mrf.mxu0  ;;  %v4706_v34 = vpop.f32.mrf.mxu1 }
 0x1a7   : > { %4977 = vst [vmem:[#allocation4_spill] sm:$0xff] %v4704_v7  ;;  %v3534_v35 = vadd.f32 %v3533_v61, %v3532_v50 }
 0x1a8   : > { %v3535_v20 = vpop.f32.mrf.mxu0  ;;  %v4708_v22 = vpop.f32.mrf.mxu1 }
 0x1a9   : > { %v4711_v17 = vadd.f32 %v3534_v35, %v4604_v39 }
 0x1aa   : > { %v3536_v45 = vpop.f32.mrf.mxu0  ;;  %v4713_v26 = vpop.f32.mrf.mxu1 }
 0x1ab   : > { %4978 = vst [vmem:[#allocation5_spill] sm:$0xff] %v4711_v17  ;;  %v3537_v33 = vadd.f32 %v3536_v45, %v3535_v20 }
 0x1ac   : > { %v3538_v31 = vpop.f32.mrf.mxu0  ;;  %v4715_v13 = vpop.f32.mrf.mxu1 }
 0x1ad   : > { %v4718_v27 = vadd.f32 %v3537_v33, %v4610_v49 }
 0x1ae   : > { %v3539_v38 = vpop.f32.mrf.mxu0  ;;  %v4720_v46 = vpop.f32.mrf.mxu1 }
 0x1af   : > { %4979 = vst [vmem:[#allocation6_spill] sm:$0xff] %v4718_v27  ;;  %v3540_v41 = vadd.f32 %v3539_v38, %v3538_v31 }
 0x1b0   : > { %v3541_v19 = vpop.f32.mrf.mxu0  ;;  %v4722_v56 = vpop.f32.mrf.mxu1 }
 0x1b1   : > { %v4725_v39 = vadd.f32 %v3540_v41, %v4616_v63 }
 0x1b2   : > { %v3542_v57 = vpop.f32.mrf.mxu0  ;;  %v4727_v62 = vpop.f32.mrf.mxu1 }
 0x1b3   : > { %4980 = vst [vmem:[#allocation7_spill] sm:$0xff] %v4725_v39  ;;  %v3543_v4 = vadd.f32 %v3542_v57, %v3541_v19 }
 0x1b4   : > { %v3544_v50 = vpop.f32.mrf.mxu0  ;;  %v3608_v61 = vpop.f32.mrf.mxu1 }
 0x1b5   : > { %v4730_v35 = vadd.f32 %v3543_v4, %v4622_v11 }
 0x1b6   : > { %v3545_v49 = vpop.f32.mrf.mxu0  ;;  %v3609_v20 = vpop.f32.mrf.mxu1 }
 0x1b7   : > { %4981 = vst [vmem:[#allocation8_spill] sm:$0xff] %v4730_v35  ;;  %v3546_v45 = vadd.f32 %v3545_v49, %v3544_v50  ;;  %v2552_v49 = vlaneseq }
 0x1b8   : > { %v3547_v33 = vpop.f32.mrf.mxu0  ;;  %v3611_v31 = vpop.f32.mrf.mxu1 }
 0x1b9   : > { %v4733_v38 = vadd.f32 %v3546_v45, %v4628_v24 }
 0x1ba   : > { %v3548_v27 = vpop.f32.mrf.mxu0  ;;  %v3612_v63 = vpop.f32.mrf.mxu1 }
 0x1bb   : > { %4982 = vst [vmem:[#allocation9_spill] sm:$0xff] %v4733_v38  ;;  %v3549_v41 = vadd.f32 %v3548_v27, %v3547_v33 }
 0x1bc   : > { %v3550_v39 = vpop.f32.mrf.mxu0  ;;  %v4735_v7 = vpop.f32.mrf.mxu1 }
 0x1bd   : > { %v4738_v19 = vadd.f32 %v3549_v41, %v4634_v37  ;;  %v2553_v37 = vshrl.u32 %v2552_v49, 7 }
 0x1be   : > { %v3551_v57 = vpop.f32.mrf.mxu0  ;;  %v4740_v11 = vpop.f32.mrf.mxu1 }
 0x1bf   : > { %4983 = vst [vmem:[#allocation10_spill] sm:$0xff] %v4738_v19  ;;  %v3552_v4 = vadd.f32 %v3551_v57, %v3550_v39  ;;  %v3586_v57 = vadd.f32 %v4678_v30, %v4673_v12  ;;  %v2590_v28 = vsub.s32 2, %v2553_v37 }
 0x1c0   : > { %v3553_v35 = vpop.f32.mrf.mxu0  ;;  %v4742_v50 = vpop.f32.mrf.mxu1 }
 0x1c1   : > { %v4745_v24 = vadd.f32 %v3552_v4, %v4640_v48  ;;  %v2176_v12 = vadd.f32 %v3586_v57, %v4583_v23  ;;  %v3595_v23 = vadd.f32 %v4699_v29, %v4694_v51  ;;  %v3613_v51 = vadd.f32 %v3612_v63, %v3611_v31 }
 0x1c2   : > { %v3554_v45 = vpop.f32.mrf.mxu0  ;;  %v4747_v38 = vpop.f32.mrf.mxu1 }
 0x1c3   : > { %4984 = vst [vmem:[#allocation11_spill] sm:$0xff] %v4745_v24  ;;  %v3555_v27 = vadd.f32 %v3554_v45, %v3553_v35  ;;  %v2554_v24 = vsub.s32 1, %v2553_v37  ;;  %v3589_v35 = vadd.f32 %v4685_v43, %v4680_v59  ;;  %v3601_v37 = vadd.f32 %v4713_v26, %v4708_v22 }
 0x1c4   : > { %v3556_v33 = vpop.f32.mrf.mxu0  ;;  %v4749_v17 = vpop.f32.mrf.mxu1 }
 0x1c5   : > { %v4752_v41 = vadd.f32 %v3555_v27, %v4646_v0  ;;  %v2551_v0 = vld [vmem:[%s4973_s2] sm:$0x7] }
 0x1c6   : > { %v3557_v19 = vpop.f32.mrf.mxu0  ;;  %v4754_v39 = vpop.f32.mrf.mxu1  ;;  %v4796_v29 = vrot.slane %v2551_v0, %v2590_v28 }
 0x1c7   : > { %4985 = vst [vmem:[#allocation12_spill] sm:$0xff] %v4752_v41  ;;  %v3558_v58 = vadd.f32 %v3557_v19, %v3556_v33  ;;  %v4773_v33 = vrot.slane %v2551_v0, %v2554_v24  ;;  %v3598_v24 = vadd.f32 %v4706_v34, %v4701_v8 }
 0x1c8   : > { %v3559_v48 = vpop.f32.mrf.mxu0  ;;  %v4758_v4 = vpop.f32.mrf.mxu1 }
 0x1c9   : > { %v4763_v45 = vadd.f32 %v3558_v58, %v4652_v14  ;;  %v3583_v14 = vadd.f32 %v4671_v3, %v4663_v60  ;;  %v2179_v58 = vadd.f32 %v3589_v35, %v4589_v52 }
 0x1ca   : > { %v3560_v49 = vpop.f32.mrf.mxu0  ;;  %v4768_v27 = vpop.f32.mrf.mxu1 }
 0x1cb   : > { %v3561_v41 = vadd.f32 %v3560_v49, %v3559_v48  ;;  %v3592_v48 = vadd.f32 %v4692_v53, %v4687_v47  ;;  %v3607_v47 = vadd.f32 %v4727_v62, %v4722_v56  ;;  %v3610_v53 = vadd.f32 %v3609_v20, %v3608_v61 }
 0x1cc   : > { %v4771_v30 = vpop.f32.mrf.mxu1  ;;  %v3716_v19 = vpop.f32.mrf.mxu0  ;;  %v2187_v62 = vadd.f32 %v3595_v23, %v4601_v9  ;;  %v2195_v61 = vadd.f32 %v3601_v37, %v4613_v2  ;;  %v3616_v2 = vadd.f32 %v4740_v11, %v4735_v7 }
 0x1cd   : > { %v4778_v59 = vadd.f32 %v3561_v41, %v4658_v25  ;;  %v2337_v43 = vadd.f32 %v3716_v19, %v2176_v12  ;;  %v3604_v25 = vadd.f32 %v4720_v46, %v4715_v13  ;;  %v2171_v13 = vadd.f32 %v3583_v14, %v4577_v10 }
 0x1ce   : > { %v4789_v57 = vpop.f32.mrf.mxu1  ;;  %v2328_v60 = vpop.f32.mrf.mxu0  ;;  %v2184_v56 = vadd.f32 %v3592_v48, %v4595_v18  ;;  %v2208_v12 = vadd.f32 %v3610_v53, %v4631_v6  ;;  %v4818_v19 = vadd.f32 %v3613_v51, %v4637_v15  ;;  %v3619_v6 = vadd.f32 %v4747_v38, %v4742_v50 }
 0x1cf   : > { %vm2457_vm0 = vcmp.gt.f32.partialorder %v2337_v43, 0.0  ;;  %v2489_v52 = vmul.f32 0.2, %v2337_v43  ;;  %v2329_v3 = vadd.f32 %v2328_v60, %v4669_v21  ;;  %v2192_v21 = vadd.f32 %v3598_v24, %v4607_v16 }
 0x1d0   : > { %v4798_v8 = vpop.f32.mrf.mxu1  ;;  %v3717_v34 = vpop.f32.mrf.mxu0  ;;  %v4808_v20 = vadd.f32 %v3604_v25, %v4619_v42  ;;  %v4814_v16 = vadd.f32 %v3607_v47, %v4625_v55  ;;  %v3622_v38 = vadd.f32 %v4754_v39, %v4749_v17  ;;  %v4844_v51 = vadd.f32 %v3616_v2, %v4643_v44 }
 0x1d1   : > { %v2521_v22 = vsel %vm2457_vm0, %v2337_v43, %v2489_v52  ;;  %vm2455_vm1 = vcmp.gt.f32.partialorder %v2329_v3, 0.0  ;;  %v2487_v26 = vmul.f32 0.2, %v2329_v3  ;;  %v2340_v41 = vadd.f32 %v3717_v34, %v2179_v58 }
 0x1d2   : > { %v4800_v35 = vpop.f32.mrf.mxu1  ;;  %v2331_v46 = vpop.f32.mrf.mxu0  ;;  %v2558_v31 = vmul.f32 %v4773_v33, %v2521_v22  ;;  %v3628_v2 = vadd.f32 %v4789_v57, %v4771_v30 }
 0x1d3   : > { %vm2458_vm2 = vcmp.gt.f32.partialorder %v2340_v41, 0.0  ;;  %v2490_v28 = vmul.f32 0.2, %v2340_v41  ;;  %v2519_v63 = vsel %vm2455_vm1, %v2329_v3, %v2487_v26  ;;  %v2332_v0 = vadd.f32 %v2331_v46, %v2171_v13 }
 0x1d4   : > { %v4811_v10 = vpop.f32.mrf.mxu1  ;;  %v3720_v49 = vpop.f32.mrf.mxu0  ;;  %v2556_v55 = vmul.f32 %v4773_v33, %v2519_v63  ;;  %v2594_v15 = vadd.f32 %v4796_v29, %v2558_v31 }
 0x1d5   : > { %v2522_v18 = vsel %vm2458_vm2, %v2340_v41, %v2490_v28  ;;  %v2353_v9 = vadd.f32 %v3720_v49, %v2192_v21  ;;  %vm2456_vm3 = vcmp.gt.f32.partialorder %v2332_v0, 0.0  ;;  %v2488_v14 = vmul.f32 0.2, %v2332_v0 }
 0x1d6   : > { %v2559_v42 = vmul.f32 %v4773_v33, %v2522_v18  ;;  %v4824_v43 = vpop.f32.mrf.mxu1  ;;  %v2344_v58 = vpop.f32.mrf.mxu0  ;;  %v2592_v34 = vadd.f32 %v4796_v29, %v2556_v55  ;;  %v4853_v21 = vadd.f32 %v3619_v6, %v4649_v40  ;;  %v2224_v49 = vadd.f32 %v3622_v38, %v4655_v1 }
 0x1d7   : > { %vm2461_vm4 = vcmp.gt.f32.partialorder %v2353_v9, 0.0  ;;  %v2493_v48 = vmul.f32 0.2, %v2353_v9  ;;  %v2345_v23 = vadd.f32 %v2344_v58, %v2184_v56  ;;  %v2520_v11 = vsel %vm2456_vm3, %v2332_v0, %v2488_v14 }
 0x1d8   : > { %v2595_v7 = vadd.f32 %v4796_v29, %v2559_v42  ;;  %v4831_v24 = vpop.f32.mrf.mxu1  ;;  %v3721_v37 = vpop.f32.mrf.mxu0  ;;  %v2557_v60 = vmul.f32 %v4773_v33, %v2520_v11 }
 0x1d9   : > { %v2525_v25 = vsel %vm2461_vm4, %v2353_v9, %v2493_v48  ;;  %vm2459_vm5 = vcmp.gt.f32.partialorder %v2345_v23, 0.0  ;;  %v2491_v52 = vmul.f32 0.2, %v2345_v23  ;;  %v2356_v3 = vadd.f32 %v3721_v37, %v2195_v61 }
 0x1da   : > { %v3139_v50 = vpack.c.bf16 %v2595_v7, %v2594_v15  ;;  %v4841_v47 = vpop.f32.mrf.mxu1  ;;  %v2347_v53 = vpop.f32.mrf.mxu0  ;;  %v2593_v22 = vadd.f32 %v4796_v29, %v2557_v60  ;;  %v2562_v13 = vmul.f32 %v4773_v33, %v2525_v25  ;;  %v3625_v61 = vadd.f32 %v4768_v27, %v4758_v4 }
 0x1db   : > { %v2523_v26 = vsel %vm2459_vm5, %v2345_v23, %v2491_v52  ;;  %v2348_v41 = vadd.f32 %v2347_v53, %v2187_v62  ;;  %vm2462_vm6 = vcmp.gt.f32.partialorder %v2356_v3, 0.0  ;;  %v2494_v17 = vmul.f32 0.2, %v2356_v3 }
 0x1dc   : > { %3211 = vst [vmem:[%s4836_s21 + $0x8] sm:$0xff] %v3139_v50   ;;  %v4850_v39 = vpop.f32.mrf.mxu1  ;;  %v3724_v46 = vpop.f32.mrf.mxu0  ;;  %v3134_v44 = vpack.c.bf16 %v2593_v22, %v2592_v34  ;;  %v2560_v62 = vmul.f32 %v4773_v33, %v2523_v26  ;;  %v2598_v1 = vadd.f32 %v4796_v29, %v2562_v13  ;;  %v2227_v15 = vadd.f32 %v3625_v61, %v4661_v5 }
 0x1dd   : > { %vm2460_vm7 = vcmp.gt.f32.partialorder %v2348_v41, 0.0  ;;  %v2492_v56 = vmul.f32 0.2, %v2348_v41  ;;  %v2369_v28 = vadd.f32 %v3724_v46, %v2208_v12  ;;  %v2526_v31 = vsel %vm2462_vm6, %v2356_v3, %v2494_v17 }
 0x1de   : > { %v3639_v63 = vpop.f32.mrf.mxu1  ;;  %v2360_v0 = vpop.f32.mrf.mxu0  ;;  %3135 = vst [vmem:[%s4836_s21] sm:$0xff] %v3134_v44   ;;  %v2563_v18 = vmul.f32 %v4773_v33, %v2526_v31  ;;  %v3631_v12 = vadd.f32 %v4800_v35, %v4798_v8  ;;  %v2596_v23 = vadd.f32 %v4796_v29, %v2560_v62  ;;  %v3634_v52 = vadd.f32 %v4824_v43, %v4811_v10 }
 0x1df   : > { %v2524_v9 = vsel %vm2460_vm7, %v2348_v41, %v2492_v56  ;;  %vm2465_vm8 = vcmp.gt.f32.partialorder %v2369_v28, 0.0  ;;  %v2497_v40 = vmul.f32 0.2, %v2369_v28  ;;  %v2361_v27 = vadd.f32 %v2360_v0, %v4808_v20 }
 0x1e0   : > { %v2561_v4 = vmul.f32 %v4773_v33, %v2524_v9  ;;  %v4867_v42 = vpop.f32.mrf.mxu1  ;;  %v3725_v14 = vpop.f32.mrf.mxu0  ;;  %v2599_v58 = vadd.f32 %v4796_v29, %v2563_v18  ;;  %v2232_v3 = vadd.f32 %v3628_v2, %v4666_v36  ;;  %v4884_v26 = vadd.f32 %v3631_v12, %v4676_v32 }
 0x1e1   : > { %v2529_v55 = vsel %vm2465_vm8, %v2369_v28, %v2497_v40  ;;  %v2372_v48 = vadd.f32 %v3725_v14, %v4818_v19  ;;  %vm2463_vm9 = vcmp.gt.f32.partialorder %v2361_v27, 0.0  ;;  %v2495_v57 = vmul.f32 0.2, %v2361_v27 }
 0x1e2   : > { %v2597_v30 = vadd.f32 %v4796_v29, %v2561_v4  ;;  %v3642_v8 = vpop.f32.mrf.mxu1  ;;  %v2363_v35 = vpop.f32.mrf.mxu0  ;;  %v3149_v20 = vpack.c.bf16 %v2599_v58, %v2598_v1  ;;  %v2566_v11 = vmul.f32 %v4773_v33, %v2529_v55 }
 0x1e3   : > { %vm2466_vm10 = vcmp.gt.f32.partialorder %v2372_v48, 0.0  ;;  %v2498_v6 = vmul.f32 0.2, %v2372_v48  ;;  %v2527_v37 = vsel %vm2463_vm9, %v2361_v27, %v2495_v57  ;;  %v2364_v19 = vadd.f32 %v2363_v35, %v4814_v16  ;;  %v4987_v35 = vld [vmem:[#allocation3_spill] sm:$0xff] }
 0x1e4   : > { %v3144_v7 = vpack.c.bf16 %v2597_v30, %v2596_v23  ;;  %v3644_v60 = vpop.f32.mrf.mxu1  ;;  %v3728_v25 = vpop.f32.mrf.mxu0  ;;  %3213 = vst [vmem:[%s4836_s21 + $0x18] sm:$0xff] %v3149_v20   ;;  %v3637_v16 = vadd.f32 %v4841_v47, %v4831_v24  ;;  %v2564_v10 = vmul.f32 %v4773_v33, %v2527_v37  ;;  %v2602_v41 = vadd.f32 %v4796_v29, %v2566_v11 }
 0x1e5   : > { %v2530_v38 = vsel %vm2466_vm10, %v2372_v48, %v2498_v6  ;;  %v2385_v50 = vadd.f32 %v3728_v25, %v2224_v49  ;;  %vm2464_vm11 = vcmp.gt.f32.partialorder %v2364_v19, 0.0  ;;  %v2496_v5 = vmul.f32 0.2, %v2364_v19  ;;  %v4988_v25 = vld [vmem:[#allocation5_spill] sm:$0xff] }
 0x1e6   : > { %3212 = vst [vmem:[%s4836_s21 + $0x10] sm:$0xff] %v3144_v7   ;;  %v2567_v53 = vmul.f32 %v4773_v33, %v2530_v38  ;;  %v3645_v34 = vpop.f32.mrf.mxu1  ;;  %v2376_v22 = vpop.f32.mrf.mxu0  ;;  %v2240_v24 = vadd.f32 %v3634_v52, %v4683_v54  ;;  %v3640_v47 = vadd.f32 %v3639_v63, %v4850_v39  ;;  %v2600_v49 = vadd.f32 %v4796_v29, %v2564_v10  ;;  %v4986_v63 = vld [vmem:[#allocation2_spill] sm:$0xff] }
 0x1e7   : > { %vm2469_vm12 = vcmp.gt.f32.partialorder %v2385_v50, 0.0  ;;  %v2501_v43 = vmul.f32 0.2, %v2385_v50  ;;  %v2528_v13 = vsel %vm2464_vm11, %v2364_v19, %v2496_v5  ;;  %v2377_v17 = vadd.f32 %v2376_v22, %v4844_v51 }
 0x1e8   : > { %v2603_v36 = vadd.f32 %v4796_v29, %v2567_v53  ;;  %v3647_v46 = vpop.f32.mrf.mxu1  ;;  %v3729_v44 = vpop.f32.mrf.mxu0  ;;  %v2565_v32 = vmul.f32 %v4773_v33, %v2528_v13  ;;  %v2243_v12 = vadd.f32 %v3637_v16, %v4986_v63  ;;  %v3646_v27 = vadd.f32 %v3645_v34, %v3644_v60 }
 0x1e9   : > { %v2533_v56 = vsel %vm2469_vm12, %v2385_v50, %v2501_v43  ;;  %v2388_v28 = vadd.f32 %v3729_v44, %v2227_v15  ;;  %vm2467_vm13 = vcmp.gt.f32.partialorder %v2377_v17, 0.0  ;;  %v2499_v62 = vmul.f32 0.2, %v2377_v17 }
 0x1ea   : > { %v3159_v61 = vpack.c.bf16 %v2603_v36, %v2602_v41  ;;  %v3648_v31 = vpop.f32.mrf.mxu1  ;;  %v2379_v0 = vpop.f32.mrf.mxu0  ;;  %v2601_v51 = vadd.f32 %v4796_v29, %v2565_v32  ;;  %v2570_v9 = vmul.f32 %v4773_v33, %v2533_v56  ;;  %v3643_v58 = vadd.f32 %v3642_v8, %v4867_v42 }
 0x1eb   : > { %vm2470_vm14 = vcmp.gt.f32.partialorder %v2388_v28, 0.0  ;;  %v2502_v18 = vmul.f32 0.2, %v2388_v28  ;;  %v2531_v40 = vsel %vm2467_vm13, %v2377_v17, %v2499_v62  ;;  %v2380_v54 = vadd.f32 %v2379_v0, %v4853_v21  ;;  %v4989_v17 = vld [vmem:[#allocation4_spill] sm:$0xff] }
 0x1ec   : > { %3215 = vst [vmem:[%s4836_s21 + $0x28] sm:$0xff] %v3159_v61   ;;  %v3650_v2 = vpop.f32.mrf.mxu1  ;;  %v3732_v39 = vpop.f32.mrf.mxu0  ;;  %v3154_v4 = vpack.c.bf16 %v2601_v51, %v2600_v49  ;;  %v2568_v57 = vmul.f32 %v4773_v33, %v2531_v40  ;;  %v2248_v20 = vadd.f32 %v3640_v47, %v4987_v35  ;;  %v2606_v6 = vadd.f32 %v4796_v29, %v2570_v9 }
 0x1ed   : > { %v2534_v14 = vsel %vm2470_vm14, %v2388_v28, %v2502_v18  ;;  %v2401_v1 = vadd.f32 %v3732_v39, %v2240_v24  ;;  %vm2468_vm15 = vcmp.gt.f32.partialorder %v2380_v54, 0.0  ;;  %v2500_v48 = vmul.f32 0.2, %v2380_v54 }
 0x1ee   : > { %v2571_v55 = vmul.f32 %v4773_v33, %v2534_v14  ;;  %v3651_v23 = vpop.f32.mrf.mxu1  ;;  %v2392_v30 = vpop.f32.mrf.mxu0  ;;  %3214 = vst [vmem:[%s4836_s21 + $0x20] sm:$0xff] %v3154_v4   ;;  %v2256_v52 = vadd.f32 %v3646_v27, %v4988_v25  ;;  %v3649_v50 = vadd.f32 %v3648_v31, %v3647_v46  ;;  %v2604_v22 = vadd.f32 %v4796_v29, %v2568_v57  ;;  %v4990_v31 = vld [vmem:[#allocation6_spill] sm:$0xff] }
 0x1ef   : > { %vm2473_vm0 = vcmp.gt.f32.partialorder %v2401_v1, 0.0  ;;  %v2505_v21 = vmul.f32 0.2, %v2401_v1  ;;  %v2532_v7 = vsel %vm2468_vm15, %v2380_v54, %v2500_v48  ;;  %v2393_v11 = vadd.f32 %v2392_v30, %v2232_v3  ;;  %v4991_v48 = vld [vmem:[#allocation9_spill] sm:$0xff] }
 0x1f0   : > { %v2607_v15 = vadd.f32 %v4796_v29, %v2571_v55  ;;  %v4908_v42 = vpop.f32.mrf.mxu1  ;;  %v3733_v8 = vpop.f32.mrf.mxu0  ;;  %v2569_v37 = vmul.f32 %v4773_v33, %v2532_v7  ;;  %v2251_v46 = vadd.f32 %v3643_v58, %v4989_v17  ;;  %v2259_v0 = vadd.f32 %v3649_v50, %v4990_v31 }
 0x1f1   : > { %v2537_v19 = vsel %vm2473_vm0, %v2401_v1, %v2505_v21  ;;  %v2404_v60 = vadd.f32 %v3733_v8, %v2243_v12  ;;  %vm2471_vm1 = vcmp.gt.f32.partialorder %v2393_v11, 0.0  ;;  %v2503_v53 = vmul.f32 0.2, %v2393_v11 }
 0x1f2   : > { %v3169_v38 = vpack.c.bf16 %v2607_v15, %v2606_v6  ;;  %v3654_v5 = vpop.f32.mrf.mxu1  ;;  %v2395_v34 = vpop.f32.mrf.mxu0  ;;  %v2605_v3 = vadd.f32 %v4796_v29, %v2569_v37  ;;  %v2574_v10 = vmul.f32 %v4773_v33, %v2537_v19  ;;  %v3652_v49 = vadd.f32 %v3651_v23, %v3650_v2  ;;  %v4992_v19 = vld [vmem:[#allocation7_spill] sm:$0xff] }
 0x1f3   : > { %vm2474_vm2 = vcmp.gt.f32.partialorder %v2404_v60, 0.0  ;;  %v2506_v16 = vmul.f32 0.2, %v2404_v60  ;;  %v2535_v43 = vsel %vm2471_vm1, %v2393_v11, %v2503_v53  ;;  %v2396_v41 = vadd.f32 %v2395_v34, %v4884_v26 }
 0x1f4   : > { %3217 = vst [vmem:[%s4836_s21 + $0x38] sm:$0xff] %v3169_v38   ;;  %v3656_v36 = vpop.f32.mrf.mxu1  ;;  %v3736_v13 = vpop.f32.mrf.mxu0  ;;  %v3164_v44 = vpack.c.bf16 %v2605_v3, %v2604_v22  ;;  %v2572_v32 = vmul.f32 %v4773_v33, %v2535_v43  ;;  %v2610_v18 = vadd.f32 %v4796_v29, %v2574_v10  ;;  %v3655_v25 = vadd.f32 %v3654_v5, %v4908_v42  ;;  %v4993_v3 = vld [vmem:[#allocation10_spill] sm:$0xff] }
 0x1f5   : > { %v2538_v56 = vsel %vm2474_vm2, %v2404_v60, %v2506_v16  ;;  %v2417_v28 = vadd.f32 %v3736_v13, %v2256_v52  ;;  %vm2472_vm3 = vcmp.gt.f32.partialorder %v2396_v41, 0.0  ;;  %v2504_v47 = vmul.f32 0.2, %v2396_v41 }
 0x1f6   : > { %v2575_v24 = vmul.f32 %v4773_v33, %v2538_v56  ;;  %v3657_v61 = vpop.f32.mrf.mxu1  ;;  %v2408_v62 = vpop.f32.mrf.mxu0  ;;  %3216 = vst [vmem:[%s4836_s21 + $0x30] sm:$0xff] %v3164_v44   ;;  %v2608_v12 = vadd.f32 %v4796_v29, %v2572_v32  ;;  %v2264_v60 = vadd.f32 %v3652_v49, %v4992_v19 }
 0x1f7   : > { %vm2477_vm4 = vcmp.gt.f32.partialorder %v2417_v28, 0.0  ;;  %v2509_v26 = vmul.f32 0.2, %v2417_v28  ;;  %v3658_v51 = vadd.f32 %v3657_v61, %v3656_v36  ;;  %v2536_v40 = vsel %vm2472_vm3, %v2396_v41, %v2504_v47 }
 0x1f8   : > { %v2611_v9 = vadd.f32 %v4796_v29, %v2575_v24  ;;  %v2409_v54 = vadd.f32 %v2408_v62, %v2248_v20  ;;  %v3659_v39 = vpop.f32.mrf.mxu1  ;;  %v3737_v63 = vpop.f32.mrf.mxu0  ;;  %v2573_v4 = vmul.f32 %v4773_v33, %v2536_v40  ;;  %v4994_v24 = vld [vmem:[#allocation8_spill] sm:$0xff] }
 0x1f9   : > { %v2541_v27 = vsel %vm2477_vm4, %v2417_v28, %v2509_v26  ;;  %v2420_v14 = vadd.f32 %v3737_v63, %v2259_v0  ;;  %v2272_v23 = vadd.f32 %v3658_v51, %v4991_v48  ;;  %v2267_v47 = vadd.f32 %v3655_v25, %v4994_v24 }
 0x1fa   : > { %v3179_v1 = vpack.c.bf16 %v2611_v9, %v2610_v18  ;;  %vm2475_vm5 = vcmp.gt.f32.partialorder %v2409_v54, 0.0  ;;  %v2507_v2 = vmul.f32 0.2, %v2409_v54  ;;  %v3660_v58 = vpop.f32.mrf.mxu1  ;;  %v2411_v55 = vpop.f32.mrf.mxu0  ;;  %v2609_v30 = vadd.f32 %v4796_v29, %v2573_v4 }
 0x1fb   : > { %vm2478_vm6 = vcmp.gt.f32.partialorder %v2420_v14, 0.0  ;;  %v2510_v57 = vmul.f32 0.2, %v2420_v14  ;;  %v3661_v21 = vadd.f32 %v3660_v58, %v3659_v39  ;;  %v2578_v35 = vmul.f32 %v4773_v33, %v2541_v27  ;;  %v4995_v39 = vld [vmem:[#allocation11_spill] sm:$0xff] }
 0x1fc   : > { %3219 = vst [vmem:[%s4836_s21 + $0x48] sm:$0xff] %v3179_v1   ;;  %v2539_v20 = vsel %vm2475_vm5, %v2409_v54, %v2507_v2  ;;  %v2412_v6 = vadd.f32 %v2411_v55, %v2251_v46  ;;  %v3662_v15 = vpop.f32.mrf.mxu1  ;;  %v3740_v7 = vpop.f32.mrf.mxu0  ;;  %v3174_v11 = vpack.c.bf16 %v2609_v30, %v2608_v12 }
 0x1fd   : > { %v2542_v8 = vsel %vm2478_vm6, %v2420_v14, %v2510_v57  ;;  %v2433_v37 = vadd.f32 %v3740_v7, %v2272_v23  ;;  %v2576_v34 = vmul.f32 %v4773_v33, %v2539_v20  ;;  %v2275_v16 = vadd.f32 %v3661_v21, %v4993_v3 }
 0x1fe   : > { %v2579_v52 = vmul.f32 %v4773_v33, %v2542_v8  ;;  %vm2476_vm7 = vcmp.gt.f32.partialorder %v2412_v6, 0.0  ;;  %v2508_v38 = vmul.f32 0.2, %v2412_v6  ;;  %v3663_v50 = vpop.f32.mrf.mxu1  ;;  %v2424_v53 = vpop.f32.mrf.mxu0  ;;  %3218 = vst [vmem:[%s4836_s21 + $0x40] sm:$0xff] %v3174_v11   ;;  %v2614_v10 = vadd.f32 %v4796_v29, %v2578_v35  ;;  %v4996_v11 = vld [vmem:[#allocation12_spill] sm:$0xff] }
 0x1ff   : > { %vm2481_vm8 = vcmp.gt.f32.partialorder %v2433_v37, 0.0  ;;  %v2513_v22 = vmul.f32 0.2, %v2433_v37  ;;  %v2425_v36 = vadd.f32 %v2424_v53, %v2264_v60  ;;  %v3664_v46 = vadd.f32 %v3663_v50, %v3662_v15 }
 0x200   : > { %v2615_v43 = vadd.f32 %v4796_v29, %v2579_v52  ;;  %v2540_v41 = vsel %vm2476_vm7, %v2412_v6, %v2508_v38  ;;  %v3665_v42 = vpop.f32.mrf.mxu1  ;;  %v3741_v5 = vpop.f32.mrf.mxu0  ;;  %v2612_v62 = vadd.f32 %v4796_v29, %v2576_v34 }
 0x201   : > { %v2577_v13 = vmul.f32 %v4773_v33, %v2540_v41  ;;  %v2545_v17 = vsel %vm2481_vm8, %v2433_v37, %v2513_v22  ;;  %v2436_v44 = vadd.f32 %v3741_v5, %v2275_v16  ;;  %vm2479_vm9 = vcmp.gt.f32.partialorder %v2425_v36, 0.0 }
 0x202   : > { %v3189_v32 = vpack.c.bf16 %v2615_v43, %v2614_v10  ;;  %v2511_v56 = vmul.f32 0.2, %v2425_v36  ;;  %v3666_v28 = vpop.f32.mrf.mxu1  ;;  %v2427_v61 = vpop.f32.mrf.mxu0  ;;  %v2582_v49 = vmul.f32 %v4773_v33, %v2545_v17  ;;  %v2280_v63 = vadd.f32 %v3664_v46, %v4995_v39 }
 0x203   : > { %v2613_v31 = vadd.f32 %v4796_v29, %v2577_v13  ;;  %vm2482_vm10 = vcmp.gt.f32.partialorder %v2436_v44, 0.0  ;;  %v2514_v0 = vmul.f32 0.2, %v2436_v44  ;;  %v2428_v51 = vadd.f32 %v2427_v61, %v2267_v47 }
 0x204   : > { %3221 = vst [vmem:[%s4836_s21 + $0x58] sm:$0xff] %v3189_v32   ;;  %v2543_v26 = vsel %vm2479_vm9, %v2425_v36, %v2511_v56  ;;  %v3668_v18 = vpop.f32.mrf.mxu1  ;;  %v3744_v9 = vpop.f32.mrf.mxu0  ;;  %v3667_v4 = vadd.f32 %v3666_v28, %v3665_v42  ;;  %v2618_v48 = vadd.f32 %v4796_v29, %v2582_v49 }
 0x205   : > { %v3184_v40 = vpack.c.bf16 %v2613_v31, %v2612_v62  ;;  %v2546_v54 = vsel %vm2482_vm10, %v2436_v44, %v2514_v0  ;;  %vm2480_vm11 = vcmp.gt.f32.partialorder %v2428_v51, 0.0  ;;  %v2512_v27 = vmul.f32 0.2, %v2428_v51 }
 0x206   : > { %v2583_v12 = vmul.f32 %v4773_v33, %v2546_v54  ;;  %v3669_v14 = vpop.f32.mrf.mxu1  ;;  %v2440_v1 = vpop.f32.mrf.mxu0  ;;  %v2580_v2 = vmul.f32 %v4773_v33, %v2543_v26  ;;  %v2283_v8 = vadd.f32 %v3667_v4, %v4996_v11 }
 0x207   : > { %3220 = vst [vmem:[%s4836_s21 + $0x50] sm:$0xff] %v3184_v40   ;;  %v3670_v58 = vadd.f32 %v3669_v14, %v3668_v18  ;;  %v2441_v55 = vadd.f32 %v2440_v1, %v2280_v63  ;;  %v2544_v30 = vsel %vm2480_vm11, %v2428_v51, %v2512_v27 }
 0x208   : > { %v2619_v23 = vadd.f32 %v4796_v29, %v2583_v12  ;;  %v3671_v57 = vpop.f32.mrf.mxu1  ;;  %v3745_v21 = vpop.f32.mrf.mxu0  ;;  %v2581_v35 = vmul.f32 %v4773_v33, %v2544_v30  ;;  %v2616_v19 = vadd.f32 %v4796_v29, %v2580_v2 }
 0x209   : > { %v2288_v20 = vadd.f32 %v3670_v58, %v4763_v45  ;;  %vm2483_vm12 = vcmp.gt.f32.partialorder %v2441_v55, 0.0  ;;  %v2515_v6 = vmul.f32 0.2, %v2441_v55 }
 0x20a   : > { %v3199_v15 = vpack.c.bf16 %v2619_v23, %v2618_v48  ;;  %v3672_v7 = vpop.f32.mrf.mxu1  ;;  %v2443_v37 = vpop.f32.mrf.mxu0  ;;  %v2617_v60 = vadd.f32 %v4796_v29, %v2581_v35 }
 0x20b   : > { %v2449_v25 = vadd.f32 %v3744_v9, %v2288_v20  ;;  %v3673_v52 = vadd.f32 %v3672_v7, %v3671_v57  ;;  %v2547_v38 = vsel %vm2483_vm12, %v2441_v55, %v2515_v6  ;;  %v2444_v50 = vadd.f32 %v2443_v37, %v2283_v8 }
 0x20c   : > { %3223 = vst [vmem:[%s4836_s21 + $0x68] sm:$0xff] %v3199_v15   ;;  %v3194_v53 = vpack.c.bf16 %v2617_v60, %v2616_v19  ;;  %v2584_v16 = vmul.f32 %v4773_v33, %v2547_v38 }
 0x20d   : > { %vm2485_vm13 = vcmp.gt.f32.partialorder %v2449_v25, 0.0  ;;  %v2517_v45 = vmul.f32 0.2, %v2449_v25  ;;  %v2291_v34 = vadd.f32 %v3673_v52, %v4778_v59  ;;  %vm2484_vm14 = vcmp.gt.f32.partialorder %v2444_v50, 0.0 }
 0x20e   : > { %v2516_v22 = vmul.f32 0.2, %v2444_v50  ;;  %3222 = vst [vmem:[%s4836_s21 + $0x60] sm:$0xff] %v3194_v53   ;;  %v2620_v5 = vadd.f32 %v4796_v29, %v2584_v16 }
 0x20f   : > { %v2549_v3 = vsel %vm2485_vm13, %v2449_v25, %v2517_v45  ;;  %v2452_v10 = vadd.f32 %v3745_v21, %v2291_v34 }
 0x210   : > { %v2548_v43 = vsel %vm2484_vm14, %v2444_v50, %v2516_v22  ;;  %v2586_v42 = vmul.f32 %v4773_v33, %v2549_v3 }
 0x211   : > { %vm2486_vm15 = vcmp.gt.f32.partialorder %v2452_v10, 0.0  ;;  %v2518_v41 = vmul.f32 0.2, %v2452_v10  ;;  %v2585_v36 = vmul.f32 %v4773_v33, %v2548_v43 }
 0x212   : > { %v2622_v44 = vadd.f32 %v4796_v29, %v2586_v42 }
 0x213   : > { %v2550_v13 = vsel %vm2486_vm15, %v2452_v10, %v2518_v41  ;;  %v2621_v59 = vadd.f32 %v4796_v29, %v2585_v36 }
 0x214   : > { %v2587_v17 = vmul.f32 %v4773_v33, %v2550_v13 }
 0x215   : > { %v3204_v46 = vpack.c.bf16 %v2621_v59, %v2620_v5 }
 0x216   : > { %v2623_v32 = vadd.f32 %v4796_v29, %v2587_v17 }
 0x217   : > { %3224 = vst [vmem:[%s4836_s21 + $0x70] sm:$0xff] %v3204_v46  }
 0x218   : > { %v3209_v56 = vpack.c.bf16 %v2623_v32, %v2622_v44 }
 0x21a   : > { %3225 = vst [vmem:[%s4836_s21 + $0x78] sm:$0xff] %v3209_v56  }
 0x21b PF: > { %s13_s12 = sadd.s32 1, %s4057_s12  }
 0x21c   : > { %p10_p4 = scmp.ge.s32.totalorder %s13_s12, 4  }
 0x21e   :  { %12 = sbr.rel (!%p10_p4) target bundleno = 1 (0x1), region = 62 }

// kernel: net_forward.8
= control target key start
LH: loop header
LB: loop body
LE: loop exit
PB: predicated region body
PF: predicated region fallthrough
CT: control target
= control target key end

     0   :  { %vm2258_vm0 = vmmov 0   ;;  %s2948_s1 = inlined_call_operand.vmem [shape: bf16[1152,128], index: 1, kind: input, shape index: {}]   ;;  %s2949_s0 = inlined_call_operand.vmem [shape: bf16[112,1152], index: 0, kind: input, shape index: {}]   ;;  %s2950_s2 = inlined_call_operand.vmem [shape: f32[3,128], index: 2, kind: input, shape index: {}]   ;;  %s2951_s3 = inlined_call_operand.vmem [shape: bf16[112,128], index: 3, kind: output, shape index: {}]  }
   0x1   :  { %v2094_v0 = vld [vmem:[%s2948_s1 + $0x78] sm:$0xff]   ;;  %v2096_v2 = vld [vmem:[%s2948_s1 + $0x70] sm:$0xff]   ;;  %v2098_v4 = vld [vmem:[%s2948_s1 + $0x68] sm:$0xff]  }
   0x2   :  { %v2095_v1 = vld [vmem:[%s2948_s1 + $0x38] sm:$0xff]   ;;  %2076 = vmatprep.subr.bf16.mxu1 %v2094_v0  ;;  %1785 = vmatprep.subr.bf16.mxu0 %v2094_v0  ;;  %v2097_v3 = vld [vmem:[%s2948_s1 + $0x30] sm:$0xff]   ;;  %v2099_v5 = vld [vmem:[%s2948_s1 + $0x28] sm:$0xff]  }
   0x3   :  { %2084 = vmatpush3.bf16.msra.mxu1 %v2095_v1  ;;  %1786 = vmatpush3.bf16.msra.mxu0 %v2095_v1  ;;  %v2100_v6 = vld [vmem:[%s2948_s1 + $0x60] sm:$0xff]   ;;  %v2102_v8 = vld [vmem:[%s2948_s1 + $0x58] sm:$0xff]   ;;  %v2104_v10 = vld [vmem:[%s2948_s1 + $0x50] sm:$0xff]  }
   0x4   :  { %2077 = vmatprep.subr.bf16.mxu1 %v2096_v2  ;;  %1787 = vmatprep.subr.bf16.mxu0 %v2096_v2  ;;  %v2101_v7 = vld [vmem:[%s2948_s1 + $0x20] sm:$0xff]   ;;  %v2103_v9 = vld [vmem:[%s2948_s1 + $0x18] sm:$0xff]   ;;  %v2105_v13 = vld [vmem:[%s2948_s1 + $0x10] sm:$0xff]  }
   0x5   :  { %v2112_v11 = vld [vmem:[%s2949_s0 + $0x124] ss:$36 sps:$4 sm:$0xff]   ;;  %v2116_v20 = vld [vmem:[%s2948_s1 + $0xf8] sm:$0xff]   ;;  %v2120_v24 = vld [vmem:[%s2948_s1 + $0xf0] sm:$0xff]  }
   0x6   :  { %v2115_v12 = vld [vmem:[%s2949_s0 + $0x4] ss:$36 sps:$4 sm:$0xff]   ;;  %1047 = vmatprep.mubr.bf16.mxu1 %v2112_v11  ;;  %v2118_v21 = vld [vmem:[%s2948_s1 + $0x178] sm:$0xff]   ;;  %v2122_v25 = vld [vmem:[%s2948_s1 + $0x170] sm:$0xff]  }
   0x7   :  { %2085 = vmatpush3.bf16.msra.mxu1 %v2097_v3  ;;  %1788 = vmatpush3.bf16.msra.mxu0 %v2097_v3  ;;  %v2106_v14 = vld [vmem:[%s2948_s1 + $0x48] sm:$0xff]   ;;  %v2108_v16 = vld [vmem:[%s2948_s1 + $0x40] sm:$0xff]   ;;  %v2117_v22 = vld [vmem:[%s2948_s1 + $0xb8] sm:$0xff]  }
   0x8   :  { %2078 = vmatprep.subr.bf16.mxu1 %v2098_v4  ;;  %1789 = vmatprep.subr.bf16.mxu0 %v2098_v4  ;;  %v2107_v15 = vld [vmem:[%s2948_s1 + $0x8] sm:$0xff]   ;;  %v2109_v17 = vld [vmem:[%s2948_s1] sm:$0xff]   ;;  %v2119_v23 = vld [vmem:[%s2948_s1 + $0x138] sm:$0xff]  }
   0x9   :  { %1015 = vmatprep.mubr.bf16.mxu0 %v2115_v12  ;;  %v2110_v18 = vld [vmem:[%s2949_s0 + $0x120] ss:$36 sps:$4 sm:$0xff]   ;;  %v2124_v26 = vld [vmem:[%s2949_s0 + $0x4c] ss:$36 sps:$4 sm:$0xff]   ;;  %v2138_v39 = vld [vmem:[%s2949_s0 + $0x94] ss:$36 sps:$4 sm:$0xff]  }
   0xa   :  { %v2113_v19 = vld [vmem:[%s2949_s0] ss:$36 sps:$4 sm:$0xff]   ;;  %v2121_v27 = vld [vmem:[%s2948_s1 + $0xb0] sm:$0xff]   ;;  %v2126_v30 = vld [vmem:[%s2948_s1 + $0xe8] sm:$0xff]  }
   0xb   :  { %2086 = vmatpush3.bf16.msra.mxu1 %v2099_v5  ;;  %1790 = vmatpush3.bf16.msra.mxu0 %v2099_v5  ;;  %v2130_v28 = vld [vmem:[%s2949_s0 + $0x16c] ss:$36 sps:$4 sm:$0xff]   ;;  %v2134_v36 = vld [vmem:[%s2948_s1 + $0xe0] sm:$0xff]   ;;  %v2144_v40 = vld [vmem:[%s2949_s0 + $0x1b4] ss:$36 sps:$4 sm:$0xff]  }
   0xc   :  { %2079 = vmatprep.subr.bf16.mxu1 %v2100_v6  ;;  %1791 = vmatprep.subr.bf16.mxu0 %v2100_v6  ;;  %v2123_v29 = vld [vmem:[%s2948_s1 + $0x130] sm:$0xff]   ;;  %v2127_v31 = vld [vmem:[%s2949_s0 + $0x48] ss:$36 sps:$4 sm:$0xff]   ;;  %v2136_v37 = vld [vmem:[%s2948_s1 + $0x160] sm:$0xff]   ;;  %v2257_v6 = vmov 0.0  }
   0xd   :  { %v2129_v32 = vld [vmem:[%s2948_s1 + $0x168] sm:$0xff]   ;;  %v2135_v38 = vld [vmem:[%s2948_s1 + $0xa0] sm:$0xff]   ;;  %v2140_v42 = vld [vmem:[%s2948_s1 + $0xd8] sm:$0xff]  }
   0xe   :  { %v2128_v33 = vld [vmem:[%s2948_s1 + $0xa8] sm:$0xff]   ;;  %v2137_v41 = vld [vmem:[%s2948_s1 + $0x120] sm:$0xff]   ;;  %v2141_v43 = vld [vmem:[%s2949_s0 + $0x90] ss:$36 sps:$4 sm:$0xff]  }
   0xf   :  { %2087 = vmatpush3.bf16.msra.mxu1 %v2101_v7  ;;  %1792 = vmatpush3.bf16.msra.mxu0 %v2101_v7  ;;  %v2133_v34 = vld [vmem:[%s2949_s0 + $0x168] ss:$36 sps:$4 sm:$0xff]   ;;  %v2143_v44 = vld [vmem:[%s2948_s1 + $0x158] sm:$0xff]   ;;  %v2147_v47 = vld [vmem:[%s2949_s0 + $0x1b0] ss:$36 sps:$4 sm:$0xff]  }
  0x10   :  { %2080 = vmatprep.subr.bf16.mxu1 %v2102_v8  ;;  %1793 = vmatprep.subr.bf16.mxu0 %v2102_v8  ;;  %v2132_v35 = vld [vmem:[%s2948_s1 + $0x128] sm:$0xff]   ;;  %v2142_v45 = vld [vmem:[%s2948_s1 + $0x98] sm:$0xff]   ;;  %v2148_v48 = vld [vmem:[%s2948_s1 + $0xd0] sm:$0xff]  }
  0x11   :  { %v2146_v46 = vld [vmem:[%s2948_s1 + $0x118] sm:$0xff]   ;;  %v2150_v49 = vld [vmem:[%s2948_s1 + $0x150] sm:$0xff]   ;;  %v2154_v53 = vld [vmem:[%s2948_s1 + $0xc8] sm:$0xff]  }
  0x12   :  { %v2149_v50 = vld [vmem:[%s2948_s1 + $0x90] sm:$0xff]   ;;  %v2152_v51 = vld [vmem:[%s2949_s0 + $0xdc] ss:$36 sps:$4 sm:$0xff]   ;;  %v2157_v55 = vld [vmem:[%s2948_s1 + $0x148] sm:$0xff]  }
  0x13   :  { %2088 = vmatpush3.bf16.msra.mxu1 %v2103_v9  ;;  %1794 = vmatpush3.bf16.msra.mxu0 %v2103_v9  ;;  %v2151_v52 = vld [vmem:[%s2948_s1 + $0x110] sm:$0xff]   ;;  %v2155_v54 = vld [vmem:[%s2949_s0 + $0xd8] ss:$36 sps:$4 sm:$0xff]   ;;  %v2156_v56 = vld [vmem:[%s2948_s1 + $0x88] sm:$0xff]  }
  0x14   :  { %2081 = vmatprep.subr.bf16.mxu1 %v2104_v10  ;;  %1795 = vmatprep.subr.bf16.mxu0 %v2104_v10  ;;  %v2158_v57 = vld [vmem:[%s2948_s1 + $0x108] sm:$0xff]   ;;  %v2159_v58 = vld [vmem:[%s2948_s1 + $0xc0] sm:$0xff]   ;;  %v2168_v63 = vld [vmem:[%s2949_s0 + $0x14] ss:$36 sps:$4 sm:$0xff]  }
  0x15   :  { %v2161_v59 = vld [vmem:[%s2948_s1 + $0x140] sm:$0xff]   ;;  %v2165_v61 = vld [vmem:[%s2949_s0 + $0xc] ss:$36 sps:$4 sm:$0xff]   ;;  %v2169_v2 = vld [vmem:[%s2948_s1 + $0x1f8] sm:$0xff]  }
  0x16   :  { %v2160_v60 = vld [vmem:[%s2948_s1 + $0x80] sm:$0xff]   ;;  %v2163_v0 = vld [vmem:[%s2949_s0 + $0x8] ss:$36 sps:$4 sm:$0xff]   ;;  %v2166_v1 = vld [vmem:[%s2949_s0 + $0x10] ss:$36 sps:$4 sm:$0xff]  }
  0x17   :  { %2089 = vmatpush3.bf16.msra.mxu1 %v2105_v13  ;;  %1796 = vmatpush3.bf16.msra.mxu0 %v2105_v13  ;;  %v2162_v62 = vld [vmem:[%s2948_s1 + $0x100] sm:$0xff]   ;;  %v2170_v3 = vld [vmem:[%s2948_s1 + $0x1b8] sm:$0xff]   ;;  %v2173_v5 = vld [vmem:[%s2948_s1 + $0x1f0] sm:$0xff]  }
  0x18   :  { %2082 = vmatprep.subr.bf16.mxu1 %v2106_v14  ;;  %1797 = vmatprep.subr.bf16.mxu0 %v2106_v14  ;;  %v2171_v4 = vld [vmem:[%s2949_s0 + $0x54] ss:$36 sps:$4 sm:$0xff]   ;;  %v2176_v8 = vld [vmem:[%s2949_s0 + $0x5c] ss:$36 sps:$4 sm:$0xff]   ;;  %v2180_v11 = vld [vmem:[%s2948_s1 + $0x1e8] sm:$0xff]  }
  0x19   :  { %v2174_v7 = vld [vmem:[%s2948_s1 + $0x238] sm:$0xff]   ;;  %v2178_v9 = vld [vmem:[%s2948_s1 + $0x1b0] sm:$0xff]  }
  0x1a   :  { %v2175_v10 = vld [vmem:[%s2949_s0 + $0x50] ss:$36 sps:$4 sm:$0xff]   ;;  %v2179_v13 = vld [vmem:[%s2949_s0 + $0x58] ss:$36 sps:$4 sm:$0xff]  }
  0x1b   :  { %2090 = vmatpush3.bf16.msra.mxu1 %v2107_v15  ;;  %1798 = vmatpush3.bf16.msra.mxu0 %v2107_v15  ;;  %v2181_v12 = vld [vmem:[%s2948_s1 + $0x230] sm:$0xff]   ;;  %v2182_v14 = vld [vmem:[%s2949_s0 + $0x9c] ss:$36 sps:$4 sm:$0xff]   ;;  %v2184_v15 = vld [vmem:[%s2948_s1 + $0x1a8] sm:$0xff]  }
  0x1c   :  { %2083 = vmatprep.subr.bf16.mxu1 %v2108_v16  ;;  %1799 = vmatprep.subr.bf16.mxu0 %v2108_v16  ;;  %v2186_v16 = vld [vmem:[%s2949_s0 + $0xa4] ss:$36 sps:$4 sm:$0xff]  }
  0x1f   :  { %2091 = vmatpush3.bf16.msra.mxu1 %v2109_v17  ;;  %1800 = vmatpush3.bf16.msra.mxu0 %v2109_v17  ;;  %v2189_v17 = vld [vmem:[%s2948_s1 + $0x1e0] sm:$0xff]  }
  0x20   :  { %1843 = vmatprep.subr.bf16.mxu1 %v2116_v20  ;;  %1901 = vmatprep.subr.bf16.mxu0 %v2118_v21  ;;  %v2185_v20 = vld [vmem:[%s2949_s0 + $0x98] ss:$36 sps:$4 sm:$0xff]   ;;  %v2188_v21 = vld [vmem:[%s2949_s0 + $0xa0] ss:$36 sps:$4 sm:$0xff]  }
  0x22   :  { %1048 = vmatmul.mubr.bf16.vlgmr.msra.gmra.mxu1 %v2110_v18  ;;  %1016 = vmatmul.mubr.bf16.vlgmr.msra.gmra.mxu0 %v2113_v19  ;;  %v2190_v18 = vld [vmem:[%s2948_s1 + $0x228] sm:$0xff]   ;;  %v2191_v19 = vld [vmem:[%s2948_s1 + $0x1a0] sm:$0xff]  }
  0x23   :  { %1844 = vmatpush3.bf16.msra.mxu1 %v2117_v22  ;;  %1902 = vmatpush3.bf16.msra.mxu0 %v2119_v23  ;;  %v2192_v22 = vld [vmem:[%s2949_s0 + $0xe4] ss:$36 sps:$4 sm:$0xff]   ;;  %v2195_v23 = vld [vmem:[%s2949_s0 + $0xec] ss:$36 sps:$4 sm:$0xff]  }
  0x24   :  { %1845 = vmatprep.subr.bf16.mxu1 %v2120_v24  ;;  %1903 = vmatprep.subr.bf16.mxu0 %v2122_v25  ;;  %v2198_v24 = vld [vmem:[%s2948_s1 + $0x1d8] sm:$0xff]   ;;  %v2199_v25 = vld [vmem:[%s2948_s1 + $0x220] sm:$0xff]  }
  0x25   :  { %1023 = vmatprep.mubr.bf16.mxu0 %v2124_v26  ;;  %1055 = vmatprep.mubr.bf16.mxu1 %v2130_v28  ;;  %v2200_v26 = vld [vmem:[%s2948_s1 + $0x198] sm:$0xff]   ;;  %v2197_v28 = vld [vmem:[%s2949_s0 + $0xe8] ss:$36 sps:$4 sm:$0xff]  }
  0x27   :  { %1846 = vmatpush3.bf16.msra.mxu1 %v2121_v27  ;;  %1904 = vmatpush3.bf16.msra.mxu0 %v2123_v29  ;;  %v2194_v27 = vld [vmem:[%s2949_s0 + $0xe0] ss:$36 sps:$4 sm:$0xff]   ;;  %v2201_v29 = vld [vmem:[%s2949_s0 + $0x12c] ss:$36 sps:$4 sm:$0xff]  }
  0x28   :  { %1847 = vmatprep.subr.bf16.mxu1 %v2126_v30  ;;  %1905 = vmatprep.subr.bf16.mxu0 %v2129_v32  ;;  %v2204_v30 = vld [vmem:[%s2949_s0 + $0x134] ss:$36 sps:$4 sm:$0xff]  }
  0x29   :  { %v2208_v32 = vld [vmem:[%s2948_s1 + $0x218] sm:$0xff]  }
  0x2a   :  { %1024 = vmatmul.mubr.bf16.gmra.mxu0 %v2127_v31  ;;  %1056 = vmatmul.mubr.bf16.gmra.mxu1 %v2133_v34  ;;  %v2207_v31 = vld [vmem:[%s2948_s1 + $0x1d0] sm:$0xff]   ;;  %v2216_v34 = vld [vmem:[%s2948_s1 + $0x1c8] sm:$0xff]  }
  0x2b   :  { %1848 = vmatpush3.bf16.msra.mxu1 %v2128_v33  ;;  %1906 = vmatpush3.bf16.msra.mxu0 %v2132_v35  ;;  %v2209_v33 = vld [vmem:[%s2948_s1 + $0x190] sm:$0xff]  }
  0x2c   :  { %1849 = vmatprep.subr.bf16.mxu1 %v2134_v36  ;;  %1907 = vmatprep.subr.bf16.mxu0 %v2136_v37  ;;  %v2217_v35 = vld [vmem:[%s2948_s1 + $0x210] sm:$0xff]   ;;  %v2218_v36 = vld [vmem:[%s2948_s1 + $0x188] sm:$0xff]  }
  0x2d   :  { %1031 = vmatprep.mubr.bf16.mxu0 %v2138_v39  ;;  %1063 = vmatprep.mubr.bf16.mxu1 %v2144_v40  ;;  %v2203_v37 = vld [vmem:[%s2949_s0 + $0x128] ss:$36 sps:$4 sm:$0xff]   ;;  %v2210_v39 = vld [vmem:[%s2949_s0 + $0x174] ss:$36 sps:$4 sm:$0xff]   ;;  %v2213_v40 = vld [vmem:[%s2949_s0 + $0x17c] ss:$36 sps:$4 sm:$0xff]  }
  0x2f   :  { %1850 = vmatpush3.bf16.msra.mxu1 %v2135_v38  ;;  %1908 = vmatpush3.bf16.msra.mxu0 %v2137_v41  ;;  %v2206_v38 = vld [vmem:[%s2949_s0 + $0x130] ss:$36 sps:$4 sm:$0xff]   ;;  %v2225_v41 = vld [vmem:[%s2948_s1 + $0x1c0] sm:$0xff]  }
  0x30   :  { %1851 = vmatprep.subr.bf16.mxu1 %v2140_v42  ;;  %1909 = vmatprep.subr.bf16.mxu0 %v2143_v44  ;;  %v2226_v42 = vld [vmem:[%s2948_s1 + $0x208] sm:$0xff]   ;;  %v2228_v44 = vld [vmem:[%s2948_s1 + $0x200] sm:$0xff]  }
  0x32   :  { %1032 = vmatmul.mubr.bf16.gmra.mxu0 %v2141_v43  ;;  %1064 = vmatmul.mubr.bf16.gmra.mxu1 %v2147_v47  ;;  %v2227_v43 = vld [vmem:[%s2948_s1 + $0x180] sm:$0xff]  }
  0x33   :  { %1852 = vmatpush3.bf16.msra.mxu1 %v2142_v45  ;;  %1910 = vmatpush3.bf16.msra.mxu0 %v2146_v46  ;;  %v2212_v45 = vld [vmem:[%s2949_s0 + $0x170] ss:$36 sps:$4 sm:$0xff]   ;;  %v2215_v46 = vld [vmem:[%s2949_s0 + $0x178] ss:$36 sps:$4 sm:$0xff]  }
  0x34   :  { %1853 = vmatprep.subr.bf16.mxu1 %v2148_v48  ;;  %1911 = vmatprep.subr.bf16.mxu0 %v2150_v49  ;;  %v2219_v47 = vld [vmem:[%s2949_s0 + $0x1bc] ss:$36 sps:$4 sm:$0xff]   ;;  %v2222_v48 = vld [vmem:[%s2949_s0 + $0x1c4] ss:$36 sps:$4 sm:$0xff]  }
  0x35   :  { %1039 = vmatprep.mubr.bf16.mxu0 %v2152_v51  ;;  %1104 = vmatprep.mubr.bf16.mxu1 %v2165_v61  ;;  %v2221_v49 = vld [vmem:[%s2949_s0 + $0x1b8] ss:$36 sps:$4 sm:$0xff]   ;;  %v2243_v61 = vld [vmem:[%s2949_s0 + $0xf0] ss:$36 sps:$4 sm:$0xff]  }
  0x36   :  { %v2231_v51 = vld [vmem:[%s2949_s0 + $0x1c] ss:$36 sps:$4 sm:$0xff]  }
  0x37   :  { %1854 = vmatpush3.bf16.msra.mxu1 %v2149_v50  ;;  %1912 = vmatpush3.bf16.msra.mxu0 %v2151_v52  ;;  %v2224_v50 = vld [vmem:[%s2949_s0 + $0x1c0] ss:$36 sps:$4 sm:$0xff]   ;;  %v2229_v52 = vld [vmem:[%s2949_s0 + $0x18] ss:$36 sps:$4 sm:$0xff]  }
  0x38   :  { %1855 = vmatprep.subr.bf16.mxu1 %v2154_v53  ;;  %1913 = vmatprep.subr.bf16.mxu0 %v2157_v55  ;;  %v2232_v53 = vld [vmem:[%s2949_s0 + $0x20] ss:$36 sps:$4 sm:$0xff]  }
  0x39   :  { %v2235_v55 = vld [vmem:[%s2949_s0 + $0x60] ss:$36 sps:$4 sm:$0xff]  }
  0x3a   :  { %1040 = vmatmul.mubr.bf16.gmra.mxu0 %v2155_v54  ;;  %v2233_v54 = vld [vmem:[%s2949_s0 + $0x64] ss:$36 sps:$4 sm:$0xff]  }
  0x3b   :  { %1856 = vmatpush3.bf16.msra.mxu1 %v2156_v56  ;;  %1914 = vmatpush3.bf16.msra.mxu0 %v2158_v57  ;;  %v2236_v56 = vld [vmem:[%s2949_s0 + $0x68] ss:$36 sps:$4 sm:$0xff]  }
  0x3c   :  { %1857 = vmatprep.subr.bf16.mxu1 %v2159_v58  ;;  %1915 = vmatprep.subr.bf16.mxu0 %v2161_v59  ;;  %v2237_v57 = vld [vmem:[%s2949_s0 + $0xac] ss:$36 sps:$4 sm:$0xff]  }
  0x3d   :  { %1193 = vmatprep.mubr.bf16.mxu0 %v2168_v63  ;;  %v2239_v58 = vld [vmem:[%s2949_s0 + $0xa8] ss:$36 sps:$4 sm:$0xff]   ;;  %v2240_v59 = vld [vmem:[%s2949_s0 + $0xb0] ss:$36 sps:$4 sm:$0xff]   ;;  %v2245_v63 = vld [vmem:[%s2949_s0 + $0x13c] ss:$36 sps:$4 sm:$0xff]  }
  0x3f   :  { %1858 = vmatpush3.bf16.msra.mxu1 %v2160_v60  ;;  %1916 = vmatpush3.bf16.msra.mxu0 %v2162_v62  ;;  %v2241_v60 = vld [vmem:[%s2949_s0 + $0xf4] ss:$36 sps:$4 sm:$0xff]  }
  0x40   :  { %1959 = vmatprep.subr.bf16.mxu1 %v2169_v2  ;;  %2032 = vmatprep.subr.bf16.mxu0 %v2257_v6  ;;  %v2244_v62 = vld [vmem:[%s2949_s0 + $0xf8] ss:$36 sps:$4 sm:$0xff]   ;;  %v2249_v2 = vld [vmem:[%s2949_s0 + $0x184] ss:$36 sps:$4 sm:$0xff]  }
  0x42   :  { %1105 = vmatmul.mubr.bf16.vlgmr.msra.gmra.mxu1 %v2163_v0  ;;  %1194 = vmatmul.mubr.bf16.vlgmr.msra.gmra.mxu0 %v2166_v1  ;;  %v2247_v0 = vld [vmem:[%s2949_s0 + $0x138] ss:$36 sps:$4 sm:$0xff]   ;;  %v2248_v1 = vld [vmem:[%s2949_s0 + $0x140] ss:$36 sps:$4 sm:$0xff]  }
  0x43   :  { %1960 = vmatpush3.bf16.msra.mxu1 %v2170_v3  ;;  %1112 = vmatprep.mubr.bf16.mxu1 %v2171_v4  ;;  %v2251_v3 = vld [vmem:[%s2949_s0 + $0x180] ss:$36 sps:$4 sm:$0xff]   ;;  %v2252_v4 = vld [vmem:[%s2949_s0 + $0x188] ss:$36 sps:$4 sm:$0xff]  }
  0x44   :  { %1961 = vmatprep.subr.bf16.mxu1 %v2173_v5  ;;  %2033 = vmatpush3.bf16.msra.mxu0 %v2174_v7  ;;  %v2253_v5 = vld [vmem:[%s2949_s0 + $0x1cc] ss:$36 sps:$4 sm:$0xff]  }
  0x45   :  { %1201 = vmatprep.mubr.bf16.mxu0 %v2176_v8  ;;  %2034 = vmatprep.subr.bf16.mxu0 %v2257_v6  ;;  %v2255_v7 = vld [vmem:[%s2949_s0 + $0x1c8] ss:$36 sps:$4 sm:$0xff]   ;;  %v2256_v8 = vld [vmem:[%s2949_s0 + $0x1d0] ss:$36 sps:$4 sm:$0xff]  }
  0x47   :  { %1962 = vmatpush3.bf16.msra.mxu1 %v2178_v9 }
  0x48   :  { %1963 = vmatprep.subr.bf16.mxu1 %v2180_v11  ;;  %2035 = vmatpush3.bf16.msra.mxu0 %v2181_v12 }
  0x49   :  { %2036 = vmatprep.subr.bf16.mxu0 %v2257_v6 }
  0x4a   :  { %1113 = vmatmul.mubr.bf16.gmra.mxu1 %v2175_v10  ;;  %1202 = vmatmul.mubr.bf16.gmra.mxu0 %v2179_v13 }
  0x4b   :  { %1120 = vmatprep.mubr.bf16.mxu1 %v2182_v14  ;;  %1964 = vmatpush3.bf16.msra.mxu1 %v2184_v15 }
  0x4c   :  { %1209 = vmatprep.mubr.bf16.mxu0 %v2186_v16  ;;  %1965 = vmatprep.subr.bf16.mxu1 %v2189_v17 }
  0x4d   :  { %2037 = vmatpush3.bf16.msra.mxu0 %v2190_v18 }
  0x4e   :  { %2038 = vmatprep.subr.bf16.mxu0 %v2257_v6 }
  0x4f   :  { %1966 = vmatpush3.bf16.msra.mxu1 %v2191_v19 }
  0x50   :  { %1967 = vmatprep.subr.bf16.mxu1 %v2198_v24 }
  0x51   :  { %2039 = vmatpush3.bf16.msra.mxu0 %v2199_v25 }
  0x52   :  { %1121 = vmatmul.mubr.bf16.gmra.mxu1 %v2185_v20  ;;  %1210 = vmatmul.mubr.bf16.gmra.mxu0 %v2188_v21 }
  0x53   :  { %1128 = vmatprep.mubr.bf16.mxu1 %v2192_v22  ;;  %1217 = vmatprep.mubr.bf16.mxu0 %v2195_v23 }
  0x54   :  { %1968 = vmatpush3.bf16.msra.mxu1 %v2200_v26  ;;  %2040 = vmatprep.subr.bf16.mxu0 %v2257_v6 }
  0x55   :  { %1969 = vmatprep.subr.bf16.mxu1 %v2207_v31  ;;  %2041 = vmatpush3.bf16.msra.mxu0 %v2208_v32 }
  0x56   :  { %2042 = vmatprep.subr.bf16.mxu0 %v2257_v6 }
  0x58   :  { %1970 = vmatpush3.bf16.msra.mxu1 %v2209_v33 }
  0x59   :  { %1971 = vmatprep.subr.bf16.mxu1 %v2216_v34  ;;  %2043 = vmatpush3.bf16.msra.mxu0 %v2217_v35 }
  0x5a   :  { %1129 = vmatmul.mubr.bf16.gmra.mxu1 %v2194_v27  ;;  %1218 = vmatmul.mubr.bf16.gmra.mxu0 %v2197_v28 }
  0x5b   :  { %1136 = vmatprep.mubr.bf16.mxu1 %v2201_v29  ;;  %1225 = vmatprep.mubr.bf16.mxu0 %v2204_v30 }
  0x5c   :  { %1972 = vmatpush3.bf16.msra.mxu1 %v2218_v36  ;;  %2044 = vmatprep.subr.bf16.mxu0 %v2257_v6 }
  0x5d   :  { %1973 = vmatprep.subr.bf16.mxu1 %v2225_v41  ;;  %2045 = vmatpush3.bf16.msra.mxu0 %v2226_v42 }
  0x5e   :  { %2046 = vmatprep.subr.bf16.mxu0 %v2257_v6 }
  0x60   :  { %1974 = vmatpush3.bf16.msra.mxu1 %v2227_v43 }
  0x61   :  { %2047 = vmatpush3.bf16.msra.mxu0 %v2228_v44 }
  0x62   :  { %1137 = vmatmul.mubr.bf16.gmra.mxu1 %v2203_v37  ;;  %1226 = vmatmul.mubr.bf16.gmra.mxu0 %v2206_v38 }
  0x63   :  { %1144 = vmatprep.mubr.bf16.mxu1 %v2210_v39  ;;  %1233 = vmatprep.mubr.bf16.mxu0 %v2213_v40 }
  0x6a   :  { %1145 = vmatmul.mubr.bf16.gmra.mxu1 %v2212_v45  ;;  %1234 = vmatmul.mubr.bf16.gmra.mxu0 %v2215_v46 }
  0x6b   :  { %1152 = vmatprep.mubr.bf16.mxu1 %v2219_v47  ;;  %1241 = vmatprep.mubr.bf16.mxu0 %v2222_v48 }
  0x72   :  { %1153 = vmatmul.mubr.bf16.gmra.mxu1 %v2221_v49  ;;  %1242 = vmatmul.mubr.bf16.gmra.mxu0 %v2224_v50 }
  0x73   :  { %1282 = vmatprep.mubr.bf16.mxu1 %v2231_v51  ;;  %2048 = vmatprep.mubr.msk.bf16.mxu0 %vm2258_vm0, %v2257_v6 }
  0x7a   :  { %1283 = vmatmul.mubr.bf16.vlgmr.msra.gmra.mxu1 %v2229_v52  ;;  %2049 = vmatmul.mubr.bf16.vlgmr.msra.gmra.mxu0 %v2232_v53 }
  0x7b   :  { %1290 = vmatprep.mubr.bf16.mxu1 %v2233_v54  ;;  %2052 = vmatprep.mubr.msk.bf16.mxu0 %vm2258_vm0, %v2257_v6 }
  0x82   :  { %1291 = vmatmul.mubr.bf16.gmra.mxu1 %v2235_v55  ;;  %2053 = vmatmul.mubr.bf16.gmra.mxu0 %v2236_v56 }
  0x83   :  { %1298 = vmatprep.mubr.bf16.mxu1 %v2237_v57  ;;  %2056 = vmatprep.mubr.msk.bf16.mxu0 %vm2258_vm0, %v2257_v6 }
  0x8a   :  { %1299 = vmatmul.mubr.bf16.gmra.mxu1 %v2239_v58  ;;  %2057 = vmatmul.mubr.bf16.gmra.mxu0 %v2240_v59 }
  0x8b   :  { %1306 = vmatprep.mubr.bf16.mxu1 %v2241_v60  ;;  %2060 = vmatprep.mubr.msk.bf16.mxu0 %vm2258_vm0, %v2257_v6 }
  0x92   :  { %1307 = vmatmul.mubr.bf16.gmra.mxu1 %v2243_v61  ;;  %2061 = vmatmul.mubr.bf16.gmra.mxu0 %v2244_v62 }
  0x93   :  { %1314 = vmatprep.mubr.bf16.mxu1 %v2245_v63  ;;  %2064 = vmatprep.mubr.msk.bf16.mxu0 %vm2258_vm0, %v2257_v6 }
  0x9a   :  { %1315 = vmatmul.mubr.bf16.gmra.mxu1 %v2247_v0  ;;  %2065 = vmatmul.mubr.bf16.gmra.mxu0 %v2248_v1 }
  0x9b   :  { %1322 = vmatprep.mubr.bf16.mxu1 %v2249_v2  ;;  %2068 = vmatprep.mubr.msk.bf16.mxu0 %vm2258_vm0, %v2257_v6 }
  0xa2   :  { %1323 = vmatmul.mubr.bf16.gmra.mxu1 %v2251_v3  ;;  %2069 = vmatmul.mubr.bf16.gmra.mxu0 %v2252_v4 }
  0xa3   :  { %1330 = vmatprep.mubr.bf16.mxu1 %v2253_v5  ;;  %2072 = vmatprep.mubr.msk.bf16.mxu0 %vm2258_vm0, %v2257_v6 }
  0xaa   :  { %1331 = vmatmul.mubr.bf16.gmra.mxu1 %v2255_v7  ;;  %2073 = vmatmul.mubr.bf16.gmra.mxu0 %v2256_v8 }
  0xe2   :  { %v1825_v9 = vpop.f32.mrf.mxu1  ;;  %v1801_v10 = vpop.f32.mrf.mxu0 }
  0xe4   :  { %v1826_v11 = vpop.f32.mrf.mxu1  ;;  %v1802_v12 = vpop.f32.mrf.mxu0 }
  0xe5   :  { %v2706_v13 = vadd.f32 %v1826_v11, %v1825_v9  ;;  %v2708_v14 = vadd.f32 %v1802_v12, %v1801_v10 }
  0xe6   :  { %v1828_v15 = vpop.f32.mrf.mxu1  ;;  %v1804_v6 = vpop.f32.mrf.mxu0 }
  0xe8   :  { %v1829_v16 = vpop.f32.mrf.mxu1  ;;  %v1805_v17 = vpop.f32.mrf.mxu0 }
  0xe9   :  { %v2710_v18 = vadd.f32 %v1829_v16, %v1828_v15  ;;  %v2712_v19 = vadd.f32 %v1805_v17, %v1804_v6 }
  0xea   :  { %v1807_v20 = vpop.f32.mrf.mxu0  ;;  %v1831_v21 = vpop.f32.mrf.mxu1 }
  0xec   :  { %v1808_v22 = vpop.f32.mrf.mxu0  ;;  %v1832_v23 = vpop.f32.mrf.mxu1 }
  0xed   :  { %v2714_v24 = vadd.f32 %v1808_v22, %v1807_v20  ;;  %v2716_v25 = vadd.f32 %v1832_v23, %v1831_v21 }
  0xee   :  { %v1810_v26 = vpop.f32.mrf.mxu0  ;;  %v1834_v27 = vpop.f32.mrf.mxu1 }
  0xef   :  { %2952 = vst [vmem:[#allocation2_spill] sm:$0xff] %v2716_v25 }
  0xf0   :  { %v1811_v28 = vpop.f32.mrf.mxu0  ;;  %v1835_v29 = vpop.f32.mrf.mxu1 }
  0xf1   :  { %v2718_v30 = vadd.f32 %v1811_v28, %v1810_v26  ;;  %v2720_v31 = vadd.f32 %v1835_v29, %v1834_v27 }
  0xf2   :  { %v1813_v32 = vpop.f32.mrf.mxu0  ;;  %v1837_v33 = vpop.f32.mrf.mxu1 }
  0xf3   :  { %2953 = vst [vmem:[#allocation3_spill] sm:$0xff] %v2720_v31 }
  0xf4   :  { %v1814_v34 = vpop.f32.mrf.mxu0  ;;  %v1838_v35 = vpop.f32.mrf.mxu1 }
  0xf5   :  { %v2722_v36 = vadd.f32 %v1814_v34, %v1813_v32  ;;  %v2724_v37 = vadd.f32 %v1838_v35, %v1837_v33 }
  0xf6   :  { %v1816_v38 = vpop.f32.mrf.mxu0  ;;  %v1840_v39 = vpop.f32.mrf.mxu1 }
  0xf7   :  { %2954 = vst [vmem:[#allocation4_spill] sm:$0xff] %v2724_v37 }
  0xf8   :  { %v1817_v40 = vpop.f32.mrf.mxu0  ;;  %v1841_v41 = vpop.f32.mrf.mxu1 }
  0xf9   :  { %v2726_v42 = vadd.f32 %v1817_v40, %v1816_v38  ;;  %v2728_v43 = vadd.f32 %v1841_v41, %v1840_v39 }
  0xfa   :  { %v1819_v44 = vpop.f32.mrf.mxu0 }
  0xfb   :  { %2955 = vst [vmem:[#allocation5_spill] sm:$0xff] %v2728_v43 }
  0xfc   :  { %v1820_v45 = vpop.f32.mrf.mxu0 }
  0xfd   :  { %v2730_v46 = vadd.f32 %v1820_v45, %v1819_v44 }
  0xfe   :  { %v1822_v47 = vpop.f32.mrf.mxu0 }
 0x100   :  { %v1823_v48 = vpop.f32.mrf.mxu0 }
 0x101   :  { %v2732_v49 = vadd.f32 %v1823_v48, %v1822_v47 }
 0x102   :  { %v1859_v50 = vpop.f32.mrf.mxu1  ;;  %v1917_v51 = vpop.f32.mrf.mxu0 }
 0x104   :  { %v1860_v52 = vpop.f32.mrf.mxu1  ;;  %v1918_v53 = vpop.f32.mrf.mxu0 }
 0x105   :  { %v1861_v31 = vadd.f32 %v1860_v52, %v1859_v50 }
 0x106   :  { %v1862_v54 = vpop.f32.mrf.mxu1  ;;  %v2734_v55 = vpop.f32.mrf.mxu0 }
 0x108   :  { %v1863_v56 = vpop.f32.mrf.mxu1  ;;  %v2736_v57 = vpop.f32.mrf.mxu0 }
 0x10a   :  { %v1865_v58 = vpop.f32.mrf.mxu1  ;;  %v2738_v59 = vpop.f32.mrf.mxu0 }
 0x10c   :  { %v1866_v60 = vpop.f32.mrf.mxu1  ;;  %v2740_v61 = vpop.f32.mrf.mxu0 }
 0x10e   :  { %v2742_v62 = vpop.f32.mrf.mxu1  ;;  %v2744_v63 = vpop.f32.mrf.mxu0 }
 0x110   :  { %v2746_v0 = vpop.f32.mrf.mxu1  ;;  %v2748_v1 = vpop.f32.mrf.mxu0 }
 0x112   :  { %v2750_v2 = vpop.f32.mrf.mxu1  ;;  %v2752_v3 = vpop.f32.mrf.mxu0 }
 0x114   :  { %v2754_v4 = vpop.f32.mrf.mxu1  ;;  %v2756_v5 = vpop.f32.mrf.mxu0 }
 0x116   :  { %v2758_v7 = vpop.f32.mrf.mxu1  ;;  %v2760_v8 = vpop.f32.mrf.mxu0 }
 0x118   :  { %v2762_v9 = vpop.f32.mrf.mxu1  ;;  %v2764_v10 = vpop.f32.mrf.mxu0 }
 0x11a   :  { %v2766_v11 = vpop.f32.mrf.mxu1  ;;  %v2768_v12 = vpop.f32.mrf.mxu0 }
 0x11c   :  { %v2770_v15 = vpop.f32.mrf.mxu1  ;;  %v2772_v6 = vpop.f32.mrf.mxu0 }
 0x11e   :  { %v2774_v16 = vpop.f32.mrf.mxu1  ;;  %v2776_v17 = vpop.f32.mrf.mxu0 }
 0x120   :  { %v2778_v20 = vpop.f32.mrf.mxu1  ;;  %v2780_v21 = vpop.f32.mrf.mxu0 }
 0x122   :  { %v2782_v22 = vpop.f32.mrf.mxu1  ;;  %v2784_v23 = vpop.f32.mrf.mxu0 }
 0x124   :  { %v2786_v26 = vpop.f32.mrf.mxu1  ;;  %v2788_v27 = vpop.f32.mrf.mxu0 }
 0x126   :  { %v2790_v28 = vpop.f32.mrf.mxu1  ;;  %v2792_v29 = vpop.f32.mrf.mxu0 }
 0x127   :  { %2956 = vst [vmem:[#allocation6_spill] sm:$0xff] %v2792_v29  ;;  %v1867_v29 = vadd.f32 %v1866_v60, %v1865_v58 }
 0x128   :  { %v2794_v32 = vpop.f32.mrf.mxu1  ;;  %v2796_v33 = vpop.f32.mrf.mxu0 }
 0x129   :  { %2957 = vst [vmem:[#allocation7_spill] sm:$0xff] %v2796_v33 }
 0x12a   :  { %v2798_v34 = vpop.f32.mrf.mxu1  ;;  %v2800_v35 = vpop.f32.mrf.mxu0 }
 0x12b   :  { %2958 = vst [vmem:[#allocation8_spill] sm:$0xff] %v2798_v34  ;;  %2959 = vst [vmem:[#allocation9_spill] sm:$0xff] %v2800_v35  ;;  %v1919_v35 = vadd.f32 %v1918_v53, %v1917_v51  ;;  %v1870_v51 = vadd.f32 %v2746_v0, %v2742_v62 }
 0x12c   :  { %v2802_v38 = vpop.f32.mrf.mxu1  ;;  %v2804_v39 = vpop.f32.mrf.mxu0 }
 0x12d   :  { %2960 = vst [vmem:[#allocation10_spill] sm:$0xff] %v2802_v38  ;;  %2961 = vst [vmem:[#allocation11_spill] sm:$0xff] %v2804_v39 }
 0x12e   :  { %v2806_v40 = vpop.f32.mrf.mxu1  ;;  %v2808_v41 = vpop.f32.mrf.mxu0 }
 0x12f   :  { %2962 = vst [vmem:[#allocation12_spill] sm:$0xff] %v2806_v40  ;;  %2963 = vst [vmem:[#allocation13_spill] sm:$0xff] %v2808_v41 }
 0x130   :  { %v2810_v44 = vpop.f32.mrf.mxu1  ;;  %v2812_v45 = vpop.f32.mrf.mxu0 }
 0x131   :  { %2964 = vst [vmem:[#allocation14_spill] sm:$0xff] %v2810_v44  ;;  %2965 = vst [vmem:[#allocation15_spill] sm:$0xff] %v2812_v45  ;;  %v1471_v44 = vlaneseq  ;;  %v1107_v45 = vadd.f32 %v1861_v31, %v2708_v14  ;;  %v1115_v14 = vadd.f32 %v1867_v29, %v2714_v24  ;;  %v1925_v31 = vadd.f32 %v2740_v61, %v2738_v59 }
 0x132   :  { %v2814_v47 = vpop.f32.mrf.mxu1  ;;  %v2816_v48 = vpop.f32.mrf.mxu0  ;;  %v1118_v61 = vadd.f32 %v1870_v51, %v2718_v30 }
 0x133   :  { %2966 = vst [vmem:[#allocation16_spill] sm:$0xff] %v2814_v47  ;;  %2967 = vst [vmem:[#allocation17_spill] sm:$0xff] %v2816_v48  ;;  %v1864_v47 = vadd.f32 %v1863_v56, %v1862_v54  ;;  %v1472_v38 = vshrl.u32 %v1471_v44, 7  ;;  %v1196_v50 = vadd.f32 %v1919_v35, %v1107_v45  ;;  %v1204_v59 = vadd.f32 %v1925_v31, %v1115_v14 }
 0x134   :  { %v2818_v43 = vpop.f32.mrf.mxu1  ;;  %v2820_v37 = vpop.f32.mrf.mxu0 }
 0x135   :  { %2968 = vst [vmem:[#allocation18_spill] sm:$0xff] %v2818_v43  ;;  %2969 = vst [vmem:[#allocation19_spill] sm:$0xff] %v2820_v37  ;;  %v1110_v52 = vadd.f32 %v1864_v47, %v2712_v19  ;;  %v1473_v53 = vsub.s32 1, %v1472_v38 }
 0x136   :  { %v2822_v25 = vpop.f32.mrf.mxu1  ;;  %v2824_v39 = vpop.f32.mrf.mxu0 }
 0x137   :  { %2970 = vst [vmem:[#allocation20_spill] sm:$0xff] %v2822_v25  ;;  %2971 = vst [vmem:[#allocation21_spill] sm:$0xff] %v2824_v39 }
 0x138   :  { %v2826_v40 = vpop.f32.mrf.mxu1  ;;  %v2828_v41 = vpop.f32.mrf.mxu0 }
 0x139   :  { %2972 = vst [vmem:[#allocation22_spill] sm:$0xff] %v2826_v40  ;;  %2973 = vst [vmem:[#allocation23_spill] sm:$0xff] %v2828_v41  ;;  %v1922_v41 = vadd.f32 %v2736_v57, %v2734_v55  ;;  %v1491_v57 = vsub.s32 2, %v1472_v38 }
 0x13a   :  { %v1975_v33 = vpop.f32.mrf.mxu1  ;;  %v1373_v48 = vpop.f32.mrf.mxu0 }
 0x13b   :  { %v1199_v56 = vadd.f32 %v1922_v41, %v1110_v52 }
 0x13c   :  { %v1976_v43 = vpop.f32.mrf.mxu1  ;;  %v2050_v37 = vpop.f32.mrf.mxu0 }
 0x13d   :  { %v1977_v25 = vadd.f32 %v1976_v43, %v1975_v33  ;;  %v1470_v43 = vld [vmem:[%s2950_s2] sm:$0x7]  ;;  %v1873_v33 = vadd.f32 %v2754_v4, %v2750_v2  ;;  %v1876_v2 = vadd.f32 %v2762_v9, %v2758_v7 }
 0x13e   :  { %v1978_v39 = vpop.f32.mrf.mxu1  ;;  %v1376_v34 = vpop.f32.mrf.mxu0  ;;  %v2843_v62 = vrot.slane %v1470_v43, %v1473_v53  ;;  %v2849_v38 = vrot.slane %v1470_v43, %v1491_v57 }
 0x13f   :  { %v1285_v40 = vadd.f32 %v1977_v25, %v1196_v50  ;;  %v1931_v50 = vadd.f32 %v2756_v5, %v2752_v3  ;;  %v1126_v3 = vadd.f32 %v1876_v2, %v2726_v42  ;;  %v1879_v5 = vadd.f32 %v2770_v15, %v2766_v11 }
 0x140   :  { %v1979_v37 = vpop.f32.mrf.mxu1  ;;  %v2051_v54 = vpop.f32.mrf.mxu0 }
 0x141   :  { %v1374_v19 = vadd.f32 %v1373_v48, %v1285_v40  ;;  %v1980_v58 = vadd.f32 %v1979_v37, %v1978_v39  ;;  %v1928_v39 = vadd.f32 %v2748_v1, %v2744_v63  ;;  %v1123_v63 = vadd.f32 %v1873_v33, %v2722_v36 }
 0x142   :  { %v1981_v55 = vpop.f32.mrf.mxu1  ;;  %v1381_v25 = vpop.f32.mrf.mxu0  ;;  %v1131_v15 = vadd.f32 %v1879_v5, %v2730_v46 }
 0x143   :  { %vm1428_vm1 = vcmp.gt.f32.partialorder %v1374_v19, 0.0  ;;  %v1442_v24 = vmul.f32 0.2, %v1374_v19  ;;  %v1288_v60 = vadd.f32 %v1980_v58, %v1199_v56  ;;  %v1207_v48 = vadd.f32 %v1928_v39, %v1118_v61 }
 0x144   :  { %v1982_v0 = vpop.f32.mrf.mxu1  ;;  %v2054_v29 = vpop.f32.mrf.mxu0  ;;  %v1212_v43 = vadd.f32 %v1931_v50, %v1123_v63 }
 0x145   :  { %v1456_v35 = vsel %vm1428_vm1, %v1374_v19, %v1442_v24  ;;  %v1377_v40 = vadd.f32 %v1376_v34, %v1288_v60  ;;  %v1983_v41 = vadd.f32 %v1982_v0, %v1981_v55  ;;  %v1934_v24 = vadd.f32 %v2764_v10, %v2760_v8 }
 0x146   :  { %v1984_v44 = vpop.f32.mrf.mxu1  ;;  %v1384_v45 = vpop.f32.mrf.mxu0  ;;  %v1475_v4 = vmul.f32 %v2843_v62, %v1456_v35  ;;  %v1937_v0 = vadd.f32 %v2772_v6, %v2768_v12  ;;  %v1882_v10 = vadd.f32 %v2778_v20, %v2774_v16 }
 0x147   :  { %vm1429_vm2 = vcmp.gt.f32.partialorder %v1377_v40, 0.0  ;;  %v1443_v47 = vmul.f32 0.2, %v1377_v40  ;;  %v1293_v30 = vadd.f32 %v1983_v41, %v1204_v59  ;;  %v1215_v11 = vadd.f32 %v1934_v24, %v1126_v3 }
 0x148   :  { %v1985_v34 = vpop.f32.mrf.mxu1  ;;  %v2055_v52 = vpop.f32.mrf.mxu0  ;;  %v1493_v7 = vadd.f32 %v2849_v38, %v1475_v4  ;;  %v1134_v20 = vadd.f32 %v1882_v10, %v2732_v49  ;;  %v1888_v49 = vadd.f32 %v2794_v32, %v2790_v28  ;;  %v2979_v10 = vld [vmem:[#allocation11_spill] sm:$0xff] }
 0x149   :  { %v1457_v1 = vsel %vm1429_vm2, %v1377_v40, %v1443_v47  ;;  %v1382_v14 = vadd.f32 %v1381_v25, %v1293_v30  ;;  %v1986_v31 = vadd.f32 %v1985_v34, %v1984_v44  ;;  %v1885_v47 = vadd.f32 %v2786_v26, %v2782_v22 }
 0x14a   :  { %v1476_v51 = vmul.f32 %v2843_v62, %v1457_v1  ;;  %v1987_v53 = vpop.f32.mrf.mxu1  ;;  %v1389_v37 = vpop.f32.mrf.mxu0  ;;  %v1142_v32 = vadd.f32 %v1888_v49, %v2710_v18 }
 0x14b   :  { %vm1430_vm3 = vcmp.gt.f32.partialorder %v1382_v14, 0.0  ;;  %v1444_v54 = vmul.f32 0.2, %v1382_v14  ;;  %v1296_v56 = vadd.f32 %v1986_v31, %v1207_v48  ;;  %v1139_v26 = vadd.f32 %v1885_v47, %v2706_v13 }
 0x14c   :  { %v1494_v9 = vadd.f32 %v2849_v38, %v1476_v51  ;;  %v1988_v36 = vpop.f32.mrf.mxu1  ;;  %v2058_v19 = vpop.f32.mrf.mxu0  ;;  %v1943_v51 = vadd.f32 %v2788_v27, %v2784_v23 }
 0x14d   :  { %v1458_v58 = vsel %vm1430_vm3, %v1382_v14, %v1444_v54  ;;  %v1385_v55 = vadd.f32 %v1384_v45, %v1296_v56  ;;  %v1989_v25 = vadd.f32 %v1988_v36, %v1987_v53  ;;  %v1220_v45 = vadd.f32 %v1937_v0, %v1131_v15 }
 0x14e   :  { %v1747_v57 = vpack.c.bf16 %v1494_v9, %v1493_v7  ;;  %v1990_v60 = vpop.f32.mrf.mxu1  ;;  %v1392_v59 = vpop.f32.mrf.mxu0  ;;  %v1477_v29 = vmul.f32 %v2843_v62, %v1458_v58  ;;  %v1940_v14 = vadd.f32 %v2780_v21, %v2776_v17  ;;  %v1228_v28 = vadd.f32 %v1943_v51, %v1139_v26  ;;  %v2974_v58 = vld [vmem:[#allocation8_spill] sm:$0xff] }
 0x14f   :  { %vm1431_vm4 = vcmp.gt.f32.partialorder %v1385_v55, 0.0  ;;  %v1445_v42 = vmul.f32 0.2, %v1385_v55  ;;  %v1301_v61 = vadd.f32 %v1989_v25, %v1212_v43 }
 0x150   :  { %1748 = vst [vmem:[%s2951_s3] sm:$0xff] %v1747_v57   ;;  %v1991_v33 = vpop.f32.mrf.mxu1  ;;  %v2059_v8 = vpop.f32.mrf.mxu0  ;;  %v1495_v30 = vadd.f32 %v2849_v38, %v1477_v29  ;;  %v1223_v17 = vadd.f32 %v1940_v14, %v1134_v20 }
 0x151   :  { %v1459_v35 = vsel %vm1431_vm4, %v1385_v55, %v1445_v42  ;;  %v1390_v40 = vadd.f32 %v1389_v37, %v1301_v61  ;;  %v1992_v41 = vadd.f32 %v1991_v33, %v1990_v60  ;;  %v2975_v55 = vld [vmem:[#allocation10_spill] sm:$0xff]  ;;  %v2977_v42 = vld [vmem:[#allocation7_spill] sm:$0xff]  ;;  %v2978_v8 = vld [vmem:[#allocation9_spill] sm:$0xff] }
 0x152   :  { %v1478_v39 = vmul.f32 %v2843_v62, %v1459_v35  ;;  %v1993_v46 = vpop.f32.mrf.mxu1  ;;  %v1397_v44 = vpop.f32.mrf.mxu0  ;;  %v1891_v25 = vadd.f32 %v2975_v55, %v2974_v58  ;;  %v1949_v35 = vadd.f32 %v2979_v10, %v2978_v8 }
 0x153   :  { %vm1432_vm5 = vcmp.gt.f32.partialorder %v1390_v40, 0.0  ;;  %v1446_v12 = vmul.f32 0.2, %v1390_v40  ;;  %v1304_v6 = vadd.f32 %v1992_v41, %v1215_v11  ;;  %v2981_v41 = vld [vmem:[#allocation14_spill] sm:$0xff] }
 0x154   :  { %v1496_v48 = vadd.f32 %v2849_v38, %v1478_v39  ;;  %v1994_v50 = vpop.f32.mrf.mxu1  ;;  %v2062_v16 = vpop.f32.mrf.mxu0 }
 0x155   :  { %v1460_v2 = vsel %vm1432_vm5, %v1390_v40, %v1446_v12  ;;  %v1393_v4 = vadd.f32 %v1392_v59, %v1304_v6  ;;  %v1995_v34 = vadd.f32 %v1994_v50, %v1993_v46  ;;  %v2976_v59 = vld [vmem:[#allocation6_spill] sm:$0xff]  ;;  %v2980_v40 = vld [vmem:[#allocation12_spill] sm:$0xff] }
 0x156   :  { %v1752_v52 = vpack.c.bf16 %v1496_v48, %v1495_v30  ;;  %v1996_v63 = vpop.f32.mrf.mxu1  ;;  %v1400_v1 = vpop.f32.mrf.mxu0  ;;  %v1479_v53 = vmul.f32 %v2843_v62, %v1460_v2  ;;  %v1946_v61 = vadd.f32 %v2977_v42, %v2976_v59  ;;  %v1894_v39 = vadd.f32 %v2981_v41, %v2980_v40  ;;  %v2982_v6 = vld [vmem:[#allocation2_spill] sm:$0xff]  ;;  %v2993_v40 = vld [vmem:[#allocation5_spill] sm:$0xff] }
 0x157   :  { %vm1433_vm6 = vcmp.gt.f32.partialorder %v1393_v4, 0.0  ;;  %v1447_v31 = vmul.f32 0.2, %v1393_v4  ;;  %v1309_v22 = vadd.f32 %v1995_v34, %v1220_v45  ;;  %v1147_v45 = vadd.f32 %v1891_v25, %v2982_v6  ;;  %v2983_v34 = vld [vmem:[#allocation3_spill] sm:$0xff]  ;;  %v2991_v25 = vld [vmem:[#allocation20_spill] sm:$0xff] }
 0x158   :  { %1779 = vst [vmem:[%s2951_s3 + $0x8] sm:$0xff] %v1752_v52   ;;  %v1997_v37 = vpop.f32.mrf.mxu1  ;;  %v2063_v54 = vpop.f32.mrf.mxu0  ;;  %v1497_v9 = vadd.f32 %v2849_v38, %v1479_v53  ;;  %v1231_v33 = vadd.f32 %v1946_v61, %v1142_v32  ;;  %v1150_v52 = vadd.f32 %v1894_v39, %v2983_v34 }
 0x159   :  { %v1461_v21 = vsel %vm1433_vm6, %v1393_v4, %v1447_v31  ;;  %v1398_v56 = vadd.f32 %v1397_v44, %v1309_v22  ;;  %v1998_v3 = vadd.f32 %v1997_v37, %v1996_v63  ;;  %v2984_v63 = vld [vmem:[#allocation16_spill] sm:$0xff]  ;;  %v1236_v49 = vadd.f32 %v1949_v35, %v1147_v45 }
 0x15a   :  { %v1480_v13 = vmul.f32 %v2843_v62, %v1461_v21  ;;  %v1999_v5 = vpop.f32.mrf.mxu1  ;;  %v1405_v7 = vpop.f32.mrf.mxu0  ;;  %v2987_v21 = vld [vmem:[#allocation15_spill] sm:$0xff] }
 0x15b   :  { %vm1434_vm7 = vcmp.gt.f32.partialorder %v1398_v56, 0.0  ;;  %v1448_v23 = vmul.f32 0.2, %v1398_v56  ;;  %v1312_v27 = vadd.f32 %v1998_v3, %v1223_v17  ;;  %v2986_v17 = vld [vmem:[#allocation13_spill] sm:$0xff] }
 0x15c   :  { %v1498_v36 = vadd.f32 %v2849_v38, %v1480_v13  ;;  %v2000_v19 = vpop.f32.mrf.mxu1  ;;  %v2066_v43 = vpop.f32.mrf.mxu0 }
 0x15d   :  { %v1462_v24 = vsel %vm1434_vm7, %v1398_v56, %v1448_v23  ;;  %v1401_v57 = vadd.f32 %v1400_v1, %v1312_v27  ;;  %v2001_v60 = vadd.f32 %v2000_v19, %v1999_v5  ;;  %v2985_v1 = vld [vmem:[#allocation18_spill] sm:$0xff]  ;;  %v1952_v56 = vadd.f32 %v2987_v21, %v2986_v17 }
 0x15e   :  { %v1757_v11 = vpack.c.bf16 %v1498_v36, %v1497_v9  ;;  %v2002_v15 = vpop.f32.mrf.mxu1  ;;  %v1408_v0 = vpop.f32.mrf.mxu0  ;;  %v1481_v46 = vmul.f32 %v2843_v62, %v1462_v24  ;;  %v1897_v14 = vadd.f32 %v2985_v1, %v2984_v63  ;;  %v2989_v9 = vld [vmem:[#allocation17_spill] sm:$0xff]  ;;  %v2990_v36 = vld [vmem:[#allocation19_spill] sm:$0xff]  ;;  %v2992_v24 = vld [vmem:[#allocation22_spill] sm:$0xff] }
 0x15f   :  { %vm1435_vm8 = vcmp.gt.f32.partialorder %v1401_v57, 0.0  ;;  %v1449_v18 = vmul.f32 0.2, %v1401_v57  ;;  %v1317_v29 = vadd.f32 %v2001_v60, %v1228_v28  ;;  %v1239_v27 = vadd.f32 %v1952_v56, %v1150_v52  ;;  %v2988_v28 = vld [vmem:[#allocation4_spill] sm:$0xff] }
 0x160   :  { %1780 = vst [vmem:[%s2951_s3 + $0x10] sm:$0xff] %v1757_v11   ;;  %v2003_v44 = vpop.f32.mrf.mxu1  ;;  %v2067_v12 = vpop.f32.mrf.mxu0  ;;  %v1499_v31 = vadd.f32 %v2849_v38, %v1481_v46  ;;  %v1155_v32 = vadd.f32 %v1897_v14, %v2988_v28  ;;  %v1955_v19 = vadd.f32 %v2990_v36, %v2989_v9 }
 0x161   :  { %v1463_v47 = vsel %vm1435_vm8, %v1401_v57, %v1449_v18  ;;  %v1406_v30 = vadd.f32 %v1405_v7, %v1317_v29  ;;  %v2004_v48 = vadd.f32 %v2003_v44, %v2002_v15  ;;  %v1900_v57 = vadd.f32 %v2992_v24, %v2991_v25 }
 0x162   :  { %v1482_v50 = vmul.f32 %v2843_v62, %v1463_v47  ;;  %v2005_v16 = vpop.f32.mrf.mxu1  ;;  %v1413_v20 = vpop.f32.mrf.mxu0  ;;  %v1244_v29 = vadd.f32 %v1955_v19, %v1155_v32  ;;  %v2994_v47 = vld [vmem:[#allocation21_spill] sm:$0xff] }
 0x163   :  { %vm1436_vm9 = vcmp.gt.f32.partialorder %v1406_v30, 0.0  ;;  %v1450_v2 = vmul.f32 0.2, %v1406_v30  ;;  %v1320_v4 = vadd.f32 %v2004_v48, %v1231_v33  ;;  %v1158_v41 = vadd.f32 %v1900_v57, %v2993_v40 }
 0x164   :  { %v1500_v22 = vadd.f32 %v2849_v38, %v1482_v50  ;;  %v2006_v26 = vpop.f32.mrf.mxu1  ;;  %v2070_v51 = vpop.f32.mrf.mxu0 }
 0x165   :  { %v1464_v53 = vsel %vm1436_vm9, %v1406_v30, %v1450_v2  ;;  %v1409_v37 = vadd.f32 %v1408_v0, %v1320_v4  ;;  %v2007_v54 = vadd.f32 %v2006_v26, %v2005_v16  ;;  %v2995_v30 = vld [vmem:[#allocation23_spill] sm:$0xff] }
 0x166   :  { %v1762_v3 = vpack.c.bf16 %v1500_v22, %v1499_v31  ;;  %v2008_v13 = vpop.f32.mrf.mxu1  ;;  %v1416_v5 = vpop.f32.mrf.mxu0  ;;  %v1483_v43 = vmul.f32 %v2843_v62, %v1464_v53  ;;  %v1958_v48 = vadd.f32 %v2995_v30, %v2994_v47 }
 0x167   :  { %vm1437_vm10 = vcmp.gt.f32.partialorder %v1409_v37, 0.0  ;;  %v1451_v7 = vmul.f32 0.2, %v1409_v37  ;;  %v1325_v23 = vadd.f32 %v2007_v54, %v1236_v49 }
 0x168   :  { %1781 = vst [vmem:[%s2951_s3 + $0x18] sm:$0xff] %v1762_v3   ;;  %v2009_v58 = vpop.f32.mrf.mxu1  ;;  %v2071_v55 = vpop.f32.mrf.mxu0  ;;  %v1501_v33 = vadd.f32 %v2849_v38, %v1483_v43  ;;  %v1247_v34 = vadd.f32 %v1958_v48, %v1158_v41 }
 0x169   :  { %v1465_v60 = vsel %vm1437_vm10, %v1409_v37, %v1451_v7  ;;  %v1414_v59 = vadd.f32 %v1413_v20, %v1325_v23  ;;  %v2010_v42 = vadd.f32 %v2009_v58, %v2008_v13 }
 0x16a   :  { %v1484_v61 = vmul.f32 %v2843_v62, %v1465_v60  ;;  %v2011_v11 = vpop.f32.mrf.mxu1  ;;  %v1421_v15 = vpop.f32.mrf.mxu0 }
 0x16b   :  { %vm1438_vm11 = vcmp.gt.f32.partialorder %v1414_v59, 0.0  ;;  %v1452_v0 = vmul.f32 0.2, %v1414_v59  ;;  %v1328_v18 = vadd.f32 %v2010_v42, %v1239_v27 }
 0x16c   :  { %v1502_v8 = vadd.f32 %v2849_v38, %v1484_v61  ;;  %v2012_v10 = vpop.f32.mrf.mxu1  ;;  %v2074_v35 = vpop.f32.mrf.mxu0 }
 0x16d   :  { %v1466_v39 = vsel %vm1438_vm11, %v1414_v59, %v1452_v0  ;;  %v1417_v46 = vadd.f32 %v1416_v5, %v1328_v18  ;;  %v2013_v44 = vadd.f32 %v2012_v10, %v2011_v11 }
 0x16e   :  { %v1767_v12 = vpack.c.bf16 %v1502_v8, %v1501_v33  ;;  %v2014_v6 = vpop.f32.mrf.mxu1  ;;  %v1424_v45 = vpop.f32.mrf.mxu0  ;;  %v1485_v20 = vmul.f32 %v2843_v62, %v1466_v39 }
 0x16f   :  { %vm1439_vm12 = vcmp.gt.f32.partialorder %v1417_v46, 0.0  ;;  %v1453_v50 = vmul.f32 0.2, %v1417_v46  ;;  %v1333_v16 = vadd.f32 %v2013_v44, %v1244_v29 }
 0x170   :  { %1782 = vst [vmem:[%s2951_s3 + $0x20] sm:$0xff] %v1767_v12   ;;  %v2015_v2 = vpop.f32.mrf.mxu1  ;;  %v2075_v4 = vpop.f32.mrf.mxu0  ;;  %v1503_v26 = vadd.f32 %v2849_v38, %v1485_v20 }
 0x171   :  { %v1467_v52 = vsel %vm1439_vm12, %v1417_v46, %v1453_v50  ;;  %v1422_v63 = vadd.f32 %v1421_v15, %v1333_v16  ;;  %v2016_v1 = vadd.f32 %v2015_v2, %v2014_v6 }
 0x172   :  { %v1486_v14 = vmul.f32 %v2843_v62, %v1467_v52 }
 0x173   :  { %vm1440_vm13 = vcmp.gt.f32.partialorder %v1422_v63, 0.0  ;;  %v1454_v31 = vmul.f32 0.2, %v1422_v63  ;;  %v1336_v22 = vadd.f32 %v2016_v1, %v1247_v34 }
 0x174   :  { %v1504_v51 = vadd.f32 %v2849_v38, %v1486_v14 }
 0x175   :  { %v1468_v49 = vsel %vm1440_vm13, %v1422_v63, %v1454_v31  ;;  %v1425_v53 = vadd.f32 %v1424_v45, %v1336_v22 }
 0x176   :  { %v1772_v37 = vpack.c.bf16 %v1504_v51, %v1503_v26  ;;  %v1487_v17 = vmul.f32 %v2843_v62, %v1468_v49 }
 0x177   :  { %vm1441_vm14 = vcmp.gt.f32.partialorder %v1425_v53, 0.0  ;;  %v1455_v54 = vmul.f32 0.2, %v1425_v53 }
 0x178   :  { %1783 = vst [vmem:[%s2951_s3 + $0x28] sm:$0xff] %v1772_v37   ;;  %v1505_v3 = vadd.f32 %v2849_v38, %v1487_v17 }
 0x179   :  { %v1469_v21 = vsel %vm1441_vm14, %v1425_v53, %v1455_v54 }
 0x17a   :  { %v1488_v56 = vmul.f32 %v2843_v62, %v1469_v21 }
 0x17c   :  { %v1506_v13 = vadd.f32 %v2849_v38, %v1488_v56 }
 0x17e   :  { %v1777_v5 = vpack.c.bf16 %v1506_v13, %v1505_v3 }
 0x180   :  { %1784 = vst [vmem:[%s2951_s3 + $0x30] sm:$0xff] %v1777_v5  }

// kernel: net_forward.9
= control target key start
LH: loop header
LB: loop body
LE: loop exit
PB: predicated region body
PF: predicated region fallthrough
CT: control target
= control target key end

     0   :  { %s2159_s1 = inlined_call_operand.vmem [shape: bf16[1152,128], index: 1, kind: input, shape index: {}]   ;;  %s2160_s0 = inlined_call_operand.vmem [shape: bf16[64,1152], index: 0, kind: input, shape index: {}]   ;;  %s2161_s2 = inlined_call_operand.vmem [shape: f32[3,128], index: 2, kind: input, shape index: {}]   ;;  %s2162_s3 = inlined_call_operand.vmem [shape: bf16[64,128], index: 3, kind: output, shape index: {}]  }
   0x1   :  { %v1592_v0 = vld [vmem:[%s2159_s1 + $0x78] sm:$0xff]   ;;  %v1596_v4 = vld [vmem:[%s2159_s1 + $0x70] sm:$0xff]   ;;  %v1600_v8 = vld [vmem:[%s2159_s1 + $0x68] sm:$0xff]  }
   0x2   :  { %v1593_v1 = vld [vmem:[%s2159_s1 + $0xf8] sm:$0xff]   ;;  %1380 = vmatprep.subr.bf16.mxu0 %v1592_v0  ;;  %v1597_v5 = vld [vmem:[%s2159_s1 + $0xf0] sm:$0xff]   ;;  %v1601_v9 = vld [vmem:[%s2159_s1 + $0xe8] sm:$0xff]  }
   0x3   :  { %v1594_v2 = vld [vmem:[%s2159_s1 + $0x38] sm:$0xff]   ;;  %1420 = vmatprep.subr.bf16.mxu1 %v1593_v1  ;;  %v1598_v6 = vld [vmem:[%s2159_s1 + $0x30] sm:$0xff]   ;;  %v1602_v10 = vld [vmem:[%s2159_s1 + $0x28] sm:$0xff]  }
   0x4   :  { %v1595_v3 = vld [vmem:[%s2159_s1 + $0xb8] sm:$0xff]   ;;  %1381 = vmatpush3.bf16.msra.mxu0 %v1594_v2  ;;  %v1599_v7 = vld [vmem:[%s2159_s1 + $0xb0] sm:$0xff]   ;;  %v1603_v11 = vld [vmem:[%s2159_s1 + $0xa8] sm:$0xff]  }
   0x5   :  { %1421 = vmatpush3.bf16.msra.mxu1 %v1595_v3  ;;  %1382 = vmatprep.subr.bf16.mxu0 %v1596_v4  ;;  %v1604_v12 = vld [vmem:[%s2159_s1 + $0x60] sm:$0xff]   ;;  %v1608_v16 = vld [vmem:[%s2159_s1 + $0x58] sm:$0xff]   ;;  %v1612_v20 = vld [vmem:[%s2159_s1 + $0x50] sm:$0xff]  }
   0x6   :  { %1422 = vmatprep.subr.bf16.mxu1 %v1597_v5  ;;  %v1605_v13 = vld [vmem:[%s2159_s1 + $0xe0] sm:$0xff]   ;;  %v1609_v17 = vld [vmem:[%s2159_s1 + $0xd8] sm:$0xff]   ;;  %v1613_v21 = vld [vmem:[%s2159_s1 + $0xd0] sm:$0xff]  }
   0x7   :  { %v1606_v14 = vld [vmem:[%s2159_s1 + $0x20] sm:$0xff]   ;;  %v1610_v18 = vld [vmem:[%s2159_s1 + $0x18] sm:$0xff]   ;;  %v1614_v22 = vld [vmem:[%s2159_s1 + $0x10] sm:$0xff]  }
   0x8   :  { %1383 = vmatpush3.bf16.msra.mxu0 %v1598_v6  ;;  %v1607_v15 = vld [vmem:[%s2159_s1 + $0xa0] sm:$0xff]   ;;  %v1611_v19 = vld [vmem:[%s2159_s1 + $0x98] sm:$0xff]   ;;  %v1615_v23 = vld [vmem:[%s2159_s1 + $0x90] sm:$0xff]  }
   0x9   :  { %1423 = vmatpush3.bf16.msra.mxu1 %v1599_v7  ;;  %1384 = vmatprep.subr.bf16.mxu0 %v1600_v8  ;;  %v1616_v24 = vld [vmem:[%s2159_s1 + $0x48] sm:$0xff]   ;;  %v1620_v28 = vld [vmem:[%s2159_s1 + $0x40] sm:$0xff]   ;;  %v1630_v36 = vld [vmem:[%s2159_s1 + $0x178] sm:$0xff]  }
   0xa   :  { %1424 = vmatprep.subr.bf16.mxu1 %v1601_v9  ;;  %v1617_v25 = vld [vmem:[%s2159_s1 + $0xc8] sm:$0xff]   ;;  %v1621_v29 = vld [vmem:[%s2159_s1 + $0xc0] sm:$0xff]   ;;  %v1631_v37 = vld [vmem:[%s2159_s1 + $0x1f8] sm:$0xff]  }
   0xb   :  { %v1618_v26 = vld [vmem:[%s2159_s1 + $0x8] sm:$0xff]   ;;  %v1622_v30 = vld [vmem:[%s2159_s1] sm:$0xff]   ;;  %v1632_v38 = vld [vmem:[%s2159_s1 + $0x138] sm:$0xff]  }
   0xc   :  { %1385 = vmatpush3.bf16.msra.mxu0 %v1602_v10  ;;  %v1619_v27 = vld [vmem:[%s2159_s1 + $0x88] sm:$0xff]   ;;  %v1623_v31 = vld [vmem:[%s2159_s1 + $0x80] sm:$0xff]   ;;  %v1633_v39 = vld [vmem:[%s2159_s1 + $0x1b8] sm:$0xff]  }
   0xd   :  { %1425 = vmatpush3.bf16.msra.mxu1 %v1603_v11  ;;  %1386 = vmatprep.subr.bf16.mxu0 %v1604_v12  ;;  %v1624_v32 = vld [vmem:[%s2160_s0] ss:$36 sps:$4 sm:$0xff]   ;;  %v1627_v34 = vld [vmem:[%s2160_s0 + $0x8] ss:$36 sps:$4 sm:$0xff]   ;;  %v1634_v40 = vld [vmem:[%s2159_s1 + $0x170] sm:$0xff]  }
   0xe   :  { %1426 = vmatprep.subr.bf16.mxu1 %v1605_v13  ;;  %v1626_v33 = vld [vmem:[%s2160_s0 + $0x4] ss:$36 sps:$4 sm:$0xff]   ;;  %v1629_v35 = vld [vmem:[%s2160_s0 + $0xc] ss:$36 sps:$4 sm:$0xff]   ;;  %v1640_v45 = vld [vmem:[%s2160_s0 + $0x54] ss:$36 sps:$4 sm:$0xff]  }
   0xf   :  { %847 = vmatprep.mubr.bf16.mxu0 %v1626_v33  ;;  %912 = vmatprep.mubr.bf16.mxu1 %v1629_v35  ;;  %v1635_v41 = vld [vmem:[%s2159_s1 + $0x1f0] sm:$0xff]   ;;  %v1642_v46 = vld [vmem:[%s2160_s0 + $0x48] ss:$36 sps:$4 sm:$0xff]   ;;  %v1648_v52 = vld [vmem:[%s2159_s1 + $0x160] sm:$0xff]  }
  0x10   :  { %1387 = vmatpush3.bf16.msra.mxu0 %v1606_v14  ;;  %v1636_v42 = vld [vmem:[%s2159_s1 + $0x130] sm:$0xff]   ;;  %v1644_v48 = vld [vmem:[%s2159_s1 + $0x168] sm:$0xff]   ;;  %v1649_v53 = vld [vmem:[%s2159_s1 + $0x1e0] sm:$0xff]  }
  0x11   :  { %1427 = vmatpush3.bf16.msra.mxu1 %v1607_v15  ;;  %1388 = vmatprep.subr.bf16.mxu0 %v1608_v16  ;;  %v1637_v43 = vld [vmem:[%s2159_s1 + $0x1b0] sm:$0xff]   ;;  %v1645_v49 = vld [vmem:[%s2159_s1 + $0x1e8] sm:$0xff]   ;;  %v1650_v54 = vld [vmem:[%s2159_s1 + $0x120] sm:$0xff]  }
  0x12   :  { %1428 = vmatprep.subr.bf16.mxu1 %v1609_v17  ;;  %v1638_v44 = vld [vmem:[%s2160_s0 + $0x4c] ss:$36 sps:$4 sm:$0xff]   ;;  %v1651_v55 = vld [vmem:[%s2159_s1 + $0x1a0] sm:$0xff]   ;;  %v1652_v56 = vld [vmem:[%s2160_s0 + $0x94] ss:$36 sps:$4 sm:$0xff]  }
  0x13   :  { %v1643_v47 = vld [vmem:[%s2160_s0 + $0x50] ss:$36 sps:$4 sm:$0xff]   ;;  %v1646_v50 = vld [vmem:[%s2159_s1 + $0x128] sm:$0xff]   ;;  %v1654_v57 = vld [vmem:[%s2160_s0 + $0x9c] ss:$36 sps:$4 sm:$0xff]  }
  0x14   :  { %1389 = vmatpush3.bf16.msra.mxu0 %v1610_v18  ;;  %v1647_v51 = vld [vmem:[%s2159_s1 + $0x1a8] sm:$0xff]   ;;  %v1656_v58 = vld [vmem:[%s2160_s0 + $0x90] ss:$36 sps:$4 sm:$0xff]   ;;  %v1657_v59 = vld [vmem:[%s2160_s0 + $0x98] ss:$36 sps:$4 sm:$0xff]  }
  0x15   :  { %1429 = vmatpush3.bf16.msra.mxu1 %v1611_v19  ;;  %1390 = vmatprep.subr.bf16.mxu0 %v1612_v20  ;;  %v1658_v60 = vld [vmem:[%s2159_s1 + $0x158] sm:$0xff]   ;;  %v1662_v0 = vld [vmem:[%s2159_s1 + $0x150] sm:$0xff]   ;;  %v1668_v5 = vld [vmem:[%s2160_s0 + $0xe4] ss:$36 sps:$4 sm:$0xff]  }
  0x16   :  { %1430 = vmatprep.subr.bf16.mxu1 %v1613_v21  ;;  %v1659_v61 = vld [vmem:[%s2159_s1 + $0x1d8] sm:$0xff]   ;;  %v1663_v1 = vld [vmem:[%s2159_s1 + $0x1d0] sm:$0xff]   ;;  %v1671_v7 = vld [vmem:[%s2160_s0 + $0xe0] ss:$36 sps:$4 sm:$0xff]  }
  0x17   :  { %v1660_v62 = vld [vmem:[%s2159_s1 + $0x118] sm:$0xff]   ;;  %v1664_v2 = vld [vmem:[%s2159_s1 + $0x110] sm:$0xff]   ;;  %v1672_v8 = vld [vmem:[%s2159_s1 + $0x148] sm:$0xff]  }
  0x18   :  { %1391 = vmatpush3.bf16.msra.mxu0 %v1614_v22  ;;  %v1661_v63 = vld [vmem:[%s2159_s1 + $0x198] sm:$0xff]   ;;  %v1665_v3 = vld [vmem:[%s2159_s1 + $0x190] sm:$0xff]   ;;  %v1673_v9 = vld [vmem:[%s2159_s1 + $0x1c8] sm:$0xff]  }
  0x19   :  { %1431 = vmatpush3.bf16.msra.mxu1 %v1615_v23  ;;  %1392 = vmatprep.subr.bf16.mxu0 %v1616_v24  ;;  %v1666_v4 = vld [vmem:[%s2160_s0 + $0xdc] ss:$36 sps:$4 sm:$0xff]   ;;  %v1674_v10 = vld [vmem:[%s2159_s1 + $0x108] sm:$0xff]   ;;  %v1680_v16 = vld [vmem:[%s2160_s0 + $0x10] ss:$36 sps:$4 sm:$0xff]  }
  0x1a   :  { %1432 = vmatprep.subr.bf16.mxu1 %v1617_v25  ;;  %v1670_v6 = vld [vmem:[%s2160_s0 + $0xd8] ss:$36 sps:$4 sm:$0xff]   ;;  %v1675_v11 = vld [vmem:[%s2159_s1 + $0x188] sm:$0xff]   ;;  %v1676_v12 = vld [vmem:[%s2159_s1 + $0x140] sm:$0xff]  }
  0x1b   :  { %v1677_v13 = vld [vmem:[%s2159_s1 + $0x1c0] sm:$0xff]   ;;  %v1682_v17 = vld [vmem:[%s2160_s0 + $0x14] ss:$36 sps:$4 sm:$0xff]   ;;  %v1704_v33 = vld [vmem:[%s2160_s0 + $0xec] ss:$36 sps:$4 sm:$0xff]  }
  0x1c   :  { %1393 = vmatpush3.bf16.msra.mxu0 %v1618_v26  ;;  %v1678_v14 = vld [vmem:[%s2159_s1 + $0x100] sm:$0xff]   ;;  %v1683_v18 = vld [vmem:[%s2160_s0 + $0x18] ss:$36 sps:$4 sm:$0xff]   ;;  %v1687_v21 = vld [vmem:[%s2159_s1 + $0x230] sm:$0xff]  }
  0x1d   :  { %1433 = vmatpush3.bf16.msra.mxu1 %v1619_v27  ;;  %1394 = vmatprep.subr.bf16.mxu0 %v1620_v28  ;;  %v1679_v15 = vld [vmem:[%s2159_s1 + $0x180] sm:$0xff]   ;;  %v1686_v20 = vld [vmem:[%s2159_s1 + $0x238] sm:$0xff]   ;;  %v1694_v26 = vld [vmem:[%s2159_s1 + $0x228] sm:$0xff]  }
  0x1e   :  { %1434 = vmatprep.subr.bf16.mxu1 %v1621_v29  ;;  %v1685_v19 = vld [vmem:[%s2160_s0 + $0x1c] ss:$36 sps:$4 sm:$0xff]   ;;  %v1690_v23 = vld [vmem:[%s2160_s0 + $0x64] ss:$36 sps:$4 sm:$0xff]   ;;  %v1698_v28 = vld [vmem:[%s2160_s0 + $0xac] ss:$36 sps:$4 sm:$0xff]  }
  0x1f   :  { %v1688_v22 = vld [vmem:[%s2160_s0 + $0x5c] ss:$36 sps:$4 sm:$0xff]   ;;  %v1696_v27 = vld [vmem:[%s2160_s0 + $0xa4] ss:$36 sps:$4 sm:$0xff]   ;;  %v1703_v35 = vld [vmem:[%s2159_s1 + $0x210] sm:$0xff]  }
  0x20   :  { %1395 = vmatpush3.bf16.msra.mxu0 %v1622_v30  ;;  %v1692_v24 = vld [vmem:[%s2160_s0 + $0x58] ss:$36 sps:$4 sm:$0xff]   ;;  %v1693_v25 = vld [vmem:[%s2160_s0 + $0x60] ss:$36 sps:$4 sm:$0xff]  }
  0x21   :  { %1435 = vmatpush3.bf16.msra.mxu1 %v1623_v31  ;;  %1460 = vmatprep.subr.bf16.mxu0 %v1630_v36  ;;  %v1695_v29 = vld [vmem:[%s2159_s1 + $0x220] sm:$0xff]   ;;  %v1701_v31 = vld [vmem:[%s2160_s0 + $0xa8] ss:$36 sps:$4 sm:$0xff]  }
  0x22   :  { %1500 = vmatprep.subr.bf16.mxu1 %v1631_v37  ;;  %v1700_v30 = vld [vmem:[%s2160_s0 + $0xa0] ss:$36 sps:$4 sm:$0xff]   ;;  %v1708_v36 = vld [vmem:[%s2160_s0 + $0xe8] ss:$36 sps:$4 sm:$0xff]  }
  0x23   :  { %848 = vmatmul.mubr.bf16.vlgmr.msra.gmra.mxu0 %v1624_v32  ;;  %v1702_v32 = vld [vmem:[%s2159_s1 + $0x218] sm:$0xff]   ;;  %v1710_v37 = vld [vmem:[%s2159_s1 + $0x208] sm:$0xff]  }
  0x24   :  { %913 = vmatmul.mubr.bf16.vlgmr.msra.gmra.mxu1 %v1627_v34  ;;  %1461 = vmatpush3.bf16.msra.mxu0 %v1632_v38  ;;  %v1706_v34 = vld [vmem:[%s2160_s0 + $0xf4] ss:$36 sps:$4 sm:$0xff]  }
  0x25   :  { %1501 = vmatpush3.bf16.msra.mxu1 %v1633_v39  ;;  %1462 = vmatprep.subr.bf16.mxu0 %v1634_v40  ;;  %v1709_v38 = vld [vmem:[%s2160_s0 + $0xf0] ss:$36 sps:$4 sm:$0xff]   ;;  %v1712_v39 = vld [vmem:[%s2160_s0 + $0x20] ss:$36 sps:$4 sm:$0xff]  }
  0x26   :  { %1502 = vmatprep.subr.bf16.mxu1 %v1635_v41  ;;  %855 = vmatprep.mubr.bf16.mxu0 %v1638_v44  ;;  %v1713_v40 = vld [vmem:[%s2160_s0 + $0xb0] ss:$36 sps:$4 sm:$0xff]   ;;  %v1711_v41 = vld [vmem:[%s2159_s1 + $0x200] sm:$0xff]  }
  0x27   :  { %920 = vmatprep.mubr.bf16.mxu1 %v1640_v45 }
  0x28   :  { %1463 = vmatpush3.bf16.msra.mxu0 %v1636_v42  ;;  %v1714_v42 = vld [vmem:[%s2160_s0 + $0x68] ss:$36 sps:$4 sm:$0xff]  }
  0x29   :  { %1503 = vmatpush3.bf16.msra.mxu1 %v1637_v43  ;;  %1464 = vmatprep.subr.bf16.mxu0 %v1644_v48  ;;  %v1715_v43 = vld [vmem:[%s2160_s0 + $0xf8] ss:$36 sps:$4 sm:$0xff]  }
  0x2a   :  { %1504 = vmatprep.subr.bf16.mxu1 %v1645_v49 }
  0x2b   :  { %856 = vmatmul.mubr.bf16.gmra.mxu0 %v1642_v46 }
  0x2c   :  { %921 = vmatmul.mubr.bf16.gmra.mxu1 %v1643_v47  ;;  %1465 = vmatpush3.bf16.msra.mxu0 %v1646_v50 }
  0x2d   :  { %1505 = vmatpush3.bf16.msra.mxu1 %v1647_v51  ;;  %1466 = vmatprep.subr.bf16.mxu0 %v1648_v52 }
  0x2e   :  { %1506 = vmatprep.subr.bf16.mxu1 %v1649_v53  ;;  %863 = vmatprep.mubr.bf16.mxu0 %v1652_v56 }
  0x2f   :  { %928 = vmatprep.mubr.bf16.mxu1 %v1654_v57 }
  0x30   :  { %1467 = vmatpush3.bf16.msra.mxu0 %v1650_v54 }
  0x31   :  { %1507 = vmatpush3.bf16.msra.mxu1 %v1651_v55  ;;  %1468 = vmatprep.subr.bf16.mxu0 %v1658_v60 }
  0x32   :  { %1508 = vmatprep.subr.bf16.mxu1 %v1659_v61 }
  0x33   :  { %864 = vmatmul.mubr.bf16.gmra.mxu0 %v1656_v58 }
  0x34   :  { %929 = vmatmul.mubr.bf16.gmra.mxu1 %v1657_v59  ;;  %1469 = vmatpush3.bf16.msra.mxu0 %v1660_v62 }
  0x35   :  { %1509 = vmatpush3.bf16.msra.mxu1 %v1661_v63  ;;  %1470 = vmatprep.subr.bf16.mxu0 %v1662_v0 }
  0x36   :  { %1510 = vmatprep.subr.bf16.mxu1 %v1663_v1  ;;  %871 = vmatprep.mubr.bf16.mxu0 %v1666_v4 }
  0x37   :  { %936 = vmatprep.mubr.bf16.mxu1 %v1668_v5 }
  0x38   :  { %1471 = vmatpush3.bf16.msra.mxu0 %v1664_v2 }
  0x39   :  { %1511 = vmatpush3.bf16.msra.mxu1 %v1665_v3  ;;  %1472 = vmatprep.subr.bf16.mxu0 %v1672_v8 }
  0x3a   :  { %1512 = vmatprep.subr.bf16.mxu1 %v1673_v9 }
  0x3b   :  { %872 = vmatmul.mubr.bf16.gmra.mxu0 %v1670_v6 }
  0x3c   :  { %937 = vmatmul.mubr.bf16.gmra.mxu1 %v1671_v7  ;;  %1473 = vmatpush3.bf16.msra.mxu0 %v1674_v10 }
  0x3d   :  { %1513 = vmatpush3.bf16.msra.mxu1 %v1675_v11  ;;  %1474 = vmatprep.subr.bf16.mxu0 %v1676_v12 }
  0x3e   :  { %1514 = vmatprep.subr.bf16.mxu1 %v1677_v13  ;;  %977 = vmatprep.mubr.bf16.mxu0 %v1682_v17 }
  0x3f   :  { %1042 = vmatprep.mubr.bf16.mxu1 %v1685_v19 }
  0x40   :  { %1475 = vmatpush3.bf16.msra.mxu0 %v1678_v14 }
  0x41   :  { %1515 = vmatpush3.bf16.msra.mxu1 %v1679_v15  ;;  %1552 = vmatprep.subr.bf16.mxu0 %v1686_v20 }
  0x42   :  { %1576 = vmatprep.subr.bf16.mxu1 %v1686_v20 }
  0x43   :  { %978 = vmatmul.mubr.bf16.vlgmr.msra.gmra.mxu0 %v1680_v16 }
  0x44   :  { %1043 = vmatmul.mubr.bf16.vlgmr.msra.gmra.mxu1 %v1683_v18  ;;  %1553 = vmatpush3.bf16.msra.mxu0 %v1686_v20 }
  0x45   :  { %1584 = vmatpush3.bf16.msra.mxu1 %v1686_v20  ;;  %1554 = vmatprep.subr.bf16.mxu0 %v1687_v21 }
  0x46   :  { %1577 = vmatprep.subr.bf16.mxu1 %v1687_v21  ;;  %985 = vmatprep.mubr.bf16.mxu0 %v1688_v22 }
  0x47   :  { %1050 = vmatprep.mubr.bf16.mxu1 %v1690_v23 }
  0x48   :  { %1555 = vmatpush3.bf16.msra.mxu0 %v1687_v21 }
  0x49   :  { %1585 = vmatpush3.bf16.msra.mxu1 %v1687_v21  ;;  %1556 = vmatprep.subr.bf16.mxu0 %v1694_v26 }
  0x4a   :  { %1578 = vmatprep.subr.bf16.mxu1 %v1694_v26 }
  0x4b   :  { %986 = vmatmul.mubr.bf16.gmra.mxu0 %v1692_v24 }
  0x4c   :  { %1051 = vmatmul.mubr.bf16.gmra.mxu1 %v1693_v25  ;;  %993 = vmatprep.mubr.bf16.mxu0 %v1696_v27  ;;  %v1165_v25 = vlaneseq }
  0x4d   :  { %1557 = vmatpush3.bf16.msra.mxu0 %v1694_v26  ;;  %1058 = vmatprep.mubr.bf16.mxu1 %v1698_v28 }
  0x4e   :  { %1586 = vmatpush3.bf16.msra.mxu1 %v1694_v26  ;;  %1558 = vmatprep.subr.bf16.mxu0 %v1695_v29 }
  0x4f   :  { %1579 = vmatprep.subr.bf16.mxu1 %v1695_v29 }
  0x51   :  { %1559 = vmatpush3.bf16.msra.mxu0 %v1695_v29 }
  0x52   :  { %1587 = vmatpush3.bf16.msra.mxu1 %v1695_v29  ;;  %1560 = vmatprep.subr.bf16.mxu0 %v1702_v32 }
  0x53   :  { %994 = vmatmul.mubr.bf16.gmra.mxu0 %v1700_v30  ;;  %1580 = vmatprep.subr.bf16.mxu1 %v1702_v32  ;;  %v2098_v30 = vshrl.u32 %v1165_v25, 7 }
  0x54   :  { %1059 = vmatmul.mubr.bf16.gmra.mxu1 %v1701_v31  ;;  %1001 = vmatprep.mubr.bf16.mxu0 %v1704_v33 }
  0x55   :  { %1561 = vmatpush3.bf16.msra.mxu0 %v1702_v32  ;;  %1066 = vmatprep.mubr.bf16.mxu1 %v1706_v34 }
  0x56   :  { %1588 = vmatpush3.bf16.msra.mxu1 %v1702_v32  ;;  %1562 = vmatprep.subr.bf16.mxu0 %v1703_v35 }
  0x57   :  { %1581 = vmatprep.subr.bf16.mxu1 %v1703_v35 }
  0x59   :  { %1563 = vmatpush3.bf16.msra.mxu0 %v1703_v35 }
  0x5a   :  { %1589 = vmatpush3.bf16.msra.mxu1 %v1703_v35  ;;  %1564 = vmatprep.subr.bf16.mxu0 %v1710_v37  ;;  %v1167_v35 = vsub.s32 1, %v2098_v30 }
  0x5b   :  { %1002 = vmatmul.mubr.bf16.gmra.mxu0 %v1708_v36  ;;  %1582 = vmatprep.subr.bf16.mxu1 %v1710_v37 }
  0x5c   :  { %1067 = vmatmul.mubr.bf16.gmra.mxu1 %v1709_v38  ;;  %1568 = vmatprep.mubr.bf16.mxu0 %v1712_v39 }
  0x5d   :  { %1565 = vmatpush3.bf16.msra.mxu0 %v1710_v37  ;;  %1572 = vmatprep.mubr.bf16.mxu1 %v1713_v40 }
  0x5e   :  { %1590 = vmatpush3.bf16.msra.mxu1 %v1710_v37  ;;  %1566 = vmatprep.subr.bf16.mxu0 %v1711_v41 }
  0x5f   :  { %1583 = vmatprep.subr.bf16.mxu1 %v1711_v41 }
  0x61   :  { %1567 = vmatpush3.bf16.msra.mxu0 %v1711_v41 }
  0x62   :  { %1591 = vmatpush3.bf16.msra.mxu1 %v1711_v41 }
  0x64   :  { %1569 = vmatmul.mubr.bf16.vlgmr.msra.gmra.mxu0 %v1714_v42  ;;  %v2108_v42 = vld [vmem:[%s2161_s2] sm:$0x7] }
  0x65   :  { %1573 = vmatmul.mubr.bf16.vlgmr.msra.gmra.mxu1 %v1715_v43 }
  0xe3   :  { %v1396_v44 = vpop.f32.mrf.mxu0 }
  0xe4   :  { %v1436_v45 = vpop.f32.mrf.mxu1 }
  0xe5   :  { %v1397_v46 = vpop.f32.mrf.mxu0 }
  0xe6   :  { %v1437_v47 = vpop.f32.mrf.mxu1  ;;  %v1398_v36 = vadd.f32 %v1397_v46, %v1396_v44  ;;  %v2113_v44 = vrot.slane %v2108_v42, %v1167_v35 }
  0xe7   :  { %v2060_v48 = vpop.f32.mrf.mxu0  ;;  %v1438_v37 = vadd.f32 %v1437_v47, %v1436_v45 }
  0xe8   :  { %v2062_v49 = vpop.f32.mrf.mxu1 }
  0xe9   :  { %v2064_v50 = vpop.f32.mrf.mxu0  ;;  %v915_v45 = vadd.f32 %v1438_v37, %v1398_v36 }
  0xea   :  { %v2066_v51 = vpop.f32.mrf.mxu1  ;;  %v1401_v46 = vadd.f32 %v2064_v50, %v2060_v48 }
  0xeb   :  { %v1402_v52 = vpop.f32.mrf.mxu0 }
  0xec   :  { %v1442_v53 = vpop.f32.mrf.mxu1 }
  0xed   :  { %v1403_v54 = vpop.f32.mrf.mxu0 }
  0xee   :  { %v1443_v55 = vpop.f32.mrf.mxu1  ;;  %v1404_v38 = vadd.f32 %v1403_v54, %v1402_v52 }
  0xef   :  { %v2068_v56 = vpop.f32.mrf.mxu0  ;;  %v1444_v39 = vadd.f32 %v1443_v55, %v1442_v53 }
  0xf0   :  { %v2070_v57 = vpop.f32.mrf.mxu1 }
  0xf1   :  { %v2072_v58 = vpop.f32.mrf.mxu0  ;;  %v923_v47 = vadd.f32 %v1444_v39, %v1404_v38 }
  0xf2   :  { %v2074_v59 = vpop.f32.mrf.mxu1  ;;  %v1407_v55 = vadd.f32 %v2072_v58, %v2068_v56 }
  0xf3   :  { %v1408_v60 = vpop.f32.mrf.mxu0 }
  0xf4   :  { %v1448_v61 = vpop.f32.mrf.mxu1 }
  0xf5   :  { %v1409_v62 = vpop.f32.mrf.mxu0 }
  0xf6   :  { %v1449_v63 = vpop.f32.mrf.mxu1 }
  0xf7   :  { %v2076_v0 = vpop.f32.mrf.mxu0 }
  0xf8   :  { %v2078_v1 = vpop.f32.mrf.mxu1 }
  0xf9   :  { %v2080_v2 = vpop.f32.mrf.mxu0 }
  0xfa   :  { %v2082_v3 = vpop.f32.mrf.mxu1  ;;  %v1413_v56 = vadd.f32 %v2080_v2, %v2076_v0 }
  0xfb   :  { %v1414_v4 = vpop.f32.mrf.mxu0 }
  0xfc   :  { %v1454_v5 = vpop.f32.mrf.mxu1 }
  0xfd   :  { %v1415_v6 = vpop.f32.mrf.mxu0 }
  0xfe   :  { %v1455_v7 = vpop.f32.mrf.mxu1  ;;  %v1416_v43 = vadd.f32 %v1415_v6, %v1414_v4  ;;  %v1447_v4 = vadd.f32 %v2074_v59, %v2070_v57  ;;  %v1453_v57 = vadd.f32 %v2082_v3, %v2078_v1  ;;  %v1179_v1 = vsub.s32 2, %v2098_v30 }
  0xff   :  { %v1417_v8 = vpop.f32.mrf.mxu0  ;;  %v1456_v25 = vadd.f32 %v1455_v7, %v1454_v5 }
 0x100   :  { %v1457_v9 = vpop.f32.mrf.mxu1  ;;  %v934_v3 = vadd.f32 %v1453_v57, %v1413_v56 }
 0x101   :  { %v1418_v10 = vpop.f32.mrf.mxu0 }
 0x102   :  { %v1458_v11 = vpop.f32.mrf.mxu1 }
 0x103   :  { %v1476_v12 = vpop.f32.mrf.mxu0  ;;  %v1459_v5 = vadd.f32 %v1458_v11, %v1457_v9 }
 0x104   :  { %v2084_v13 = vpop.f32.mrf.mxu1 }
 0x105   :  { %v1477_v14 = vpop.f32.mrf.mxu0 }
 0x106   :  { %v2086_v15 = vpop.f32.mrf.mxu1  ;;  %v1478_v52 = vadd.f32 %v1477_v14, %v1476_v12 }
 0x107   :  { %v2088_v16 = vpop.f32.mrf.mxu0  ;;  %v1518_v11 = vadd.f32 %v2086_v15, %v2084_v13 }
 0x108   :  { %v2090_v17 = vpop.f32.mrf.mxu1  ;;  %v980_v58 = vadd.f32 %v1478_v52, %v915_v45 }
 0x109   :  { %2163 = vst [vmem:[#allocation2_spill] sm:$0xff] %v2090_v17  ;;  %v1480_v18 = vpop.f32.mrf.mxu0 }
 0x10a   :  { %v2092_v19 = vpop.f32.mrf.mxu1  ;;  %v1045_v35 = vadd.f32 %v1518_v11, %v980_v58 }
 0x10b   :  { %2164 = vst [vmem:[#allocation3_spill] sm:$0xff] %v2092_v19  ;;  %v1482_v20 = vpop.f32.mrf.mxu0 }
 0x10c   :  { %v1522_v21 = vpop.f32.mrf.mxu1 }
 0x10d   :  { %v1483_v22 = vpop.f32.mrf.mxu0 }
 0x10e   :  { %v1523_v23 = vpop.f32.mrf.mxu1 }
 0x10f   :  { %v1485_v24 = vpop.f32.mrf.mxu0 }
 0x110   :  { %v2094_v26 = vpop.f32.mrf.mxu1  ;;  %v2171_v38 = vld [vmem:[#allocation2_spill] sm:$0xff] }
 0x111   :  { %2165 = vst [vmem:[#allocation4_spill] sm:$0xff] %v2094_v26  ;;  %v1486_v27 = vpop.f32.mrf.mxu0  ;;  %v1484_v26 = vadd.f32 %v1483_v22, %v1482_v20 }
 0x112   :  { %v2096_v28 = vpop.f32.mrf.mxu1  ;;  %v1487_v14 = vadd.f32 %v1486_v27, %v1485_v24  ;;  %v2172_v39 = vld [vmem:[#allocation3_spill] sm:$0xff] }
 0x113   :  { %2166 = vst [vmem:[#allocation5_spill] sm:$0xff] %v2096_v28  ;;  %v1488_v29 = vpop.f32.mrf.mxu0  ;;  %v1450_v28 = vadd.f32 %v1449_v63, %v1448_v61  ;;  %v1419_v63 = vadd.f32 %v1418_v10, %v1417_v8  ;;  %v988_v12 = vadd.f32 %v1484_v26, %v923_v47  ;;  %v1524_v8 = vadd.f32 %v1523_v23, %v1522_v21 }
 0x114   :  { %v1528_v31 = vpop.f32.mrf.mxu1 }
 0x115   :  { %v1489_v32 = vpop.f32.mrf.mxu0  ;;  %v942_v10 = vadd.f32 %v1459_v5, %v1419_v63 }
 0x116   :  { %v1529_v33 = vpop.f32.mrf.mxu1  ;;  %v1490_v6 = vadd.f32 %v1489_v32, %v1488_v29 }
 0x117   :  { %v2100_v34 = vpop.f32.mrf.mxu0  ;;  %v1530_v29 = vadd.f32 %v1529_v33, %v1528_v31 }
 0x118   :  { %2167 = vst [vmem:[#allocation6_spill] sm:$0xff] %v2100_v34  ;;  %v2103_v40 = vpop.f32.mrf.mxu1  ;;  %v1410_v34 = vadd.f32 %v1409_v62, %v1408_v60  ;;  %v939_v60 = vadd.f32 %v1456_v25, %v1416_v43  ;;  %v1441_v62 = vadd.f32 %v2066_v51, %v2062_v49  ;;  %v926_v49 = vadd.f32 %v1447_v4, %v1407_v55 }
 0x119   :  { %v1492_v41 = vpop.f32.mrf.mxu0  ;;  %v1481_v51 = vadd.f32 %v1480_v18, %v2088_v16  ;;  %v2168_v18 = vld [vmem:[#allocation4_spill] sm:$0xff]  ;;  %v1521_v43 = vadd.f32 %v2172_v39, %v2171_v38 }
 0x11a   :  { %v2110_v19 = vpop.f32.mrf.mxu1  ;;  %v931_v50 = vadd.f32 %v1450_v28, %v1410_v34  ;;  %v918_v0 = vadd.f32 %v1441_v62, %v1401_v46  ;;  %v991_v2 = vadd.f32 %v1487_v14, %v926_v49  ;;  %v1053_v28 = vadd.f32 %v1524_v8, %v988_v12  ;;  %v2169_v21 = vld [vmem:[#allocation5_spill] sm:$0xff] }
 0x11b   :  { %v1494_v17 = vpop.f32.mrf.mxu0  ;;  %v1527_v23 = vadd.f32 %v2169_v21, %v2168_v18  ;;  %v1533_v5 = vadd.f32 %v2110_v19, %v2103_v40 }
 0x11c   :  { %v1534_v53 = vpop.f32.mrf.mxu1  ;;  %v996_v24 = vadd.f32 %v1490_v6, %v931_v50  ;;  %v983_v16 = vadd.f32 %v1481_v51, %v918_v0 }
 0x11d   :  { %v1495_v54 = vpop.f32.mrf.mxu0  ;;  %v1056_v52 = vadd.f32 %v1527_v23, %v991_v2 }
 0x11e   :  { %v1496_v61 = vadd.f32 %v1495_v54, %v1494_v17  ;;  %v1535_v7 = vpop.f32.mrf.mxu1  ;;  %v1061_v30 = vadd.f32 %v1530_v29, %v996_v24  ;;  %v1048_v6 = vadd.f32 %v1521_v43, %v983_v16 }
 0x11f   :  { %v1497_v48 = vpop.f32.mrf.mxu0  ;;  %v1536_v59 = vadd.f32 %v1535_v7, %v1534_v53  ;;  %v2170_v36 = vld [vmem:[#allocation6_spill] sm:$0xff] }
 0x120   :  { %v1004_v20 = vadd.f32 %v1496_v61, %v939_v60  ;;  %v1537_v17 = vpop.f32.mrf.mxu1  ;;  %v1493_v37 = vadd.f32 %v1492_v41, %v2170_v36 }
 0x121   :  { %v1498_v22 = vpop.f32.mrf.mxu0 }
 0x122   :  { %v1499_v9 = vadd.f32 %v1498_v22, %v1497_v48  ;;  %v1538_v26 = vpop.f32.mrf.mxu1  ;;  %v1069_v27 = vadd.f32 %v1536_v59, %v1004_v20  ;;  %v999_v41 = vadd.f32 %v1493_v37, %v934_v3  ;;  %v1180_v20 = vrot.slane %v2108_v42, %v1179_v1 }
 0x123   :  { %v1539_v25 = vadd.f32 %v1538_v26, %v1537_v17 }
 0x124   :  { %v1007_v32 = vadd.f32 %v1499_v9, %v942_v10  ;;  %v1570_v34 = vpop.f32.mrf.mxu0  ;;  %v1064_v22 = vadd.f32 %v1533_v5, %v999_v41 }
 0x125   :  { %v1118_v13 = vadd.f32 %v1570_v34, %v1053_v28  ;;  %v1574_v15 = vpop.f32.mrf.mxu1 }
 0x126   :  { %v1134_v45 = vadd.f32 %v1574_v15, %v1069_v27  ;;  %v1109_v46 = vpop.f32.mrf.mxu0  ;;  %v1072_v4 = vadd.f32 %v1539_v25, %v1007_v32 }
 0x127   :  { %vm1142_vm0 = vcmp.gt.f32.partialorder %v1118_v13, 0.0  ;;  %v1150_v31 = vmul.f32 0.2, %v1118_v13  ;;  %v1110_v33 = vadd.f32 %v1109_v46, %v1045_v35  ;;  %v1125_v47 = vpop.f32.mrf.mxu1 }
 0x128   :  { %vm1146_vm1 = vcmp.gt.f32.partialorder %v1134_v45, 0.0  ;;  %v1154_v53 = vmul.f32 0.2, %v1134_v45  ;;  %v1126_v54 = vadd.f32 %v1125_v47, %v1061_v30  ;;  %v1571_v55 = vpop.f32.mrf.mxu0 }
 0x129   :  { %v1158_v60 = vsel %vm1142_vm0, %v1118_v13, %v1150_v31  ;;  %v1148_v61 = vmul.f32 0.2, %v1110_v33  ;;  %v1121_v62 = vadd.f32 %v1571_v55, %v1056_v52  ;;  %v1575_v63 = vpop.f32.mrf.mxu1  ;;  %vm1140_vm2 = vcmp.gt.f32.partialorder %v1110_v33, 0.0 }
 0x12a   :  { %v1112_v7 = vpop.f32.mrf.mxu0  ;;  %v1162_v48 = vsel %vm1146_vm1, %v1134_v45, %v1154_v53  ;;  %v1152_v50 = vmul.f32 0.2, %v1126_v54  ;;  %v1171_v14 = vmul.f32 %v2113_v44, %v1158_v60  ;;  %vm1144_vm4 = vcmp.gt.f32.partialorder %v1126_v54, 0.0 }
 0x12b   :  { %vm1143_vm3 = vcmp.gt.f32.partialorder %v1121_v62, 0.0  ;;  %v1151_v12 = vmul.f32 0.2, %v1121_v62  ;;  %v1137_v56 = vadd.f32 %v1575_v63, %v1072_v4  ;;  %v1128_v57 = vpop.f32.mrf.mxu1  ;;  %v1156_v58 = vsel %vm1140_vm2, %v1110_v33, %v1148_v61 }
 0x12c   :  { %v1113_v17 = vadd.f32 %v1112_v7, %v1048_v6  ;;  %v1175_v19 = vmul.f32 %v2113_v44, %v1162_v48  ;;  %v1160_v51 = vsel %vm1144_vm4, %v1126_v54, %v1152_v50  ;;  %v1129_v9 = vadd.f32 %v1128_v57, %v1064_v22 }
 0x12d   :  { %v1159_v59 = vsel %vm1143_vm3, %v1121_v62, %v1151_v12  ;;  %vm1147_vm5 = vcmp.gt.f32.partialorder %v1137_v56, 0.0  ;;  %v1155_v49 = vmul.f32 0.2, %v1137_v56  ;;  %v1183_v10 = vadd.f32 %v1180_v20, %v1171_v14 }
 0x12e   :  { %v1172_v40 = vmul.f32 %v2113_v44, %v1159_v59  ;;  %vm1141_vm6 = vcmp.gt.f32.partialorder %v1113_v17, 0.0  ;;  %v1149_v8 = vmul.f32 0.2, %v1113_v17  ;;  %v1169_v42 = vmul.f32 %v2113_v44, %v1156_v58 }
 0x12f   :  { %v1163_v24 = vsel %vm1147_vm5, %v1137_v56, %v1155_v49  ;;  %vm1145_vm7 = vcmp.gt.f32.partialorder %v1129_v9, 0.0  ;;  %v1153_v0 = vmul.f32 0.2, %v1129_v9  ;;  %v1173_v2 = vmul.f32 %v2113_v44, %v1160_v51 }
 0x130   :  { %v1184_v11 = vadd.f32 %v1180_v20, %v1172_v40  ;;  %v1176_v26 = vmul.f32 %v2113_v44, %v1163_v24  ;;  %v1157_v27 = vsel %vm1141_vm6, %v1113_v17, %v1149_v8  ;;  %v1187_v3 = vadd.f32 %v1180_v20, %v1175_v19 }
 0x131   :  { %v1170_v1 = vmul.f32 %v2113_v44, %v1157_v27  ;;  %v1161_v32 = vsel %vm1145_vm7, %v1129_v9, %v1153_v0  ;;  %v1181_v34 = vadd.f32 %v1180_v20, %v1169_v42  ;;  %v1185_v21 = vadd.f32 %v1180_v20, %v1173_v2 }
 0x132   :  { %v1365_v28 = vpack.c.bf16 %v1184_v11, %v1183_v10  ;;  %v1188_v29 = vadd.f32 %v1180_v20, %v1176_v26  ;;  %v1174_v16 = vmul.f32 %v2113_v44, %v1161_v32 }
 0x133   :  { %v1182_v35 = vadd.f32 %v1180_v20, %v1170_v1 }
 0x134   :  { %1377 = vst [vmem:[%s2162_s3 + $0x8] sm:$0xff] %v1365_v28   ;;  %v1375_v18 = vpack.c.bf16 %v1188_v29, %v1187_v3  ;;  %v1186_v36 = vadd.f32 %v1180_v20, %v1174_v16 }
 0x135   :  { %v1360_v23 = vpack.c.bf16 %v1182_v35, %v1181_v34 }
 0x136   :  { %1379 = vst [vmem:[%s2162_s3 + $0x18] sm:$0xff] %v1375_v18   ;;  %v1370_v37 = vpack.c.bf16 %v1186_v36, %v1185_v21 }
 0x137   :  { %1361 = vst [vmem:[%s2162_s3] sm:$0xff] %v1360_v23  }
 0x138   :  { %1378 = vst [vmem:[%s2162_s3 + $0x10] sm:$0xff] %v1370_v37  }

// kernel: net_forward.10
= control target key start
LH: loop header
LB: loop body
LE: loop exit
PB: predicated region body
PF: predicated region fallthrough
CT: control target
= control target key end

     0   :  { %s2353_s1 = inlined_call_operand.vmem [shape: bf16[1152,256], index: 1, kind: input, shape index: {}]   ;;  %s2354_s0 = inlined_call_operand.vmem [shape: bf16[32,1152], index: 0, kind: input, shape index: {}]   ;;  %s2355_s2 = inlined_call_operand.vmem [shape: f32[3,256], index: 2, kind: input, shape index: {}]   ;;  %s2356_s3 = inlined_call_operand.vmem [shape: bf16[32,256], index: 3, kind: output, shape index: {}]  }
   0x1   :  { %v1571_v0 = vld [vmem:[%s2353_s1 + $0x74] ss:$8 sps:$4 sm:$0xff]   ;;  %v1575_v2 = vld [vmem:[%s2353_s1 + $0x70] ss:$8 sps:$4 sm:$0xff]   ;;  %v1577_v4 = vld [vmem:[%s2353_s1 + $0x64] ss:$8 sps:$4 sm:$0xff]  }
   0x2   :  { %v1573_v1 = vld [vmem:[%s2353_s1 + $0x174] ss:$8 sps:$4 sm:$0xff]   ;;  %1011 = vmatprep.subr.bf16.mxu0 %v1571_v0  ;;  %v1576_v3 = vld [vmem:[%s2353_s1 + $0x170] ss:$8 sps:$4 sm:$0xff]   ;;  %v1579_v5 = vld [vmem:[%s2353_s1 + $0x164] ss:$8 sps:$4 sm:$0xff]  }
   0x3   :  { %1064 = vmatprep.subr.bf16.mxu1 %v1573_v1  ;;  %1012 = vmatpush1.bf16.msra.mxu0 %v1575_v2  ;;  %v1581_v6 = vld [vmem:[%s2353_s1 + $0x60] ss:$8 sps:$4 sm:$0xff]   ;;  %v1583_v8 = vld [vmem:[%s2353_s1 + $0x54] ss:$8 sps:$4 sm:$0xff]   ;;  %v1587_v10 = vld [vmem:[%s2353_s1 + $0x50] ss:$8 sps:$4 sm:$0xff]  }
   0x4   :  { %1065 = vmatpush1.bf16.msra.mxu1 %v1576_v3  ;;  %1013 = vmatprep.subr.bf16.mxu0 %v1577_v4  ;;  %v1582_v7 = vld [vmem:[%s2353_s1 + $0x160] ss:$8 sps:$4 sm:$0xff]   ;;  %v1585_v9 = vld [vmem:[%s2353_s1 + $0x154] ss:$8 sps:$4 sm:$0xff]   ;;  %v1588_v11 = vld [vmem:[%s2353_s1 + $0x150] ss:$8 sps:$4 sm:$0xff]  }
   0x5   :  { %1066 = vmatprep.subr.bf16.mxu1 %v1579_v5  ;;  %v1589_v12 = vld [vmem:[%s2353_s1 + $0x44] ss:$8 sps:$4 sm:$0xff]   ;;  %v1593_v14 = vld [vmem:[%s2353_s1 + $0x40] ss:$8 sps:$4 sm:$0xff]   ;;  %v1595_v16 = vld [vmem:[%s2353_s1 + $0x34] ss:$8 sps:$4 sm:$0xff]  }
   0x6   :  { %v1591_v13 = vld [vmem:[%s2353_s1 + $0x144] ss:$8 sps:$4 sm:$0xff]   ;;  %v1594_v15 = vld [vmem:[%s2353_s1 + $0x140] ss:$8 sps:$4 sm:$0xff]   ;;  %v1597_v17 = vld [vmem:[%s2353_s1 + $0x134] ss:$8 sps:$4 sm:$0xff]  }
   0x7   :  { %1014 = vmatpush1.bf16.msra.mxu0 %v1581_v6  ;;  %v1599_v18 = vld [vmem:[%s2353_s1 + $0x30] ss:$8 sps:$4 sm:$0xff]   ;;  %v1601_v20 = vld [vmem:[%s2353_s1 + $0x24] ss:$8 sps:$4 sm:$0xff]   ;;  %v1605_v22 = vld [vmem:[%s2353_s1 + $0x20] ss:$8 sps:$4 sm:$0xff]  }
   0x8   :  { %1067 = vmatpush1.bf16.msra.mxu1 %v1582_v7  ;;  %1015 = vmatprep.subr.bf16.mxu0 %v1583_v8  ;;  %v1600_v19 = vld [vmem:[%s2353_s1 + $0x130] ss:$8 sps:$4 sm:$0xff]   ;;  %v1603_v21 = vld [vmem:[%s2353_s1 + $0x124] ss:$8 sps:$4 sm:$0xff]   ;;  %v1606_v23 = vld [vmem:[%s2353_s1 + $0x120] ss:$8 sps:$4 sm:$0xff]  }
   0x9   :  { %1068 = vmatprep.subr.bf16.mxu1 %v1585_v9  ;;  %v1607_v24 = vld [vmem:[%s2353_s1 + $0x14] ss:$8 sps:$4 sm:$0xff]   ;;  %v1611_v26 = vld [vmem:[%s2353_s1 + $0x10] ss:$8 sps:$4 sm:$0xff]   ;;  %v1613_v28 = vld [vmem:[%s2353_s1 + $0x4] ss:$8 sps:$4 sm:$0xff]  }
   0xa   :  { %v1609_v25 = vld [vmem:[%s2353_s1 + $0x114] ss:$8 sps:$4 sm:$0xff]   ;;  %v1612_v27 = vld [vmem:[%s2353_s1 + $0x110] ss:$8 sps:$4 sm:$0xff]   ;;  %v1615_v29 = vld [vmem:[%s2353_s1 + $0x104] ss:$8 sps:$4 sm:$0xff]  }
   0xb   :  { %1016 = vmatpush1.bf16.msra.mxu0 %v1587_v10  ;;  %v1617_v30 = vld [vmem:[%s2353_s1] ss:$8 sps:$4 sm:$0xff]   ;;  %v1619_v32 = vld [vmem:[%s2353_s1 + $0xf4] ss:$8 sps:$4 sm:$0xff]   ;;  %v1623_v34 = vld [vmem:[%s2353_s1 + $0xf0] ss:$8 sps:$4 sm:$0xff]  }
   0xc   :  { %1069 = vmatpush1.bf16.msra.mxu1 %v1588_v11  ;;  %1017 = vmatprep.subr.bf16.mxu0 %v1589_v12  ;;  %v1618_v31 = vld [vmem:[%s2353_s1 + $0x100] ss:$8 sps:$4 sm:$0xff]   ;;  %v1621_v33 = vld [vmem:[%s2353_s1 + $0x1f4] ss:$8 sps:$4 sm:$0xff]   ;;  %v1624_v35 = vld [vmem:[%s2353_s1 + $0x1f0] ss:$8 sps:$4 sm:$0xff]  }
   0xd   :  { %1070 = vmatprep.subr.bf16.mxu1 %v1591_v13  ;;  %v1625_v36 = vld [vmem:[%s2353_s1 + $0xe4] ss:$8 sps:$4 sm:$0xff]   ;;  %v1629_v38 = vld [vmem:[%s2353_s1 + $0xe0] ss:$8 sps:$4 sm:$0xff]   ;;  %v1631_v40 = vld [vmem:[%s2353_s1 + $0xd4] ss:$8 sps:$4 sm:$0xff]  }
   0xe   :  { %v1627_v37 = vld [vmem:[%s2353_s1 + $0x1e4] ss:$8 sps:$4 sm:$0xff]   ;;  %v1630_v39 = vld [vmem:[%s2353_s1 + $0x1e0] ss:$8 sps:$4 sm:$0xff]   ;;  %v1633_v41 = vld [vmem:[%s2353_s1 + $0x1d4] ss:$8 sps:$4 sm:$0xff]  }
   0xf   :  { %1018 = vmatpush1.bf16.msra.mxu0 %v1593_v14  ;;  %v1635_v42 = vld [vmem:[%s2353_s1 + $0xd0] ss:$8 sps:$4 sm:$0xff]   ;;  %v1637_v44 = vld [vmem:[%s2353_s1 + $0xc4] ss:$8 sps:$4 sm:$0xff]   ;;  %v1641_v46 = vld [vmem:[%s2353_s1 + $0xc0] ss:$8 sps:$4 sm:$0xff]  }
  0x10   :  { %1071 = vmatpush1.bf16.msra.mxu1 %v1594_v15  ;;  %1019 = vmatprep.subr.bf16.mxu0 %v1595_v16  ;;  %v1636_v43 = vld [vmem:[%s2353_s1 + $0x1d0] ss:$8 sps:$4 sm:$0xff]   ;;  %v1639_v45 = vld [vmem:[%s2353_s1 + $0x1c4] ss:$8 sps:$4 sm:$0xff]   ;;  %v1642_v47 = vld [vmem:[%s2353_s1 + $0x1c0] ss:$8 sps:$4 sm:$0xff]  }
  0x11   :  { %1072 = vmatprep.subr.bf16.mxu1 %v1597_v17  ;;  %v1643_v48 = vld [vmem:[%s2353_s1 + $0xb4] ss:$8 sps:$4 sm:$0xff]   ;;  %v1669_v49 = vld [vmem:[%s2354_s0 + $0x4] ss:$36 sps:$4 sm:$0xff]   ;;  %v1672_v51 = vld [vmem:[%s2354_s0 + $0xc] ss:$36 sps:$4 sm:$0xff]  }
  0x12   :  { %v1645_v50 = vld [vmem:[%s2353_s1 + $0x1b4] ss:$8 sps:$4 sm:$0xff]   ;;  %1043 = vmatprep.mubr.bf16.mxu0 %v1669_v49  ;;  %v1647_v52 = vld [vmem:[%s2353_s1 + $0xb0] ss:$8 sps:$4 sm:$0xff]   ;;  %1096 = vmatprep.mubr.bf16.mxu1 %v1672_v51  ;;  %v1649_v54 = vld [vmem:[%s2353_s1 + $0xa4] ss:$8 sps:$4 sm:$0xff]  }
  0x13   :  { %1020 = vmatpush1.bf16.msra.mxu0 %v1599_v18  ;;  %v1648_v53 = vld [vmem:[%s2353_s1 + $0x1b0] ss:$8 sps:$4 sm:$0xff]   ;;  %v1651_v55 = vld [vmem:[%s2353_s1 + $0x1a4] ss:$8 sps:$4 sm:$0xff]   ;;  %v1653_v56 = vld [vmem:[%s2353_s1 + $0xa0] ss:$8 sps:$4 sm:$0xff]  }
  0x14   :  { %1073 = vmatpush1.bf16.msra.mxu1 %v1600_v19  ;;  %1021 = vmatprep.subr.bf16.mxu0 %v1601_v20  ;;  %v1654_v57 = vld [vmem:[%s2353_s1 + $0x1a0] ss:$8 sps:$4 sm:$0xff]   ;;  %v1655_v58 = vld [vmem:[%s2353_s1 + $0x94] ss:$8 sps:$4 sm:$0xff]   ;;  %v1659_v60 = vld [vmem:[%s2353_s1 + $0x90] ss:$8 sps:$4 sm:$0xff]  }
  0x15   :  { %1074 = vmatprep.subr.bf16.mxu1 %v1603_v21  ;;  %v1657_v59 = vld [vmem:[%s2353_s1 + $0x194] ss:$8 sps:$4 sm:$0xff]   ;;  %v1660_v61 = vld [vmem:[%s2353_s1 + $0x190] ss:$8 sps:$4 sm:$0xff]   ;;  %v1661_v62 = vld [vmem:[%s2353_s1 + $0x84] ss:$8 sps:$4 sm:$0xff]  }
  0x16   :  { %v1663_v63 = vld [vmem:[%s2353_s1 + $0x184] ss:$8 sps:$4 sm:$0xff]   ;;  %v1665_v0 = vld [vmem:[%s2353_s1 + $0x80] ss:$8 sps:$4 sm:$0xff]   ;;  %v1675_v2 = vld [vmem:[%s2353_s1 + $0x274] ss:$8 sps:$4 sm:$0xff]  }
  0x17   :  { %1022 = vmatpush1.bf16.msra.mxu0 %v1605_v22  ;;  %v1666_v1 = vld [vmem:[%s2353_s1 + $0x180] ss:$8 sps:$4 sm:$0xff]   ;;  %v1678_v3 = vld [vmem:[%s2353_s1 + $0x374] ss:$8 sps:$4 sm:$0xff]   ;;  %v1673_v6 = vld [vmem:[%s2353_s1 + $0x270] ss:$8 sps:$4 sm:$0xff]  }
  0x18   :  { %1075 = vmatpush1.bf16.msra.mxu1 %v1606_v23  ;;  %1023 = vmatprep.subr.bf16.mxu0 %v1607_v24  ;;  %v1667_v4 = vld [vmem:[%s2354_s0] ss:$36 sps:$4 sm:$0xff]   ;;  %v1670_v5 = vld [vmem:[%s2354_s0 + $0x8] ss:$36 sps:$4 sm:$0xff]   ;;  %v1676_v7 = vld [vmem:[%s2353_s1 + $0x370] ss:$8 sps:$4 sm:$0xff]  }
  0x19   :  { %1076 = vmatprep.subr.bf16.mxu1 %v1609_v25  ;;  %v1681_v8 = vld [vmem:[%s2353_s1 + $0x264] ss:$8 sps:$4 sm:$0xff]   ;;  %v1679_v10 = vld [vmem:[%s2353_s1 + $0x260] ss:$8 sps:$4 sm:$0xff]   ;;  %v1687_v12 = vld [vmem:[%s2353_s1 + $0x254] ss:$8 sps:$4 sm:$0xff]  }
  0x1a   :  { %v1684_v9 = vld [vmem:[%s2353_s1 + $0x364] ss:$8 sps:$4 sm:$0xff]   ;;  %v1682_v11 = vld [vmem:[%s2353_s1 + $0x360] ss:$8 sps:$4 sm:$0xff]   ;;  %v1690_v13 = vld [vmem:[%s2353_s1 + $0x354] ss:$8 sps:$4 sm:$0xff]  }
  0x1b   :  { %1024 = vmatpush1.bf16.msra.mxu0 %v1611_v26  ;;  %v1685_v14 = vld [vmem:[%s2353_s1 + $0x250] ss:$8 sps:$4 sm:$0xff]   ;;  %v1693_v16 = vld [vmem:[%s2353_s1 + $0x244] ss:$8 sps:$4 sm:$0xff]   ;;  %v1691_v18 = vld [vmem:[%s2353_s1 + $0x240] ss:$8 sps:$4 sm:$0xff]  }
  0x1c   :  { %1077 = vmatpush1.bf16.msra.mxu1 %v1612_v27  ;;  %1025 = vmatprep.subr.bf16.mxu0 %v1613_v28  ;;  %v1688_v15 = vld [vmem:[%s2353_s1 + $0x350] ss:$8 sps:$4 sm:$0xff]   ;;  %v1696_v17 = vld [vmem:[%s2353_s1 + $0x344] ss:$8 sps:$4 sm:$0xff]   ;;  %v1694_v19 = vld [vmem:[%s2353_s1 + $0x340] ss:$8 sps:$4 sm:$0xff]  }
  0x1d   :  { %1078 = vmatprep.subr.bf16.mxu1 %v1615_v29  ;;  %v1699_v20 = vld [vmem:[%s2353_s1 + $0x234] ss:$8 sps:$4 sm:$0xff]   ;;  %v1745_v22 = vld [vmem:[%s2354_s0 + $0x4c] ss:$36 sps:$4 sm:$0xff]   ;;  %v1703_v28 = vld [vmem:[%s2353_s1 + $0x220] ss:$8 sps:$4 sm:$0xff]  }
  0x1e   :  { %v1702_v21 = vld [vmem:[%s2353_s1 + $0x334] ss:$8 sps:$4 sm:$0xff]   ;;  %v1697_v23 = vld [vmem:[%s2353_s1 + $0x230] ss:$8 sps:$4 sm:$0xff]   ;;  %v1705_v25 = vld [vmem:[%s2353_s1 + $0x224] ss:$8 sps:$4 sm:$0xff]  }
  0x1f   :  { %1026 = vmatpush1.bf16.msra.mxu0 %v1617_v30  ;;  %v1700_v24 = vld [vmem:[%s2353_s1 + $0x330] ss:$8 sps:$4 sm:$0xff]   ;;  %v1708_v26 = vld [vmem:[%s2353_s1 + $0x324] ss:$8 sps:$4 sm:$0xff]   ;;  %v1706_v30 = vld [vmem:[%s2353_s1 + $0x320] ss:$8 sps:$4 sm:$0xff]  }
  0x20   :  { %1079 = vmatpush1.bf16.msra.mxu1 %v1618_v31  ;;  %1027 = vmatprep.subr.bf16.mxu0 %v1619_v32  ;;  %v1753_v27 = vld [vmem:[%s2354_s0 + $0x48] ss:$36 sps:$4 sm:$0xff]   ;;  %v1754_v29 = vld [vmem:[%s2354_s0 + $0x54] ss:$36 sps:$4 sm:$0xff]  }
  0x21   :  { %1080 = vmatprep.subr.bf16.mxu1 %v1621_v33  ;;  %v1756_v31 = vld [vmem:[%s2354_s0 + $0x50] ss:$36 sps:$4 sm:$0xff]   ;;  %v1730_v49 = vld [vmem:[%s2353_s1 + $0x3e0] ss:$8 sps:$4 sm:$0xff]  }
  0x22   :  { %v1711_v32 = vld [vmem:[%s2353_s1 + $0x214] ss:$8 sps:$4 sm:$0xff]  }
  0x23   :  { %1028 = vmatpush2.bf16.msra.mxu0 %v1623_v34  ;;  %v1714_v33 = vld [vmem:[%s2353_s1 + $0x314] ss:$8 sps:$4 sm:$0xff]   ;;  %v1709_v34 = vld [vmem:[%s2353_s1 + $0x210] ss:$8 sps:$4 sm:$0xff]  }
  0x24   :  { %1081 = vmatpush2.bf16.msra.mxu1 %v1624_v35  ;;  %1029 = vmatprep.subr.bf16.mxu0 %v1625_v36  ;;  %v1712_v35 = vld [vmem:[%s2353_s1 + $0x310] ss:$8 sps:$4 sm:$0xff]   ;;  %v1717_v36 = vld [vmem:[%s2353_s1 + $0x204] ss:$8 sps:$4 sm:$0xff]   ;;  %v1738_v51 = vld [vmem:[%s2353_s1 + $0x3d4] ss:$8 sps:$4 sm:$0xff]  }
  0x25   :  { %1082 = vmatprep.subr.bf16.mxu1 %v1627_v37  ;;  %v1720_v37 = vld [vmem:[%s2353_s1 + $0x304] ss:$8 sps:$4 sm:$0xff]  }
  0x27   :  { %1030 = vmatpush2.bf16.msra.mxu0 %v1629_v38  ;;  %v1715_v38 = vld [vmem:[%s2353_s1 + $0x200] ss:$8 sps:$4 sm:$0xff]  }
  0x28   :  { %1083 = vmatpush2.bf16.msra.mxu1 %v1630_v39  ;;  %1031 = vmatprep.subr.bf16.mxu0 %v1631_v40  ;;  %v1718_v39 = vld [vmem:[%s2353_s1 + $0x300] ss:$8 sps:$4 sm:$0xff]   ;;  %v1723_v40 = vld [vmem:[%s2353_s1 + $0x2f4] ss:$8 sps:$4 sm:$0xff]  }
  0x29   :  { %1084 = vmatprep.subr.bf16.mxu1 %v1633_v41  ;;  %v1777_v41 = vld [vmem:[%s2354_s0 + $0x14] ss:$36 sps:$4 sm:$0xff]  }
  0x2b   :  { %1032 = vmatpush2.bf16.msra.mxu0 %v1635_v42  ;;  %v1726_v42 = vld [vmem:[%s2353_s1 + $0x3f4] ss:$8 sps:$4 sm:$0xff]  }
  0x2c   :  { %1085 = vmatpush2.bf16.msra.mxu1 %v1636_v43  ;;  %1033 = vmatprep.subr.bf16.mxu0 %v1637_v44  ;;  %v1780_v43 = vld [vmem:[%s2354_s0 + $0x1c] ss:$36 sps:$4 sm:$0xff]   ;;  %v1721_v44 = vld [vmem:[%s2353_s1 + $0x2f0] ss:$8 sps:$4 sm:$0xff]  }
  0x2d   :  { %1086 = vmatprep.subr.bf16.mxu1 %v1639_v45  ;;  %v1724_v45 = vld [vmem:[%s2353_s1 + $0x3f0] ss:$8 sps:$4 sm:$0xff]  }
  0x2f   :  { %1034 = vmatpush2.bf16.msra.mxu0 %v1641_v46  ;;  %v1729_v46 = vld [vmem:[%s2353_s1 + $0x2e4] ss:$8 sps:$4 sm:$0xff]  }
  0x30   :  { %1087 = vmatpush2.bf16.msra.mxu1 %v1642_v47  ;;  %1035 = vmatprep.subr.bf16.mxu0 %v1643_v48  ;;  %v1732_v47 = vld [vmem:[%s2353_s1 + $0x3e4] ss:$8 sps:$4 sm:$0xff]   ;;  %v1727_v48 = vld [vmem:[%s2353_s1 + $0x2e0] ss:$8 sps:$4 sm:$0xff]  }
  0x31   :  { %1088 = vmatprep.subr.bf16.mxu1 %v1645_v50  ;;  %v1735_v50 = vld [vmem:[%s2353_s1 + $0x2d4] ss:$8 sps:$4 sm:$0xff]  }
  0x33   :  { %1036 = vmatpush2.bf16.msra.mxu0 %v1647_v52  ;;  %v1733_v52 = vld [vmem:[%s2353_s1 + $0x2d0] ss:$8 sps:$4 sm:$0xff]  }
  0x34   :  { %1089 = vmatpush2.bf16.msra.mxu1 %v1648_v53  ;;  %1037 = vmatprep.subr.bf16.mxu0 %v1649_v54  ;;  %v1736_v53 = vld [vmem:[%s2353_s1 + $0x3d0] ss:$8 sps:$4 sm:$0xff]   ;;  %v1741_v54 = vld [vmem:[%s2353_s1 + $0x2c4] ss:$8 sps:$4 sm:$0xff]  }
  0x35   :  { %1090 = vmatprep.subr.bf16.mxu1 %v1651_v55  ;;  %v1744_v55 = vld [vmem:[%s2353_s1 + $0x3c4] ss:$8 sps:$4 sm:$0xff]  }
  0x37   :  { %1038 = vmatpush2.bf16.msra.mxu0 %v1653_v56  ;;  %v1739_v56 = vld [vmem:[%s2353_s1 + $0x2c0] ss:$8 sps:$4 sm:$0xff]  }
  0x38   :  { %1091 = vmatpush2.bf16.msra.mxu1 %v1654_v57  ;;  %1039 = vmatprep.subr.bf16.mxu0 %v1655_v58  ;;  %v1742_v57 = vld [vmem:[%s2353_s1 + $0x3c0] ss:$8 sps:$4 sm:$0xff]   ;;  %v1749_v58 = vld [vmem:[%s2353_s1 + $0x2b4] ss:$8 sps:$4 sm:$0xff]  }
  0x39   :  { %1092 = vmatprep.subr.bf16.mxu1 %v1657_v59  ;;  %v1752_v59 = vld [vmem:[%s2353_s1 + $0x3b4] ss:$8 sps:$4 sm:$0xff]  }
  0x3b   :  { %1040 = vmatpush2.bf16.msra.mxu0 %v1659_v60  ;;  %v1747_v60 = vld [vmem:[%s2353_s1 + $0x2b0] ss:$8 sps:$4 sm:$0xff]  }
  0x3c   :  { %1093 = vmatpush2.bf16.msra.mxu1 %v1660_v61  ;;  %1041 = vmatprep.subr.bf16.mxu0 %v1661_v62  ;;  %v1750_v61 = vld [vmem:[%s2353_s1 + $0x3b0] ss:$8 sps:$4 sm:$0xff]   ;;  %v1759_v62 = vld [vmem:[%s2353_s1 + $0x2a4] ss:$8 sps:$4 sm:$0xff]  }
  0x3d   :  { %1094 = vmatprep.subr.bf16.mxu1 %v1663_v63  ;;  %v1762_v63 = vld [vmem:[%s2353_s1 + $0x3a4] ss:$8 sps:$4 sm:$0xff]  }
  0x3f   :  { %1042 = vmatpush2.bf16.msra.mxu0 %v1665_v0  ;;  %v1757_v0 = vld [vmem:[%s2353_s1 + $0x2a0] ss:$8 sps:$4 sm:$0xff]  }
  0x40   :  { %1095 = vmatpush2.bf16.msra.mxu1 %v1666_v1  ;;  %1117 = vmatprep.subr.bf16.mxu0 %v1675_v2  ;;  %v1760_v1 = vld [vmem:[%s2353_s1 + $0x3a0] ss:$8 sps:$4 sm:$0xff]   ;;  %v1765_v2 = vld [vmem:[%s2353_s1 + $0x294] ss:$8 sps:$4 sm:$0xff]  }
  0x41   :  { %1170 = vmatprep.subr.bf16.mxu1 %v1678_v3  ;;  %v1768_v3 = vld [vmem:[%s2353_s1 + $0x394] ss:$8 sps:$4 sm:$0xff]  }
  0x42   :  { %1044 = vmatmul.mubr.bf16.vlgmr.msra.gmra.mxu0 %v1667_v4  ;;  %v1763_v4 = vld [vmem:[%s2353_s1 + $0x290] ss:$8 sps:$4 sm:$0xff]  }
  0x43   :  { %1097 = vmatmul.mubr.bf16.vlgmr.msra.gmra.mxu1 %v1670_v5  ;;  %1118 = vmatpush1.bf16.msra.mxu0 %v1673_v6  ;;  %v1766_v5 = vld [vmem:[%s2353_s1 + $0x390] ss:$8 sps:$4 sm:$0xff]   ;;  %v1771_v6 = vld [vmem:[%s2353_s1 + $0x284] ss:$8 sps:$4 sm:$0xff]  }
  0x44   :  { %1171 = vmatpush1.bf16.msra.mxu1 %v1676_v7  ;;  %1119 = vmatprep.subr.bf16.mxu0 %v1681_v8  ;;  %v1774_v7 = vld [vmem:[%s2353_s1 + $0x384] ss:$8 sps:$4 sm:$0xff]   ;;  %v1769_v8 = vld [vmem:[%s2353_s1 + $0x280] ss:$8 sps:$4 sm:$0xff]  }
  0x45   :  { %1172 = vmatprep.subr.bf16.mxu1 %v1684_v9  ;;  %1053 = vmatprep.mubr.bf16.mxu0 %v1745_v22  ;;  %v1772_v9 = vld [vmem:[%s2353_s1 + $0x380] ss:$8 sps:$4 sm:$0xff]   ;;  %v1798_v22 = vld [vmem:[%s2353_s1 + $0x444] ss:$8 sps:$4 sm:$0xff]  }
  0x46   :  { %1106 = vmatprep.mubr.bf16.mxu1 %v1754_v29  ;;  %v1807_v29 = vld [vmem:[%s2353_s1 + $0x414] ss:$8 sps:$4 sm:$0xff]  }
  0x47   :  { %1120 = vmatpush1.bf16.msra.mxu0 %v1679_v10  ;;  %v1783_v10 = vld [vmem:[%s2353_s1 + $0x474] ss:$8 sps:$4 sm:$0xff]  }
  0x48   :  { %1173 = vmatpush1.bf16.msra.mxu1 %v1682_v11  ;;  %1121 = vmatprep.subr.bf16.mxu0 %v1687_v12  ;;  %v1775_v11 = vld [vmem:[%s2354_s0 + $0x10] ss:$36 sps:$4 sm:$0xff]   ;;  %v1778_v12 = vld [vmem:[%s2354_s0 + $0x18] ss:$36 sps:$4 sm:$0xff]  }
  0x49   :  { %1174 = vmatprep.subr.bf16.mxu1 %v1690_v13  ;;  %v1781_v13 = vld [vmem:[%s2353_s1 + $0x470] ss:$8 sps:$4 sm:$0xff]  }
  0x4a   :  { %1054 = vmatmul.mubr.bf16.gmra.mxu0 %v1753_v27  ;;  %v1804_v27 = vld [vmem:[%s2353_s1 + $0x424] ss:$8 sps:$4 sm:$0xff]  }
  0x4b   :  { %1122 = vmatpush1.bf16.msra.mxu0 %v1685_v14  ;;  %1107 = vmatmul.mubr.bf16.gmra.mxu1 %v1756_v31  ;;  %v1786_v14 = vld [vmem:[%s2353_s1 + $0x464] ss:$8 sps:$4 sm:$0xff]  }
  0x4c   :  { %1175 = vmatpush1.bf16.msra.mxu1 %v1688_v15  ;;  %1123 = vmatprep.subr.bf16.mxu0 %v1693_v16  ;;  %v1787_v15 = vld [vmem:[%s2354_s0 + $0x5c] ss:$36 sps:$4 sm:$0xff]   ;;  %v1793_v16 = vld [vmem:[%s2354_s0 + $0x64] ss:$36 sps:$4 sm:$0xff]  }
  0x4d   :  { %1176 = vmatprep.subr.bf16.mxu1 %v1696_v17  ;;  %1149 = vmatprep.mubr.bf16.mxu0 %v1777_v41  ;;  %v1784_v17 = vld [vmem:[%s2353_s1 + $0x460] ss:$8 sps:$4 sm:$0xff]   ;;  %v1810_v31 = vld [vmem:[%s2353_s1 + $0x404] ss:$8 sps:$4 sm:$0xff]  }
  0x4e   :  { %1202 = vmatprep.mubr.bf16.mxu1 %v1780_v43 }
  0x4f   :  { %1124 = vmatpush1.bf16.msra.mxu0 %v1691_v18  ;;  %v1792_v18 = vld [vmem:[%s2353_s1 + $0x454] ss:$8 sps:$4 sm:$0xff]  }
  0x50   :  { %1177 = vmatpush1.bf16.msra.mxu1 %v1694_v19  ;;  %1125 = vmatprep.subr.bf16.mxu0 %v1699_v20  ;;  %v1789_v19 = vld [vmem:[%s2354_s0 + $0x58] ss:$36 sps:$4 sm:$0xff]   ;;  %v1795_v20 = vld [vmem:[%s2354_s0 + $0x60] ss:$36 sps:$4 sm:$0xff]  }
  0x51   :  { %1178 = vmatprep.subr.bf16.mxu1 %v1702_v21  ;;  %v1790_v21 = vld [vmem:[%s2353_s1 + $0x450] ss:$8 sps:$4 sm:$0xff]  }
  0x53   :  { %1126 = vmatpush1.bf16.msra.mxu0 %v1697_v23  ;;  %v1796_v23 = vld [vmem:[%s2353_s1 + $0x440] ss:$8 sps:$4 sm:$0xff]  }
  0x54   :  { %1179 = vmatpush1.bf16.msra.mxu1 %v1700_v24  ;;  %1127 = vmatprep.subr.bf16.mxu0 %v1705_v25  ;;  %v1801_v24 = vld [vmem:[%s2353_s1 + $0x434] ss:$8 sps:$4 sm:$0xff]   ;;  %v1813_v25 = vmov 0  }
  0x55   :  { %1180 = vmatprep.subr.bf16.mxu1 %v1708_v26  ;;  %v1799_v26 = vld [vmem:[%s2353_s1 + $0x430] ss:$8 sps:$4 sm:$0xff]  }
  0x57   :  { %1128 = vmatpush1.bf16.msra.mxu0 %v1703_v28  ;;  %v1802_v28 = vld [vmem:[%s2353_s1 + $0x420] ss:$8 sps:$4 sm:$0xff]  }
  0x58   :  { %1181 = vmatpush1.bf16.msra.mxu1 %v1706_v30  ;;  %1129 = vmatprep.subr.bf16.mxu0 %v1711_v32  ;;  %v1805_v30 = vld [vmem:[%s2353_s1 + $0x410] ss:$8 sps:$4 sm:$0xff]   ;;  %v1808_v32 = vld [vmem:[%s2353_s1 + $0x400] ss:$8 sps:$4 sm:$0xff]  }
  0x59   :  { %1182 = vmatprep.subr.bf16.mxu1 %v1714_v33  ;;  %v1811_v33 = vld [vmem:[%s2354_s0 + $0x20] ss:$36 sps:$4 sm:$0xff]  }
  0x5b   :  { %1130 = vmatpush1.bf16.msra.mxu0 %v1709_v34  ;;  %v1812_v34 = vld [vmem:[%s2354_s0 + $0x68] ss:$36 sps:$4 sm:$0xff]  }
  0x5c   :  { %1183 = vmatpush1.bf16.msra.mxu1 %v1712_v35  ;;  %1131 = vmatprep.subr.bf16.mxu0 %v1717_v36 }
  0x5d   :  { %1184 = vmatprep.subr.bf16.mxu1 %v1720_v37 }
  0x5f   :  { %1132 = vmatpush1.bf16.msra.mxu0 %v1715_v38 }
  0x60   :  { %1185 = vmatpush1.bf16.msra.mxu1 %v1718_v39  ;;  %1133 = vmatprep.subr.bf16.mxu0 %v1723_v40 }
  0x61   :  { %1186 = vmatprep.subr.bf16.mxu1 %v1726_v42 }
  0x63   :  { %1134 = vmatpush2.bf16.msra.mxu0 %v1721_v44 }
  0x64   :  { %1187 = vmatpush2.bf16.msra.mxu1 %v1724_v45  ;;  %1135 = vmatprep.subr.bf16.mxu0 %v1729_v46 }
  0x65   :  { %1188 = vmatprep.subr.bf16.mxu1 %v1732_v47 }
  0x67   :  { %1136 = vmatpush2.bf16.msra.mxu0 %v1727_v48 }
  0x68   :  { %1189 = vmatpush2.bf16.msra.mxu1 %v1730_v49  ;;  %1137 = vmatprep.subr.bf16.mxu0 %v1735_v50  ;;  %v181_v50 = vlaneseq }
  0x69   :  { %1190 = vmatprep.subr.bf16.mxu1 %v1738_v51 }
  0x6b   :  { %1138 = vmatpush2.bf16.msra.mxu0 %v1733_v52 }
  0x6c   :  { %1191 = vmatpush2.bf16.msra.mxu1 %v1736_v53  ;;  %1139 = vmatprep.subr.bf16.mxu0 %v1741_v54  ;;  %v182_v54 = vshrl.u32 %v181_v50, 7 }
  0x6d   :  { %1192 = vmatprep.subr.bf16.mxu1 %v1744_v55 }
  0x6f   :  { %1140 = vmatpush2.bf16.msra.mxu0 %v1739_v56 }
  0x70   :  { %1193 = vmatpush2.bf16.msra.mxu1 %v1742_v57  ;;  %1141 = vmatprep.subr.bf16.mxu0 %v1749_v58  ;;  %v183_v57 = vsub.s32 0, %v182_v54  ;;  %v179_v58 = vld [vmem:[%s2355_s2] sm:$0x77] }
  0x71   :  { %1194 = vmatprep.subr.bf16.mxu1 %v1752_v59 }
  0x73   :  { %1142 = vmatpush2.bf16.msra.mxu0 %v1747_v60  ;;  %v187_v60 = vsub.s32 4, %v182_v54 }
  0x74   :  { %1195 = vmatpush2.bf16.msra.mxu1 %v1750_v61  ;;  %1143 = vmatprep.subr.bf16.mxu0 %v1759_v62  ;;  %v184_v62 = vrot.slane %v179_v58, %v183_v57 }
  0x75   :  { %1196 = vmatprep.subr.bf16.mxu1 %v1762_v63 }
  0x77   :  { %1144 = vmatpush2.bf16.msra.mxu0 %v1757_v0  ;;  %v188_v0 = vrot.slane %v179_v58, %v187_v60 }
  0x78   :  { %1197 = vmatpush2.bf16.msra.mxu1 %v1760_v1  ;;  %1145 = vmatprep.subr.bf16.mxu0 %v1765_v2  ;;  %v194_v2 = vrot.slane %v184_v62, %v183_v57 }
  0x79   :  { %1198 = vmatprep.subr.bf16.mxu1 %v1768_v3 }
  0x7b   :  { %1146 = vmatpush2.bf16.msra.mxu0 %v1763_v4 }
  0x7c   :  { %1199 = vmatpush2.bf16.msra.mxu1 %v1766_v5  ;;  %1147 = vmatprep.subr.bf16.mxu0 %v1771_v6  ;;  %v198_v5 = vrot.slane %v188_v0, %v183_v57 }
  0x7d   :  { %1200 = vmatprep.subr.bf16.mxu1 %v1774_v7 }
  0x7f   :  { %1148 = vmatpush2.bf16.msra.mxu0 %v1769_v8 }
  0x80   :  { %1201 = vmatpush2.bf16.msra.mxu1 %v1772_v9  ;;  %1223 = vmatprep.subr.bf16.mxu0 %v1783_v10 }
  0x81   :  { %1554 = vmatprep.subr.bf16.mxu1 %v1783_v10  ;;  %v1302_v10 = vsub.s32 1, %v182_v54 }
  0x82   :  { %1150 = vmatmul.mubr.bf16.vlgmr.msra.gmra.mxu0 %v1775_v11  ;;  %v1328_v11 = vsub.s32 2, %v182_v54 }
  0x83   :  { %1203 = vmatmul.mubr.bf16.vlgmr.msra.gmra.mxu1 %v1778_v12  ;;  %1224 = vmatpush1.bf16.msra.mxu0 %v1781_v13 }
  0x84   :  { %1562 = vmatpush1.bf16.msra.mxu1 %v1781_v13  ;;  %1225 = vmatprep.subr.bf16.mxu0 %v1786_v14 }
  0x85   :  { %1555 = vmatprep.subr.bf16.mxu1 %v1786_v14  ;;  %1159 = vmatprep.mubr.bf16.mxu0 %v1787_v15 }
  0x86   :  { %1212 = vmatprep.mubr.bf16.mxu1 %v1793_v16 }
  0x87   :  { %1226 = vmatpush1.bf16.msra.mxu0 %v1784_v17 }
  0x88   :  { %1563 = vmatpush1.bf16.msra.mxu1 %v1784_v17  ;;  %1227 = vmatprep.subr.bf16.mxu0 %v1792_v18 }
  0x89   :  { %1556 = vmatprep.subr.bf16.mxu1 %v1792_v18 }
  0x8a   :  { %1160 = vmatmul.mubr.bf16.gmra.mxu0 %v1789_v19 }
  0x8b   :  { %1213 = vmatmul.mubr.bf16.gmra.mxu1 %v1795_v20  ;;  %1228 = vmatpush1.bf16.msra.mxu0 %v1790_v21  ;;  %v1303_v20 = vrot.slane %v179_v58, %v1302_v10 }
  0x8c   :  { %1564 = vmatpush1.bf16.msra.mxu1 %v1790_v21  ;;  %1229 = vmatprep.subr.bf16.mxu0 %v1798_v22  ;;  %v1329_v21 = vrot.slane %v179_v58, %v1328_v11 }
  0x8d   :  { %1557 = vmatprep.subr.bf16.mxu1 %v1798_v22  ;;  %1255 = vmatprep.mubr.bf16.mxu0 %v1813_v25  ;;  %v1306_v22 = vsub.s32 5, %v182_v54 }
  0x8e   :  { %1265 = vmatprep.mubr.bf16.mxu1 %v1813_v25  ;;  %v2330_v50 = vrot.slane %v1329_v21, %v1328_v11 }
  0x8f   :  { %1230 = vmatpush1.bf16.msra.mxu0 %v1796_v23 }
  0x90   :  { %1565 = vmatpush1.bf16.msra.mxu1 %v1796_v23  ;;  %1231 = vmatprep.subr.bf16.mxu0 %v1801_v24  ;;  %v1332_v23 = vsub.s32 6, %v182_v54 }
  0x91   :  { %1558 = vmatprep.subr.bf16.mxu1 %v1801_v24 }
  0x93   :  { %1232 = vmatpush1.bf16.msra.mxu0 %v1799_v26 }
  0x94   :  { %1566 = vmatpush1.bf16.msra.mxu1 %v1799_v26  ;;  %1233 = vmatprep.subr.bf16.mxu0 %v1804_v27 }
  0x95   :  { %1559 = vmatprep.subr.bf16.mxu1 %v1804_v27 }
  0x97   :  { %1234 = vmatpush1.bf16.msra.mxu0 %v1802_v28 }
  0x98   :  { %1567 = vmatpush1.bf16.msra.mxu1 %v1802_v28  ;;  %1235 = vmatprep.subr.bf16.mxu0 %v1807_v29 }
  0x99   :  { %1560 = vmatprep.subr.bf16.mxu1 %v1807_v29 }
  0x9b   :  { %1236 = vmatpush1.bf16.msra.mxu0 %v1805_v30 }
  0x9c   :  { %1568 = vmatpush1.bf16.msra.mxu1 %v1805_v30  ;;  %1237 = vmatprep.subr.bf16.mxu0 %v1810_v31 }
  0x9d   :  { %1561 = vmatprep.subr.bf16.mxu1 %v1810_v31 }
  0x9f   :  { %1238 = vmatpush1.bf16.msra.mxu0 %v1808_v32 }
  0xa0   :  { %1569 = vmatpush1.bf16.msra.mxu1 %v1808_v32 }
  0xa2   :  { %1256 = vmatmul.mubr.bf16.vlgmr.msra.gmra.mxu0 %v1811_v33 }
  0xa3   :  { %1266 = vmatmul.mubr.bf16.vlgmr.msra.gmra.mxu1 %v1812_v34 }
 0x102   :  { %v1045_v35 = vpop.f32.mrf.mxu0 }
 0x103   :  { %v1098_v36 = vpop.f32.mrf.mxu1  ;;  %v1046_v6 = vadd.f32 %v1045_v35, %v194_v2 }
 0x104   :  { %v1047_v37 = vpop.f32.mrf.mxu0 }
 0x105   :  { %v1100_v38 = vpop.f32.mrf.mxu1  ;;  %v1048_v12 = vadd.f32 %v1047_v37, %v198_v5  ;;  %v1099_v16 = vadd.f32 %v1098_v36, %v1046_v6 }
 0x106   :  { %v1049_v39 = vpop.f32.mrf.mxu0 }
 0x107   :  { %v1102_v40 = vpop.f32.mrf.mxu1  ;;  %v1050_v13 = vadd.f32 %v1049_v39, %v194_v2  ;;  %v1101_v24 = vadd.f32 %v1100_v38, %v1048_v12 }
 0x108   :  { %v1051_v41 = vpop.f32.mrf.mxu0 }
 0x109   :  { %v2320_v42 = vpop.f32.mrf.mxu1  ;;  %v1103_v25 = vadd.f32 %v1102_v40, %v1050_v13  ;;  %v1052_v28 = vadd.f32 %v1051_v41, %v198_v5 }
 0x10a   :  { %v1055_v43 = vpop.f32.mrf.mxu0 }
 0x10b   :  { %v1108_v44 = vpop.f32.mrf.mxu1  ;;  %v1056_v7 = vadd.f32 %v1055_v43, %v194_v2  ;;  %v1105_v38 = vadd.f32 %v2320_v42, %v1052_v28 }
 0x10c   :  { %v1057_v45 = vpop.f32.mrf.mxu0 }
 0x10d   :  { %v1110_v46 = vpop.f32.mrf.mxu1  ;;  %v1058_v14 = vadd.f32 %v1057_v45, %v198_v5  ;;  %v1109_v17 = vadd.f32 %v1108_v44, %v1056_v7  ;;  %v2327_v44 = vrot.slane %v1303_v20, %v1302_v10  ;;  %v1307_v45 = vrot.slane %v179_v58, %v1306_v22 }
 0x10e   :  { %v1059_v47 = vpop.f32.mrf.mxu0 }
 0x10f   :  { %v1112_v48 = vpop.f32.mrf.mxu1  ;;  %v1060_v15 = vadd.f32 %v1059_v47, %v194_v2  ;;  %v1111_v29 = vadd.f32 %v1110_v46, %v1058_v14  ;;  %v1333_v46 = vrot.slane %v179_v58, %v1332_v23  ;;  %v1317_v2 = vrot.slane %v1307_v45, %v1302_v10 }
 0x110   :  { %v1061_v49 = vpop.f32.mrf.mxu0 }
 0x111   :  { %v1114_v51 = vpop.f32.mrf.mxu1  ;;  %v1062_v30 = vadd.f32 %v1061_v49, %v198_v5  ;;  %v1113_v31 = vadd.f32 %v1112_v48, %v1060_v15 }
 0x113   :  { %v1115_v40 = vadd.f32 %v1114_v51, %v1062_v30 }
 0x142   :  { %v1151_v52 = vpop.f32.mrf.mxu0 }
 0x143   :  { %v1204_v53 = vpop.f32.mrf.mxu1  ;;  %v1152_v26 = vadd.f32 %v1151_v52, %v1099_v16 }
 0x144   :  { %v1153_v55 = vpop.f32.mrf.mxu0 }
 0x145   :  { %v1206_v56 = vpop.f32.mrf.mxu1  ;;  %v1154_v32 = vadd.f32 %v1153_v55, %v1101_v24  ;;  %v1205_v39 = vadd.f32 %v1204_v53, %v1152_v26 }
 0x146   :  { %v1155_v59 = vpop.f32.mrf.mxu0 }
 0x147   :  { %v1208_v61 = vpop.f32.mrf.mxu1  ;;  %v1156_v33 = vadd.f32 %v1155_v59, %v1103_v25  ;;  %v1207_v48 = vadd.f32 %v1206_v56, %v1154_v32 }
 0x148   :  { %v1157_v63 = vpop.f32.mrf.mxu0 }
 0x149   :  { %v2325_v1 = vpop.f32.mrf.mxu1  ;;  %v1209_v49 = vadd.f32 %v1208_v61, %v1156_v33  ;;  %v1158_v55 = vadd.f32 %v1157_v63, %v1105_v38 }
 0x14a   :  { %v1161_v3 = vpop.f32.mrf.mxu0 }
 0x14b   :  { %v1214_v4 = vpop.f32.mrf.mxu1  ;;  %v1162_v27 = vadd.f32 %v1161_v3, %v1109_v17  ;;  %v1343_v3 = vrot.slane %v1333_v46, %v1328_v11  ;;  %v1211_v63 = vadd.f32 %v2325_v1, %v1158_v55 }
 0x14c   :  { %v1163_v8 = vpop.f32.mrf.mxu0 }
 0x14d   :  { %v1216_v9 = vpop.f32.mrf.mxu1  ;;  %v1164_v34 = vadd.f32 %v1163_v8, %v1111_v29  ;;  %v1215_v43 = vadd.f32 %v1214_v4, %v1162_v27 }
 0x14e   :  { %v1165_v18 = vpop.f32.mrf.mxu0 }
 0x14f   :  { %v1218_v19 = vpop.f32.mrf.mxu1  ;;  %v1166_v35 = vadd.f32 %v1165_v18, %v1113_v31  ;;  %v1217_v57 = vadd.f32 %v1216_v9, %v1164_v34 }
 0x150   :  { %v1167_v36 = vpop.f32.mrf.mxu0 }
 0x151   :  { %v1220_v37 = vpop.f32.mrf.mxu1  ;;  %v1168_v59 = vadd.f32 %v1167_v36, %v1115_v40  ;;  %v1219_v53 = vadd.f32 %v1218_v19, %v1166_v35 }
 0x153   :  { %v1221_v8 = vadd.f32 %v1220_v37, %v1168_v59 }
 0x162   :  { %v1257_v47 = vpop.f32.mrf.mxu0 }
 0x163   :  { %v1267_v41 = vpop.f32.mrf.mxu1  ;;  %v1258_v52 = vadd.f32 %v1257_v47, %v1205_v39 }
 0x164   :  { %v1268_v54 = vadd.f32 %v1267_v41, %v1215_v43  ;;  %v1259_v60 = vpop.f32.mrf.mxu0 }
 0x165   :  { %v1269_v62 = vpop.f32.mrf.mxu1  ;;  %vm1276_vm0 = vcmp.gt.f32.partialorder %v1258_v52, 0.0  ;;  %v1284_v0 = vmul.f32 0.2, %v1258_v52  ;;  %v1260_v51 = vadd.f32 %v1259_v60, %v1207_v48 }
 0x166   :  { %vm1280_vm1 = vcmp.gt.f32.partialorder %v1268_v54, 0.0  ;;  %v1288_v42 = vmul.f32 0.2, %v1268_v54  ;;  %v1270_v4 = vadd.f32 %v1269_v62, %v1217_v57  ;;  %v1261_v5 = vpop.f32.mrf.mxu0 }
 0x167   :  { %v1271_v58 = vpop.f32.mrf.mxu1  ;;  %v1292_v56 = vsel %vm1276_vm0, %v1258_v52, %v1284_v0  ;;  %v1262_v6 = vadd.f32 %v1261_v5, %v1209_v49  ;;  %vm1277_vm2 = vcmp.gt.f32.partialorder %v1260_v51, 0.0  ;;  %v1285_v9 = vmul.f32 0.2, %v1260_v51 }
 0x168   :  { %v1296_v61 = vsel %vm1280_vm1, %v1268_v54, %v1288_v42  ;;  %v1272_v7 = vadd.f32 %v1271_v58, %v1219_v53  ;;  %v1318_v12 = vmul.f32 %v2327_v44, %v1292_v56  ;;  %vm1281_vm3 = vcmp.gt.f32.partialorder %v1270_v4, 0.0  ;;  %v1263_v15 = vpop.f32.mrf.mxu0 }
 0x169   :  { %v1289_v13 = vmul.f32 0.2, %v1270_v4  ;;  %v1286_v14 = vmul.f32 0.2, %v1262_v6  ;;  %v1273_v10 = vpop.f32.mrf.mxu1  ;;  %v1322_v11 = vmul.f32 %v2327_v44, %v1296_v61  ;;  %v1293_v16 = vsel %vm1277_vm2, %v1260_v51, %v1285_v9 }
 0x16a   :  { %vm1278_vm4 = vcmp.gt.f32.partialorder %v1262_v6, 0.0  ;;  %vm1282_vm5 = vcmp.gt.f32.partialorder %v1272_v7, 0.0  ;;  %v1319_v17 = vmul.f32 %v1317_v2, %v1293_v16  ;;  %v1290_v19 = vmul.f32 0.2, %v1272_v7 }
 0x16b   :  { %v1297_v18 = vsel %vm1281_vm3, %v1270_v4, %v1289_v13  ;;  %v1264_v1 = vadd.f32 %v1263_v15, %v1211_v63  ;;  %v1274_v21 = vadd.f32 %v1273_v10, %v1221_v8  ;;  %v1344_v22 = vadd.f32 %v2330_v50, %v1318_v12 }
 0x16c   :  { %v1323_v20 = vmul.f32 %v1317_v2, %v1297_v18  ;;  %v1345_v23 = vadd.f32 %v1343_v3, %v1319_v17  ;;  %v1294_v24 = vsel %vm1278_vm4, %v1262_v6, %v1286_v14  ;;  %v1298_v25 = vsel %vm1282_vm5, %v1272_v7, %v1290_v19 }
 0x16d   :  { %v1348_v26 = vadd.f32 %v2330_v50, %v1322_v11  ;;  %vm1279_vm6 = vcmp.gt.f32.partialorder %v1264_v1, 0.0  ;;  %v1287_v29 = vmul.f32 0.2, %v1264_v1  ;;  %vm1283_vm7 = vcmp.gt.f32.partialorder %v1274_v21, 0.0 }
 0x16e   :  { %v1349_v27 = vadd.f32 %v1343_v3, %v1323_v20  ;;  %v1550_v28 = vpack.c.bf16 %v1345_v23, %v1344_v22  ;;  %v1291_v30 = vmul.f32 0.2, %v1274_v21  ;;  %v1320_v32 = vmul.f32 %v2327_v44, %v1294_v24 }
 0x16f   :  { %v1324_v33 = vmul.f32 %v2327_v44, %v1298_v25  ;;  %v1295_v34 = vsel %vm1279_vm6, %v1264_v1, %v1287_v29 }
 0x170   :  { %v1552_v31 = vpack.c.bf16 %v1349_v27, %v1348_v26  ;;  %1376 = vst [vmem:[%s2356_s3] sm:$0xff] %v1550_v28  ;;  %v1299_v35 = vsel %vm1283_vm7, %v1274_v21, %v1291_v30  ;;  %v1321_v36 = vmul.f32 %v1317_v2, %v1295_v34  ;;  %v1346_v39 = vadd.f32 %v2330_v50, %v1320_v32 }
 0x171   :  { %v1325_v37 = vmul.f32 %v1317_v2, %v1299_v35  ;;  %v1350_v43 = vadd.f32 %v2330_v50, %v1324_v33 }
 0x172   :  { %1378 = vst [vmem:[%s2356_s3 + $0x10] sm:$0xff] %v1552_v31  ;;  %v1347_v45 = vadd.f32 %v1343_v3, %v1321_v36 }
 0x173   :  { %v1351_v38 = vadd.f32 %v1343_v3, %v1325_v37 }
 0x174   :  { %v1551_v40 = vpack.c.bf16 %v1347_v45, %v1346_v39 }
 0x175   :  { %v1553_v44 = vpack.c.bf16 %v1351_v38, %v1350_v43 }
 0x176   :  { %1377 = vst [vmem:[%s2356_s3 + $0x8] sm:$0xff] %v1551_v40 }
 0x177   :  { %1379 = vst [vmem:[%s2356_s3 + $0x18] sm:$0xff] %v1553_v44 }

// kernel: net_forward.11
= control target key start
LH: loop header
LB: loop body
LE: loop exit
PB: predicated region body
PF: predicated region fallthrough
CT: control target
= control target key end

     0   :  { %s8010_s1 = inlined_call_operand.vmem [shape: bf16[2304,512], index: 1, kind: input, shape index: {}]   ;;  %s8011_s0 = inlined_call_operand.vmem [shape: bf16[16,2304], index: 0, kind: input, shape index: {}]   ;;  %s8012_s2 = inlined_call_operand.vmem [shape: f32[3,512], index: 2, kind: input, shape index: {}]   ;;  %s8013_s3 = inlined_call_operand.vmem [shape: f32[16,512], index: 3, kind: output, shape index: {}]  }
   0x1   :  { %v5110_v0 = vld [vmem:[%s8010_s1 + $0xe4] ss:$16 sps:$4 sm:$0xff]   ;;  %v5114_v2 = vld [vmem:[%s8010_s1 + $0xe0] ss:$16 sps:$4 sm:$0xff]  }
   0x2   :  { %v5112_v1 = vld [vmem:[%s8010_s1 + $0x2e4] ss:$16 sps:$4 sm:$0xff]   ;;  %3618 = vmatprep.subr.bf16.mxu0 %v5110_v0  ;;  %v5115_v3 = vld [vmem:[%s8010_s1 + $0x2e0] ss:$16 sps:$4 sm:$0xff]  }
   0x3   :  { %3661 = vmatprep.subr.bf16.mxu1 %v5112_v1  ;;  %v5116_v4 = vld [vmem:[%s8010_s1 + $0xc4] ss:$16 sps:$4 sm:$0xff]   ;;  %3619 = vmatpush1.bf16.msra.mxu0 %v5114_v2  ;;  %v5120_v6 = vld [vmem:[%s8010_s1 + $0xc0] ss:$16 sps:$4 sm:$0xff]  }
   0x4   :  { %3662 = vmatpush1.bf16.msra.mxu1 %v5115_v3  ;;  %v5118_v5 = vld [vmem:[%s8010_s1 + $0x2c4] ss:$16 sps:$4 sm:$0xff]   ;;  %3620 = vmatprep.subr.bf16.mxu0 %v5116_v4  ;;  %v5121_v7 = vld [vmem:[%s8010_s1 + $0x2c0] ss:$16 sps:$4 sm:$0xff]  }
   0x5   :  { %3663 = vmatprep.subr.bf16.mxu1 %v5118_v5  ;;  %v5122_v8 = vld [vmem:[%s8010_s1 + $0xa4] ss:$16 sps:$4 sm:$0xff]   ;;  %v5126_v10 = vld [vmem:[%s8010_s1 + $0xa0] ss:$16 sps:$4 sm:$0xff]  }
   0x6   :  { %v5124_v9 = vld [vmem:[%s8010_s1 + $0x2a4] ss:$16 sps:$4 sm:$0xff]   ;;  %v5127_v11 = vld [vmem:[%s8010_s1 + $0x2a0] ss:$16 sps:$4 sm:$0xff]  }
   0x7   :  { %3621 = vmatpush1.bf16.msra.mxu0 %v5120_v6  ;;  %v5128_v12 = vld [vmem:[%s8010_s1 + $0x84] ss:$16 sps:$4 sm:$0xff]   ;;  %v5132_v14 = vld [vmem:[%s8010_s1 + $0x80] ss:$16 sps:$4 sm:$0xff]  }
   0x8   :  { %3664 = vmatpush1.bf16.msra.mxu1 %v5121_v7  ;;  %3622 = vmatprep.subr.bf16.mxu0 %v5122_v8  ;;  %v5130_v13 = vld [vmem:[%s8010_s1 + $0x284] ss:$16 sps:$4 sm:$0xff]   ;;  %v5133_v15 = vld [vmem:[%s8010_s1 + $0x280] ss:$16 sps:$4 sm:$0xff]  }
   0x9   :  { %3665 = vmatprep.subr.bf16.mxu1 %v5124_v9  ;;  %v5134_v16 = vld [vmem:[%s8010_s1 + $0x64] ss:$16 sps:$4 sm:$0xff]   ;;  %v5138_v18 = vld [vmem:[%s8010_s1 + $0x60] ss:$16 sps:$4 sm:$0xff]  }
   0xa   :  { %v5136_v17 = vld [vmem:[%s8010_s1 + $0x264] ss:$16 sps:$4 sm:$0xff]   ;;  %v5139_v19 = vld [vmem:[%s8010_s1 + $0x260] ss:$16 sps:$4 sm:$0xff]  }
   0xb   :  { %3623 = vmatpush1.bf16.msra.mxu0 %v5126_v10  ;;  %v5140_v20 = vld [vmem:[%s8010_s1 + $0x44] ss:$16 sps:$4 sm:$0xff]   ;;  %v5144_v22 = vld [vmem:[%s8010_s1 + $0x40] ss:$16 sps:$4 sm:$0xff]  }
   0xc   :  { %3666 = vmatpush1.bf16.msra.mxu1 %v5127_v11  ;;  %3624 = vmatprep.subr.bf16.mxu0 %v5128_v12  ;;  %v5142_v21 = vld [vmem:[%s8010_s1 + $0x244] ss:$16 sps:$4 sm:$0xff]   ;;  %v5145_v23 = vld [vmem:[%s8010_s1 + $0x240] ss:$16 sps:$4 sm:$0xff]  }
   0xd   :  { %3667 = vmatprep.subr.bf16.mxu1 %v5130_v13  ;;  %v5146_v24 = vld [vmem:[%s8010_s1 + $0x24] ss:$16 sps:$4 sm:$0xff]   ;;  %v5150_v26 = vld [vmem:[%s8010_s1 + $0x20] ss:$16 sps:$4 sm:$0xff]  }
   0xe   :  { %v5148_v25 = vld [vmem:[%s8010_s1 + $0x224] ss:$16 sps:$4 sm:$0xff]   ;;  %v5151_v27 = vld [vmem:[%s8010_s1 + $0x220] ss:$16 sps:$4 sm:$0xff]  }
   0xf   :  { %3625 = vmatpush1.bf16.msra.mxu0 %v5132_v14  ;;  %v5152_v28 = vld [vmem:[%s8010_s1 + $0x4] ss:$16 sps:$4 sm:$0xff]   ;;  %v5156_v30 = vld [vmem:[%s8010_s1] ss:$16 sps:$4 sm:$0xff]  }
  0x10   :  { %3668 = vmatpush1.bf16.msra.mxu1 %v5133_v15  ;;  %3626 = vmatprep.subr.bf16.mxu0 %v5134_v16  ;;  %v5154_v29 = vld [vmem:[%s8010_s1 + $0x204] ss:$16 sps:$4 sm:$0xff]   ;;  %v5157_v31 = vld [vmem:[%s8010_s1 + $0x200] ss:$16 sps:$4 sm:$0xff]  }
  0x11   :  { %3669 = vmatprep.subr.bf16.mxu1 %v5136_v17  ;;  %v5158_v32 = vld [vmem:[%s8010_s1 + $0x1e4] ss:$16 sps:$4 sm:$0xff]   ;;  %v5162_v34 = vld [vmem:[%s8010_s1 + $0x1e0] ss:$16 sps:$4 sm:$0xff]  }
  0x12   :  { %v5160_v33 = vld [vmem:[%s8010_s1 + $0x3e4] ss:$16 sps:$4 sm:$0xff]   ;;  %v5163_v35 = vld [vmem:[%s8010_s1 + $0x3e0] ss:$16 sps:$4 sm:$0xff]  }
  0x13   :  { %3627 = vmatpush1.bf16.msra.mxu0 %v5138_v18  ;;  %v5164_v36 = vld [vmem:[%s8010_s1 + $0x1c4] ss:$16 sps:$4 sm:$0xff]   ;;  %v5168_v38 = vld [vmem:[%s8010_s1 + $0x1c0] ss:$16 sps:$4 sm:$0xff]  }
  0x14   :  { %3670 = vmatpush1.bf16.msra.mxu1 %v5139_v19  ;;  %3628 = vmatprep.subr.bf16.mxu0 %v5140_v20  ;;  %v5166_v37 = vld [vmem:[%s8010_s1 + $0x3c4] ss:$16 sps:$4 sm:$0xff]   ;;  %v5169_v39 = vld [vmem:[%s8010_s1 + $0x3c0] ss:$16 sps:$4 sm:$0xff]  }
  0x15   :  { %3671 = vmatprep.subr.bf16.mxu1 %v5142_v21  ;;  %v5170_v40 = vld [vmem:[%s8010_s1 + $0x1a4] ss:$16 sps:$4 sm:$0xff]   ;;  %v5174_v42 = vld [vmem:[%s8010_s1 + $0x1a0] ss:$16 sps:$4 sm:$0xff]  }
  0x16   :  { %v5172_v41 = vld [vmem:[%s8010_s1 + $0x3a4] ss:$16 sps:$4 sm:$0xff]   ;;  %v5175_v43 = vld [vmem:[%s8010_s1 + $0x3a0] ss:$16 sps:$4 sm:$0xff]  }
  0x17   :  { %3629 = vmatpush1.bf16.msra.mxu0 %v5144_v22  ;;  %v5176_v44 = vld [vmem:[%s8010_s1 + $0x184] ss:$16 sps:$4 sm:$0xff]   ;;  %v5180_v46 = vld [vmem:[%s8010_s1 + $0x180] ss:$16 sps:$4 sm:$0xff]  }
  0x18   :  { %3672 = vmatpush1.bf16.msra.mxu1 %v5145_v23  ;;  %3630 = vmatprep.subr.bf16.mxu0 %v5146_v24  ;;  %v5178_v45 = vld [vmem:[%s8010_s1 + $0x384] ss:$16 sps:$4 sm:$0xff]   ;;  %v5181_v47 = vld [vmem:[%s8010_s1 + $0x380] ss:$16 sps:$4 sm:$0xff]  }
  0x19   :  { %3673 = vmatprep.subr.bf16.mxu1 %v5148_v25  ;;  %v5182_v48 = vld [vmem:[%s8010_s1 + $0x164] ss:$16 sps:$4 sm:$0xff]   ;;  %v5186_v52 = vld [vmem:[%s8010_s1 + $0x160] ss:$16 sps:$4 sm:$0xff]  }
  0x1a   :  { %v5208_v49 = vld [vmem:[%s8011_s0 + $0x4] ss:$72 sps:$4 sm:$0xff]   ;;  %v5187_v53 = vld [vmem:[%s8010_s1 + $0x360] ss:$16 sps:$4 sm:$0xff]  }
  0x1b   :  { %3631 = vmatpush1.bf16.msra.mxu0 %v5150_v26  ;;  %v5184_v50 = vld [vmem:[%s8010_s1 + $0x364] ss:$16 sps:$4 sm:$0xff]   ;;  %3650 = vmatprep.mubr.bf16.mxu0 %v5208_v49  ;;  %v5192_v56 = vld [vmem:[%s8010_s1 + $0x140] ss:$16 sps:$4 sm:$0xff]  }
  0x1c   :  { %3674 = vmatpush1.bf16.msra.mxu1 %v5151_v27  ;;  %3632 = vmatprep.subr.bf16.mxu0 %v5152_v28  ;;  %v5211_v51 = vld [vmem:[%s8011_s0 + $0xc] ss:$72 sps:$4 sm:$0xff]   ;;  %v5193_v57 = vld [vmem:[%s8010_s1 + $0x340] ss:$16 sps:$4 sm:$0xff]  }
  0x1d   :  { %3675 = vmatprep.subr.bf16.mxu1 %v5154_v29  ;;  %3693 = vmatprep.mubr.bf16.mxu1 %v5211_v51  ;;  %v5188_v54 = vld [vmem:[%s8010_s1 + $0x144] ss:$16 sps:$4 sm:$0xff]   ;;  %v5198_v60 = vld [vmem:[%s8010_s1 + $0x120] ss:$16 sps:$4 sm:$0xff]  }
  0x1e   :  { %v5190_v55 = vld [vmem:[%s8010_s1 + $0x344] ss:$16 sps:$4 sm:$0xff]   ;;  %v5199_v61 = vld [vmem:[%s8010_s1 + $0x320] ss:$16 sps:$4 sm:$0xff]  }
  0x1f   :  { %3633 = vmatpush1.bf16.msra.mxu0 %v5156_v30  ;;  %v5194_v58 = vld [vmem:[%s8010_s1 + $0x124] ss:$16 sps:$4 sm:$0xff]   ;;  %v5204_v0 = vld [vmem:[%s8010_s1 + $0x100] ss:$16 sps:$4 sm:$0xff]  }
  0x20   :  { %3676 = vmatpush1.bf16.msra.mxu1 %v5157_v31  ;;  %3634 = vmatprep.subr.bf16.mxu0 %v5158_v32  ;;  %v5196_v59 = vld [vmem:[%s8010_s1 + $0x324] ss:$16 sps:$4 sm:$0xff]   ;;  %v5205_v1 = vld [vmem:[%s8010_s1 + $0x300] ss:$16 sps:$4 sm:$0xff]  }
  0x21   :  { %3677 = vmatprep.subr.bf16.mxu1 %v5160_v33  ;;  %v5200_v62 = vld [vmem:[%s8010_s1 + $0x104] ss:$16 sps:$4 sm:$0xff]   ;;  %v5206_v4 = vld [vmem:[%s8011_s0] ss:$72 sps:$4 sm:$0xff]  }
  0x22   :  { %v5202_v63 = vld [vmem:[%s8010_s1 + $0x304] ss:$16 sps:$4 sm:$0xff]   ;;  %v5209_v5 = vld [vmem:[%s8011_s0 + $0x8] ss:$72 sps:$4 sm:$0xff]  }
  0x23   :  { %3635 = vmatpush2.bf16.msra.mxu0 %v5162_v34  ;;  %v5214_v2 = vld [vmem:[%s8010_s1 + $0x4e4] ss:$16 sps:$4 sm:$0xff]   ;;  %v5212_v6 = vld [vmem:[%s8010_s1 + $0x4e0] ss:$16 sps:$4 sm:$0xff]  }
  0x24   :  { %3678 = vmatpush2.bf16.msra.mxu1 %v5163_v35  ;;  %3636 = vmatprep.subr.bf16.mxu0 %v5164_v36  ;;  %v5217_v3 = vld [vmem:[%s8010_s1 + $0x6e4] ss:$16 sps:$4 sm:$0xff]   ;;  %v5215_v7 = vld [vmem:[%s8010_s1 + $0x6e0] ss:$16 sps:$4 sm:$0xff]  }
  0x25   :  { %3679 = vmatprep.subr.bf16.mxu1 %v5166_v37  ;;  %v5220_v8 = vld [vmem:[%s8010_s1 + $0x4c4] ss:$16 sps:$4 sm:$0xff]   ;;  %v5218_v10 = vld [vmem:[%s8010_s1 + $0x4c0] ss:$16 sps:$4 sm:$0xff]  }
  0x26   :  { %v5223_v9 = vld [vmem:[%s8010_s1 + $0x6c4] ss:$16 sps:$4 sm:$0xff]   ;;  %v5221_v11 = vld [vmem:[%s8010_s1 + $0x6c0] ss:$16 sps:$4 sm:$0xff]  }
  0x27   :  { %3637 = vmatpush2.bf16.msra.mxu0 %v5168_v38  ;;  %v5226_v12 = vld [vmem:[%s8010_s1 + $0x4a4] ss:$16 sps:$4 sm:$0xff]   ;;  %v5224_v14 = vld [vmem:[%s8010_s1 + $0x4a0] ss:$16 sps:$4 sm:$0xff]  }
  0x28   :  { %3680 = vmatpush2.bf16.msra.mxu1 %v5169_v39  ;;  %3638 = vmatprep.subr.bf16.mxu0 %v5170_v40  ;;  %v5229_v13 = vld [vmem:[%s8010_s1 + $0x6a4] ss:$16 sps:$4 sm:$0xff]   ;;  %v5227_v15 = vld [vmem:[%s8010_s1 + $0x6a0] ss:$16 sps:$4 sm:$0xff]  }
  0x29   :  { %3681 = vmatprep.subr.bf16.mxu1 %v5172_v41  ;;  %v5232_v16 = vld [vmem:[%s8010_s1 + $0x484] ss:$16 sps:$4 sm:$0xff]   ;;  %v5230_v18 = vld [vmem:[%s8010_s1 + $0x480] ss:$16 sps:$4 sm:$0xff]  }
  0x2a   :  { %v5235_v17 = vld [vmem:[%s8010_s1 + $0x684] ss:$16 sps:$4 sm:$0xff]   ;;  %v5233_v19 = vld [vmem:[%s8010_s1 + $0x680] ss:$16 sps:$4 sm:$0xff]  }
  0x2b   :  { %3639 = vmatpush2.bf16.msra.mxu0 %v5174_v42  ;;  %v5238_v20 = vld [vmem:[%s8010_s1 + $0x464] ss:$16 sps:$4 sm:$0xff]   ;;  %v5236_v22 = vld [vmem:[%s8010_s1 + $0x460] ss:$16 sps:$4 sm:$0xff]  }
  0x2c   :  { %3682 = vmatpush2.bf16.msra.mxu1 %v5175_v43  ;;  %3640 = vmatprep.subr.bf16.mxu0 %v5176_v44  ;;  %v5241_v21 = vld [vmem:[%s8010_s1 + $0x664] ss:$16 sps:$4 sm:$0xff]   ;;  %v5239_v23 = vld [vmem:[%s8010_s1 + $0x660] ss:$16 sps:$4 sm:$0xff]  }
  0x2d   :  { %3683 = vmatprep.subr.bf16.mxu1 %v5178_v45  ;;  %v5244_v24 = vld [vmem:[%s8010_s1 + $0x444] ss:$16 sps:$4 sm:$0xff]   ;;  %v5242_v26 = vld [vmem:[%s8010_s1 + $0x440] ss:$16 sps:$4 sm:$0xff]  }
  0x2e   :  { %v5247_v25 = vld [vmem:[%s8010_s1 + $0x644] ss:$16 sps:$4 sm:$0xff]   ;;  %v5245_v27 = vld [vmem:[%s8010_s1 + $0x640] ss:$16 sps:$4 sm:$0xff]  }
  0x2f   :  { %3641 = vmatpush2.bf16.msra.mxu0 %v5180_v46  ;;  %v5250_v28 = vld [vmem:[%s8010_s1 + $0x424] ss:$16 sps:$4 sm:$0xff]   ;;  %v5248_v30 = vld [vmem:[%s8010_s1 + $0x420] ss:$16 sps:$4 sm:$0xff]  }
  0x30   :  { %3684 = vmatpush2.bf16.msra.mxu1 %v5181_v47  ;;  %3642 = vmatprep.subr.bf16.mxu0 %v5182_v48  ;;  %v5253_v29 = vld [vmem:[%s8010_s1 + $0x624] ss:$16 sps:$4 sm:$0xff]   ;;  %v5251_v31 = vld [vmem:[%s8010_s1 + $0x620] ss:$16 sps:$4 sm:$0xff]  }
  0x31   :  { %3685 = vmatprep.subr.bf16.mxu1 %v5184_v50  ;;  %v5256_v32 = vld [vmem:[%s8010_s1 + $0x404] ss:$16 sps:$4 sm:$0xff]   ;;  %v5254_v36 = vld [vmem:[%s8010_s1 + $0x400] ss:$16 sps:$4 sm:$0xff]  }
  0x32   :  { %v5259_v33 = vld [vmem:[%s8010_s1 + $0x604] ss:$16 sps:$4 sm:$0xff]   ;;  %v5257_v37 = vld [vmem:[%s8010_s1 + $0x600] ss:$16 sps:$4 sm:$0xff]  }
  0x33   :  { %3643 = vmatpush2.bf16.msra.mxu0 %v5186_v52  ;;  %v5310_v34 = vld [vmem:[%s8011_s0 + $0x14] ss:$72 sps:$4 sm:$0xff]   ;;  %v5260_v40 = vld [vmem:[%s8010_s1 + $0x5e0] ss:$16 sps:$4 sm:$0xff]  }
  0x34   :  { %3686 = vmatpush2.bf16.msra.mxu1 %v5187_v53  ;;  %3644 = vmatprep.subr.bf16.mxu0 %v5188_v54  ;;  %v5313_v35 = vld [vmem:[%s8011_s0 + $0x1c] ss:$72 sps:$4 sm:$0xff]   ;;  %v5263_v41 = vld [vmem:[%s8010_s1 + $0x7e0] ss:$16 sps:$4 sm:$0xff]  }
  0x35   :  { %3687 = vmatprep.subr.bf16.mxu1 %v5190_v55  ;;  %v5262_v38 = vld [vmem:[%s8010_s1 + $0x5e4] ss:$16 sps:$4 sm:$0xff]   ;;  %v5266_v44 = vld [vmem:[%s8010_s1 + $0x5c0] ss:$16 sps:$4 sm:$0xff]  }
  0x36   :  { %v5265_v39 = vld [vmem:[%s8010_s1 + $0x7e4] ss:$16 sps:$4 sm:$0xff]   ;;  %v5269_v45 = vld [vmem:[%s8010_s1 + $0x7c0] ss:$16 sps:$4 sm:$0xff]  }
  0x37   :  { %3645 = vmatpush2.bf16.msra.mxu0 %v5192_v56  ;;  %v5268_v42 = vld [vmem:[%s8010_s1 + $0x5c4] ss:$16 sps:$4 sm:$0xff]   ;;  %v5272_v48 = vld [vmem:[%s8010_s1 + $0x5a0] ss:$16 sps:$4 sm:$0xff]  }
  0x38   :  { %3688 = vmatpush2.bf16.msra.mxu1 %v5193_v57  ;;  %3646 = vmatprep.subr.bf16.mxu0 %v5194_v58  ;;  %v5271_v43 = vld [vmem:[%s8010_s1 + $0x7c4] ss:$16 sps:$4 sm:$0xff]   ;;  %v5275_v49 = vld [vmem:[%s8010_s1 + $0x7a0] ss:$16 sps:$4 sm:$0xff]  }
  0x39   :  { %3689 = vmatprep.subr.bf16.mxu1 %v5196_v59  ;;  %v5274_v46 = vld [vmem:[%s8010_s1 + $0x5a4] ss:$16 sps:$4 sm:$0xff]   ;;  %v5278_v52 = vld [vmem:[%s8010_s1 + $0x580] ss:$16 sps:$4 sm:$0xff]  }
  0x3a   :  { %v5277_v47 = vld [vmem:[%s8010_s1 + $0x7a4] ss:$16 sps:$4 sm:$0xff]   ;;  %v5281_v53 = vld [vmem:[%s8010_s1 + $0x780] ss:$16 sps:$4 sm:$0xff]  }
  0x3b   :  { %3647 = vmatpush2.bf16.msra.mxu0 %v5198_v60  ;;  %v5280_v50 = vld [vmem:[%s8010_s1 + $0x584] ss:$16 sps:$4 sm:$0xff]   ;;  %v5284_v56 = vld [vmem:[%s8010_s1 + $0x560] ss:$16 sps:$4 sm:$0xff]  }
  0x3c   :  { %3690 = vmatpush2.bf16.msra.mxu1 %v5199_v61  ;;  %3648 = vmatprep.subr.bf16.mxu0 %v5200_v62  ;;  %v5283_v51 = vld [vmem:[%s8010_s1 + $0x784] ss:$16 sps:$4 sm:$0xff]   ;;  %v5287_v57 = vld [vmem:[%s8010_s1 + $0x760] ss:$16 sps:$4 sm:$0xff]  }
  0x3d   :  { %3691 = vmatprep.subr.bf16.mxu1 %v5202_v63  ;;  %v5286_v54 = vld [vmem:[%s8010_s1 + $0x564] ss:$16 sps:$4 sm:$0xff]   ;;  %v5290_v60 = vld [vmem:[%s8010_s1 + $0x540] ss:$16 sps:$4 sm:$0xff]  }
  0x3e   :  { %v5289_v55 = vld [vmem:[%s8010_s1 + $0x764] ss:$16 sps:$4 sm:$0xff]   ;;  %v5293_v61 = vld [vmem:[%s8010_s1 + $0x740] ss:$16 sps:$4 sm:$0xff]  }
  0x3f   :  { %3649 = vmatpush2.bf16.msra.mxu0 %v5204_v0  ;;  %v5292_v58 = vld [vmem:[%s8010_s1 + $0x544] ss:$16 sps:$4 sm:$0xff]   ;;  %v5296_v0 = vld [vmem:[%s8010_s1 + $0x520] ss:$16 sps:$4 sm:$0xff]  }
  0x40   :  { %3692 = vmatpush2.bf16.msra.mxu1 %v5205_v1  ;;  %3704 = vmatprep.subr.bf16.mxu0 %v5214_v2  ;;  %v5295_v59 = vld [vmem:[%s8010_s1 + $0x744] ss:$16 sps:$4 sm:$0xff]   ;;  %v5299_v1 = vld [vmem:[%s8010_s1 + $0x720] ss:$16 sps:$4 sm:$0xff]  }
  0x41   :  { %3747 = vmatprep.subr.bf16.mxu1 %v5217_v3  ;;  %v5298_v62 = vld [vmem:[%s8010_s1 + $0x524] ss:$16 sps:$4 sm:$0xff]  }
  0x42   :  { %3651 = vmatmul.mubr.bf16.vlgmr.msra.gmra.mxu0 %v5206_v4  ;;  %v5301_v63 = vld [vmem:[%s8010_s1 + $0x724] ss:$16 sps:$4 sm:$0xff]   ;;  %v5302_v4 = vld [vmem:[%s8010_s1 + $0x500] ss:$16 sps:$4 sm:$0xff]  }
  0x43   :  { %3694 = vmatmul.mubr.bf16.vlgmr.msra.gmra.mxu1 %v5209_v5  ;;  %3705 = vmatpush1.bf16.msra.mxu0 %v5212_v6  ;;  %v5304_v2 = vld [vmem:[%s8010_s1 + $0x504] ss:$16 sps:$4 sm:$0xff]   ;;  %v5305_v5 = vld [vmem:[%s8010_s1 + $0x700] ss:$16 sps:$4 sm:$0xff]  }
  0x44   :  { %3748 = vmatpush1.bf16.msra.mxu1 %v5215_v7  ;;  %3706 = vmatprep.subr.bf16.mxu0 %v5220_v8  ;;  %v5307_v3 = vld [vmem:[%s8010_s1 + $0x704] ss:$16 sps:$4 sm:$0xff]   ;;  %v5308_v8 = vld [vmem:[%s8011_s0 + $0x10] ss:$72 sps:$4 sm:$0xff]  }
  0x45   :  { %3749 = vmatprep.subr.bf16.mxu1 %v5223_v9  ;;  %3736 = vmatprep.mubr.bf16.mxu0 %v5310_v34  ;;  %v5316_v6 = vld [vmem:[%s8010_s1 + $0x8e4] ss:$16 sps:$4 sm:$0xff]   ;;  %v5311_v9 = vld [vmem:[%s8011_s0 + $0x18] ss:$72 sps:$4 sm:$0xff]  }
  0x46   :  { %3779 = vmatprep.mubr.bf16.mxu1 %v5313_v35  ;;  %v5319_v7 = vld [vmem:[%s8010_s1 + $0xae4] ss:$16 sps:$4 sm:$0xff]  }
  0x47   :  { %3707 = vmatpush1.bf16.msra.mxu0 %v5218_v10  ;;  %v5314_v10 = vld [vmem:[%s8010_s1 + $0x8e0] ss:$16 sps:$4 sm:$0xff]   ;;  %v5352_v34 = vld [vmem:[%s8010_s1 + $0x824] ss:$16 sps:$4 sm:$0xff]  }
  0x48   :  { %3750 = vmatpush1.bf16.msra.mxu1 %v5221_v11  ;;  %3708 = vmatprep.subr.bf16.mxu0 %v5226_v12  ;;  %v5317_v11 = vld [vmem:[%s8010_s1 + $0xae0] ss:$16 sps:$4 sm:$0xff]   ;;  %v5322_v12 = vld [vmem:[%s8010_s1 + $0x8c4] ss:$16 sps:$4 sm:$0xff]  }
  0x49   :  { %3751 = vmatprep.subr.bf16.mxu1 %v5229_v13  ;;  %v5325_v13 = vld [vmem:[%s8010_s1 + $0xac4] ss:$16 sps:$4 sm:$0xff]  }
  0x4a   :  { %v5355_v35 = vld [vmem:[%s8010_s1 + $0xa24] ss:$16 sps:$4 sm:$0xff]  }
  0x4b   :  { %3709 = vmatpush1.bf16.msra.mxu0 %v5224_v14  ;;  %v5320_v14 = vld [vmem:[%s8010_s1 + $0x8c0] ss:$16 sps:$4 sm:$0xff]  }
  0x4c   :  { %3752 = vmatpush1.bf16.msra.mxu1 %v5227_v15  ;;  %3710 = vmatprep.subr.bf16.mxu0 %v5232_v16  ;;  %v5323_v15 = vld [vmem:[%s8010_s1 + $0xac0] ss:$16 sps:$4 sm:$0xff]   ;;  %v5328_v16 = vld [vmem:[%s8010_s1 + $0x8a4] ss:$16 sps:$4 sm:$0xff]  }
  0x4d   :  { %3753 = vmatprep.subr.bf16.mxu1 %v5235_v17  ;;  %v5331_v17 = vld [vmem:[%s8010_s1 + $0xaa4] ss:$16 sps:$4 sm:$0xff]  }
  0x4f   :  { %3711 = vmatpush1.bf16.msra.mxu0 %v5230_v18  ;;  %v5326_v18 = vld [vmem:[%s8010_s1 + $0x8a0] ss:$16 sps:$4 sm:$0xff]  }
  0x50   :  { %3754 = vmatpush1.bf16.msra.mxu1 %v5233_v19  ;;  %3712 = vmatprep.subr.bf16.mxu0 %v5238_v20  ;;  %v5412_v19 = vld [vmem:[%s8011_s0 + $0x24] ss:$72 sps:$4 sm:$0xff]   ;;  %v5329_v20 = vld [vmem:[%s8010_s1 + $0xaa0] ss:$16 sps:$4 sm:$0xff]  }
  0x51   :  { %3755 = vmatprep.subr.bf16.mxu1 %v5241_v21  ;;  %v5415_v21 = vld [vmem:[%s8011_s0 + $0x2c] ss:$72 sps:$4 sm:$0xff]  }
  0x53   :  { %3713 = vmatpush1.bf16.msra.mxu0 %v5236_v22  ;;  %v5334_v22 = vld [vmem:[%s8010_s1 + $0x884] ss:$16 sps:$4 sm:$0xff]  }
  0x54   :  { %3756 = vmatpush1.bf16.msra.mxu1 %v5239_v23  ;;  %3714 = vmatprep.subr.bf16.mxu0 %v5244_v24  ;;  %v5337_v23 = vld [vmem:[%s8010_s1 + $0xa84] ss:$16 sps:$4 sm:$0xff]   ;;  %v5332_v24 = vld [vmem:[%s8010_s1 + $0x880] ss:$16 sps:$4 sm:$0xff]  }
  0x55   :  { %3757 = vmatprep.subr.bf16.mxu1 %v5247_v25  ;;  %v5335_v25 = vld [vmem:[%s8010_s1 + $0xa80] ss:$16 sps:$4 sm:$0xff]  }
  0x57   :  { %3715 = vmatpush1.bf16.msra.mxu0 %v5242_v26  ;;  %v5340_v26 = vld [vmem:[%s8010_s1 + $0x864] ss:$16 sps:$4 sm:$0xff]  }
  0x58   :  { %3758 = vmatpush1.bf16.msra.mxu1 %v5245_v27  ;;  %3716 = vmatprep.subr.bf16.mxu0 %v5250_v28  ;;  %v5343_v27 = vld [vmem:[%s8010_s1 + $0xa64] ss:$16 sps:$4 sm:$0xff]   ;;  %v5338_v28 = vld [vmem:[%s8010_s1 + $0x860] ss:$16 sps:$4 sm:$0xff]  }
  0x59   :  { %3759 = vmatprep.subr.bf16.mxu1 %v5253_v29  ;;  %v5341_v29 = vld [vmem:[%s8010_s1 + $0xa60] ss:$16 sps:$4 sm:$0xff]  }
  0x5b   :  { %3717 = vmatpush1.bf16.msra.mxu0 %v5248_v30  ;;  %v5346_v30 = vld [vmem:[%s8010_s1 + $0x844] ss:$16 sps:$4 sm:$0xff]  }
  0x5c   :  { %3760 = vmatpush1.bf16.msra.mxu1 %v5251_v31  ;;  %3718 = vmatprep.subr.bf16.mxu0 %v5256_v32  ;;  %v5349_v31 = vld [vmem:[%s8010_s1 + $0xa44] ss:$16 sps:$4 sm:$0xff]   ;;  %v5344_v32 = vld [vmem:[%s8010_s1 + $0x840] ss:$16 sps:$4 sm:$0xff]  }
  0x5d   :  { %3761 = vmatprep.subr.bf16.mxu1 %v5259_v33  ;;  %v5347_v33 = vld [vmem:[%s8010_s1 + $0xa40] ss:$16 sps:$4 sm:$0xff]  }
  0x5f   :  { %3719 = vmatpush1.bf16.msra.mxu0 %v5254_v36  ;;  %v5350_v36 = vld [vmem:[%s8010_s1 + $0x820] ss:$16 sps:$4 sm:$0xff]  }
  0x60   :  { %3762 = vmatpush1.bf16.msra.mxu1 %v5257_v37  ;;  %3720 = vmatprep.subr.bf16.mxu0 %v5262_v38  ;;  %v5353_v37 = vld [vmem:[%s8010_s1 + $0xa20] ss:$16 sps:$4 sm:$0xff]   ;;  %v5358_v38 = vld [vmem:[%s8010_s1 + $0x804] ss:$16 sps:$4 sm:$0xff]  }
  0x61   :  { %3763 = vmatprep.subr.bf16.mxu1 %v5265_v39  ;;  %v5361_v39 = vld [vmem:[%s8010_s1 + $0xa04] ss:$16 sps:$4 sm:$0xff]  }
  0x63   :  { %3721 = vmatpush2.bf16.msra.mxu0 %v5260_v40  ;;  %v5356_v40 = vld [vmem:[%s8010_s1 + $0x800] ss:$16 sps:$4 sm:$0xff]  }
  0x64   :  { %3764 = vmatpush2.bf16.msra.mxu1 %v5263_v41  ;;  %3722 = vmatprep.subr.bf16.mxu0 %v5268_v42  ;;  %v5359_v41 = vld [vmem:[%s8010_s1 + $0xa00] ss:$16 sps:$4 sm:$0xff]   ;;  %v5364_v42 = vld [vmem:[%s8010_s1 + $0x9e4] ss:$16 sps:$4 sm:$0xff]  }
  0x65   :  { %3765 = vmatprep.subr.bf16.mxu1 %v5271_v43  ;;  %v5367_v43 = vld [vmem:[%s8010_s1 + $0xbe4] ss:$16 sps:$4 sm:$0xff]  }
  0x67   :  { %3723 = vmatpush2.bf16.msra.mxu0 %v5266_v44  ;;  %v5362_v44 = vld [vmem:[%s8010_s1 + $0x9e0] ss:$16 sps:$4 sm:$0xff]  }
  0x68   :  { %3766 = vmatpush2.bf16.msra.mxu1 %v5269_v45  ;;  %3724 = vmatprep.subr.bf16.mxu0 %v5274_v46  ;;  %v5365_v45 = vld [vmem:[%s8010_s1 + $0xbe0] ss:$16 sps:$4 sm:$0xff]   ;;  %v5370_v46 = vld [vmem:[%s8010_s1 + $0x9c4] ss:$16 sps:$4 sm:$0xff]  }
  0x69   :  { %3767 = vmatprep.subr.bf16.mxu1 %v5277_v47  ;;  %v5373_v47 = vld [vmem:[%s8010_s1 + $0xbc4] ss:$16 sps:$4 sm:$0xff]  }
  0x6b   :  { %3725 = vmatpush2.bf16.msra.mxu0 %v5272_v48  ;;  %v5368_v48 = vld [vmem:[%s8010_s1 + $0x9c0] ss:$16 sps:$4 sm:$0xff]  }
  0x6c   :  { %3768 = vmatpush2.bf16.msra.mxu1 %v5275_v49  ;;  %3726 = vmatprep.subr.bf16.mxu0 %v5280_v50  ;;  %v5371_v49 = vld [vmem:[%s8010_s1 + $0xbc0] ss:$16 sps:$4 sm:$0xff]   ;;  %v5376_v50 = vld [vmem:[%s8010_s1 + $0x9a4] ss:$16 sps:$4 sm:$0xff]  }
  0x6d   :  { %3769 = vmatprep.subr.bf16.mxu1 %v5283_v51  ;;  %v5379_v51 = vld [vmem:[%s8010_s1 + $0xba4] ss:$16 sps:$4 sm:$0xff]  }
  0x6f   :  { %3727 = vmatpush2.bf16.msra.mxu0 %v5278_v52  ;;  %v5374_v52 = vld [vmem:[%s8010_s1 + $0x9a0] ss:$16 sps:$4 sm:$0xff]  }
  0x70   :  { %3770 = vmatpush2.bf16.msra.mxu1 %v5281_v53  ;;  %3728 = vmatprep.subr.bf16.mxu0 %v5286_v54  ;;  %v5377_v53 = vld [vmem:[%s8010_s1 + $0xba0] ss:$16 sps:$4 sm:$0xff]   ;;  %v5382_v54 = vld [vmem:[%s8010_s1 + $0x984] ss:$16 sps:$4 sm:$0xff]  }
  0x71   :  { %3771 = vmatprep.subr.bf16.mxu1 %v5289_v55  ;;  %v5385_v55 = vld [vmem:[%s8010_s1 + $0xb84] ss:$16 sps:$4 sm:$0xff]  }
  0x73   :  { %3729 = vmatpush2.bf16.msra.mxu0 %v5284_v56  ;;  %v5380_v56 = vld [vmem:[%s8010_s1 + $0x980] ss:$16 sps:$4 sm:$0xff]  }
  0x74   :  { %3772 = vmatpush2.bf16.msra.mxu1 %v5287_v57  ;;  %3730 = vmatprep.subr.bf16.mxu0 %v5292_v58  ;;  %v5383_v57 = vld [vmem:[%s8010_s1 + $0xb80] ss:$16 sps:$4 sm:$0xff]   ;;  %v5388_v58 = vld [vmem:[%s8010_s1 + $0x964] ss:$16 sps:$4 sm:$0xff]  }
  0x75   :  { %3773 = vmatprep.subr.bf16.mxu1 %v5295_v59  ;;  %v5391_v59 = vld [vmem:[%s8010_s1 + $0xb64] ss:$16 sps:$4 sm:$0xff]  }
  0x77   :  { %3731 = vmatpush2.bf16.msra.mxu0 %v5290_v60  ;;  %v5386_v60 = vld [vmem:[%s8010_s1 + $0x960] ss:$16 sps:$4 sm:$0xff]  }
  0x78   :  { %3774 = vmatpush2.bf16.msra.mxu1 %v5293_v61  ;;  %3732 = vmatprep.subr.bf16.mxu0 %v5298_v62  ;;  %v5389_v61 = vld [vmem:[%s8010_s1 + $0xb60] ss:$16 sps:$4 sm:$0xff]   ;;  %v5394_v62 = vld [vmem:[%s8010_s1 + $0x944] ss:$16 sps:$4 sm:$0xff]  }
  0x79   :  { %3775 = vmatprep.subr.bf16.mxu1 %v5301_v63  ;;  %v5397_v63 = vld [vmem:[%s8010_s1 + $0xb44] ss:$16 sps:$4 sm:$0xff]  }
  0x7b   :  { %3733 = vmatpush2.bf16.msra.mxu0 %v5296_v0  ;;  %v5392_v0 = vld [vmem:[%s8010_s1 + $0x940] ss:$16 sps:$4 sm:$0xff]  }
  0x7c   :  { %3776 = vmatpush2.bf16.msra.mxu1 %v5299_v1  ;;  %3734 = vmatprep.subr.bf16.mxu0 %v5304_v2  ;;  %v5395_v1 = vld [vmem:[%s8010_s1 + $0xb40] ss:$16 sps:$4 sm:$0xff]   ;;  %v5400_v2 = vld [vmem:[%s8010_s1 + $0x924] ss:$16 sps:$4 sm:$0xff]  }
  0x7d   :  { %3777 = vmatprep.subr.bf16.mxu1 %v5307_v3  ;;  %v5403_v3 = vld [vmem:[%s8010_s1 + $0xb24] ss:$16 sps:$4 sm:$0xff]  }
  0x7f   :  { %3735 = vmatpush2.bf16.msra.mxu0 %v5302_v4  ;;  %v5398_v4 = vld [vmem:[%s8010_s1 + $0x920] ss:$16 sps:$4 sm:$0xff]  }
  0x80   :  { %3778 = vmatpush2.bf16.msra.mxu1 %v5305_v5  ;;  %3790 = vmatprep.subr.bf16.mxu0 %v5316_v6  ;;  %v5401_v5 = vld [vmem:[%s8010_s1 + $0xb20] ss:$16 sps:$4 sm:$0xff]   ;;  %v5406_v6 = vld [vmem:[%s8010_s1 + $0x904] ss:$16 sps:$4 sm:$0xff]  }
  0x81   :  { %3833 = vmatprep.subr.bf16.mxu1 %v5319_v7  ;;  %v5409_v7 = vld [vmem:[%s8010_s1 + $0xb04] ss:$16 sps:$4 sm:$0xff]  }
  0x82   :  { %3737 = vmatmul.mubr.bf16.vlgmr.msra.gmra.mxu0 %v5308_v8  ;;  %v5404_v8 = vld [vmem:[%s8010_s1 + $0x900] ss:$16 sps:$4 sm:$0xff]  }
  0x83   :  { %3780 = vmatmul.mubr.bf16.vlgmr.msra.gmra.mxu1 %v5311_v9  ;;  %3791 = vmatpush1.bf16.msra.mxu0 %v5314_v10  ;;  %v5407_v9 = vld [vmem:[%s8010_s1 + $0xb00] ss:$16 sps:$4 sm:$0xff]   ;;  %v5418_v10 = vld [vmem:[%s8010_s1 + $0xce4] ss:$16 sps:$4 sm:$0xff]  }
  0x84   :  { %3834 = vmatpush1.bf16.msra.mxu1 %v5317_v11  ;;  %3792 = vmatprep.subr.bf16.mxu0 %v5322_v12  ;;  %v5421_v11 = vld [vmem:[%s8010_s1 + $0xee4] ss:$16 sps:$4 sm:$0xff]   ;;  %v5410_v12 = vld [vmem:[%s8011_s0 + $0x20] ss:$72 sps:$4 sm:$0xff]  }
  0x85   :  { %3835 = vmatprep.subr.bf16.mxu1 %v5325_v13  ;;  %3822 = vmatprep.mubr.bf16.mxu0 %v5412_v19  ;;  %v5413_v13 = vld [vmem:[%s8011_s0 + $0x28] ss:$72 sps:$4 sm:$0xff]   ;;  %v5517_v19 = vld [vmem:[%s8011_s0 + $0x3c] ss:$72 sps:$4 sm:$0xff]  }
  0x86   :  { %3865 = vmatprep.mubr.bf16.mxu1 %v5415_v21  ;;  %v5425_v21 = vld [vmem:[%s8010_s1 + $0xec0] ss:$16 sps:$4 sm:$0xff]  }
  0x87   :  { %3793 = vmatpush1.bf16.msra.mxu0 %v5320_v14  ;;  %v5416_v14 = vld [vmem:[%s8010_s1 + $0xce0] ss:$16 sps:$4 sm:$0xff]  }
  0x88   :  { %3836 = vmatpush1.bf16.msra.mxu1 %v5323_v15  ;;  %3794 = vmatprep.subr.bf16.mxu0 %v5328_v16  ;;  %v5419_v15 = vld [vmem:[%s8010_s1 + $0xee0] ss:$16 sps:$4 sm:$0xff]   ;;  %v5424_v16 = vld [vmem:[%s8010_s1 + $0xcc4] ss:$16 sps:$4 sm:$0xff]  }
  0x89   :  { %3837 = vmatprep.subr.bf16.mxu1 %v5331_v17  ;;  %v5427_v17 = vld [vmem:[%s8010_s1 + $0xec4] ss:$16 sps:$4 sm:$0xff]  }
  0x8b   :  { %3795 = vmatpush1.bf16.msra.mxu0 %v5326_v18  ;;  %v5514_v18 = vld [vmem:[%s8011_s0 + $0x34] ss:$72 sps:$4 sm:$0xff]  }
  0x8c   :  { %3838 = vmatpush1.bf16.msra.mxu1 %v5329_v20  ;;  %3796 = vmatprep.subr.bf16.mxu0 %v5334_v22  ;;  %v5422_v20 = vld [vmem:[%s8010_s1 + $0xcc0] ss:$16 sps:$4 sm:$0xff]   ;;  %v5430_v22 = vld [vmem:[%s8010_s1 + $0xca4] ss:$16 sps:$4 sm:$0xff]  }
  0x8d   :  { %3839 = vmatprep.subr.bf16.mxu1 %v5337_v23  ;;  %v5433_v23 = vld [vmem:[%s8010_s1 + $0xea4] ss:$16 sps:$4 sm:$0xff]  }
  0x8f   :  { %3797 = vmatpush1.bf16.msra.mxu0 %v5332_v24  ;;  %v5428_v24 = vld [vmem:[%s8010_s1 + $0xca0] ss:$16 sps:$4 sm:$0xff]  }
  0x90   :  { %3840 = vmatpush1.bf16.msra.mxu1 %v5335_v25  ;;  %3798 = vmatprep.subr.bf16.mxu0 %v5340_v26  ;;  %v5431_v25 = vld [vmem:[%s8010_s1 + $0xea0] ss:$16 sps:$4 sm:$0xff]   ;;  %v5436_v26 = vld [vmem:[%s8010_s1 + $0xc84] ss:$16 sps:$4 sm:$0xff]  }
  0x91   :  { %3841 = vmatprep.subr.bf16.mxu1 %v5343_v27  ;;  %v5439_v27 = vld [vmem:[%s8010_s1 + $0xe84] ss:$16 sps:$4 sm:$0xff]  }
  0x93   :  { %3799 = vmatpush1.bf16.msra.mxu0 %v5338_v28  ;;  %v5434_v28 = vld [vmem:[%s8010_s1 + $0xc80] ss:$16 sps:$4 sm:$0xff]  }
  0x94   :  { %3842 = vmatpush1.bf16.msra.mxu1 %v5341_v29  ;;  %3800 = vmatprep.subr.bf16.mxu0 %v5346_v30  ;;  %v5437_v29 = vld [vmem:[%s8010_s1 + $0xe80] ss:$16 sps:$4 sm:$0xff]   ;;  %v5442_v30 = vld [vmem:[%s8010_s1 + $0xc64] ss:$16 sps:$4 sm:$0xff]  }
  0x95   :  { %3843 = vmatprep.subr.bf16.mxu1 %v5349_v31  ;;  %v5445_v31 = vld [vmem:[%s8010_s1 + $0xe64] ss:$16 sps:$4 sm:$0xff]  }
  0x97   :  { %3801 = vmatpush1.bf16.msra.mxu0 %v5344_v32  ;;  %v5440_v32 = vld [vmem:[%s8010_s1 + $0xc60] ss:$16 sps:$4 sm:$0xff]  }
  0x98   :  { %3844 = vmatpush1.bf16.msra.mxu1 %v5347_v33  ;;  %3802 = vmatprep.subr.bf16.mxu0 %v5352_v34  ;;  %v5443_v33 = vld [vmem:[%s8010_s1 + $0xe60] ss:$16 sps:$4 sm:$0xff]   ;;  %v5448_v34 = vld [vmem:[%s8010_s1 + $0xc44] ss:$16 sps:$4 sm:$0xff]  }
  0x99   :  { %3845 = vmatprep.subr.bf16.mxu1 %v5355_v35  ;;  %v5451_v35 = vld [vmem:[%s8010_s1 + $0xe44] ss:$16 sps:$4 sm:$0xff]  }
  0x9b   :  { %3803 = vmatpush1.bf16.msra.mxu0 %v5350_v36  ;;  %v5446_v36 = vld [vmem:[%s8010_s1 + $0xc40] ss:$16 sps:$4 sm:$0xff]  }
  0x9c   :  { %3846 = vmatpush1.bf16.msra.mxu1 %v5353_v37  ;;  %3804 = vmatprep.subr.bf16.mxu0 %v5358_v38  ;;  %v5449_v37 = vld [vmem:[%s8010_s1 + $0xe40] ss:$16 sps:$4 sm:$0xff]   ;;  %v5454_v38 = vld [vmem:[%s8010_s1 + $0xc24] ss:$16 sps:$4 sm:$0xff]  }
  0x9d   :  { %3847 = vmatprep.subr.bf16.mxu1 %v5361_v39  ;;  %v5457_v39 = vld [vmem:[%s8010_s1 + $0xe24] ss:$16 sps:$4 sm:$0xff]  }
  0x9f   :  { %3805 = vmatpush1.bf16.msra.mxu0 %v5356_v40  ;;  %v5452_v40 = vld [vmem:[%s8010_s1 + $0xc20] ss:$16 sps:$4 sm:$0xff]  }
  0xa0   :  { %3848 = vmatpush1.bf16.msra.mxu1 %v5359_v41  ;;  %3806 = vmatprep.subr.bf16.mxu0 %v5364_v42  ;;  %v5455_v41 = vld [vmem:[%s8010_s1 + $0xe20] ss:$16 sps:$4 sm:$0xff]   ;;  %v5460_v42 = vld [vmem:[%s8010_s1 + $0xc04] ss:$16 sps:$4 sm:$0xff]  }
  0xa1   :  { %3849 = vmatprep.subr.bf16.mxu1 %v5367_v43  ;;  %v5463_v43 = vld [vmem:[%s8010_s1 + $0xe04] ss:$16 sps:$4 sm:$0xff]  }
  0xa3   :  { %3807 = vmatpush2.bf16.msra.mxu0 %v5362_v44  ;;  %v5458_v44 = vld [vmem:[%s8010_s1 + $0xc00] ss:$16 sps:$4 sm:$0xff]  }
  0xa4   :  { %3850 = vmatpush2.bf16.msra.mxu1 %v5365_v45  ;;  %3808 = vmatprep.subr.bf16.mxu0 %v5370_v46  ;;  %v5461_v45 = vld [vmem:[%s8010_s1 + $0xe00] ss:$16 sps:$4 sm:$0xff]   ;;  %v5466_v46 = vld [vmem:[%s8010_s1 + $0xde4] ss:$16 sps:$4 sm:$0xff]  }
  0xa5   :  { %3851 = vmatprep.subr.bf16.mxu1 %v5373_v47  ;;  %v5469_v47 = vld [vmem:[%s8010_s1 + $0xfe4] ss:$16 sps:$4 sm:$0xff]  }
  0xa7   :  { %3809 = vmatpush2.bf16.msra.mxu0 %v5368_v48  ;;  %v5464_v48 = vld [vmem:[%s8010_s1 + $0xde0] ss:$16 sps:$4 sm:$0xff]  }
  0xa8   :  { %3852 = vmatpush2.bf16.msra.mxu1 %v5371_v49  ;;  %3810 = vmatprep.subr.bf16.mxu0 %v5376_v50  ;;  %v5467_v49 = vld [vmem:[%s8010_s1 + $0xfe0] ss:$16 sps:$4 sm:$0xff]   ;;  %v5472_v50 = vld [vmem:[%s8010_s1 + $0xdc4] ss:$16 sps:$4 sm:$0xff]  }
  0xa9   :  { %3853 = vmatprep.subr.bf16.mxu1 %v5379_v51  ;;  %v5475_v51 = vld [vmem:[%s8010_s1 + $0xfc4] ss:$16 sps:$4 sm:$0xff]  }
  0xab   :  { %3811 = vmatpush2.bf16.msra.mxu0 %v5374_v52  ;;  %v5470_v52 = vld [vmem:[%s8010_s1 + $0xdc0] ss:$16 sps:$4 sm:$0xff]  }
  0xac   :  { %3854 = vmatpush2.bf16.msra.mxu1 %v5377_v53  ;;  %3812 = vmatprep.subr.bf16.mxu0 %v5382_v54  ;;  %v5473_v53 = vld [vmem:[%s8010_s1 + $0xfc0] ss:$16 sps:$4 sm:$0xff]   ;;  %v5478_v54 = vld [vmem:[%s8010_s1 + $0xda4] ss:$16 sps:$4 sm:$0xff]  }
  0xad   :  { %3855 = vmatprep.subr.bf16.mxu1 %v5385_v55  ;;  %v5481_v55 = vld [vmem:[%s8010_s1 + $0xfa4] ss:$16 sps:$4 sm:$0xff]  }
  0xaf   :  { %3813 = vmatpush2.bf16.msra.mxu0 %v5380_v56  ;;  %v5476_v56 = vld [vmem:[%s8010_s1 + $0xda0] ss:$16 sps:$4 sm:$0xff]  }
  0xb0   :  { %3856 = vmatpush2.bf16.msra.mxu1 %v5383_v57  ;;  %3814 = vmatprep.subr.bf16.mxu0 %v5388_v58  ;;  %v5479_v57 = vld [vmem:[%s8010_s1 + $0xfa0] ss:$16 sps:$4 sm:$0xff]   ;;  %v5484_v58 = vld [vmem:[%s8010_s1 + $0xd84] ss:$16 sps:$4 sm:$0xff]  }
  0xb1   :  { %3857 = vmatprep.subr.bf16.mxu1 %v5391_v59  ;;  %v5487_v59 = vld [vmem:[%s8010_s1 + $0xf84] ss:$16 sps:$4 sm:$0xff]  }
  0xb3   :  { %3815 = vmatpush2.bf16.msra.mxu0 %v5386_v60  ;;  %v5482_v60 = vld [vmem:[%s8010_s1 + $0xd80] ss:$16 sps:$4 sm:$0xff]  }
  0xb4   :  { %3858 = vmatpush2.bf16.msra.mxu1 %v5389_v61  ;;  %3816 = vmatprep.subr.bf16.mxu0 %v5394_v62  ;;  %v5485_v61 = vld [vmem:[%s8010_s1 + $0xf80] ss:$16 sps:$4 sm:$0xff]   ;;  %v5490_v62 = vld [vmem:[%s8010_s1 + $0xd64] ss:$16 sps:$4 sm:$0xff]  }
  0xb5   :  { %3859 = vmatprep.subr.bf16.mxu1 %v5397_v63  ;;  %v5493_v63 = vld [vmem:[%s8010_s1 + $0xf64] ss:$16 sps:$4 sm:$0xff]  }
  0xb7   :  { %3817 = vmatpush2.bf16.msra.mxu0 %v5392_v0  ;;  %v5488_v0 = vld [vmem:[%s8010_s1 + $0xd60] ss:$16 sps:$4 sm:$0xff]  }
  0xb8   :  { %3860 = vmatpush2.bf16.msra.mxu1 %v5395_v1  ;;  %3818 = vmatprep.subr.bf16.mxu0 %v5400_v2  ;;  %v5491_v1 = vld [vmem:[%s8010_s1 + $0xf60] ss:$16 sps:$4 sm:$0xff]   ;;  %v5496_v2 = vld [vmem:[%s8010_s1 + $0xd44] ss:$16 sps:$4 sm:$0xff]  }
  0xb9   :  { %3861 = vmatprep.subr.bf16.mxu1 %v5403_v3  ;;  %v5499_v3 = vld [vmem:[%s8010_s1 + $0xf44] ss:$16 sps:$4 sm:$0xff]  }
  0xbb   :  { %3819 = vmatpush2.bf16.msra.mxu0 %v5398_v4  ;;  %v5494_v4 = vld [vmem:[%s8010_s1 + $0xd40] ss:$16 sps:$4 sm:$0xff]  }
  0xbc   :  { %3862 = vmatpush2.bf16.msra.mxu1 %v5401_v5  ;;  %3820 = vmatprep.subr.bf16.mxu0 %v5406_v6  ;;  %v5497_v5 = vld [vmem:[%s8010_s1 + $0xf40] ss:$16 sps:$4 sm:$0xff]   ;;  %v5502_v6 = vld [vmem:[%s8010_s1 + $0xd24] ss:$16 sps:$4 sm:$0xff]  }
  0xbd   :  { %3863 = vmatprep.subr.bf16.mxu1 %v5409_v7  ;;  %v5505_v7 = vld [vmem:[%s8010_s1 + $0xf24] ss:$16 sps:$4 sm:$0xff]  }
  0xbf   :  { %3821 = vmatpush2.bf16.msra.mxu0 %v5404_v8  ;;  %v5500_v8 = vld [vmem:[%s8010_s1 + $0xd20] ss:$16 sps:$4 sm:$0xff]  }
  0xc0   :  { %3864 = vmatpush2.bf16.msra.mxu1 %v5407_v9  ;;  %3876 = vmatprep.subr.bf16.mxu0 %v5418_v10  ;;  %v5503_v9 = vld [vmem:[%s8010_s1 + $0xf20] ss:$16 sps:$4 sm:$0xff]   ;;  %v5508_v10 = vld [vmem:[%s8010_s1 + $0xd04] ss:$16 sps:$4 sm:$0xff]  }
  0xc1   :  { %3919 = vmatprep.subr.bf16.mxu1 %v5421_v11  ;;  %v5511_v11 = vld [vmem:[%s8010_s1 + $0xf04] ss:$16 sps:$4 sm:$0xff]  }
  0xc2   :  { %3823 = vmatmul.mubr.bf16.vlgmr.msra.gmra.mxu0 %v5410_v12  ;;  %v5506_v12 = vld [vmem:[%s8010_s1 + $0xd00] ss:$16 sps:$4 sm:$0xff]  }
  0xc3   :  { %3866 = vmatmul.mubr.bf16.vlgmr.msra.gmra.mxu1 %v5413_v13  ;;  %3877 = vmatpush1.bf16.msra.mxu0 %v5416_v14  ;;  %v5509_v13 = vld [vmem:[%s8010_s1 + $0xf00] ss:$16 sps:$4 sm:$0xff]   ;;  %v5520_v14 = vld [vmem:[%s8010_s1 + $0x10e4] ss:$16 sps:$4 sm:$0xff]  }
  0xc4   :  { %3920 = vmatpush1.bf16.msra.mxu1 %v5419_v15  ;;  %3878 = vmatprep.subr.bf16.mxu0 %v5424_v16  ;;  %v5523_v15 = vld [vmem:[%s8010_s1 + $0xec] ss:$16 sps:$4 sm:$0xff]   ;;  %v5512_v16 = vld [vmem:[%s8011_s0 + $0x30] ss:$72 sps:$4 sm:$0xff]  }
  0xc5   :  { %3921 = vmatprep.subr.bf16.mxu1 %v5427_v17  ;;  %3908 = vmatprep.mubr.bf16.mxu0 %v5514_v18  ;;  %v5515_v17 = vld [vmem:[%s8011_s0 + $0x38] ss:$72 sps:$4 sm:$0xff]  }
  0xc6   :  { %3951 = vmatprep.mubr.bf16.mxu1 %v5517_v19  ;;  %v5518_v18 = vld [vmem:[%s8010_s1 + $0x10e0] ss:$16 sps:$4 sm:$0xff]   ;;  %v5521_v19 = vld [vmem:[%s8010_s1 + $0xe8] ss:$16 sps:$4 sm:$0xff]  }
  0xc7   :  { %3879 = vmatpush1.bf16.msra.mxu0 %v5422_v20  ;;  %v5526_v20 = vld [vmem:[%s8010_s1 + $0x10c4] ss:$16 sps:$4 sm:$0xff]  }
  0xc8   :  { %3922 = vmatpush1.bf16.msra.mxu1 %v5425_v21  ;;  %3880 = vmatprep.subr.bf16.mxu0 %v5430_v22  ;;  %v5529_v21 = vld [vmem:[%s8010_s1 + $0xcc] ss:$16 sps:$4 sm:$0xff]  }
  0xc9   :  { %3923 = vmatprep.subr.bf16.mxu1 %v5433_v23  ;;  %v5616_v22 = vld [vmem:[%s8011_s0 + $0x44] ss:$72 sps:$4 sm:$0xff]   ;;  %v5524_v23 = vld [vmem:[%s8010_s1 + $0x10c0] ss:$16 sps:$4 sm:$0xff]  }
  0xcb   :  { %3881 = vmatpush1.bf16.msra.mxu0 %v5428_v24  ;;  %v5527_v24 = vld [vmem:[%s8010_s1 + $0xc8] ss:$16 sps:$4 sm:$0xff]  }
  0xcc   :  { %3924 = vmatpush1.bf16.msra.mxu1 %v5431_v25  ;;  %3882 = vmatprep.subr.bf16.mxu0 %v5436_v26  ;;  %v5532_v25 = vld [vmem:[%s8010_s1 + $0x10a4] ss:$16 sps:$4 sm:$0xff]   ;;  %v5535_v26 = vld [vmem:[%s8010_s1 + $0xac] ss:$16 sps:$4 sm:$0xff]  }
  0xcd   :  { %3925 = vmatprep.subr.bf16.mxu1 %v5439_v27  ;;  %v6001_v27 = vld [vmem:[%s8011_s0 + $0x4] ss:$72 sps:$4 sm:$0xff]  }
  0xcf   :  { %3883 = vmatpush1.bf16.msra.mxu0 %v5434_v28  ;;  %v5530_v28 = vld [vmem:[%s8010_s1 + $0x10a0] ss:$16 sps:$4 sm:$0xff]  }
  0xd0   :  { %3926 = vmatpush1.bf16.msra.mxu1 %v5437_v29  ;;  %3884 = vmatprep.subr.bf16.mxu0 %v5442_v30  ;;  %v5533_v29 = vld [vmem:[%s8010_s1 + $0xa8] ss:$16 sps:$4 sm:$0xff]   ;;  %v5538_v30 = vld [vmem:[%s8010_s1 + $0x1084] ss:$16 sps:$4 sm:$0xff]  }
  0xd1   :  { %3927 = vmatprep.subr.bf16.mxu1 %v5445_v31  ;;  %v5541_v31 = vld [vmem:[%s8010_s1 + $0x8c] ss:$16 sps:$4 sm:$0xff]  }
  0xd3   :  { %3885 = vmatpush1.bf16.msra.mxu0 %v5440_v32  ;;  %v5536_v32 = vld [vmem:[%s8010_s1 + $0x1080] ss:$16 sps:$4 sm:$0xff]  }
  0xd4   :  { %3928 = vmatpush1.bf16.msra.mxu1 %v5443_v33  ;;  %3886 = vmatprep.subr.bf16.mxu0 %v5448_v34  ;;  %v5539_v33 = vld [vmem:[%s8010_s1 + $0x88] ss:$16 sps:$4 sm:$0xff]   ;;  %v5544_v34 = vld [vmem:[%s8010_s1 + $0x1064] ss:$16 sps:$4 sm:$0xff]  }
  0xd5   :  { %3929 = vmatprep.subr.bf16.mxu1 %v5451_v35  ;;  %v5547_v35 = vld [vmem:[%s8010_s1 + $0x6c] ss:$16 sps:$4 sm:$0xff]  }
  0xd7   :  { %3887 = vmatpush1.bf16.msra.mxu0 %v5446_v36  ;;  %v5542_v36 = vld [vmem:[%s8010_s1 + $0x1060] ss:$16 sps:$4 sm:$0xff]  }
  0xd8   :  { %3930 = vmatpush1.bf16.msra.mxu1 %v5449_v37  ;;  %3888 = vmatprep.subr.bf16.mxu0 %v5454_v38  ;;  %v5545_v37 = vld [vmem:[%s8010_s1 + $0x68] ss:$16 sps:$4 sm:$0xff]   ;;  %v5550_v38 = vld [vmem:[%s8010_s1 + $0x1044] ss:$16 sps:$4 sm:$0xff]  }
  0xd9   :  { %3931 = vmatprep.subr.bf16.mxu1 %v5457_v39  ;;  %v5553_v39 = vld [vmem:[%s8010_s1 + $0x4c] ss:$16 sps:$4 sm:$0xff]  }
  0xdb   :  { %3889 = vmatpush1.bf16.msra.mxu0 %v5452_v40  ;;  %v5548_v40 = vld [vmem:[%s8010_s1 + $0x1040] ss:$16 sps:$4 sm:$0xff]  }
  0xdc   :  { %3932 = vmatpush1.bf16.msra.mxu1 %v5455_v41  ;;  %3890 = vmatprep.subr.bf16.mxu0 %v5460_v42  ;;  %v5551_v41 = vld [vmem:[%s8010_s1 + $0x48] ss:$16 sps:$4 sm:$0xff]   ;;  %v5556_v42 = vld [vmem:[%s8010_s1 + $0x1024] ss:$16 sps:$4 sm:$0xff]  }
  0xdd   :  { %3933 = vmatprep.subr.bf16.mxu1 %v5463_v43  ;;  %v5559_v43 = vld [vmem:[%s8010_s1 + $0x2c] ss:$16 sps:$4 sm:$0xff]  }
  0xdf   :  { %3891 = vmatpush1.bf16.msra.mxu0 %v5458_v44  ;;  %v5554_v44 = vld [vmem:[%s8010_s1 + $0x1020] ss:$16 sps:$4 sm:$0xff]  }
  0xe0   :  { %3934 = vmatpush1.bf16.msra.mxu1 %v5461_v45  ;;  %3892 = vmatprep.subr.bf16.mxu0 %v5466_v46  ;;  %v5557_v45 = vld [vmem:[%s8010_s1 + $0x28] ss:$16 sps:$4 sm:$0xff]   ;;  %v5562_v46 = vld [vmem:[%s8010_s1 + $0x1004] ss:$16 sps:$4 sm:$0xff]  }
  0xe1   :  { %3935 = vmatprep.subr.bf16.mxu1 %v5469_v47  ;;  %v5565_v47 = vld [vmem:[%s8010_s1 + $0xc] ss:$16 sps:$4 sm:$0xff]  }
  0xe3   :  { %3893 = vmatpush2.bf16.msra.mxu0 %v5464_v48  ;;  %v5560_v48 = vld [vmem:[%s8010_s1 + $0x1000] ss:$16 sps:$4 sm:$0xff]  }
  0xe4   :  { %3936 = vmatpush2.bf16.msra.mxu1 %v5467_v49  ;;  %3894 = vmatprep.subr.bf16.mxu0 %v5472_v50  ;;  %v5563_v49 = vld [vmem:[%s8010_s1 + $0x8] ss:$16 sps:$4 sm:$0xff]   ;;  %v5568_v50 = vld [vmem:[%s8010_s1 + $0x11e4] ss:$16 sps:$4 sm:$0xff]  }
  0xe5   :  { %3937 = vmatprep.subr.bf16.mxu1 %v5475_v51  ;;  %v5571_v51 = vld [vmem:[%s8010_s1 + $0x1ec] ss:$16 sps:$4 sm:$0xff]  }
  0xe7   :  { %3895 = vmatpush2.bf16.msra.mxu0 %v5470_v52  ;;  %v5566_v52 = vld [vmem:[%s8010_s1 + $0x11e0] ss:$16 sps:$4 sm:$0xff]  }
  0xe8   :  { %3938 = vmatpush2.bf16.msra.mxu1 %v5473_v53  ;;  %3896 = vmatprep.subr.bf16.mxu0 %v5478_v54  ;;  %v5569_v53 = vld [vmem:[%s8010_s1 + $0x1e8] ss:$16 sps:$4 sm:$0xff]   ;;  %v5574_v54 = vld [vmem:[%s8010_s1 + $0x11c4] ss:$16 sps:$4 sm:$0xff]  }
  0xe9   :  { %3939 = vmatprep.subr.bf16.mxu1 %v5481_v55  ;;  %v5577_v55 = vld [vmem:[%s8010_s1 + $0x1cc] ss:$16 sps:$4 sm:$0xff]  }
  0xeb   :  { %3897 = vmatpush2.bf16.msra.mxu0 %v5476_v56  ;;  %v5572_v56 = vld [vmem:[%s8010_s1 + $0x11c0] ss:$16 sps:$4 sm:$0xff]  }
  0xec   :  { %3940 = vmatpush2.bf16.msra.mxu1 %v5479_v57  ;;  %3898 = vmatprep.subr.bf16.mxu0 %v5484_v58  ;;  %v5575_v57 = vld [vmem:[%s8010_s1 + $0x1c8] ss:$16 sps:$4 sm:$0xff]   ;;  %v5580_v58 = vld [vmem:[%s8010_s1 + $0x11a4] ss:$16 sps:$4 sm:$0xff]  }
  0xed   :  { %3941 = vmatprep.subr.bf16.mxu1 %v5487_v59  ;;  %v5583_v59 = vld [vmem:[%s8010_s1 + $0x1ac] ss:$16 sps:$4 sm:$0xff]  }
  0xef   :  { %3899 = vmatpush2.bf16.msra.mxu0 %v5482_v60  ;;  %v5578_v60 = vld [vmem:[%s8010_s1 + $0x11a0] ss:$16 sps:$4 sm:$0xff]  }
  0xf0   :  { %3942 = vmatpush2.bf16.msra.mxu1 %v5485_v61  ;;  %3900 = vmatprep.subr.bf16.mxu0 %v5490_v62  ;;  %v5581_v61 = vld [vmem:[%s8010_s1 + $0x1a8] ss:$16 sps:$4 sm:$0xff]   ;;  %v5586_v62 = vld [vmem:[%s8010_s1 + $0x1184] ss:$16 sps:$4 sm:$0xff]  }
  0xf1   :  { %3943 = vmatprep.subr.bf16.mxu1 %v5493_v63  ;;  %v5589_v63 = vld [vmem:[%s8010_s1 + $0x18c] ss:$16 sps:$4 sm:$0xff]  }
  0xf3   :  { %3901 = vmatpush2.bf16.msra.mxu0 %v5488_v0  ;;  %v5584_v0 = vld [vmem:[%s8010_s1 + $0x1180] ss:$16 sps:$4 sm:$0xff]  }
  0xf4   :  { %3944 = vmatpush2.bf16.msra.mxu1 %v5491_v1  ;;  %3902 = vmatprep.subr.bf16.mxu0 %v5496_v2  ;;  %v5587_v1 = vld [vmem:[%s8010_s1 + $0x188] ss:$16 sps:$4 sm:$0xff]   ;;  %v5592_v2 = vld [vmem:[%s8010_s1 + $0x1164] ss:$16 sps:$4 sm:$0xff]  }
  0xf5   :  { %3945 = vmatprep.subr.bf16.mxu1 %v5499_v3  ;;  %v5595_v3 = vld [vmem:[%s8010_s1 + $0x16c] ss:$16 sps:$4 sm:$0xff]  }
  0xf7   :  { %3903 = vmatpush2.bf16.msra.mxu0 %v5494_v4  ;;  %v5590_v4 = vld [vmem:[%s8010_s1 + $0x1160] ss:$16 sps:$4 sm:$0xff]  }
  0xf8   :  { %3946 = vmatpush2.bf16.msra.mxu1 %v5497_v5  ;;  %3904 = vmatprep.subr.bf16.mxu0 %v5502_v6  ;;  %v5593_v5 = vld [vmem:[%s8010_s1 + $0x168] ss:$16 sps:$4 sm:$0xff]   ;;  %v5598_v6 = vld [vmem:[%s8010_s1 + $0x1144] ss:$16 sps:$4 sm:$0xff]  }
  0xf9   :  { %3947 = vmatprep.subr.bf16.mxu1 %v5505_v7  ;;  %v5601_v7 = vld [vmem:[%s8010_s1 + $0x14c] ss:$16 sps:$4 sm:$0xff]  }
  0xfb   :  { %3905 = vmatpush2.bf16.msra.mxu0 %v5500_v8  ;;  %v5596_v8 = vld [vmem:[%s8010_s1 + $0x1140] ss:$16 sps:$4 sm:$0xff]  }
  0xfc   :  { %3948 = vmatpush2.bf16.msra.mxu1 %v5503_v9  ;;  %3906 = vmatprep.subr.bf16.mxu0 %v5508_v10  ;;  %v5599_v9 = vld [vmem:[%s8010_s1 + $0x148] ss:$16 sps:$4 sm:$0xff]   ;;  %v5604_v10 = vld [vmem:[%s8010_s1 + $0x1124] ss:$16 sps:$4 sm:$0xff]  }
  0xfd   :  { %3949 = vmatprep.subr.bf16.mxu1 %v5511_v11  ;;  %v5607_v11 = vld [vmem:[%s8010_s1 + $0x12c] ss:$16 sps:$4 sm:$0xff]  }
  0xff   :  { %3907 = vmatpush2.bf16.msra.mxu0 %v5506_v12  ;;  %v5602_v12 = vld [vmem:[%s8010_s1 + $0x1120] ss:$16 sps:$4 sm:$0xff]  }
 0x100   :  { %3950 = vmatpush2.bf16.msra.mxu1 %v5509_v13  ;;  %3962 = vmatprep.subr.bf16.mxu0 %v5520_v14  ;;  %v5605_v13 = vld [vmem:[%s8010_s1 + $0x128] ss:$16 sps:$4 sm:$0xff]   ;;  %v5610_v14 = vld [vmem:[%s8010_s1 + $0x1104] ss:$16 sps:$4 sm:$0xff]  }
 0x101   :  { %4005 = vmatprep.subr.bf16.mxu1 %v5523_v15  ;;  %v5613_v15 = vld [vmem:[%s8010_s1 + $0x10c] ss:$16 sps:$4 sm:$0xff]  }
 0x102   :  { %3909 = vmatmul.mubr.bf16.vlgmr.msra.gmra.mxu0 %v5512_v16  ;;  %v5608_v16 = vld [vmem:[%s8010_s1 + $0x1100] ss:$16 sps:$4 sm:$0xff]  }
 0x103   :  { %3952 = vmatmul.mubr.bf16.vlgmr.msra.gmra.mxu1 %v5515_v17  ;;  %3963 = vmatpush1.bf16.msra.mxu0 %v5518_v18  ;;  %v5611_v17 = vld [vmem:[%s8010_s1 + $0x108] ss:$16 sps:$4 sm:$0xff]  }
 0x104   :  { %4006 = vmatpush1.bf16.msra.mxu1 %v5521_v19  ;;  %3964 = vmatprep.subr.bf16.mxu0 %v5526_v20  ;;  %v5614_v18 = vld [vmem:[%s8011_s0 + $0x40] ss:$72 sps:$4 sm:$0xff]   ;;  %v5619_v19 = vld [vmem:[%s8010_s1 + $0x2ec] ss:$16 sps:$4 sm:$0xff]  }
 0x105   :  { %4007 = vmatprep.subr.bf16.mxu1 %v5529_v21  ;;  %3994 = vmatprep.mubr.bf16.mxu0 %v5616_v22  ;;  %v5622_v20 = vld [vmem:[%s8010_s1 + $0x4ec] ss:$16 sps:$4 sm:$0xff]   ;;  %v5617_v21 = vld [vmem:[%s8010_s1 + $0x2e8] ss:$16 sps:$4 sm:$0xff]  }
 0x106   :  { %4037 = vmatprep.mubr.bf16.mxu1 %v6001_v27  ;;  %v5620_v22 = vld [vmem:[%s8010_s1 + $0x4e8] ss:$16 sps:$4 sm:$0xff]  }
 0x107   :  { %3965 = vmatpush1.bf16.msra.mxu0 %v5524_v23  ;;  %v5625_v23 = vld [vmem:[%s8010_s1 + $0x2cc] ss:$16 sps:$4 sm:$0xff]   ;;  %v6002_v27 = vld [vmem:[%s8011_s0] ss:$72 sps:$4 sm:$0xff]  }
 0x108   :  { %4008 = vmatpush1.bf16.msra.mxu1 %v5527_v24  ;;  %3966 = vmatprep.subr.bf16.mxu0 %v5532_v25  ;;  %v5628_v24 = vld [vmem:[%s8010_s1 + $0x4cc] ss:$16 sps:$4 sm:$0xff]   ;;  %v5623_v25 = vld [vmem:[%s8010_s1 + $0x2c8] ss:$16 sps:$4 sm:$0xff]  }
 0x109   :  { %4009 = vmatprep.subr.bf16.mxu1 %v5535_v26  ;;  %v5626_v26 = vld [vmem:[%s8010_s1 + $0x4c8] ss:$16 sps:$4 sm:$0xff]  }
 0x10b   :  { %3967 = vmatpush1.bf16.msra.mxu0 %v5530_v28  ;;  %v5631_v28 = vld [vmem:[%s8010_s1 + $0x2ac] ss:$16 sps:$4 sm:$0xff]  }
 0x10c   :  { %4010 = vmatpush1.bf16.msra.mxu1 %v5533_v29  ;;  %3968 = vmatprep.subr.bf16.mxu0 %v5538_v30  ;;  %v5634_v29 = vld [vmem:[%s8010_s1 + $0x4ac] ss:$16 sps:$4 sm:$0xff]   ;;  %v5629_v30 = vld [vmem:[%s8010_s1 + $0x2a8] ss:$16 sps:$4 sm:$0xff]  }
 0x10d   :  { %4011 = vmatprep.subr.bf16.mxu1 %v5541_v31  ;;  %v5632_v31 = vld [vmem:[%s8010_s1 + $0x4a8] ss:$16 sps:$4 sm:$0xff]  }
 0x10f   :  { %3969 = vmatpush1.bf16.msra.mxu0 %v5536_v32  ;;  %v6003_v32 = vld [vmem:[%s8011_s0 + $0xc] ss:$72 sps:$4 sm:$0xff]  }
 0x110   :  { %4012 = vmatpush1.bf16.msra.mxu1 %v5539_v33  ;;  %3970 = vmatprep.subr.bf16.mxu0 %v5544_v34  ;;  %v6004_v33 = vld [vmem:[%s8011_s0 + $0x14] ss:$72 sps:$4 sm:$0xff]  }
 0x111   :  { %4013 = vmatprep.subr.bf16.mxu1 %v5547_v35  ;;  %v5637_v34 = vld [vmem:[%s8010_s1 + $0x28c] ss:$16 sps:$4 sm:$0xff]  }
 0x112   :  { %v5640_v35 = vld [vmem:[%s8010_s1 + $0x48c] ss:$16 sps:$4 sm:$0xff]  }
 0x113   :  { %3971 = vmatpush1.bf16.msra.mxu0 %v5542_v36  ;;  %v5635_v36 = vld [vmem:[%s8010_s1 + $0x288] ss:$16 sps:$4 sm:$0xff]  }
 0x114   :  { %4014 = vmatpush1.bf16.msra.mxu1 %v5545_v37  ;;  %3972 = vmatprep.subr.bf16.mxu0 %v5550_v38  ;;  %v5638_v37 = vld [vmem:[%s8010_s1 + $0x488] ss:$16 sps:$4 sm:$0xff]   ;;  %v5643_v38 = vld [vmem:[%s8010_s1 + $0x26c] ss:$16 sps:$4 sm:$0xff]  }
 0x115   :  { %4015 = vmatprep.subr.bf16.mxu1 %v5553_v39  ;;  %v5646_v39 = vld [vmem:[%s8010_s1 + $0x46c] ss:$16 sps:$4 sm:$0xff]  }
 0x117   :  { %3973 = vmatpush1.bf16.msra.mxu0 %v5548_v40  ;;  %v5641_v40 = vld [vmem:[%s8010_s1 + $0x268] ss:$16 sps:$4 sm:$0xff]  }
 0x118   :  { %4016 = vmatpush1.bf16.msra.mxu1 %v5551_v41  ;;  %3974 = vmatprep.subr.bf16.mxu0 %v5556_v42  ;;  %v5644_v41 = vld [vmem:[%s8010_s1 + $0x468] ss:$16 sps:$4 sm:$0xff]   ;;  %v5649_v42 = vld [vmem:[%s8010_s1 + $0x24c] ss:$16 sps:$4 sm:$0xff]  }
 0x119   :  { %4017 = vmatprep.subr.bf16.mxu1 %v5559_v43  ;;  %v5652_v43 = vld [vmem:[%s8010_s1 + $0x44c] ss:$16 sps:$4 sm:$0xff]  }
 0x11b   :  { %3975 = vmatpush1.bf16.msra.mxu0 %v5554_v44  ;;  %v5647_v44 = vld [vmem:[%s8010_s1 + $0x248] ss:$16 sps:$4 sm:$0xff]  }
 0x11c   :  { %4018 = vmatpush1.bf16.msra.mxu1 %v5557_v45  ;;  %3976 = vmatprep.subr.bf16.mxu0 %v5562_v46  ;;  %v5650_v45 = vld [vmem:[%s8010_s1 + $0x448] ss:$16 sps:$4 sm:$0xff]   ;;  %v5655_v46 = vld [vmem:[%s8010_s1 + $0x22c] ss:$16 sps:$4 sm:$0xff]  }
 0x11d   :  { %4019 = vmatprep.subr.bf16.mxu1 %v5565_v47  ;;  %v5658_v47 = vld [vmem:[%s8010_s1 + $0x42c] ss:$16 sps:$4 sm:$0xff]  }
 0x11f   :  { %3977 = vmatpush1.bf16.msra.mxu0 %v5560_v48  ;;  %v5653_v48 = vld [vmem:[%s8010_s1 + $0x228] ss:$16 sps:$4 sm:$0xff]  }
 0x120   :  { %4020 = vmatpush1.bf16.msra.mxu1 %v5563_v49  ;;  %3978 = vmatprep.subr.bf16.mxu0 %v5568_v50  ;;  %v5656_v49 = vld [vmem:[%s8010_s1 + $0x428] ss:$16 sps:$4 sm:$0xff]   ;;  %v5661_v50 = vld [vmem:[%s8010_s1 + $0x20c] ss:$16 sps:$4 sm:$0xff]  }
 0x121   :  { %4021 = vmatprep.subr.bf16.mxu1 %v5571_v51  ;;  %v5664_v51 = vld [vmem:[%s8010_s1 + $0x40c] ss:$16 sps:$4 sm:$0xff]  }
 0x123   :  { %3979 = vmatpush2.bf16.msra.mxu0 %v5566_v52  ;;  %v5659_v52 = vld [vmem:[%s8010_s1 + $0x208] ss:$16 sps:$4 sm:$0xff]  }
 0x124   :  { %4022 = vmatpush2.bf16.msra.mxu1 %v5569_v53  ;;  %3980 = vmatprep.subr.bf16.mxu0 %v5574_v54  ;;  %v5662_v53 = vld [vmem:[%s8010_s1 + $0x408] ss:$16 sps:$4 sm:$0xff]   ;;  %v5667_v54 = vld [vmem:[%s8010_s1 + $0x3ec] ss:$16 sps:$4 sm:$0xff]  }
 0x125   :  { %4023 = vmatprep.subr.bf16.mxu1 %v5577_v55  ;;  %v5670_v55 = vld [vmem:[%s8010_s1 + $0x5ec] ss:$16 sps:$4 sm:$0xff]  }
 0x127   :  { %3981 = vmatpush2.bf16.msra.mxu0 %v5572_v56  ;;  %v5665_v56 = vld [vmem:[%s8010_s1 + $0x3e8] ss:$16 sps:$4 sm:$0xff]  }
 0x128   :  { %4024 = vmatpush2.bf16.msra.mxu1 %v5575_v57  ;;  %3982 = vmatprep.subr.bf16.mxu0 %v5580_v58  ;;  %v5668_v57 = vld [vmem:[%s8010_s1 + $0x5e8] ss:$16 sps:$4 sm:$0xff]   ;;  %v5673_v58 = vld [vmem:[%s8010_s1 + $0x3cc] ss:$16 sps:$4 sm:$0xff]  }
 0x129   :  { %4025 = vmatprep.subr.bf16.mxu1 %v5583_v59  ;;  %v5676_v59 = vld [vmem:[%s8010_s1 + $0x5cc] ss:$16 sps:$4 sm:$0xff]  }
 0x12b   :  { %3983 = vmatpush2.bf16.msra.mxu0 %v5578_v60  ;;  %v5671_v60 = vld [vmem:[%s8010_s1 + $0x3c8] ss:$16 sps:$4 sm:$0xff]  }
 0x12c   :  { %4026 = vmatpush2.bf16.msra.mxu1 %v5581_v61  ;;  %3984 = vmatprep.subr.bf16.mxu0 %v5586_v62  ;;  %v5674_v61 = vld [vmem:[%s8010_s1 + $0x5c8] ss:$16 sps:$4 sm:$0xff]   ;;  %v5679_v62 = vld [vmem:[%s8010_s1 + $0x3ac] ss:$16 sps:$4 sm:$0xff]  }
 0x12d   :  { %4027 = vmatprep.subr.bf16.mxu1 %v5589_v63  ;;  %v5682_v63 = vld [vmem:[%s8010_s1 + $0x5ac] ss:$16 sps:$4 sm:$0xff]  }
 0x12f   :  { %3985 = vmatpush2.bf16.msra.mxu0 %v5584_v0  ;;  %v5677_v0 = vld [vmem:[%s8010_s1 + $0x3a8] ss:$16 sps:$4 sm:$0xff]  }
 0x130   :  { %4028 = vmatpush2.bf16.msra.mxu1 %v5587_v1  ;;  %3986 = vmatprep.subr.bf16.mxu0 %v5592_v2  ;;  %v5680_v1 = vld [vmem:[%s8010_s1 + $0x5a8] ss:$16 sps:$4 sm:$0xff]   ;;  %v5685_v2 = vld [vmem:[%s8010_s1 + $0x38c] ss:$16 sps:$4 sm:$0xff]  }
 0x131   :  { %4029 = vmatprep.subr.bf16.mxu1 %v5595_v3  ;;  %v5688_v3 = vld [vmem:[%s8010_s1 + $0x58c] ss:$16 sps:$4 sm:$0xff]  }
 0x133   :  { %3987 = vmatpush2.bf16.msra.mxu0 %v5590_v4  ;;  %v5683_v4 = vld [vmem:[%s8010_s1 + $0x388] ss:$16 sps:$4 sm:$0xff]  }
 0x134   :  { %4030 = vmatpush2.bf16.msra.mxu1 %v5593_v5  ;;  %3988 = vmatprep.subr.bf16.mxu0 %v5598_v6  ;;  %v5686_v5 = vld [vmem:[%s8010_s1 + $0x588] ss:$16 sps:$4 sm:$0xff]   ;;  %v5691_v6 = vld [vmem:[%s8010_s1 + $0x36c] ss:$16 sps:$4 sm:$0xff]  }
 0x135   :  { %4031 = vmatprep.subr.bf16.mxu1 %v5601_v7  ;;  %v5694_v7 = vld [vmem:[%s8010_s1 + $0x56c] ss:$16 sps:$4 sm:$0xff]  }
 0x137   :  { %3989 = vmatpush2.bf16.msra.mxu0 %v5596_v8  ;;  %v5689_v8 = vld [vmem:[%s8010_s1 + $0x368] ss:$16 sps:$4 sm:$0xff]  }
 0x138   :  { %4032 = vmatpush2.bf16.msra.mxu1 %v5599_v9  ;;  %3990 = vmatprep.subr.bf16.mxu0 %v5604_v10  ;;  %v5692_v9 = vld [vmem:[%s8010_s1 + $0x568] ss:$16 sps:$4 sm:$0xff]   ;;  %v5697_v10 = vld [vmem:[%s8010_s1 + $0x34c] ss:$16 sps:$4 sm:$0xff]  }
 0x139   :  { %4033 = vmatprep.subr.bf16.mxu1 %v5607_v11  ;;  %v5700_v11 = vld [vmem:[%s8010_s1 + $0x54c] ss:$16 sps:$4 sm:$0xff]  }
 0x13b   :  { %3991 = vmatpush2.bf16.msra.mxu0 %v5602_v12  ;;  %v5695_v12 = vld [vmem:[%s8010_s1 + $0x348] ss:$16 sps:$4 sm:$0xff]  }
 0x13c   :  { %4034 = vmatpush2.bf16.msra.mxu1 %v5605_v13  ;;  %3992 = vmatprep.subr.bf16.mxu0 %v5610_v14  ;;  %v5698_v13 = vld [vmem:[%s8010_s1 + $0x548] ss:$16 sps:$4 sm:$0xff]   ;;  %v5703_v14 = vld [vmem:[%s8010_s1 + $0x32c] ss:$16 sps:$4 sm:$0xff]  }
 0x13d   :  { %4035 = vmatprep.subr.bf16.mxu1 %v5613_v15  ;;  %v5706_v15 = vld [vmem:[%s8010_s1 + $0x52c] ss:$16 sps:$4 sm:$0xff]  }
 0x13f   :  { %3993 = vmatpush2.bf16.msra.mxu0 %v5608_v16  ;;  %v5701_v16 = vld [vmem:[%s8010_s1 + $0x328] ss:$16 sps:$4 sm:$0xff]  }
 0x140   :  { %4036 = vmatpush2.bf16.msra.mxu1 %v5611_v17  ;;  %4048 = vmatprep.subr.bf16.mxu0 %v5619_v19  ;;  %v5704_v17 = vld [vmem:[%s8010_s1 + $0x528] ss:$16 sps:$4 sm:$0xff]   ;;  %v5712_v19 = vld [vmem:[%s8010_s1 + $0x50c] ss:$16 sps:$4 sm:$0xff]  }
 0x141   :  { %4091 = vmatprep.subr.bf16.mxu1 %v5622_v20  ;;  %v5707_v20 = vld [vmem:[%s8010_s1 + $0x308] ss:$16 sps:$4 sm:$0xff]  }
 0x142   :  { %3995 = vmatmul.mubr.bf16.vlgmr.msra.gmra.mxu0 %v5614_v18  ;;  %v5709_v18 = vld [vmem:[%s8010_s1 + $0x30c] ss:$16 sps:$4 sm:$0xff]  }
 0x143   :  { %4038 = vmatmul.mubr.bf16.vlgmr.msra.gmra.mxu1 %v6002_v27  ;;  %4049 = vmatpush1.bf16.msra.mxu0 %v5617_v21  ;;  %v5710_v21 = vld [vmem:[%s8010_s1 + $0x508] ss:$16 sps:$4 sm:$0xff]   ;;  %v5724_v27 = vld [vmem:[%s8010_s1 + $0x8cc] ss:$16 sps:$4 sm:$0xff]  }
 0x144   :  { %4092 = vmatpush1.bf16.msra.mxu1 %v5620_v22  ;;  %4050 = vmatprep.subr.bf16.mxu0 %v5625_v23  ;;  %v5715_v22 = vld [vmem:[%s8010_s1 + $0x6ec] ss:$16 sps:$4 sm:$0xff]  }
 0x145   :  { %4093 = vmatprep.subr.bf16.mxu1 %v5628_v24  ;;  %4080 = vmatprep.mubr.bf16.mxu0 %v6003_v32  ;;  %v5718_v23 = vld [vmem:[%s8010_s1 + $0x8ec] ss:$16 sps:$4 sm:$0xff]   ;;  %v5713_v24 = vld [vmem:[%s8010_s1 + $0x6e8] ss:$16 sps:$4 sm:$0xff]  }
 0x146   :  { %4123 = vmatprep.mubr.bf16.mxu1 %v6004_v33  ;;  %v5727_v32 = vld [vmem:[%s8010_s1 + $0x6ac] ss:$16 sps:$4 sm:$0xff]  }
 0x147   :  { %4051 = vmatpush1.bf16.msra.mxu0 %v5623_v25  ;;  %v5716_v25 = vld [vmem:[%s8010_s1 + $0x8e8] ss:$16 sps:$4 sm:$0xff]   ;;  %v5730_v33 = vld [vmem:[%s8010_s1 + $0x8ac] ss:$16 sps:$4 sm:$0xff]  }
 0x148   :  { %4094 = vmatpush1.bf16.msra.mxu1 %v5626_v26  ;;  %4052 = vmatprep.subr.bf16.mxu0 %v5631_v28  ;;  %v5721_v26 = vld [vmem:[%s8010_s1 + $0x6cc] ss:$16 sps:$4 sm:$0xff]   ;;  %v6005_v28 = vld [vmem:[%s8011_s0 + $0x8] ss:$72 sps:$4 sm:$0xff]  }
 0x149   :  { %4095 = vmatprep.subr.bf16.mxu1 %v5634_v29  ;;  %v6006_v29 = vld [vmem:[%s8011_s0 + $0x10] ss:$72 sps:$4 sm:$0xff]  }
 0x14b   :  { %4053 = vmatpush1.bf16.msra.mxu0 %v5629_v30  ;;  %v5719_v30 = vld [vmem:[%s8010_s1 + $0x6c8] ss:$16 sps:$4 sm:$0xff]  }
 0x14c   :  { %4096 = vmatpush1.bf16.msra.mxu1 %v5632_v31  ;;  %4054 = vmatprep.subr.bf16.mxu0 %v5637_v34  ;;  %v5722_v31 = vld [vmem:[%s8010_s1 + $0x8c8] ss:$16 sps:$4 sm:$0xff]   ;;  %v6007_v34 = vld [vmem:[%s8011_s0 + $0x1c] ss:$72 sps:$4 sm:$0xff]  }
 0x14d   :  { %4097 = vmatprep.subr.bf16.mxu1 %v5640_v35  ;;  %v6008_v35 = vld [vmem:[%s8011_s0 + $0x24] ss:$72 sps:$4 sm:$0xff]  }
 0x14f   :  { %4055 = vmatpush1.bf16.msra.mxu0 %v5635_v36  ;;  %v5725_v36 = vld [vmem:[%s8010_s1 + $0x6a8] ss:$16 sps:$4 sm:$0xff]  }
 0x150   :  { %4098 = vmatpush1.bf16.msra.mxu1 %v5638_v37  ;;  %4056 = vmatprep.subr.bf16.mxu0 %v5643_v38  ;;  %v5728_v37 = vld [vmem:[%s8010_s1 + $0x8a8] ss:$16 sps:$4 sm:$0xff]   ;;  %v5733_v38 = vld [vmem:[%s8010_s1 + $0x68c] ss:$16 sps:$4 sm:$0xff]  }
 0x151   :  { %4099 = vmatprep.subr.bf16.mxu1 %v5646_v39  ;;  %v5736_v39 = vld [vmem:[%s8010_s1 + $0x88c] ss:$16 sps:$4 sm:$0xff]  }
 0x153   :  { %4057 = vmatpush1.bf16.msra.mxu0 %v5641_v40  ;;  %v5731_v40 = vld [vmem:[%s8010_s1 + $0x688] ss:$16 sps:$4 sm:$0xff]  }
 0x154   :  { %4100 = vmatpush1.bf16.msra.mxu1 %v5644_v41  ;;  %4058 = vmatprep.subr.bf16.mxu0 %v5649_v42  ;;  %v5734_v41 = vld [vmem:[%s8010_s1 + $0x888] ss:$16 sps:$4 sm:$0xff]   ;;  %v5739_v42 = vld [vmem:[%s8010_s1 + $0x66c] ss:$16 sps:$4 sm:$0xff]  }
 0x155   :  { %4101 = vmatprep.subr.bf16.mxu1 %v5652_v43  ;;  %v5742_v43 = vld [vmem:[%s8010_s1 + $0x86c] ss:$16 sps:$4 sm:$0xff]  }
 0x157   :  { %4059 = vmatpush1.bf16.msra.mxu0 %v5647_v44  ;;  %v5737_v44 = vld [vmem:[%s8010_s1 + $0x668] ss:$16 sps:$4 sm:$0xff]  }
 0x158   :  { %4102 = vmatpush1.bf16.msra.mxu1 %v5650_v45  ;;  %4060 = vmatprep.subr.bf16.mxu0 %v5655_v46  ;;  %v5740_v45 = vld [vmem:[%s8010_s1 + $0x868] ss:$16 sps:$4 sm:$0xff]   ;;  %v5745_v46 = vld [vmem:[%s8010_s1 + $0x64c] ss:$16 sps:$4 sm:$0xff]  }
 0x159   :  { %4103 = vmatprep.subr.bf16.mxu1 %v5658_v47  ;;  %v5748_v47 = vld [vmem:[%s8010_s1 + $0x84c] ss:$16 sps:$4 sm:$0xff]  }
 0x15b   :  { %4061 = vmatpush1.bf16.msra.mxu0 %v5653_v48  ;;  %v5743_v48 = vld [vmem:[%s8010_s1 + $0x648] ss:$16 sps:$4 sm:$0xff]  }
 0x15c   :  { %4104 = vmatpush1.bf16.msra.mxu1 %v5656_v49  ;;  %4062 = vmatprep.subr.bf16.mxu0 %v5661_v50  ;;  %v5746_v49 = vld [vmem:[%s8010_s1 + $0x848] ss:$16 sps:$4 sm:$0xff]   ;;  %v5751_v50 = vld [vmem:[%s8010_s1 + $0x62c] ss:$16 sps:$4 sm:$0xff]  }
 0x15d   :  { %4105 = vmatprep.subr.bf16.mxu1 %v5664_v51  ;;  %v5754_v51 = vld [vmem:[%s8010_s1 + $0x82c] ss:$16 sps:$4 sm:$0xff]  }
 0x15f   :  { %4063 = vmatpush1.bf16.msra.mxu0 %v5659_v52  ;;  %v5749_v52 = vld [vmem:[%s8010_s1 + $0x628] ss:$16 sps:$4 sm:$0xff]  }
 0x160   :  { %4106 = vmatpush1.bf16.msra.mxu1 %v5662_v53  ;;  %4064 = vmatprep.subr.bf16.mxu0 %v5667_v54  ;;  %v5752_v53 = vld [vmem:[%s8010_s1 + $0x828] ss:$16 sps:$4 sm:$0xff]   ;;  %v5757_v54 = vld [vmem:[%s8010_s1 + $0x60c] ss:$16 sps:$4 sm:$0xff]  }
 0x161   :  { %4107 = vmatprep.subr.bf16.mxu1 %v5670_v55  ;;  %v5760_v55 = vld [vmem:[%s8010_s1 + $0x80c] ss:$16 sps:$4 sm:$0xff]  }
 0x163   :  { %4065 = vmatpush2.bf16.msra.mxu0 %v5665_v56  ;;  %v5755_v56 = vld [vmem:[%s8010_s1 + $0x608] ss:$16 sps:$4 sm:$0xff]  }
 0x164   :  { %4108 = vmatpush2.bf16.msra.mxu1 %v5668_v57  ;;  %4066 = vmatprep.subr.bf16.mxu0 %v5673_v58  ;;  %v5758_v57 = vld [vmem:[%s8010_s1 + $0x808] ss:$16 sps:$4 sm:$0xff]   ;;  %v5763_v58 = vld [vmem:[%s8010_s1 + $0x7ec] ss:$16 sps:$4 sm:$0xff]  }
 0x165   :  { %4109 = vmatprep.subr.bf16.mxu1 %v5676_v59  ;;  %v5766_v59 = vld [vmem:[%s8010_s1 + $0x9ec] ss:$16 sps:$4 sm:$0xff]  }
 0x167   :  { %4067 = vmatpush2.bf16.msra.mxu0 %v5671_v60  ;;  %v5761_v60 = vld [vmem:[%s8010_s1 + $0x7e8] ss:$16 sps:$4 sm:$0xff]  }
 0x168   :  { %4110 = vmatpush2.bf16.msra.mxu1 %v5674_v61  ;;  %4068 = vmatprep.subr.bf16.mxu0 %v5679_v62  ;;  %v5764_v61 = vld [vmem:[%s8010_s1 + $0x9e8] ss:$16 sps:$4 sm:$0xff]   ;;  %v5769_v62 = vld [vmem:[%s8010_s1 + $0x7cc] ss:$16 sps:$4 sm:$0xff]  }
 0x169   :  { %4111 = vmatprep.subr.bf16.mxu1 %v5682_v63  ;;  %v5772_v63 = vld [vmem:[%s8010_s1 + $0x9cc] ss:$16 sps:$4 sm:$0xff]  }
 0x16b   :  { %4069 = vmatpush2.bf16.msra.mxu0 %v5677_v0  ;;  %v5767_v0 = vld [vmem:[%s8010_s1 + $0x7c8] ss:$16 sps:$4 sm:$0xff]  }
 0x16c   :  { %4112 = vmatpush2.bf16.msra.mxu1 %v5680_v1  ;;  %4070 = vmatprep.subr.bf16.mxu0 %v5685_v2  ;;  %v5770_v1 = vld [vmem:[%s8010_s1 + $0x9c8] ss:$16 sps:$4 sm:$0xff]   ;;  %v5775_v2 = vld [vmem:[%s8010_s1 + $0x7ac] ss:$16 sps:$4 sm:$0xff]  }
 0x16d   :  { %4113 = vmatprep.subr.bf16.mxu1 %v5688_v3  ;;  %v5778_v3 = vld [vmem:[%s8010_s1 + $0x9ac] ss:$16 sps:$4 sm:$0xff]  }
 0x16f   :  { %4071 = vmatpush2.bf16.msra.mxu0 %v5683_v4  ;;  %v5773_v4 = vld [vmem:[%s8010_s1 + $0x7a8] ss:$16 sps:$4 sm:$0xff]  }
 0x170   :  { %4114 = vmatpush2.bf16.msra.mxu1 %v5686_v5  ;;  %4072 = vmatprep.subr.bf16.mxu0 %v5691_v6  ;;  %v5776_v5 = vld [vmem:[%s8010_s1 + $0x9a8] ss:$16 sps:$4 sm:$0xff]   ;;  %v5781_v6 = vld [vmem:[%s8010_s1 + $0x78c] ss:$16 sps:$4 sm:$0xff]  }
 0x171   :  { %4115 = vmatprep.subr.bf16.mxu1 %v5694_v7  ;;  %v5784_v7 = vld [vmem:[%s8010_s1 + $0x98c] ss:$16 sps:$4 sm:$0xff]  }
 0x173   :  { %4073 = vmatpush2.bf16.msra.mxu0 %v5689_v8  ;;  %v5779_v8 = vld [vmem:[%s8010_s1 + $0x788] ss:$16 sps:$4 sm:$0xff]  }
 0x174   :  { %4116 = vmatpush2.bf16.msra.mxu1 %v5692_v9  ;;  %4074 = vmatprep.subr.bf16.mxu0 %v5697_v10  ;;  %v5782_v9 = vld [vmem:[%s8010_s1 + $0x988] ss:$16 sps:$4 sm:$0xff]   ;;  %v5787_v10 = vld [vmem:[%s8010_s1 + $0x76c] ss:$16 sps:$4 sm:$0xff]  }
 0x175   :  { %4117 = vmatprep.subr.bf16.mxu1 %v5700_v11  ;;  %v5790_v11 = vld [vmem:[%s8010_s1 + $0x96c] ss:$16 sps:$4 sm:$0xff]  }
 0x177   :  { %4075 = vmatpush2.bf16.msra.mxu0 %v5695_v12  ;;  %v5785_v12 = vld [vmem:[%s8010_s1 + $0x768] ss:$16 sps:$4 sm:$0xff]  }
 0x178   :  { %4118 = vmatpush2.bf16.msra.mxu1 %v5698_v13  ;;  %4076 = vmatprep.subr.bf16.mxu0 %v5703_v14  ;;  %v5788_v13 = vld [vmem:[%s8010_s1 + $0x968] ss:$16 sps:$4 sm:$0xff]   ;;  %v5793_v14 = vld [vmem:[%s8010_s1 + $0x74c] ss:$16 sps:$4 sm:$0xff]  }
 0x179   :  { %4119 = vmatprep.subr.bf16.mxu1 %v5706_v15  ;;  %v5796_v15 = vld [vmem:[%s8010_s1 + $0x94c] ss:$16 sps:$4 sm:$0xff]  }
 0x17b   :  { %4077 = vmatpush2.bf16.msra.mxu0 %v5701_v16  ;;  %v5791_v16 = vld [vmem:[%s8010_s1 + $0x748] ss:$16 sps:$4 sm:$0xff]  }
 0x17c   :  { %4120 = vmatpush2.bf16.msra.mxu1 %v5704_v17  ;;  %4078 = vmatprep.subr.bf16.mxu0 %v5709_v18  ;;  %v5794_v17 = vld [vmem:[%s8010_s1 + $0x948] ss:$16 sps:$4 sm:$0xff]   ;;  %v5799_v18 = vld [vmem:[%s8010_s1 + $0x72c] ss:$16 sps:$4 sm:$0xff]  }
 0x17d   :  { %4121 = vmatprep.subr.bf16.mxu1 %v5712_v19  ;;  %v5802_v19 = vld [vmem:[%s8010_s1 + $0x92c] ss:$16 sps:$4 sm:$0xff]  }
 0x17f   :  { %4079 = vmatpush2.bf16.msra.mxu0 %v5707_v20  ;;  %v5797_v20 = vld [vmem:[%s8010_s1 + $0x728] ss:$16 sps:$4 sm:$0xff]  }
 0x180   :  { %4122 = vmatpush2.bf16.msra.mxu1 %v5710_v21  ;;  %4134 = vmatprep.subr.bf16.mxu0 %v5715_v22  ;;  %v5800_v21 = vld [vmem:[%s8010_s1 + $0x928] ss:$16 sps:$4 sm:$0xff]   ;;  %v5805_v22 = vld [vmem:[%s8010_s1 + $0x70c] ss:$16 sps:$4 sm:$0xff]  }
 0x181   :  { %4177 = vmatprep.subr.bf16.mxu1 %v5718_v23  ;;  %v5808_v23 = vld [vmem:[%s8010_s1 + $0x90c] ss:$16 sps:$4 sm:$0xff]  }
 0x182   :  { %4081 = vmatmul.mubr.bf16.vlgmr.msra.gmra.mxu0 %v6005_v28  ;;  %v5809_v28 = vld [vmem:[%s8010_s1 + $0xae8] ss:$16 sps:$4 sm:$0xff]  }
 0x183   :  { %4124 = vmatmul.mubr.bf16.vlgmr.msra.gmra.mxu1 %v6006_v29  ;;  %4135 = vmatpush1.bf16.msra.mxu0 %v5713_v24  ;;  %v5803_v24 = vld [vmem:[%s8010_s1 + $0x708] ss:$16 sps:$4 sm:$0xff]  }
 0x184   :  { %4178 = vmatpush1.bf16.msra.mxu1 %v5716_v25  ;;  %4136 = vmatprep.subr.bf16.mxu0 %v5721_v26  ;;  %v5806_v25 = vld [vmem:[%s8010_s1 + $0x908] ss:$16 sps:$4 sm:$0xff]   ;;  %v5811_v26 = vld [vmem:[%s8010_s1 + $0xaec] ss:$16 sps:$4 sm:$0xff]  }
 0x185   :  { %4179 = vmatprep.subr.bf16.mxu1 %v5724_v27  ;;  %4166 = vmatprep.mubr.bf16.mxu0 %v6007_v34  ;;  %v5814_v27 = vld [vmem:[%s8010_s1 + $0xcec] ss:$16 sps:$4 sm:$0xff]   ;;  %v5812_v29 = vld [vmem:[%s8010_s1 + $0xce8] ss:$16 sps:$4 sm:$0xff]  }
 0x186   :  { %4209 = vmatprep.mubr.bf16.mxu1 %v6008_v35  ;;  %v5815_v34 = vld [vmem:[%s8010_s1 + $0xac8] ss:$16 sps:$4 sm:$0xff]  }
 0x187   :  { %4137 = vmatpush1.bf16.msra.mxu0 %v5719_v30  ;;  %v5817_v30 = vld [vmem:[%s8010_s1 + $0xacc] ss:$16 sps:$4 sm:$0xff]   ;;  %v5818_v35 = vld [vmem:[%s8010_s1 + $0xcc8] ss:$16 sps:$4 sm:$0xff]  }
 0x188   :  { %4180 = vmatpush1.bf16.msra.mxu1 %v5722_v31  ;;  %4138 = vmatprep.subr.bf16.mxu0 %v5727_v32  ;;  %v5820_v31 = vld [vmem:[%s8010_s1 + $0xccc] ss:$16 sps:$4 sm:$0xff]   ;;  %v6009_v32 = vld [vmem:[%s8011_s0 + $0x18] ss:$72 sps:$4 sm:$0xff]  }
 0x189   :  { %4181 = vmatprep.subr.bf16.mxu1 %v5730_v33  ;;  %v6010_v33 = vld [vmem:[%s8011_s0 + $0x20] ss:$72 sps:$4 sm:$0xff]  }
 0x18b   :  { %4139 = vmatpush1.bf16.msra.mxu0 %v5725_v36  ;;  %v5823_v36 = vld [vmem:[%s8010_s1 + $0xaac] ss:$16 sps:$4 sm:$0xff]  }
 0x18c   :  { %4182 = vmatpush1.bf16.msra.mxu1 %v5728_v37  ;;  %4140 = vmatprep.subr.bf16.mxu0 %v5733_v38  ;;  %v5826_v37 = vld [vmem:[%s8010_s1 + $0xcac] ss:$16 sps:$4 sm:$0xff]  }
 0x18d   :  { %4183 = vmatprep.subr.bf16.mxu1 %v5736_v39  ;;  %v6011_v38 = vld [vmem:[%s8011_s0 + $0x2c] ss:$72 sps:$4 sm:$0xff]  }
 0x18e   :  { %v6012_v39 = vld [vmem:[%s8011_s0 + $0x34] ss:$72 sps:$4 sm:$0xff]  }
 0x18f   :  { %4141 = vmatpush1.bf16.msra.mxu0 %v5731_v40  ;;  %v5821_v40 = vld [vmem:[%s8010_s1 + $0xaa8] ss:$16 sps:$4 sm:$0xff]  }
 0x190   :  { %4184 = vmatpush1.bf16.msra.mxu1 %v5734_v41  ;;  %4142 = vmatprep.subr.bf16.mxu0 %v5739_v42  ;;  %v5824_v41 = vld [vmem:[%s8010_s1 + $0xca8] ss:$16 sps:$4 sm:$0xff]   ;;  %v5829_v42 = vld [vmem:[%s8010_s1 + $0xa8c] ss:$16 sps:$4 sm:$0xff]  }
 0x191   :  { %4185 = vmatprep.subr.bf16.mxu1 %v5742_v43  ;;  %v5832_v43 = vld [vmem:[%s8010_s1 + $0xc8c] ss:$16 sps:$4 sm:$0xff]  }
 0x193   :  { %4143 = vmatpush1.bf16.msra.mxu0 %v5737_v44  ;;  %v7515_v44 = vpop.f32.mrf.mxu0 }
 0x194   :  { %4186 = vmatpush1.bf16.msra.mxu1 %v5740_v45  ;;  %4144 = vmatprep.subr.bf16.mxu0 %v5745_v46  ;;  %v5827_v45 = vld [vmem:[%s8010_s1 + $0xa88] ss:$16 sps:$4 sm:$0xff]  }
 0x195   :  { %4187 = vmatprep.subr.bf16.mxu1 %v5748_v47  ;;  %v5830_v46 = vld [vmem:[%s8010_s1 + $0xc88] ss:$16 sps:$4 sm:$0xff]   ;;  %v5835_v47 = vld [vmem:[%s8010_s1 + $0xa6c] ss:$16 sps:$4 sm:$0xff]  }
 0x197   :  { %4145 = vmatpush1.bf16.msra.mxu0 %v5743_v48  ;;  %v5838_v48 = vld [vmem:[%s8010_s1 + $0xc6c] ss:$16 sps:$4 sm:$0xff]  }
 0x198   :  { %4188 = vmatpush1.bf16.msra.mxu1 %v5746_v49  ;;  %4146 = vmatprep.subr.bf16.mxu0 %v5751_v50  ;;  %v7529_v49 = vpop.f32.mrf.mxu0  ;;  %v7531_v50 = vpop.f32.mrf.mxu1 }
 0x199   :  { %4189 = vmatprep.subr.bf16.mxu1 %v5754_v51  ;;  %v5833_v51 = vld [vmem:[%s8010_s1 + $0xa68] ss:$16 sps:$4 sm:$0xff]  }
 0x19b   :  { %4147 = vmatpush1.bf16.msra.mxu0 %v5749_v52  ;;  %v5836_v52 = vld [vmem:[%s8010_s1 + $0xc68] ss:$16 sps:$4 sm:$0xff]  }
 0x19c   :  { %4190 = vmatpush1.bf16.msra.mxu1 %v5752_v53  ;;  %4148 = vmatprep.subr.bf16.mxu0 %v5757_v54  ;;  %v5841_v53 = vld [vmem:[%s8010_s1 + $0xa4c] ss:$16 sps:$4 sm:$0xff]  }
 0x19d   :  { %4191 = vmatprep.subr.bf16.mxu1 %v5760_v55  ;;  %v5844_v54 = vld [vmem:[%s8010_s1 + $0xc4c] ss:$16 sps:$4 sm:$0xff]   ;;  %v7545_v55 = vpop.f32.mrf.mxu0 }
 0x19f   :  { %4149 = vmatpush1.bf16.msra.mxu0 %v5755_v56  ;;  %v7547_v56 = vpop.f32.mrf.mxu1 }
 0x1a0   :  { %4192 = vmatpush1.bf16.msra.mxu1 %v5758_v57  ;;  %4150 = vmatprep.subr.bf16.mxu0 %v5763_v58  ;;  %v5839_v57 = vld [vmem:[%s8010_s1 + $0xa48] ss:$16 sps:$4 sm:$0xff]  }
 0x1a1   :  { %4193 = vmatprep.subr.bf16.mxu1 %v5766_v59  ;;  %v5842_v58 = vld [vmem:[%s8010_s1 + $0xc48] ss:$16 sps:$4 sm:$0xff]   ;;  %v5847_v59 = vld [vmem:[%s8010_s1 + $0xa2c] ss:$16 sps:$4 sm:$0xff]  }
 0x1a3   :  { %4151 = vmatpush2.bf16.msra.mxu0 %v5761_v60  ;;  %v5850_v60 = vld [vmem:[%s8010_s1 + $0xc2c] ss:$16 sps:$4 sm:$0xff]  }
 0x1a4   :  { %4194 = vmatpush2.bf16.msra.mxu1 %v5764_v61  ;;  %4152 = vmatprep.subr.bf16.mxu0 %v5769_v62  ;;  %v7561_v61 = vpop.f32.mrf.mxu0  ;;  %v612_v62 = vlaneseq }
 0x1a5   :  { %4195 = vmatprep.subr.bf16.mxu1 %v5772_v63  ;;  %v7563_v63 = vpop.f32.mrf.mxu1 }
 0x1a7   :  { %4153 = vmatpush2.bf16.msra.mxu0 %v5767_v0  ;;  %v7565_v0 = vpop.f32.mrf.mxu0 }
 0x1a8   :  { %4196 = vmatpush2.bf16.msra.mxu1 %v5770_v1  ;;  %4154 = vmatprep.subr.bf16.mxu0 %v5775_v2  ;;  %v5845_v1 = vld [vmem:[%s8010_s1 + $0xa28] ss:$16 sps:$4 sm:$0xff]  }
 0x1a9   :  { %4197 = vmatprep.subr.bf16.mxu1 %v5778_v3  ;;  %v5848_v2 = vld [vmem:[%s8010_s1 + $0xc28] ss:$16 sps:$4 sm:$0xff]   ;;  %v5853_v3 = vld [vmem:[%s8010_s1 + $0xa0c] ss:$16 sps:$4 sm:$0xff]  }
 0x1ab   :  { %4155 = vmatpush2.bf16.msra.mxu0 %v5773_v4  ;;  %v5856_v4 = vld [vmem:[%s8010_s1 + $0xc0c] ss:$16 sps:$4 sm:$0xff]  }
 0x1ac   :  { %4198 = vmatpush2.bf16.msra.mxu1 %v5776_v5  ;;  %4156 = vmatprep.subr.bf16.mxu0 %v5781_v6  ;;  %v7579_v5 = vshrl.u32 %v612_v62, 7  ;;  %v7581_v6 = vpop.f32.mrf.mxu1 }
 0x1ad   :  { %4199 = vmatprep.subr.bf16.mxu1 %v5784_v7  ;;  %v7583_v7 = vpop.f32.mrf.mxu0 }
 0x1af   :  { %4157 = vmatpush2.bf16.msra.mxu0 %v5779_v8  ;;  %v5851_v8 = vld [vmem:[%s8010_s1 + $0xa08] ss:$16 sps:$4 sm:$0xff]  }
 0x1b0   :  { %4200 = vmatpush2.bf16.msra.mxu1 %v5782_v9  ;;  %4158 = vmatprep.subr.bf16.mxu0 %v5787_v10  ;;  %v5854_v9 = vld [vmem:[%s8010_s1 + $0xc08] ss:$16 sps:$4 sm:$0xff]   ;;  %v5859_v10 = vld [vmem:[%s8010_s1 + $0xbec] ss:$16 sps:$4 sm:$0xff]  }
 0x1b1   :  { %4201 = vmatprep.subr.bf16.mxu1 %v5790_v11  ;;  %v5862_v11 = vld [vmem:[%s8010_s1 + $0xdec] ss:$16 sps:$4 sm:$0xff]  }
 0x1b3   :  { %4159 = vmatpush2.bf16.msra.mxu0 %v5785_v12  ;;  %v7597_v12 = vpop.f32.mrf.mxu1 }
 0x1b4   :  { %4202 = vmatpush2.bf16.msra.mxu1 %v5788_v13  ;;  %4160 = vmatprep.subr.bf16.mxu0 %v5793_v14  ;;  %v7600_v13 = vsub.s32 0, %v7579_v5  ;;  %v7602_v14 = vpop.f32.mrf.mxu0 }
 0x1b5   :  { %4203 = vmatprep.subr.bf16.mxu1 %v5796_v15  ;;  %v5857_v15 = vld [vmem:[%s8010_s1 + $0xbe8] ss:$16 sps:$4 sm:$0xff]  }
 0x1b7   :  { %4161 = vmatpush2.bf16.msra.mxu0 %v5791_v16  ;;  %v5860_v16 = vld [vmem:[%s8010_s1 + $0xde8] ss:$16 sps:$4 sm:$0xff]  }
 0x1b8   :  { %4204 = vmatpush2.bf16.msra.mxu1 %v5794_v17  ;;  %4162 = vmatprep.subr.bf16.mxu0 %v5799_v18  ;;  %v7613_v17 = vld [vmem:[%s8012_s2] sm:$0x77]  ;;  %v5865_v18 = vld [vmem:[%s8010_s1 + $0xbcc] ss:$16 sps:$4 sm:$0xff]  }
 0x1b9   :  { %4205 = vmatprep.subr.bf16.mxu1 %v5802_v19  ;;  %v5868_v19 = vld [vmem:[%s8010_s1 + $0xdcc] ss:$16 sps:$4 sm:$0xff]  }
 0x1bb   :  { %4163 = vmatpush2.bf16.msra.mxu0 %v5797_v20  ;;  %v618_v20 = vsub.s32 4, %v7579_v5 }
 0x1bc   :  { %4206 = vmatpush2.bf16.msra.mxu1 %v5800_v21  ;;  %4164 = vmatprep.subr.bf16.mxu0 %v5805_v22  ;;  %v7622_v21 = vpop.f32.mrf.mxu1  ;;  %v615_v22 = vrot.slane %v7613_v17, %v7600_v13 }
 0x1bd   :  { %4207 = vmatprep.subr.bf16.mxu1 %v5808_v23  ;;  %v7626_v23 = vpop.f32.mrf.mxu0 }
 0x1bf   :  { %4165 = vmatpush2.bf16.msra.mxu0 %v5803_v24  ;;  %v5863_v24 = vld [vmem:[%s8010_s1 + $0xbc8] ss:$16 sps:$4 sm:$0xff]  }
 0x1c0   :  { %4208 = vmatpush2.bf16.msra.mxu1 %v5806_v25  ;;  %4220 = vmatprep.subr.bf16.mxu0 %v5811_v26  ;;  %v5866_v25 = vld [vmem:[%s8010_s1 + $0xdc8] ss:$16 sps:$4 sm:$0xff]   ;;  %v5871_v26 = vld [vmem:[%s8010_s1 + $0xbac] ss:$16 sps:$4 sm:$0xff]  }
 0x1c1   :  { %4263 = vmatprep.subr.bf16.mxu1 %v5814_v27  ;;  %v5874_v27 = vld [vmem:[%s8010_s1 + $0xdac] ss:$16 sps:$4 sm:$0xff]  }
 0x1c2   :  { %4167 = vmatmul.mubr.bf16.vlgmr.msra.gmra.mxu0 %v6009_v32  ;;  %v5869_v32 = vld [vmem:[%s8010_s1 + $0xba8] ss:$16 sps:$4 sm:$0xff]  }
 0x1c3   :  { %4210 = vmatmul.mubr.bf16.vlgmr.msra.gmra.mxu1 %v6010_v33  ;;  %4221 = vmatpush1.bf16.msra.mxu0 %v5809_v28  ;;  %v619_v28 = vrot.slane %v7613_v17, %v618_v20  ;;  %v5872_v33 = vld [vmem:[%s8010_s1 + $0xda8] ss:$16 sps:$4 sm:$0xff]  }
 0x1c4   :  { %4264 = vmatpush1.bf16.msra.mxu1 %v5812_v29  ;;  %4222 = vmatprep.subr.bf16.mxu0 %v5817_v30  ;;  %v7643_v29 = vpop.f32.mrf.mxu1  ;;  %v3824_v30 = vpop.f32.mrf.mxu0 }
 0x1c5   :  { %4265 = vmatprep.subr.bf16.mxu1 %v5820_v31  ;;  %4252 = vmatprep.mubr.bf16.mxu0 %v6011_v38  ;;  %v635_v31 = vrot.slane %v615_v22, %v7600_v13 }
 0x1c6   :  { %4295 = vmatprep.mubr.bf16.mxu1 %v6012_v39  ;;  %v3826_v38 = vpop.f32.mrf.mxu0 }
 0x1c7   :  { %4223 = vmatpush1.bf16.msra.mxu0 %v5815_v34  ;;  %v5877_v34 = vld [vmem:[%s8010_s1 + $0xb8c] ss:$16 sps:$4 sm:$0xff]   ;;  %v3653_v39 = vadd.f32 %v7515_v44, %v635_v31 }
 0x1c8   :  { %4266 = vmatpush1.bf16.msra.mxu1 %v5818_v35  ;;  %4224 = vmatprep.subr.bf16.mxu0 %v5823_v36  ;;  %v5880_v35 = vld [vmem:[%s8010_s1 + $0xd8c] ss:$16 sps:$4 sm:$0xff]   ;;  %v639_v36 = vrot.slane %v619_v28, %v7600_v13  ;;  %v7729_v28 = vsub.s32 1, %v7579_v5 }
 0x1c9   :  { %4267 = vmatprep.subr.bf16.mxu1 %v5826_v37  ;;  %v3787_v37 = vpop.f32.mrf.mxu1  ;;  %v5886_v44 = vld [vmem:[%s8010_s1 + $0xd6c] ss:$16 sps:$4 sm:$0xff]  }
 0x1cb   :  { %4225 = vmatpush1.bf16.msra.mxu0 %v5821_v40  ;;  %v3867_v40 = vpop.f32.mrf.mxu1 }
 0x1cc   :  { %4268 = vmatpush1.bf16.msra.mxu1 %v5824_v41  ;;  %4226 = vmatprep.subr.bf16.mxu0 %v5829_v42  ;;  %v5875_v41 = vld [vmem:[%s8010_s1 + $0xb88] ss:$16 sps:$4 sm:$0xff]  }
 0x1cd   :  { %4269 = vmatprep.subr.bf16.mxu1 %v5832_v43  ;;  %v5878_v42 = vld [vmem:[%s8010_s1 + $0xd88] ss:$16 sps:$4 sm:$0xff]   ;;  %v5883_v43 = vld [vmem:[%s8010_s1 + $0xb6c] ss:$16 sps:$4 sm:$0xff]  }
 0x1cf   :  { %4227 = vmatpush1.bf16.msra.mxu0 %v5827_v45  ;;  %v3655_v45 = vadd.f32 %v7529_v49, %v639_v36  ;;  %v5889_v49 = vld [vmem:[%s8010_s1 + $0xb4c] ss:$16 sps:$4 sm:$0xff]  }
 0x1d0   :  { %4270 = vmatpush1.bf16.msra.mxu1 %v5830_v46  ;;  %4228 = vmatprep.subr.bf16.mxu0 %v5835_v47  ;;  %v3828_v46 = vpop.f32.mrf.mxu0  ;;  %v3696_v47 = vadd.f32 %v7531_v50, %v3653_v39  ;;  %v5892_v50 = vld [vmem:[%s8010_s1 + $0xd4c] ss:$16 sps:$4 sm:$0xff]   ;;  %v5905_v39 = vld [vmem:[%s8010_s1 + $0xee8] ss:$16 sps:$4 sm:$0xff]  }
 0x1d1   :  { %4271 = vmatprep.subr.bf16.mxu1 %v5838_v48  ;;  %v3657_v48 = vadd.f32 %v7545_v55, %v635_v31  ;;  %v3698_v55 = vadd.f32 %v7547_v56, %v3655_v45  ;;  %v5916_v45 = vld [vmem:[%s8010_s1 + $0x10cc] ss:$16 sps:$4 sm:$0xff]  }
 0x1d3   :  { %4229 = vmatpush1.bf16.msra.mxu0 %v5833_v51  ;;  %v3869_v51 = vpop.f32.mrf.mxu1 }
 0x1d4   :  { %4272 = vmatpush1.bf16.msra.mxu1 %v5836_v52  ;;  %4230 = vmatprep.subr.bf16.mxu0 %v5841_v53  ;;  %v5881_v52 = vld [vmem:[%s8010_s1 + $0xb68] ss:$16 sps:$4 sm:$0xff]  }
 0x1d5   :  { %4273 = vmatprep.subr.bf16.mxu1 %v5844_v54  ;;  %v5884_v53 = vld [vmem:[%s8010_s1 + $0xd68] ss:$16 sps:$4 sm:$0xff]   ;;  %v3659_v54 = vadd.f32 %v7561_v61, %v639_v36  ;;  %v3871_v61 = vpop.f32.mrf.mxu1 }
 0x1d7   :  { %4231 = vmatpush1.bf16.msra.mxu0 %v5839_v57  ;;  %v3739_v57 = vadd.f32 %v7565_v0, %v3696_v47  ;;  %v3702_v56 = vadd.f32 %v7581_v6, %v3659_v54  ;;  %v5898_v0 = vld [vmem:[%s8010_s1 + $0xd2c] ss:$16 sps:$4 sm:$0xff]   ;;  %v3873_v6 = vpop.f32.mrf.mxu1  ;;  %v6013_v54 = vld [vmem:[%s8011_s0 + $0x28] ss:$72 sps:$4 sm:$0xff]  }
 0x1d8   :  { %4274 = vmatpush1.bf16.msra.mxu1 %v5842_v58  ;;  %4232 = vmatprep.subr.bf16.mxu0 %v5847_v59  ;;  %v3830_v58 = vpop.f32.mrf.mxu0  ;;  %v3700_v59 = vadd.f32 %v7563_v63, %v3657_v48  ;;  %v5895_v63 = vld [vmem:[%s8010_s1 + $0xb2c] ss:$16 sps:$4 sm:$0xff]  }
 0x1d9   :  { %4275 = vmatprep.subr.bf16.mxu1 %v5850_v60  ;;  %v3741_v60 = vadd.f32 %v7583_v7, %v3698_v55  ;;  %v3745_v7 = vadd.f32 %v7626_v23, %v3702_v56 }
 0x1da   :  { %v3910_v62 = vpop.f32.mrf.mxu0 }
 0x1db   :  { %4233 = vmatpush1.bf16.msra.mxu0 %v5845_v1  ;;  %v5887_v1 = vld [vmem:[%s8010_s1 + $0xb48] ss:$16 sps:$4 sm:$0xff]  }
 0x1dc   :  { %4276 = vmatpush1.bf16.msra.mxu1 %v5848_v2  ;;  %4234 = vmatprep.subr.bf16.mxu0 %v5853_v3  ;;  %v5890_v2 = vld [vmem:[%s8010_s1 + $0xd48] ss:$16 sps:$4 sm:$0xff]   ;;  %v3782_v3 = vadd.f32 %v7597_v12, %v3739_v57  ;;  %v5901_v12 = vld [vmem:[%s8010_s1 + $0xb0c] ss:$16 sps:$4 sm:$0xff]  }
 0x1dd   :  { %4277 = vmatprep.subr.bf16.mxu1 %v5856_v4  ;;  %v3743_v4 = vadd.f32 %v7602_v14, %v3700_v59  ;;  %v5904_v14 = vld [vmem:[%s8010_s1 + $0xd0c] ss:$16 sps:$4 sm:$0xff]   ;;  %v5914_v59 = vld [vmem:[%s8010_s1 + $0x10c8] ss:$16 sps:$4 sm:$0xff]  }
 0x1df   :  { %4235 = vmatpush1.bf16.msra.mxu0 %v5851_v8  ;;  %v3784_v8 = vadd.f32 %v7622_v21, %v3741_v60  ;;  %v3788_v21 = vadd.f32 %v3787_v37, %v3745_v7 }
 0x1e0   :  { %4278 = vmatpush1.bf16.msra.mxu1 %v5854_v9  ;;  %4236 = vmatprep.subr.bf16.mxu0 %v5859_v10  ;;  %v3825_v9 = vadd.f32 %v3824_v30, %v3782_v3  ;;  %v3912_v10 = vpop.f32.mrf.mxu0  ;;  %v5910_v30 = vld [vmem:[%s8010_s1 + $0x10ec] ss:$16 sps:$4 sm:$0xff]  }
 0x1e1   :  { %4279 = vmatprep.subr.bf16.mxu1 %v5862_v11  ;;  %v5893_v11 = vld [vmem:[%s8010_s1 + $0xb28] ss:$16 sps:$4 sm:$0xff]  }
 0x1e2   :  { %v3868_v22 = vadd.f32 %v3867_v40, %v3825_v9  ;;  %v5908_v40 = vld [vmem:[%s8010_s1 + $0x10e8] ss:$16 sps:$4 sm:$0xff]  }
 0x1e3   :  { %4237 = vmatpush2.bf16.msra.mxu0 %v5857_v15  ;;  %v5896_v15 = vld [vmem:[%s8010_s1 + $0xd28] ss:$16 sps:$4 sm:$0xff]  }
 0x1e4   :  { %4280 = vmatpush2.bf16.msra.mxu1 %v5860_v16  ;;  %4238 = vmatprep.subr.bf16.mxu0 %v5865_v18  ;;  %v3786_v16 = vadd.f32 %v7643_v29, %v3743_v4  ;;  %v3827_v18 = vadd.f32 %v3826_v38, %v3784_v8  ;;  %v5907_v29 = vld [vmem:[%s8010_s1 + $0xeec] ss:$16 sps:$4 sm:$0xff]  }
 0x1e5   :  { %4281 = vmatprep.subr.bf16.mxu1 %v5868_v19  ;;  %v3953_v19 = vpop.f32.mrf.mxu1  ;;  %v6015_v4 = vld [vmem:[%s8011_s0 + $0x3c] ss:$72 sps:$4 sm:$0xff]  }
 0x1e6   :  { %v3829_v23 = vadd.f32 %v3828_v46, %v3786_v16  ;;  %v3870_v31 = vadd.f32 %v3869_v51, %v3827_v18 }
 0x1e7   :  { %4239 = vmatpush2.bf16.msra.mxu0 %v5863_v24  ;;  %v3914_v24 = vpop.f32.mrf.mxu0 }
 0x1e8   :  { %4282 = vmatpush2.bf16.msra.mxu1 %v5866_v25  ;;  %4240 = vmatprep.subr.bf16.mxu0 %v5871_v26  ;;  %v5899_v25 = vld [vmem:[%s8010_s1 + $0xb08] ss:$16 sps:$4 sm:$0xff]   ;;  %v3872_v36 = vadd.f32 %v3871_v61, %v3829_v23  ;;  %v3913_v37 = vadd.f32 %v3912_v10, %v3870_v31 }
 0x1e9   :  { %4283 = vmatprep.subr.bf16.mxu1 %v5874_v27  ;;  %v5902_v26 = vld [vmem:[%s8010_s1 + $0xd08] ss:$16 sps:$4 sm:$0xff]   ;;  %v3831_v27 = vadd.f32 %v3830_v58, %v3788_v21  ;;  %v3916_v38 = vpop.f32.mrf.mxu0  ;;  %v5925_v21 = vld [vmem:[%s8010_s1 + $0xe8c] ss:$16 sps:$4 sm:$0xff]  }
 0x1ea   :  { %v3915_v47 = vadd.f32 %v3914_v24, %v3872_v36  ;;  %v5911_v58 = vld [vmem:[%s8010_s1 + $0xec8] ss:$16 sps:$4 sm:$0xff]  }
 0x1eb   :  { %4241 = vmatpush2.bf16.msra.mxu0 %v5869_v32  ;;  %v3911_v32 = vadd.f32 %v3910_v62, %v3868_v22  ;;  %v5917_v10 = vld [vmem:[%s8010_s1 + $0xea8] ss:$16 sps:$4 sm:$0xff]   ;;  %v5928_v22 = vld [vmem:[%s8010_s1 + $0x108c] ss:$16 sps:$4 sm:$0xff]  }
 0x1ec   :  { %4284 = vmatpush2.bf16.msra.mxu1 %v5872_v33  ;;  %4242 = vmatprep.subr.bf16.mxu0 %v5877_v34  ;;  %v3955_v33 = vpop.f32.mrf.mxu1  ;;  %v7738_v34 = vsub.s32 2, %v7579_v5 }
 0x1ed   :  { %4285 = vmatprep.subr.bf16.mxu1 %v5880_v35  ;;  %v4422_v35 = vsub.s32 5, %v7579_v5  ;;  %v3954_v46 = vadd.f32 %v3953_v19, %v3911_v32  ;;  %v3956_v55 = vadd.f32 %v3955_v33, %v3913_v37  ;;  %v5926_v32 = vld [vmem:[%s8010_s1 + $0x1088] ss:$16 sps:$4 sm:$0xff]   ;;  %v5931_v37 = vld [vmem:[%s8010_s1 + $0xe6c] ss:$16 sps:$4 sm:$0xff]  }
 0x1ee   :  { %v3957_v48 = vpop.f32.mrf.mxu1 }
 0x1ef   :  { %4243 = vmatpush2.bf16.msra.mxu0 %v5875_v41  ;;  %v3874_v41 = vadd.f32 %v3873_v6, %v3831_v27  ;;  %v3958_v56 = vadd.f32 %v3957_v48, %v3915_v47  ;;  %v5940_v47 = vld [vmem:[%s8010_s1 + $0x104c] ss:$16 sps:$4 sm:$0xff]   ;;  %v5935_v48 = vld [vmem:[%s8010_s1 + $0xe48] ss:$16 sps:$4 sm:$0xff]  }
 0x1f0   :  { %4286 = vmatpush2.bf16.msra.mxu1 %v5878_v42  ;;  %4244 = vmatprep.subr.bf16.mxu0 %v5883_v43  ;;  %v4419_v42 = vrot.slane %v7613_v17, %v7729_v28  ;;  %v4466_v43 = vsub.s32 6, %v7579_v5 }
 0x1f1   :  { %4287 = vmatprep.subr.bf16.mxu1 %v5886_v44  ;;  %v5913_v44 = vld [vmem:[%s8010_s1 + $0xecc] ss:$16 sps:$4 sm:$0xff]   ;;  %v3917_v51 = vadd.f32 %v3916_v38, %v3874_v41 }
 0x1f2   :  { %v4439_v60 = vrot.slane %v4419_v42, %v7729_v28  ;;  %v4467_v62 = vrot.slane %v7613_v17, %v4466_v43  ;;  %v5934_v38 = vld [vmem:[%s8010_s1 + $0x106c] ss:$16 sps:$4 sm:$0xff]   ;;  %v5929_v42 = vld [vmem:[%s8010_s1 + $0xe68] ss:$16 sps:$4 sm:$0xff]  }
 0x1f3   :  { %4245 = vmatpush2.bf16.msra.mxu0 %v5881_v52 }
 0x1f4   :  { %4288 = vmatpush2.bf16.msra.mxu1 %v5884_v53  ;;  %4246 = vmatprep.subr.bf16.mxu0 %v5889_v49  ;;  %v4463_v53 = vrot.slane %v7613_v17, %v7738_v34  ;;  %v6014_v49 = vld [vmem:[%s8011_s0 + $0x30] ss:$72 sps:$4 sm:$0xff]   ;;  %v4487_v18 = vrot.slane %v4467_v62, %v7738_v34 }
 0x1f5   :  { %4289 = vmatprep.subr.bf16.mxu1 %v5892_v50  ;;  %v4423_v50 = vrot.slane %v7613_v17, %v4422_v35  ;;  %v6016_v17 = vld [vmem:[%s8011_s0 + $0x44] ss:$72 sps:$4 sm:$0xff]   ;;  %v5956_v62 = vld [vmem:[%s8010_s1 + $0x11e8] ss:$16 sps:$4 sm:$0xff]  }
 0x1f6   :  { %v4483_v8 = vrot.slane %v4463_v53, %v7738_v34  ;;  %v5946_v53 = vld [vmem:[%s8010_s1 + $0x102c] ss:$16 sps:$4 sm:$0xff]  }
 0x1f7   :  { %4247 = vmatpush2.bf16.msra.mxu0 %v5887_v1  ;;  %v5919_v1 = vld [vmem:[%s8010_s1 + $0xeac] ss:$16 sps:$4 sm:$0xff]   ;;  %v4443_v9 = vrot.slane %v4423_v50, %v7729_v28 }
 0x1f8   :  { %4290 = vmatpush2.bf16.msra.mxu1 %v5890_v2  ;;  %4248 = vmatprep.subr.bf16.mxu0 %v5895_v63  ;;  %v5922_v2 = vld [vmem:[%s8010_s1 + $0x10ac] ss:$16 sps:$4 sm:$0xff]   ;;  %v3959_v63 = vpop.f32.mrf.mxu1 }
 0x1f9   :  { %4291 = vmatprep.subr.bf16.mxu1 %v5898_v0  ;;  %v3960_v7 = vadd.f32 %v3959_v63, %v3917_v51  ;;  %v5938_v51 = vld [vmem:[%s8010_s1 + $0x1048] ss:$16 sps:$4 sm:$0xff]   ;;  %v5949_v50 = vld [vmem:[%s8010_s1 + $0xe0c] ss:$16 sps:$4 sm:$0xff]  }
 0x1fa   :  { %v5962_v63 = vld [vmem:[%s8010_s1 + $0x11c8] ss:$16 sps:$4 sm:$0xff]  }
 0x1fb   :  { %4249 = vmatpush2.bf16.msra.mxu0 %v5893_v11 }
 0x1fc   :  { %4292 = vmatpush2.bf16.msra.mxu1 %v5896_v15  ;;  %4250 = vmatprep.subr.bf16.mxu0 %v5901_v12 }
 0x1fd   :  { %4293 = vmatprep.subr.bf16.mxu1 %v5904_v14  ;;  %v5920_v14 = vld [vmem:[%s8010_s1 + $0x10a8] ss:$16 sps:$4 sm:$0xff]  }
 0x1ff   :  { %4251 = vmatpush2.bf16.msra.mxu0 %v5899_v25 }
 0x200   :  { %4294 = vmatpush2.bf16.msra.mxu1 %v5902_v26  ;;  %4306 = vmatprep.subr.bf16.mxu0 %v5907_v29  ;;  %v5923_v29 = vld [vmem:[%s8010_s1 + $0xe88] ss:$16 sps:$4 sm:$0xff]  }
 0x201   :  { %4349 = vmatprep.subr.bf16.mxu1 %v5910_v30 }
 0x202   :  { %v3996_v52 = vpop.f32.mrf.mxu0  ;;  %4253 = vmatmul.mubr.bf16.vlgmr.msra.gmra.mxu0 %v6013_v54  ;;  %v5941_v54 = vld [vmem:[%s8010_s1 + $0xe28] ss:$16 sps:$4 sm:$0xff]  }
 0x203   :  { %4296 = vmatmul.mubr.bf16.vlgmr.msra.gmra.mxu1 %v6014_v49  ;;  %v3997_v57 = vadd.f32 %v3996_v52, %v3954_v46  ;;  %4307 = vmatpush1.bf16.msra.mxu0 %v5905_v39  ;;  %v5937_v46 = vld [vmem:[%s8010_s1 + $0xe4c] ss:$16 sps:$4 sm:$0xff]   ;;  %v5944_v49 = vld [vmem:[%s8010_s1 + $0x1028] ss:$16 sps:$4 sm:$0xff]  }
 0x204   :  { %4350 = vmatpush1.bf16.msra.mxu1 %v5908_v40  ;;  %v3998_v61 = vpop.f32.mrf.mxu0  ;;  %4308 = vmatprep.subr.bf16.mxu0 %v5913_v44  ;;  %v5932_v44 = vld [vmem:[%s8010_s1 + $0x1068] ss:$16 sps:$4 sm:$0xff]   ;;  %v5943_v52 = vld [vmem:[%s8010_s1 + $0xe2c] ss:$16 sps:$4 sm:$0xff]  }
 0x205   :  { %4351 = vmatprep.subr.bf16.mxu1 %v5916_v45  ;;  %vm4392_vm0 = vcmp.gt.f32.partialorder %v3997_v57, 0.0  ;;  %v4400_v0 = vmul.f32 0.2, %v3997_v57  ;;  %v3999_v3 = vadd.f32 %v3998_v61, %v3956_v55  ;;  %4338 = vmatprep.mubr.bf16.mxu0 %v6015_v4  ;;  %v5952_v55 = vld [vmem:[%s8010_s1 + $0x100c] ss:$16 sps:$4 sm:$0xff]  }
 0x206   :  { %4381 = vmatprep.mubr.bf16.mxu1 %v6016_v17  ;;  %v4000_v6 = vpop.f32.mrf.mxu0  ;;  %v5953_v61 = vld [vmem:[%s8010_s1 + $0xfe8] ss:$16 sps:$4 sm:$0xff]  }
 0x207   :  { %v4408_v11 = vsel %vm4392_vm0, %v3997_v57, %v4400_v0  ;;  %vm4393_vm1 = vcmp.gt.f32.partialorder %v3999_v3, 0.0  ;;  %v4401_v15 = vmul.f32 0.2, %v3999_v3  ;;  %v4001_v12 = vadd.f32 %v4000_v6, %v3958_v56  ;;  %4309 = vmatpush1.bf16.msra.mxu0 %v5911_v58  ;;  %v5947_v57 = vld [vmem:[%s8010_s1 + $0xe08] ss:$16 sps:$4 sm:$0xff]  }
 0x208   :  { %4352 = vmatpush1.bf16.msra.mxu1 %v5914_v59  ;;  %v4452_v16 = vmul.f32 %v4439_v60, %v4408_v11  ;;  %v4002_v19 = vpop.f32.mrf.mxu0  ;;  %4310 = vmatprep.subr.bf16.mxu0 %v5919_v1  ;;  %v5950_v58 = vld [vmem:[%s8010_s1 + $0x1008] ss:$16 sps:$4 sm:$0xff]   ;;  %v5955_v59 = vld [vmem:[%s8010_s1 + $0xfec] ss:$16 sps:$4 sm:$0xff]  }
 0x209   :  { %4353 = vmatprep.subr.bf16.mxu1 %v5922_v2  ;;  %v4409_v23 = vsel %vm4393_vm1, %v3999_v3, %v4401_v15  ;;  %vm4396_vm2 = vcmp.gt.f32.partialorder %v4001_v12, 0.0  ;;  %v4404_v24 = vmul.f32 0.2, %v4001_v12  ;;  %v4003_v25 = vadd.f32 %v4002_v19, %v3960_v7  ;;  %v5961_v1 = vld [vmem:[%s8010_s1 + $0xfcc] ss:$16 sps:$4 sm:$0xff]  }
 0x20a   :  { %v4496_v26 = vadd.f32 %v4483_v8, %v4452_v16  ;;  %v4453_v27 = vmul.f32 %v4443_v9, %v4409_v23  ;;  %v5964_v2 = vld [vmem:[%s8010_s1 + $0x11cc] ss:$16 sps:$4 sm:$0xff]   ;;  %v5959_v56 = vld [vmem:[%s8010_s1 + $0xfc8] ss:$16 sps:$4 sm:$0xff]  }
 0x20b   :  { %v4412_v30 = vsel %vm4396_vm2, %v4001_v12, %v4404_v24  ;;  %vm4397_vm3 = vcmp.gt.f32.partialorder %v4003_v25, 0.0  ;;  %v4405_v31 = vmul.f32 0.2, %v4003_v25  ;;  %4311 = vmatpush1.bf16.msra.mxu0 %v5917_v10  ;;  %v5967_v0 = vld [vmem:[%s8010_s1 + $0xfac] ss:$16 sps:$4 sm:$0xff]  }
 0x20c   :  { %4354 = vmatpush1.bf16.msra.mxu1 %v5920_v14  ;;  %4504 = vst [vmem:[%s8013_s3] sm:$0xff] %v4496_v26  ;;  %v4497_v33 = vadd.f32 %v4487_v18, %v4453_v27  ;;  %v4456_v36 = vmul.f32 %v4439_v60, %v4412_v30  ;;  %4312 = vmatprep.subr.bf16.mxu0 %v5925_v21  ;;  %v5958_v60 = vld [vmem:[%s8010_s1 + $0x11ec] ss:$16 sps:$4 sm:$0xff]   ;;  %v5965_v4 = vld [vmem:[%s8010_s1 + $0xfa8] ss:$16 sps:$4 sm:$0xff]  }
 0x20d   :  { %4355 = vmatprep.subr.bf16.mxu1 %v5928_v22  ;;  %v4413_v39 = vsel %vm4397_vm3, %v4003_v25, %v4405_v31  ;;  %v5970_v3 = vld [vmem:[%s8010_s1 + $0x11ac] ss:$16 sps:$4 sm:$0xff]   ;;  %v5968_v17 = vld [vmem:[%s8010_s1 + $0x11a8] ss:$16 sps:$4 sm:$0xff]  }
 0x20e   :  { %4505 = vst [vmem:[%s8013_s3 + $0x8] sm:$0xff] %v4497_v33  ;;  %v4500_v40 = vadd.f32 %v4483_v8, %v4456_v36  ;;  %v4457_v41 = vmul.f32 %v4443_v9, %v4413_v39  ;;  %v5973_v7 = vld [vmem:[%s8010_s1 + $0xf8c] ss:$16 sps:$4 sm:$0xff]   ;;  %v5971_v9 = vld [vmem:[%s8010_s1 + $0xf88] ss:$16 sps:$4 sm:$0xff]  }
 0x20f   :  { %4313 = vmatpush1.bf16.msra.mxu0 %v5923_v29  ;;  %v5976_v8 = vld [vmem:[%s8010_s1 + $0x118c] ss:$16 sps:$4 sm:$0xff]   ;;  %v5974_v6 = vld [vmem:[%s8010_s1 + $0x1188] ss:$16 sps:$4 sm:$0xff]  }
 0x210   :  { %4356 = vmatpush1.bf16.msra.mxu1 %v5926_v32  ;;  %4508 = vst [vmem:[%s8013_s3 + $0x20] sm:$0xff] %v4500_v40  ;;  %v4501_v45 = vadd.f32 %v4487_v18, %v4457_v41  ;;  %4314 = vmatprep.subr.bf16.mxu0 %v5931_v37  ;;  %v5979_v10 = vld [vmem:[%s8010_s1 + $0xf6c] ss:$16 sps:$4 sm:$0xff]   ;;  %v5977_v15 = vld [vmem:[%s8010_s1 + $0xf68] ss:$16 sps:$4 sm:$0xff]   ;;  %v4039_v32 = vpop.f32.mrf.mxu1 }
 0x211   :  { %4357 = vmatprep.subr.bf16.mxu1 %v5934_v38  ;;  %v5982_v11 = vld [vmem:[%s8010_s1 + $0x116c] ss:$16 sps:$4 sm:$0xff]   ;;  %v5980_v12 = vld [vmem:[%s8010_s1 + $0x1168] ss:$16 sps:$4 sm:$0xff]  }
 0x212   :  { %4509 = vst [vmem:[%s8013_s3 + $0x28] sm:$0xff] %v4501_v45  ;;  %v5985_v14 = vld [vmem:[%s8010_s1 + $0xf4c] ss:$16 sps:$4 sm:$0xff]   ;;  %v5983_v18 = vld [vmem:[%s8010_s1 + $0xf48] ss:$16 sps:$4 sm:$0xff]   ;;  %v4041_v33 = vpop.f32.mrf.mxu1 }
 0x213   :  { %4315 = vmatpush1.bf16.msra.mxu0 %v5929_v42  ;;  %v5988_v16 = vld [vmem:[%s8010_s1 + $0x114c] ss:$16 sps:$4 sm:$0xff]   ;;  %v5986_v19 = vld [vmem:[%s8010_s1 + $0x1148] ss:$16 sps:$4 sm:$0xff]  }
 0x214   :  { %4358 = vmatpush1.bf16.msra.mxu1 %v5932_v44  ;;  %4316 = vmatprep.subr.bf16.mxu0 %v5937_v46  ;;  %v5991_v21 = vld [vmem:[%s8010_s1 + $0xf2c] ss:$16 sps:$4 sm:$0xff]   ;;  %v5989_v23 = vld [vmem:[%s8010_s1 + $0xf28] ss:$16 sps:$4 sm:$0xff]   ;;  %v4043_v36 = vpop.f32.mrf.mxu1 }
 0x215   :  { %4359 = vmatprep.subr.bf16.mxu1 %v5940_v47  ;;  %v5994_v22 = vld [vmem:[%s8010_s1 + $0x112c] ss:$16 sps:$4 sm:$0xff]   ;;  %v5992_v24 = vld [vmem:[%s8010_s1 + $0x1128] ss:$16 sps:$4 sm:$0xff]  }
 0x216   :  { %v5997_v25 = vld [vmem:[%s8010_s1 + $0xf0c] ss:$16 sps:$4 sm:$0xff]   ;;  %v5995_v27 = vld [vmem:[%s8010_s1 + $0xf08] ss:$16 sps:$4 sm:$0xff]   ;;  %v4045_v37 = vpop.f32.mrf.mxu1 }
 0x217   :  { %4317 = vmatpush1.bf16.msra.mxu0 %v5935_v48  ;;  %v6000_v26 = vld [vmem:[%s8010_s1 + $0x110c] ss:$16 sps:$4 sm:$0xff]   ;;  %v5998_v29 = vld [vmem:[%s8010_s1 + $0x1108] ss:$16 sps:$4 sm:$0xff]  }
 0x218   :  { %4360 = vmatpush1.bf16.msra.mxu1 %v5938_v51  ;;  %4318 = vmatprep.subr.bf16.mxu0 %v5943_v52  ;;  %v6017_v30 = vld [vmem:[%s8011_s0 + $0x38] ss:$72 sps:$4 sm:$0xff]   ;;  %v7975_v45 = vld [vmem:[%s8012_s2 + $0x8] sm:$0x77] }
 0x219   :  { %4361 = vmatprep.subr.bf16.mxu1 %v5946_v53  ;;  %v6018_v31 = vld [vmem:[%s8011_s0 + $0x40] ss:$72 sps:$4 sm:$0xff]   ;;  %v623_v52 = vrot.slane %v7975_v45, %v7600_v13  ;;  %v627_v53 = vrot.slane %v7975_v45, %v618_v20 }
 0x21b   :  { %4319 = vmatpush1.bf16.msra.mxu0 %v5941_v54 }
 0x21c   :  { %4362 = vmatpush1.bf16.msra.mxu1 %v5944_v49  ;;  %4320 = vmatprep.subr.bf16.mxu0 %v5949_v50  ;;  %v643_v50 = vrot.slane %v623_v52, %v7600_v13 }
 0x21d   :  { %4363 = vmatprep.subr.bf16.mxu1 %v5952_v55  ;;  %v647_v55 = vrot.slane %v627_v53, %v7600_v13 }
 0x21f   :  { %4321 = vmatpush1.bf16.msra.mxu0 %v5947_v57  ;;  %v4046_v20 = vadd.f32 %v4045_v37, %v647_v55 }
 0x220   :  { %4364 = vmatpush1.bf16.msra.mxu1 %v5950_v58  ;;  %4322 = vmatprep.subr.bf16.mxu0 %v5955_v59  ;;  %v4040_v59 = vadd.f32 %v4039_v32, %v643_v50  ;;  %v4427_v32 = vrot.slane %v7975_v45, %v7729_v28 }
 0x221   :  { %4365 = vmatprep.subr.bf16.mxu1 %v5958_v60  ;;  %v4042_v60 = vadd.f32 %v4041_v33, %v647_v55 }
 0x223   :  { %4323 = vmatpush2.bf16.msra.mxu0 %v5953_v61 }
 0x224   :  { %4366 = vmatpush2.bf16.msra.mxu1 %v5956_v62  ;;  %4324 = vmatprep.subr.bf16.mxu0 %v5961_v1 }
 0x225   :  { %4367 = vmatprep.subr.bf16.mxu1 %v5964_v2  ;;  %v4044_v2 = vadd.f32 %v4043_v36, %v643_v50 }
 0x227   :  { %4325 = vmatpush2.bf16.msra.mxu0 %v5959_v56 }
 0x228   :  { %4368 = vmatpush2.bf16.msra.mxu1 %v5962_v63  ;;  %4326 = vmatprep.subr.bf16.mxu0 %v5967_v0 }
 0x229   :  { %4369 = vmatprep.subr.bf16.mxu1 %v5970_v3 }
 0x22b   :  { %4327 = vmatpush2.bf16.msra.mxu0 %v5965_v4 }
 0x22c   :  { %4370 = vmatpush2.bf16.msra.mxu1 %v5968_v17  ;;  %4328 = vmatprep.subr.bf16.mxu0 %v5973_v7 }
 0x22d   :  { %4371 = vmatprep.subr.bf16.mxu1 %v5976_v8 }
 0x22f   :  { %4329 = vmatpush2.bf16.msra.mxu0 %v5971_v9 }
 0x230   :  { %4372 = vmatpush2.bf16.msra.mxu1 %v5974_v6  ;;  %4330 = vmatprep.subr.bf16.mxu0 %v5979_v10 }
 0x231   :  { %4373 = vmatprep.subr.bf16.mxu1 %v5982_v11 }
 0x233   :  { %4331 = vmatpush2.bf16.msra.mxu0 %v5977_v15 }
 0x234   :  { %4374 = vmatpush2.bf16.msra.mxu1 %v5980_v12  ;;  %4332 = vmatprep.subr.bf16.mxu0 %v5985_v14 }
 0x235   :  { %4375 = vmatprep.subr.bf16.mxu1 %v5988_v16 }
 0x237   :  { %4333 = vmatpush2.bf16.msra.mxu0 %v5983_v18 }
 0x238   :  { %4376 = vmatpush2.bf16.msra.mxu1 %v5986_v19  ;;  %4334 = vmatprep.subr.bf16.mxu0 %v5991_v21 }
 0x239   :  { %4377 = vmatprep.subr.bf16.mxu1 %v5994_v22 }
 0x23b   :  { %4335 = vmatpush2.bf16.msra.mxu0 %v5989_v23 }
 0x23c   :  { %4378 = vmatpush2.bf16.msra.mxu1 %v5992_v24  ;;  %4336 = vmatprep.subr.bf16.mxu0 %v5997_v25 }
 0x23d   :  { %4379 = vmatprep.subr.bf16.mxu1 %v6000_v26 }
 0x23f   :  { %4337 = vmatpush2.bf16.msra.mxu0 %v5995_v27 }
 0x240   :  { %4380 = vmatpush2.bf16.msra.mxu1 %v5998_v29 }
 0x242   :  { %4339 = vmatmul.mubr.bf16.vlgmr.msra.gmra.mxu0 %v6017_v30  ;;  %v4082_v38 = vpop.f32.mrf.mxu0 }
 0x243   :  { %4382 = vmatmul.mubr.bf16.vlgmr.msra.gmra.mxu1 %v6018_v31  ;;  %v4125_v39 = vpop.f32.mrf.mxu1  ;;  %v4083_v61 = vadd.f32 %v4082_v38, %v4040_v59  ;;  %v4471_v38 = vrot.slane %v7975_v45, %v7738_v34 }
 0x244   :  { %v4084_v40 = vpop.f32.mrf.mxu0 }
 0x245   :  { %v4127_v41 = vpop.f32.mrf.mxu1  ;;  %v4085_v56 = vadd.f32 %v4084_v40, %v4042_v60  ;;  %v4126_v3 = vadd.f32 %v4125_v39, %v4083_v61  ;;  %v4491_v55 = vrot.slane %v4471_v38, %v7738_v34 }
 0x246   :  { %v4086_v42 = vpop.f32.mrf.mxu0 }
 0x247   :  { %v4129_v44 = vpop.f32.mrf.mxu1  ;;  %v4087_v4 = vadd.f32 %v4086_v42, %v4044_v2  ;;  %v4128_v17 = vadd.f32 %v4127_v41, %v4085_v56  ;;  %v4431_v41 = vrot.slane %v7975_v45, %v4422_v35 }
 0x248   :  { %v4088_v46 = vpop.f32.mrf.mxu0 }
 0x249   :  { %v4131_v47 = vpop.f32.mrf.mxu1  ;;  %v4089_v8 = vadd.f32 %v4088_v46, %v4046_v20  ;;  %v4130_v13 = vadd.f32 %v4129_v44, %v4087_v4  ;;  %v4451_v35 = vrot.slane %v4431_v41, %v7729_v28 }
 0x24b   :  { %v4132_v12 = vadd.f32 %v4131_v47, %v4089_v8  ;;  %v4447_v47 = vrot.slane %v4427_v32, %v7729_v28 }
 0x282   :  { %v4168_v48 = vpop.f32.mrf.mxu0 }
 0x283   :  { %v4211_v51 = vpop.f32.mrf.mxu1  ;;  %v4169_v7 = vadd.f32 %v4168_v48, %v4126_v3  ;;  %v4475_v48 = vrot.slane %v7975_v45, %v4466_v43 }
 0x284   :  { %v4170_v54 = vpop.f32.mrf.mxu0 }
 0x285   :  { %v4213_v49 = vpop.f32.mrf.mxu1  ;;  %v4171_v10 = vadd.f32 %v4170_v54, %v4128_v17  ;;  %v4212_v11 = vadd.f32 %v4211_v51, %v4169_v7  ;;  %v4495_v5 = vrot.slane %v4475_v48, %v7738_v34 }
 0x286   :  { %v4172_v57 = vpop.f32.mrf.mxu0 }
 0x287   :  { %v4215_v58 = vpop.f32.mrf.mxu1  ;;  %v4173_v15 = vadd.f32 %v4172_v57, %v4130_v13  ;;  %v4214_v18 = vadd.f32 %v4213_v49, %v4171_v10 }
 0x288   :  { %v4174_v62 = vpop.f32.mrf.mxu0 }
 0x289   :  { %v4217_v1 = vpop.f32.mrf.mxu1  ;;  %v4175_v21 = vadd.f32 %v4174_v62, %v4132_v12  ;;  %v4216_v22 = vadd.f32 %v4215_v58, %v4173_v15 }
 0x28b   :  { %v4218_v29 = vadd.f32 %v4217_v1, %v4175_v21 }
 0x2c2   :  { %v4254_v63 = vpop.f32.mrf.mxu0 }
 0x2c3   :  { %v4297_v0 = vpop.f32.mrf.mxu1  ;;  %v4255_v19 = vadd.f32 %v4254_v63, %v4212_v11 }
 0x2c4   :  { %v4256_v9 = vpop.f32.mrf.mxu0 }
 0x2c5   :  { %v4299_v6 = vpop.f32.mrf.mxu1  ;;  %v4257_v23 = vadd.f32 %v4256_v9, %v4214_v18  ;;  %v4298_v26 = vadd.f32 %v4297_v0, %v4255_v19 }
 0x2c6   :  { %v4258_v14 = vpop.f32.mrf.mxu0 }
 0x2c7   :  { %v4301_v16 = vpop.f32.mrf.mxu1  ;;  %v4259_v27 = vadd.f32 %v4258_v14, %v4216_v22  ;;  %v4300_v33 = vadd.f32 %v4299_v6, %v4257_v23 }
 0x2c8   :  { %v4260_v24 = vpop.f32.mrf.mxu0 }
 0x2c9   :  { %v4303_v25 = vpop.f32.mrf.mxu1  ;;  %v4261_v37 = vadd.f32 %v4260_v24, %v4218_v29  ;;  %v4302_v42 = vadd.f32 %v4301_v16, %v4259_v27 }
 0x2cb   :  { %v4304_v50 = vadd.f32 %v4303_v25, %v4261_v37 }
 0x302   :  { %v4340_v30 = vpop.f32.mrf.mxu0 }
 0x303   :  { %v4383_v31 = vpop.f32.mrf.mxu1  ;;  %v4341_v36 = vadd.f32 %v4340_v30, %v4298_v26 }
 0x304   :  { %v4342_v39 = vpop.f32.mrf.mxu0 }
 0x305   :  { %v4385_v40 = vpop.f32.mrf.mxu1  ;;  %v4384_v44 = vadd.f32 %v4383_v31, %v4341_v36  ;;  %v4343_v46 = vadd.f32 %v4342_v39, %v4300_v33 }
 0x306   :  { %v4344_v51 = vpop.f32.mrf.mxu0 }
 0x307   :  { %vm4394_vm4 = vcmp.gt.f32.partialorder %v4384_v44, 0.0  ;;  %v4402_v52 = vmul.f32 0.2, %v4384_v44  ;;  %v4386_v53 = vadd.f32 %v4385_v40, %v4343_v46  ;;  %v4345_v54 = vadd.f32 %v4344_v51, %v4302_v42  ;;  %v4387_v49 = vpop.f32.mrf.mxu1 }
 0x308   :  { %v4346_v57 = vpop.f32.mrf.mxu0 }
 0x309   :  { %v4410_v58 = vsel %vm4394_vm4, %v4384_v44, %v4402_v52  ;;  %vm4395_vm5 = vcmp.gt.f32.partialorder %v4386_v53, 0.0  ;;  %v4403_v59 = vmul.f32 0.2, %v4386_v53  ;;  %v4388_v60 = vadd.f32 %v4387_v49, %v4345_v54  ;;  %v4389_v1 = vpop.f32.mrf.mxu1 }
 0x30a   :  { %v4454_v61 = vmul.f32 %v4447_v47, %v4410_v58  ;;  %v4347_v43 = vadd.f32 %v4346_v57, %v4304_v50 }
 0x30b   :  { %v4411_v45 = vsel %vm4395_vm5, %v4386_v53, %v4403_v59  ;;  %vm4398_vm6 = vcmp.gt.f32.partialorder %v4388_v60, 0.0  ;;  %v4406_v62 = vmul.f32 0.2, %v4388_v60 }
 0x30c   :  { %v4498_v2 = vadd.f32 %v4491_v55, %v4454_v61  ;;  %v4455_v56 = vmul.f32 %v4451_v35, %v4411_v45  ;;  %v4390_v63 = vadd.f32 %v4389_v1, %v4347_v43 }
 0x30d   :  { %v4414_v0 = vsel %vm4398_vm6, %v4388_v60, %v4406_v62 }
 0x30e   :  { %4506 = vst [vmem:[%s8013_s3 + $0x10] sm:$0xff] %v4498_v2  ;;  %v4499_v28 = vadd.f32 %v4495_v5, %v4455_v56  ;;  %v4458_v3 = vmul.f32 %v4447_v47, %v4414_v0  ;;  %vm4399_vm7 = vcmp.gt.f32.partialorder %v4390_v63, 0.0  ;;  %v4407_v4 = vmul.f32 0.2, %v4390_v63 }
 0x310   :  { %4507 = vst [vmem:[%s8013_s3 + $0x18] sm:$0xff] %v4499_v28  ;;  %v4502_v34 = vadd.f32 %v4491_v55, %v4458_v3  ;;  %v4415_v20 = vsel %vm4399_vm7, %v4390_v63, %v4407_v4 }
 0x311   :  { %v4459_v17 = vmul.f32 %v4451_v35, %v4415_v20 }
 0x312   :  { %4510 = vst [vmem:[%s8013_s3 + $0x30] sm:$0xff] %v4502_v34 }
 0x313   :  { %v4503_v7 = vadd.f32 %v4495_v5, %v4459_v17 }
 0x315   :  { %4511 = vst [vmem:[%s8013_s3 + $0x38] sm:$0xff] %v4503_v7 }

</bundles_post_ra>
